<compile_context>
chip_gen: v7x
topology: tpu7x:2x2x1
jax: 0.10.0
libtpu: 0.0.40
codegen_flags: <defaults>
</compile_context>

<pallas_src>
import functools

import jax
import jax.numpy as jnp
from jax import lax
from jax.experimental import pallas as pl
from jax.experimental.pallas import tpu as pltpu


# ---------------------------------------------------------------------------
# Fused Pallas kernel (one batch element per grid step)
# ---------------------------------------------------------------------------
def _convgru_kernel(x_ref, h_ref, wx_ref, wh_ref, woh_ref,
                    bx_ref, bh_ref, boh_ref, out_ref,
                    xhalo_ref, hhalo_ref, *, H, W, kin, krec, crec):
    f32 = jnp.float32
    HW = H * W
    pin, prec = kin // 2, krec // 2

    # Column index of each output row; shared by every horizontal-wrap mask.
    j_idx = lax.broadcasted_iota(jnp.int32, (HW, 1), 0) % W
    djs = {kw - pin for kw in range(kin)} | {kw - prec for kw in range(krec)}
    masks = {dj: ((j_idx + dj >= 0) & (j_idx + dj < W)).astype(f32)
             for dj in sorted(djs) if dj != 0}

    def conv_from_halo(halo_ref, k, pad, w_ref, b_ref, ncols):
        """sum over taps:  halo[row-window] @ w[tap]  -> (HW, ncols)  (f32)."""
        acc = jnp.zeros((HW, ncols), f32)
        for kh in range(k):
            for kw in range(k):
                q = kh * W + kw                     # static sublane offset
                slab = halo_ref[q:q + HW, :]
                dj = kw - pad
                if dj != 0:                         # zero horizontally wrapped rows
                    slab = slab * masks[dj]
                acc = acc + jnp.dot(slab, w_ref[kh * k + kw],
                                    preferred_element_type=f32)
        return acc + b_ref[...]

    # ---- input conv, 3 gates fused: (HW, 3*Crec) ---------------------------
    xhalo_ref[...] = jnp.zeros_like(xhalo_ref)
    xbase = pin * W + pin
    xhalo_ref[xbase:xbase + HW, :] = x_ref[...]
    gx = conv_from_halo(xhalo_ref, kin, pin, wx_ref, bx_ref, 3 * crec)

    # ---- hidden conv on h, update+reset gates fused: (HW, 2*Crec) ----------
    h = h_ref[...]
    hhalo_ref[...] = jnp.zeros_like(hhalo_ref)
    hbase = prec * W + prec
    hhalo_ref[hbase:hbase + HW, :] = h
    gh = conv_from_halo(hhalo_ref, krec, prec, wh_ref, bh_ref, 2 * crec)

    ur = jax.nn.sigmoid(gx[:, :2 * crec] + gh)
    update = ur[:, :crec]
    reset = ur[:, crec:]

    # ---- hidden conv on (h * reset), out gate; reuse the same halo ---------
    hhalo_ref[hbase:hbase + HW, :] = h * reset
    oh = conv_from_halo(hhalo_ref, krec, prec, woh_ref, boh_ref, crec)

    out = jnp.tanh(gx[:, 2 * crec:] + oh)
    out_ref[...] = (h * (1.0 - update) + out * update).astype(out_ref.dtype)


# ---------------------------------------------------------------------------
# Wrapper-side weight layout (plain XLA glue on tiny constants)
# ---------------------------------------------------------------------------
def _fuse_tap_weights(ws):
    """[(Cout, Cin, K, K), ...] -> (K*K, Cin, n_gates*Cout), tap-major."""
    slabs = []
    for w in ws:
        cout, cin, kh, kw = w.shape
        slabs.append(jnp.transpose(w, (2, 3, 1, 0)).reshape(kh * kw, cin, cout))
    return jnp.concatenate(slabs, axis=-1) if len(slabs) > 1 else slabs[0]


# ---------------------------------------------------------------------------
# Public forward (ConvGRUCell.forward, pad_input=True semantics)
# ---------------------------------------------------------------------------
def convgru_cell_forward(params, x_nchw, prev_state_nchw=None):
    """ConvGRUCell forward.  NCHW in / NCHW out, float32 throughout."""
    N, cin, H, W = x_nchw.shape
    crec = params["update_gate_hidden_w"].shape[0]
    kin = params["update_gate_input_w"].shape[-1]
    krec = params["update_gate_hidden_w"].shape[-1]
    pin, prec = kin // 2, krec // 2
    HW = H * W

    if prev_state_nchw is None:                         # ConvGRUCell.init_state
        prev_state_nchw = jnp.zeros((N, crec, H, W), x_nchw.dtype)

    # NCHW -> (N, HW, C); the kernel streams only these raw activations.
    x = jnp.transpose(x_nchw, (0, 2, 3, 1)).reshape(N, HW, cin).astype(jnp.float32)
    h = jnp.transpose(prev_state_nchw, (0, 2, 3, 1)).reshape(N, HW, crec).astype(jnp.float32)

    wx = _fuse_tap_weights([params["update_gate_input_w"],
                            params["reset_gate_input_w"],
                            params["out_gate_input_w"]]).astype(jnp.float32)
    wh = _fuse_tap_weights([params["update_gate_hidden_w"],
                            params["reset_gate_hidden_w"]]).astype(jnp.float32)
    woh = _fuse_tap_weights([params["out_gate_hidden_w"]]).astype(jnp.float32)

    bx = jnp.concatenate([params["update_gate_input_b"],
                          params["reset_gate_input_b"],
                          params["out_gate_input_b"]]).reshape(1, 3 * crec)
    bh = jnp.concatenate([params["update_gate_hidden_b"],
                          params["reset_gate_hidden_b"]]).reshape(1, 2 * crec)
    boh = params["out_gate_hidden_b"].reshape(1, crec)

    kernel = functools.partial(_convgru_kernel, H=H, W=W, kin=kin, krec=krec,
                               crec=crec)

    def _whole(a):
        nd = a.ndim
        return pl.BlockSpec(a.shape, lambda n: (0,) * nd)

    def _per_image(a):
        tail = a.shape[1:]
        nd = a.ndim
        return pl.BlockSpec((None,) + tail, lambda n: (n,) + (0,) * (nd - 1))

    inputs = (x, h, wx, wh, woh, bx, bh, boh)
    in_specs = [_per_image(x), _per_image(h),
                _whole(wx), _whole(wh), _whole(woh),
                _whole(bx), _whole(bh), _whole(boh)]
    out_specs = pl.BlockSpec((None, HW, crec), lambda n: (n, 0, 0))

    flops = 2 * N * HW * crec * (3 * kin * kin * cin
                                 + 2 * krec * krec * crec
                                 + krec * krec * crec)
    bytes_accessed = ((x.size + h.size + N * HW * crec) * 4
                      + (wx.size + wh.size + woh.size
                         + bx.size + bh.size + boh.size) * 4)
    cost = pl.CostEstimate(flops=int(flops),
                           transcendentals=int(3 * N * HW * crec),
                           bytes_accessed=int(bytes_accessed))

    xhalo_rows = (H + 2 * pin) * W + 2 * pin
    hhalo_rows = (H + 2 * prec) * W + 2 * prec

    new_h_flat = pl.pallas_call(
        kernel,
        grid=(N,),
        in_specs=in_specs,
        out_specs=out_specs,
        out_shape=jax.ShapeDtypeStruct((N, HW, crec), jnp.float32),
        scratch_shapes=[pltpu.VMEM((xhalo_rows, cin), jnp.float32),
                        pltpu.VMEM((hhalo_rows, crec), jnp.float32)],
        compiler_params=pltpu.CompilerParams(
            dimension_semantics=("parallel",),
            vmem_limit_bytes=32 * 1024 * 1024),
        cost_estimate=cost,
    )(*inputs)

    new_h = new_h_flat.reshape(N, H, W, crec)
    return jnp.transpose(new_h, (0, 3, 1, 2))            # back to NCHW


# ---------------------------------------------------------------------------
# Parameter init (xavier_normal weights; small random biases so the test also
# exercises the bias path — the PyTorch module zero-inits them)
# ---------------------------------------------------------------------------
def init_convgru_params(key, input_channels, rec_channels, input_kern, rec_kern):
    def xavier_normal(k, cout, cin, ksz):
        fan_in, fan_out = cin * ksz * ksz, cout * ksz * ksz
        std = (2.0 / (fan_in + fan_out)) ** 0.5
        return std * jax.random.normal(k, (cout, cin, ksz, ksz), jnp.float32)

    keys = jax.random.split(key, 12)
    specs = [
        ("reset_gate_input", input_channels, input_kern),
        ("reset_gate_hidden", rec_channels, rec_kern),
        ("update_gate_input", input_channels, input_kern),
        ("update_gate_hidden", rec_channels, rec_kern),
        ("out_gate_input", input_channels, input_kern),
        ("out_gate_hidden", rec_channels, rec_kern),
    ]
    params = {}
    for i, (name, cin, ksz) in enumerate(specs):
        params[name + "_w"] = xavier_normal(keys[2 * i], rec_channels, cin, ksz)
        params[name + "_b"] = 0.1 * jax.random.normal(
            keys[2 * i + 1], (rec_channels,), jnp.float32)
    return params


# ---------------------------------------------------------------------------
# Pure-JAX reference (for verification)
# ---------------------------------------------------------------------------
def _conv2d_nchw(x, w, b, pad):
    y = lax.conv_general_dilated(x, w, (1, 1), [(pad, pad), (pad, pad)],
                                 dimension_numbers=("NCHW", "OIHW", "NCHW"))
    return y + b[None, :, None, None]


def convgru_reference(params, x, h):
    kin = params["update_gate_input_w"].shape[-1]
    krec = params["update_gate_hidden_w"].shape[-1]
    pin, prec = kin // 2, krec // 2
    update = jax.nn.sigmoid(
        _conv2d_nchw(x, params["update_gate_input_w"], params["update_gate_input_b"], pin)
        + _conv2d_nchw(h, params["update_gate_hidden_w"], params["update_gate_hidden_b"], prec))
    reset = jax.nn.sigmoid(
        _conv2d_nchw(x, params["reset_gate_input_w"], params["reset_gate_input_b"], pin)
        + _conv2d_nchw(h, params["reset_gate_hidden_w"], params["reset_gate_hidden_b"], prec))
    out = jnp.tanh(
        _conv2d_nchw(x, params["out_gate_input_w"], params["out_gate_input_b"], pin)
        + _conv2d_nchw(h * reset, params["out_gate_hidden_w"], params["out_gate_hidden_b"], prec))
    return h * (1.0 - update) + out * update


if __name__ == "__main__":
    key = jax.random.PRNGKey(0)
    kp, kx, kh = jax.random.split(key, 3)

    N, Cin, H, W = 2, 4, 16, 16
    Crec, input_kern, rec_kern = 8, 3, 3

    params = init_convgru_params(kp, Cin, Crec, input_kern, rec_kern)
    x = jax.random.normal(kx, (N, Cin, H, W), jnp.float32)
    prev_state = jax.random.normal(kh, (N, Crec, H, W), jnp.float32)

    fwd = jax.jit(convgru_cell_forward)

    # Exact-semantics check against the lax.conv reference.
    ref = convgru_reference(params, x, prev_state)
    out = jax.block_until_ready(fwd(params, x, prev_state))
    assert out.shape == (N, Crec, H, W)
    err = float(jnp.max(jnp.abs(out - ref)))
    assert err < 1e-3, f"max abs err {err}"

    # prev_state=None path (module's init_state -> zeros).
    out0 = jax.block_until_ready(fwd(params, x, None))
    ref0 = convgru_reference(params, x, jnp.zeros_like(prev_state))
    err0 = float(jnp.max(jnp.abs(out0 - ref0)))
    assert err0 < 1e-3, f"init-state max abs err {err0}"

    print("KERNEL_OK")
</pallas_src>

<mosaic_0001>
module attributes {stable_mosaic.version = 11 : i64} {
  func.func @_convgru_kernel(%arg0: i32, %arg1: memref<1x256x4xf32, #tpu.memory_space<vmem>>, %arg2: memref<1x256x8xf32, #tpu.memory_space<vmem>>, %arg3: memref<9x4x24xf32, #tpu.memory_space<vmem>>, %arg4: memref<9x8x16xf32, #tpu.memory_space<vmem>>, %arg5: memref<9x8x8xf32, #tpu.memory_space<vmem>>, %arg6: memref<1x24xf32, #tpu.memory_space<vmem>>, %arg7: memref<1x16xf32, #tpu.memory_space<vmem>>, %arg8: memref<1x8xf32, #tpu.memory_space<vmem>>, %arg9: memref<1x256x8xf32, #tpu.memory_space<vmem>>, %arg10: memref<290x4xf32, #tpu.memory_space<vmem>>, %arg11: memref<290x8xf32, #tpu.memory_space<vmem>>) attributes {dimension_semantics = [#tpu.dimension_semantics<parallel>], iteration_bounds = array<i64: 2>, scalar_prefetch = 0 : i64, scratch_operands = 2 : i64, tpu.core_type = #tpu.core_type<tc>, window_params = [{transform_indices = @transform_0, window_bounds = array<i64: 1, 256, 4>}, {transform_indices = @transform_1, window_bounds = array<i64: 1, 256, 8>}, {pipeline_mode = #tpu.pipeline_mode<synchronous>, transform_indices = @transform_2, window_bounds = array<i64: 9, 4, 24>}, {pipeline_mode = #tpu.pipeline_mode<synchronous>, transform_indices = @transform_3, window_bounds = array<i64: 9, 8, 16>}, {pipeline_mode = #tpu.pipeline_mode<synchronous>, transform_indices = @transform_4, window_bounds = array<i64: 9, 8, 8>}, {pipeline_mode = #tpu.pipeline_mode<synchronous>, transform_indices = @transform_5, window_bounds = array<i64: 1, 24>}, {pipeline_mode = #tpu.pipeline_mode<synchronous>, transform_indices = @transform_6, window_bounds = array<i64: 1, 16>}, {pipeline_mode = #tpu.pipeline_mode<synchronous>, transform_indices = @transform_7, window_bounds = array<i64: 1, 8>}, {transform_indices = @transform_8, window_bounds = array<i64: 1, 256, 8>}]} {
    %0 = tpu.iota {dimensions = array<i32: 0>} : vector<256x1xi32>
    %c16_i32 = arith.constant 16 : i32
    %c0_i32 = arith.constant 0 : i32
    %1 = arith.cmpi eq, %c16_i32, %c0_i32 : i32
    %c1_i32 = arith.constant 1 : i32
    %2 = arith.select %1, %c1_i32, %c16_i32 : i32
    %3 = vector.broadcast %2 : i32 to vector<256x1xi32>
    %4 = arith.remsi %0, %3 : vector<256x1xi32>
    %c0_i32_0 = arith.constant 0 : i32
    %5 = vector.broadcast %c0_i32_0 : i32 to vector<256x1xi32>
    %6 = arith.cmpi ne, %4, %5 : vector<256x1xi32>
    %c0_i32_1 = arith.constant 0 : i32
    %7 = vector.broadcast %c0_i32_1 : i32 to vector<256x1xi32>
    %8 = arith.cmpi slt, %4, %7 : vector<256x1xi32>
    %c0_i32_2 = arith.constant 0 : i32
    %9 = arith.cmpi slt, %2, %c0_i32_2 : i32
    %10 = vector.broadcast %9 : i1 to vector<256x1xi1>
    %11 = vector.broadcast %10 : vector<256x1xi1> to vector<256x1xi1>
    %12 = arith.xori %8, %11 : vector<256x1xi1>
    %13 = arith.andi %12, %6 : vector<256x1xi1>
    %14 = vector.broadcast %2 : i32 to vector<256x1xi32>
    %15 = arith.addi %4, %14 : vector<256x1xi32>
    %16 = arith.select %13, %15, %4 : vector<256x1xi1>, vector<256x1xi32>
    %c-1_i32 = arith.constant -1 : i32
    %17 = vector.broadcast %c-1_i32 : i32 to vector<256x1xi32>
    %18 = arith.addi %16, %17 : vector<256x1xi32>
    %c0_i32_3 = arith.constant 0 : i32
    %19 = vector.broadcast %c0_i32_3 : i32 to vector<256x1xi32>
    %20 = arith.cmpi sge, %18, %19 : vector<256x1xi32>
    %c-1_i32_4 = arith.constant -1 : i32
    %21 = vector.broadcast %c-1_i32_4 : i32 to vector<256x1xi32>
    %22 = arith.addi %16, %21 : vector<256x1xi32>
    %c16_i32_5 = arith.constant 16 : i32
    %23 = vector.broadcast %c16_i32_5 : i32 to vector<256x1xi32>
    %24 = arith.cmpi slt, %22, %23 : vector<256x1xi32>
    %25 = arith.andi %20, %24 : vector<256x1xi1>
    %26 = arith.extui %25 : vector<256x1xi1> to vector<256x1xi32>
    %27 = arith.sitofp %26 : vector<256x1xi32> to vector<256x1xf32>
    %c1_i32_6 = arith.constant 1 : i32
    %28 = vector.broadcast %c1_i32_6 : i32 to vector<256x1xi32>
    %29 = arith.addi %16, %28 : vector<256x1xi32>
    %c0_i32_7 = arith.constant 0 : i32
    %30 = vector.broadcast %c0_i32_7 : i32 to vector<256x1xi32>
    %31 = arith.cmpi sge, %29, %30 : vector<256x1xi32>
    %c1_i32_8 = arith.constant 1 : i32
    %32 = vector.broadcast %c1_i32_8 : i32 to vector<256x1xi32>
    %33 = arith.addi %16, %32 : vector<256x1xi32>
    %c16_i32_9 = arith.constant 16 : i32
    %34 = vector.broadcast %c16_i32_9 : i32 to vector<256x1xi32>
    %35 = arith.cmpi slt, %33, %34 : vector<256x1xi32>
    %36 = arith.andi %31, %35 : vector<256x1xi1>
    %37 = arith.extui %36 : vector<256x1xi1> to vector<256x1xi32>
    %38 = arith.sitofp %37 : vector<256x1xi32> to vector<256x1xf32>
    %cst = arith.constant 0.000000e+00 : f32
    %39 = vector.broadcast %cst : f32 to vector<290x4xf32>
    %c0 = arith.constant 0 : index
    %c0_10 = arith.constant 0 : index
    %40 = vector.load %arg10[%c0, %c0_10] : memref<290x4xf32, #tpu.memory_space<vmem>>, vector<290x4xf32>
    tpu.vector_store %arg10[%c0, %c0_10], %39 {strides = array<i32>} : memref<290x4xf32, #tpu.memory_space<vmem>>, vector<290x4xf32>,
    %c0_11 = arith.constant 0 : index
    %c0_12 = arith.constant 0 : index
    %c0_13 = arith.constant 0 : index
    %41 = vector.load %arg1[%c0_11, %c0_12, %c0_13] : memref<1x256x4xf32, #tpu.memory_space<vmem>>, vector<1x256x4xf32>
    %42 = vector.shape_cast %41 : vector<1x256x4xf32> to vector<256x4xf32>
    %c17 = arith.constant 17 : index
    %c0_14 = arith.constant 0 : index
    %43 = vector.load %arg10[%c17, %c0_14] : memref<290x4xf32, #tpu.memory_space<vmem>>, vector<256x4xf32>
    tpu.vector_store %arg10[%c17, %c0_14], %42 {strides = array<i32>} : memref<290x4xf32, #tpu.memory_space<vmem>>, vector<256x4xf32>,
    %cst_15 = arith.constant 0.000000e+00 : f32
    %44 = vector.broadcast %cst_15 : f32 to vector<256x24xf32>
    %c0_16 = arith.constant 0 : index
    %c0_17 = arith.constant 0 : index
    %45 = vector.load %arg10[%c0_16, %c0_17] : memref<290x4xf32, #tpu.memory_space<vmem>>, vector<256x4xf32>
    %46 = vector.broadcast %27 : vector<256x1xf32> to vector<256x4xf32>
    %47 = arith.mulf %45, %46 : vector<256x4xf32>
    %c0_18 = arith.constant 0 : index
    %c0_19 = arith.constant 0 : index
    %c0_20 = arith.constant 0 : index
    %48 = vector.load %arg3[%c0_18, %c0_19, %c0_20] : memref<9x4x24xf32, #tpu.memory_space<vmem>>, vector<1x4x24xf32>
    %49 = vector.shape_cast %48 : vector<1x4x24xf32> to vector<4x24xf32>
    %cst_21 = arith.constant dense<0.000000e+00> : vector<256x24xf32>
    %50 = tpu.matmul %47, %49, %cst_21 {dimension_numbers = #tpu.dot_dimension_numbers<[1], [0], [0], [1], [0, 0, 1, 1], [], []>} : vector<256x4xf32>, vector<4x24xf32>, vector<256x24xf32> -> vector<256x24xf32>
    %51 = arith.addf %44, %50 : vector<256x24xf32>
    %c1 = arith.constant 1 : index
    %c0_22 = arith.constant 0 : index
    %52 = vector.load %arg10[%c1, %c0_22] : memref<290x4xf32, #tpu.memory_space<vmem>>, vector<256x4xf32>
    %c1_23 = arith.constant 1 : index
    %c0_24 = arith.constant 0 : index
    %c0_25 = arith.constant 0 : index
    %53 = vector.load %arg3[%c1_23, %c0_24, %c0_25] : memref<9x4x24xf32, #tpu.memory_space<vmem>>, vector<1x4x24xf32>
    %54 = vector.shape_cast %53 : vector<1x4x24xf32> to vector<4x24xf32>
    %cst_26 = arith.constant dense<0.000000e+00> : vector<256x24xf32>
    %55 = tpu.matmul %52, %54, %cst_26 {dimension_numbers = #tpu.dot_dimension_numbers<[1], [0], [0], [1], [0, 0, 1, 1], [], []>} : vector<256x4xf32>, vector<4x24xf32>, vector<256x24xf32> -> vector<256x24xf32>
    %56 = arith.addf %51, %55 : vector<256x24xf32>
    %c2 = arith.constant 2 : index
    %c0_27 = arith.constant 0 : index
    %57 = vector.load %arg10[%c2, %c0_27] : memref<290x4xf32, #tpu.memory_space<vmem>>, vector<256x4xf32>
    %58 = vector.broadcast %38 : vector<256x1xf32> to vector<256x4xf32>
    %59 = arith.mulf %57, %58 : vector<256x4xf32>
    %c2_28 = arith.constant 2 : index
    %c0_29 = arith.constant 0 : index
    %c0_30 = arith.constant 0 : index
    %60 = vector.load %arg3[%c2_28, %c0_29, %c0_30] : memref<9x4x24xf32, #tpu.memory_space<vmem>>, vector<1x4x24xf32>
    %61 = vector.shape_cast %60 : vector<1x4x24xf32> to vector<4x24xf32>
    %cst_31 = arith.constant dense<0.000000e+00> : vector<256x24xf32>
    %62 = tpu.matmul %59, %61, %cst_31 {dimension_numbers = #tpu.dot_dimension_numbers<[1], [0], [0], [1], [0, 0, 1, 1], [], []>} : vector<256x4xf32>, vector<4x24xf32>, vector<256x24xf32> -> vector<256x24xf32>
    %63 = arith.addf %56, %62 : vector<256x24xf32>
    %c16 = arith.constant 16 : index
    %c0_32 = arith.constant 0 : index
    %64 = vector.load %arg10[%c16, %c0_32] : memref<290x4xf32, #tpu.memory_space<vmem>>, vector<256x4xf32>
    %65 = vector.broadcast %27 : vector<256x1xf32> to vector<256x4xf32>
    %66 = arith.mulf %64, %65 : vector<256x4xf32>
    %c3 = arith.constant 3 : index
    %c0_33 = arith.constant 0 : index
    %c0_34 = arith.constant 0 : index
    %67 = vector.load %arg3[%c3, %c0_33, %c0_34] : memref<9x4x24xf32, #tpu.memory_space<vmem>>, vector<1x4x24xf32>
    %68 = vector.shape_cast %67 : vector<1x4x24xf32> to vector<4x24xf32>
    %cst_35 = arith.constant dense<0.000000e+00> : vector<256x24xf32>
    %69 = tpu.matmul %66, %68, %cst_35 {dimension_numbers = #tpu.dot_dimension_numbers<[1], [0], [0], [1], [0, 0, 1, 1], [], []>} : vector<256x4xf32>, vector<4x24xf32>, vector<256x24xf32> -> vector<256x24xf32>
    %70 = arith.addf %63, %69 : vector<256x24xf32>
    %c17_36 = arith.constant 17 : index
    %c0_37 = arith.constant 0 : index
    %71 = vector.load %arg10[%c17_36, %c0_37] : memref<290x4xf32, #tpu.memory_space<vmem>>, vector<256x4xf32>
    %c4 = arith.constant 4 : index
    %c0_38 = arith.constant 0 : index
    %c0_39 = arith.constant 0 : index
    %72 = vector.load %arg3[%c4, %c0_38, %c0_39] : memref<9x4x24xf32, #tpu.memory_space<vmem>>, vector<1x4x24xf32>
    %73 = vector.shape_cast %72 : vector<1x4x24xf32> to vector<4x24xf32>
    %cst_40 = arith.constant dense<0.000000e+00> : vector<256x24xf32>
    %74 = tpu.matmul %71, %73, %cst_40 {dimension_numbers = #tpu.dot_dimension_numbers<[1], [0], [0], [1], [0, 0, 1, 1], [], []>} : vector<256x4xf32>, vector<4x24xf32>, vector<256x24xf32> -> vector<256x24xf32>
    %75 = arith.addf %70, %74 : vector<256x24xf32>
    %c18 = arith.constant 18 : index
    %c0_41 = arith.constant 0 : index
    %76 = vector.load %arg10[%c18, %c0_41] : memref<290x4xf32, #tpu.memory_space<vmem>>, vector<256x4xf32>
    %77 = vector.broadcast %38 : vector<256x1xf32> to vector<256x4xf32>
    %78 = arith.mulf %76, %77 : vector<256x4xf32>
    %c5 = arith.constant 5 : index
    %c0_42 = arith.constant 0 : index
    %c0_43 = arith.constant 0 : index
    %79 = vector.load %arg3[%c5, %c0_42, %c0_43] : memref<9x4x24xf32, #tpu.memory_space<vmem>>, vector<1x4x24xf32>
    %80 = vector.shape_cast %79 : vector<1x4x24xf32> to vector<4x24xf32>
    %cst_44 = arith.constant dense<0.000000e+00> : vector<256x24xf32>
    %81 = tpu.matmul %78, %80, %cst_44 {dimension_numbers = #tpu.dot_dimension_numbers<[1], [0], [0], [1], [0, 0, 1, 1], [], []>} : vector<256x4xf32>, vector<4x24xf32>, vector<256x24xf32> -> vector<256x24xf32>
    %82 = arith.addf %75, %81 : vector<256x24xf32>
    %c32 = arith.constant 32 : index
    %c0_45 = arith.constant 0 : index
    %83 = vector.load %arg10[%c32, %c0_45] : memref<290x4xf32, #tpu.memory_space<vmem>>, vector<256x4xf32>
    %84 = vector.broadcast %27 : vector<256x1xf32> to vector<256x4xf32>
    %85 = arith.mulf %83, %84 : vector<256x4xf32>
    %c6 = arith.constant 6 : index
    %c0_46 = arith.constant 0 : index
    %c0_47 = arith.constant 0 : index
    %86 = vector.load %arg3[%c6, %c0_46, %c0_47] : memref<9x4x24xf32, #tpu.memory_space<vmem>>, vector<1x4x24xf32>
    %87 = vector.shape_cast %86 : vector<1x4x24xf32> to vector<4x24xf32>
    %cst_48 = arith.constant dense<0.000000e+00> : vector<256x24xf32>
    %88 = tpu.matmul %85, %87, %cst_48 {dimension_numbers = #tpu.dot_dimension_numbers<[1], [0], [0], [1], [0, 0, 1, 1], [], []>} : vector<256x4xf32>, vector<4x24xf32>, vector<256x24xf32> -> vector<256x24xf32>
    %89 = arith.addf %82, %88 : vector<256x24xf32>
    %c33 = arith.constant 33 : index
    %c0_49 = arith.constant 0 : index
    %90 = vector.load %arg10[%c33, %c0_49] : memref<290x4xf32, #tpu.memory_space<vmem>>, vector<256x4xf32>
    %c7 = arith.constant 7 : index
    %c0_50 = arith.constant 0 : index
    %c0_51 = arith.constant 0 : index
    %91 = vector.load %arg3[%c7, %c0_50, %c0_51] : memref<9x4x24xf32, #tpu.memory_space<vmem>>, vector<1x4x24xf32>
    %92 = vector.shape_cast %91 : vector<1x4x24xf32> to vector<4x24xf32>
    %cst_52 = arith.constant dense<0.000000e+00> : vector<256x24xf32>
    %93 = tpu.matmul %90, %92, %cst_52 {dimension_numbers = #tpu.dot_dimension_numbers<[1], [0], [0], [1], [0, 0, 1, 1], [], []>} : vector<256x4xf32>, vector<4x24xf32>, vector<256x24xf32> -> vector<256x24xf32>
    %94 = arith.addf %89, %93 : vector<256x24xf32>
    %c34 = arith.constant 34 : index
    %c0_53 = arith.constant 0 : index
    %95 = vector.load %arg10[%c34, %c0_53] : memref<290x4xf32, #tpu.memory_space<vmem>>, vector<256x4xf32>
    %96 = vector.broadcast %38 : vector<256x1xf32> to vector<256x4xf32>
    %97 = arith.mulf %95, %96 : vector<256x4xf32>
    %c8 = arith.constant 8 : index
    %c0_54 = arith.constant 0 : index
    %c0_55 = arith.constant 0 : index
    %98 = vector.load %arg3[%c8, %c0_54, %c0_55] : memref<9x4x24xf32, #tpu.memory_space<vmem>>, vector<1x4x24xf32>
    %99 = vector.shape_cast %98 : vector<1x4x24xf32> to vector<4x24xf32>
    %cst_56 = arith.constant dense<0.000000e+00> : vector<256x24xf32>
    %100 = tpu.matmul %97, %99, %cst_56 {dimension_numbers = #tpu.dot_dimension_numbers<[1], [0], [0], [1], [0, 0, 1, 1], [], []>} : vector<256x4xf32>, vector<4x24xf32>, vector<256x24xf32> -> vector<256x24xf32>
    %101 = arith.addf %94, %100 : vector<256x24xf32>
    %c0_57 = arith.constant 0 : index
    %c0_58 = arith.constant 0 : index
    %102 = vector.load %arg6[%c0_57, %c0_58] : memref<1x24xf32, #tpu.memory_space<vmem>>, vector<1x24xf32>
    %103 = vector.broadcast %102 : vector<1x24xf32> to vector<256x24xf32>
    %104 = arith.addf %101, %103 : vector<256x24xf32>
    %c0_59 = arith.constant 0 : index
    %c0_60 = arith.constant 0 : index
    %c0_61 = arith.constant 0 : index
    %105 = vector.load %arg2[%c0_59, %c0_60, %c0_61] : memref<1x256x8xf32, #tpu.memory_space<vmem>>, vector<1x256x8xf32>
    %106 = vector.shape_cast %105 : vector<1x256x8xf32> to vector<256x8xf32>
    %cst_62 = arith.constant 0.000000e+00 : f32
    %107 = vector.broadcast %cst_62 : f32 to vector<290x8xf32>
    %c0_63 = arith.constant 0 : index
    %c0_64 = arith.constant 0 : index
    %108 = vector.load %arg11[%c0_63, %c0_64] : memref<290x8xf32, #tpu.memory_space<vmem>>, vector<290x8xf32>
    tpu.vector_store %arg11[%c0_63, %c0_64], %107 {strides = array<i32>} : memref<290x8xf32, #tpu.memory_space<vmem>>, vector<290x8xf32>,
    %c17_65 = arith.constant 17 : index
    %c0_66 = arith.constant 0 : index
    %109 = vector.load %arg11[%c17_65, %c0_66] : memref<290x8xf32, #tpu.memory_space<vmem>>, vector<256x8xf32>
    tpu.vector_store %arg11[%c17_65, %c0_66], %106 {strides = array<i32>} : memref<290x8xf32, #tpu.memory_space<vmem>>, vector<256x8xf32>,
    %cst_67 = arith.constant 0.000000e+00 : f32
    %110 = vector.broadcast %cst_67 : f32 to vector<256x16xf32>
    %c0_68 = arith.constant 0 : index
    %c0_69 = arith.constant 0 : index
    %111 = vector.load %arg11[%c0_68, %c0_69] : memref<290x8xf32, #tpu.memory_space<vmem>>, vector<256x8xf32>
    %112 = vector.broadcast %27 : vector<256x1xf32> to vector<256x8xf32>
    %113 = arith.mulf %111, %112 : vector<256x8xf32>
    %c0_70 = arith.constant 0 : index
    %c0_71 = arith.constant 0 : index
    %c0_72 = arith.constant 0 : index
    %114 = vector.load %arg4[%c0_70, %c0_71, %c0_72] : memref<9x8x16xf32, #tpu.memory_space<vmem>>, vector<1x8x16xf32>
    %115 = vector.shape_cast %114 : vector<1x8x16xf32> to vector<8x16xf32>
    %cst_73 = arith.constant dense<0.000000e+00> : vector<256x16xf32>
    %116 = tpu.matmul %113, %115, %cst_73 {dimension_numbers = #tpu.dot_dimension_numbers<[1], [0], [0], [1], [0, 0, 1, 1], [], []>} : vector<256x8xf32>, vector<8x16xf32>, vector<256x16xf32> -> vector<256x16xf32>
    %117 = arith.addf %110, %116 : vector<256x16xf32>
    %c1_74 = arith.constant 1 : index
    %c0_75 = arith.constant 0 : index
    %118 = vector.load %arg11[%c1_74, %c0_75] : memref<290x8xf32, #tpu.memory_space<vmem>>, vector<256x8xf32>
    %c1_76 = arith.constant 1 : index
    %c0_77 = arith.constant 0 : index
    %c0_78 = arith.constant 0 : index
    %119 = vector.load %arg4[%c1_76, %c0_77, %c0_78] : memref<9x8x16xf32, #tpu.memory_space<vmem>>, vector<1x8x16xf32>
    %120 = vector.shape_cast %119 : vector<1x8x16xf32> to vector<8x16xf32>
    %cst_79 = arith.constant dense<0.000000e+00> : vector<256x16xf32>
    %121 = tpu.matmul %118, %120, %cst_79 {dimension_numbers = #tpu.dot_dimension_numbers<[1], [0], [0], [1], [0, 0, 1, 1], [], []>} : vector<256x8xf32>, vector<8x16xf32>, vector<256x16xf32> -> vector<256x16xf32>
    %122 = arith.addf %117, %121 : vector<256x16xf32>
    %c2_80 = arith.constant 2 : index
    %c0_81 = arith.constant 0 : index
    %123 = vector.load %arg11[%c2_80, %c0_81] : memref<290x8xf32, #tpu.memory_space<vmem>>, vector<256x8xf32>
    %124 = vector.broadcast %38 : vector<256x1xf32> to vector<256x8xf32>
    %125 = arith.mulf %123, %124 : vector<256x8xf32>
    %c2_82 = arith.constant 2 : index
    %c0_83 = arith.constant 0 : index
    %c0_84 = arith.constant 0 : index
    %126 = vector.load %arg4[%c2_82, %c0_83, %c0_84] : memref<9x8x16xf32, #tpu.memory_space<vmem>>, vector<1x8x16xf32>
    %127 = vector.shape_cast %126 : vector<1x8x16xf32> to vector<8x16xf32>
    %cst_85 = arith.constant dense<0.000000e+00> : vector<256x16xf32>
    %128 = tpu.matmul %125, %127, %cst_85 {dimension_numbers = #tpu.dot_dimension_numbers<[1], [0], [0], [1], [0, 0, 1, 1], [], []>} : vector<256x8xf32>, vector<8x16xf32>, vector<256x16xf32> -> vector<256x16xf32>
    %129 = arith.addf %122, %128 : vector<256x16xf32>
    %c16_86 = arith.constant 16 : index
    %c0_87 = arith.constant 0 : index
    %130 = vector.load %arg11[%c16_86, %c0_87] : memref<290x8xf32, #tpu.memory_space<vmem>>, vector<256x8xf32>
    %131 = vector.broadcast %27 : vector<256x1xf32> to vector<256x8xf32>
    %132 = arith.mulf %130, %131 : vector<256x8xf32>
    %c3_88 = arith.constant 3 : index
    %c0_89 = arith.constant 0 : index
    %c0_90 = arith.constant 0 : index
    %133 = vector.load %arg4[%c3_88, %c0_89, %c0_90] : memref<9x8x16xf32, #tpu.memory_space<vmem>>, vector<1x8x16xf32>
    %134 = vector.shape_cast %133 : vector<1x8x16xf32> to vector<8x16xf32>
    %cst_91 = arith.constant dense<0.000000e+00> : vector<256x16xf32>
    %135 = tpu.matmul %132, %134, %cst_91 {dimension_numbers = #tpu.dot_dimension_numbers<[1], [0], [0], [1], [0, 0, 1, 1], [], []>} : vector<256x8xf32>, vector<8x16xf32>, vector<256x16xf32> -> vector<256x16xf32>
    %136 = arith.addf %129, %135 : vector<256x16xf32>
    %c17_92 = arith.constant 17 : index
    %c0_93 = arith.constant 0 : index
    %137 = vector.load %arg11[%c17_92, %c0_93] : memref<290x8xf32, #tpu.memory_space<vmem>>, vector<256x8xf32>
    %c4_94 = arith.constant 4 : index
    %c0_95 = arith.constant 0 : index
    %c0_96 = arith.constant 0 : index
    %138 = vector.load %arg4[%c4_94, %c0_95, %c0_96] : memref<9x8x16xf32, #tpu.memory_space<vmem>>, vector<1x8x16xf32>
    %139 = vector.shape_cast %138 : vector<1x8x16xf32> to vector<8x16xf32>
    %cst_97 = arith.constant dense<0.000000e+00> : vector<256x16xf32>
    %140 = tpu.matmul %137, %139, %cst_97 {dimension_numbers = #tpu.dot_dimension_numbers<[1], [0], [0], [1], [0, 0, 1, 1], [], []>} : vector<256x8xf32>, vector<8x16xf32>, vector<256x16xf32> -> vector<256x16xf32>
    %141 = arith.addf %136, %140 : vector<256x16xf32>
    %c18_98 = arith.constant 18 : index
    %c0_99 = arith.constant 0 : index
    %142 = vector.load %arg11[%c18_98, %c0_99] : memref<290x8xf32, #tpu.memory_space<vmem>>, vector<256x8xf32>
    %143 = vector.broadcast %38 : vector<256x1xf32> to vector<256x8xf32>
    %144 = arith.mulf %142, %143 : vector<256x8xf32>
    %c5_100 = arith.constant 5 : index
    %c0_101 = arith.constant 0 : index
    %c0_102 = arith.constant 0 : index
    %145 = vector.load %arg4[%c5_100, %c0_101, %c0_102] : memref<9x8x16xf32, #tpu.memory_space<vmem>>, vector<1x8x16xf32>
    %146 = vector.shape_cast %145 : vector<1x8x16xf32> to vector<8x16xf32>
    %cst_103 = arith.constant dense<0.000000e+00> : vector<256x16xf32>
    %147 = tpu.matmul %144, %146, %cst_103 {dimension_numbers = #tpu.dot_dimension_numbers<[1], [0], [0], [1], [0, 0, 1, 1], [], []>} : vector<256x8xf32>, vector<8x16xf32>, vector<256x16xf32> -> vector<256x16xf32>
    %148 = arith.addf %141, %147 : vector<256x16xf32>
    %c32_104 = arith.constant 32 : index
    %c0_105 = arith.constant 0 : index
    %149 = vector.load %arg11[%c32_104, %c0_105] : memref<290x8xf32, #tpu.memory_space<vmem>>, vector<256x8xf32>
    %150 = vector.broadcast %27 : vector<256x1xf32> to vector<256x8xf32>
    %151 = arith.mulf %149, %150 : vector<256x8xf32>
    %c6_106 = arith.constant 6 : index
    %c0_107 = arith.constant 0 : index
    %c0_108 = arith.constant 0 : index
    %152 = vector.load %arg4[%c6_106, %c0_107, %c0_108] : memref<9x8x16xf32, #tpu.memory_space<vmem>>, vector<1x8x16xf32>
    %153 = vector.shape_cast %152 : vector<1x8x16xf32> to vector<8x16xf32>
    %cst_109 = arith.constant dense<0.000000e+00> : vector<256x16xf32>
    %154 = tpu.matmul %151, %153, %cst_109 {dimension_numbers = #tpu.dot_dimension_numbers<[1], [0], [0], [1], [0, 0, 1, 1], [], []>} : vector<256x8xf32>, vector<8x16xf32>, vector<256x16xf32> -> vector<256x16xf32>
    %155 = arith.addf %148, %154 : vector<256x16xf32>
    %c33_110 = arith.constant 33 : index
    %c0_111 = arith.constant 0 : index
    %156 = vector.load %arg11[%c33_110, %c0_111] : memref<290x8xf32, #tpu.memory_space<vmem>>, vector<256x8xf32>
    %c7_112 = arith.constant 7 : index
    %c0_113 = arith.constant 0 : index
    %c0_114 = arith.constant 0 : index
    %157 = vector.load %arg4[%c7_112, %c0_113, %c0_114] : memref<9x8x16xf32, #tpu.memory_space<vmem>>, vector<1x8x16xf32>
    %158 = vector.shape_cast %157 : vector<1x8x16xf32> to vector<8x16xf32>
    %cst_115 = arith.constant dense<0.000000e+00> : vector<256x16xf32>
    %159 = tpu.matmul %156, %158, %cst_115 {dimension_numbers = #tpu.dot_dimension_numbers<[1], [0], [0], [1], [0, 0, 1, 1], [], []>} : vector<256x8xf32>, vector<8x16xf32>, vector<256x16xf32> -> vector<256x16xf32>
    %160 = arith.addf %155, %159 : vector<256x16xf32>
    %c34_116 = arith.constant 34 : index
    %c0_117 = arith.constant 0 : index
    %161 = vector.load %arg11[%c34_116, %c0_117] : memref<290x8xf32, #tpu.memory_space<vmem>>, vector<256x8xf32>
    %162 = vector.broadcast %38 : vector<256x1xf32> to vector<256x8xf32>
    %163 = arith.mulf %161, %162 : vector<256x8xf32>
    %c8_118 = arith.constant 8 : index
    %c0_119 = arith.constant 0 : index
    %c0_120 = arith.constant 0 : index
    %164 = vector.load %arg4[%c8_118, %c0_119, %c0_120] : memref<9x8x16xf32, #tpu.memory_space<vmem>>, vector<1x8x16xf32>
    %165 = vector.shape_cast %164 : vector<1x8x16xf32> to vector<8x16xf32>
    %cst_121 = arith.constant dense<0.000000e+00> : vector<256x16xf32>
    %166 = tpu.matmul %163, %165, %cst_121 {dimension_numbers = #tpu.dot_dimension_numbers<[1], [0], [0], [1], [0, 0, 1, 1], [], []>} : vector<256x8xf32>, vector<8x16xf32>, vector<256x16xf32> -> vector<256x16xf32>
    %167 = arith.addf %160, %166 : vector<256x16xf32>
    %c0_122 = arith.constant 0 : index
    %c0_123 = arith.constant 0 : index
    %168 = vector.load %arg7[%c0_122, %c0_123] : memref<1x16xf32, #tpu.memory_space<vmem>>, vector<1x16xf32>
    %169 = vector.broadcast %168 : vector<1x16xf32> to vector<256x16xf32>
    %170 = arith.addf %167, %169 : vector<256x16xf32>
    %171 = vector.extract_strided_slice %104 {offsets = [0, 0], sizes = [256, 16], strides = [1, 1]} : vector<256x24xf32> to vector<256x16xf32>
    %172 = arith.addf %171, %170 : vector<256x16xf32>
    %173 = arith.negf %172 : vector<256x16xf32>
    %174 = math.exp %173 : vector<256x16xf32>
    %cst_124 = arith.constant 1.000000e+00 : f32
    %175 = vector.broadcast %cst_124 : f32 to vector<256x16xf32>
    %176 = arith.addf %175, %174 : vector<256x16xf32>
    %177 = arith.divf %175, %176 : vector<256x16xf32>
    %178 = vector.extract_strided_slice %177 {offsets = [0, 0], sizes = [256, 8], strides = [1, 1]} : vector<256x16xf32> to vector<256x8xf32>
    %179 = vector.extract_strided_slice %177 {offsets = [0, 8], sizes = [256, 8], strides = [1, 1]} : vector<256x16xf32> to vector<256x8xf32>
    %180 = arith.mulf %106, %179 : vector<256x8xf32>
    %c17_125 = arith.constant 17 : index
    %c0_126 = arith.constant 0 : index
    %181 = vector.load %arg11[%c17_125, %c0_126] : memref<290x8xf32, #tpu.memory_space<vmem>>, vector<256x8xf32>
    tpu.vector_store %arg11[%c17_125, %c0_126], %180 {strides = array<i32>} : memref<290x8xf32, #tpu.memory_space<vmem>>, vector<256x8xf32>,
    %cst_127 = arith.constant 0.000000e+00 : f32
    %182 = vector.broadcast %cst_127 : f32 to vector<256x8xf32>
    %c0_128 = arith.constant 0 : index
    %c0_129 = arith.constant 0 : index
    %183 = vector.load %arg11[%c0_128, %c0_129] : memref<290x8xf32, #tpu.memory_space<vmem>>, vector<256x8xf32>
    %184 = vector.broadcast %27 : vector<256x1xf32> to vector<256x8xf32>
    %185 = arith.mulf %183, %184 : vector<256x8xf32>
    %c0_130 = arith.constant 0 : index
    %c0_131 = arith.constant 0 : index
    %c0_132 = arith.constant 0 : index
    %186 = vector.load %arg5[%c0_130, %c0_131, %c0_132] : memref<9x8x8xf32, #tpu.memory_space<vmem>>, vector<1x8x8xf32>
    %187 = vector.shape_cast %186 : vector<1x8x8xf32> to vector<8x8xf32>
    %cst_133 = arith.constant dense<0.000000e+00> : vector<256x8xf32>
    %188 = tpu.matmul %185, %187, %cst_133 {dimension_numbers = #tpu.dot_dimension_numbers<[1], [0], [0], [1], [0, 0, 1, 1], [], []>} : vector<256x8xf32>, vector<8x8xf32>, vector<256x8xf32> -> vector<256x8xf32>
    %189 = arith.addf %182, %188 : vector<256x8xf32>
    %c1_134 = arith.constant 1 : index
    %c0_135 = arith.constant 0 : index
    %190 = vector.load %arg11[%c1_134, %c0_135] : memref<290x8xf32, #tpu.memory_space<vmem>>, vector<256x8xf32>
    %c1_136 = arith.constant 1 : index
    %c0_137 = arith.constant 0 : index
    %c0_138 = arith.constant 0 : index
    %191 = vector.load %arg5[%c1_136, %c0_137, %c0_138] : memref<9x8x8xf32, #tpu.memory_space<vmem>>, vector<1x8x8xf32>
    %192 = vector.shape_cast %191 : vector<1x8x8xf32> to vector<8x8xf32>
    %cst_139 = arith.constant dense<0.000000e+00> : vector<256x8xf32>
    %193 = tpu.matmul %190, %192, %cst_139 {dimension_numbers = #tpu.dot_dimension_numbers<[1], [0], [0], [1], [0, 0, 1, 1], [], []>} : vector<256x8xf32>, vector<8x8xf32>, vector<256x8xf32> -> vector<256x8xf32>
    %194 = arith.addf %189, %193 : vector<256x8xf32>
    %c2_140 = arith.constant 2 : index
    %c0_141 = arith.constant 0 : index
    %195 = vector.load %arg11[%c2_140, %c0_141] : memref<290x8xf32, #tpu.memory_space<vmem>>, vector<256x8xf32>
    %196 = vector.broadcast %38 : vector<256x1xf32> to vector<256x8xf32>
    %197 = arith.mulf %195, %196 : vector<256x8xf32>
    %c2_142 = arith.constant 2 : index
    %c0_143 = arith.constant 0 : index
    %c0_144 = arith.constant 0 : index
    %198 = vector.load %arg5[%c2_142, %c0_143, %c0_144] : memref<9x8x8xf32, #tpu.memory_space<vmem>>, vector<1x8x8xf32>
    %199 = vector.shape_cast %198 : vector<1x8x8xf32> to vector<8x8xf32>
    %cst_145 = arith.constant dense<0.000000e+00> : vector<256x8xf32>
    %200 = tpu.matmul %197, %199, %cst_145 {dimension_numbers = #tpu.dot_dimension_numbers<[1], [0], [0], [1], [0, 0, 1, 1], [], []>} : vector<256x8xf32>, vector<8x8xf32>, vector<256x8xf32> -> vector<256x8xf32>
    %201 = arith.addf %194, %200 : vector<256x8xf32>
    %c16_146 = arith.constant 16 : index
    %c0_147 = arith.constant 0 : index
    %202 = vector.load %arg11[%c16_146, %c0_147] : memref<290x8xf32, #tpu.memory_space<vmem>>, vector<256x8xf32>
    %203 = vector.broadcast %27 : vector<256x1xf32> to vector<256x8xf32>
    %204 = arith.mulf %202, %203 : vector<256x8xf32>
    %c3_148 = arith.constant 3 : index
    %c0_149 = arith.constant 0 : index
    %c0_150 = arith.constant 0 : index
    %205 = vector.load %arg5[%c3_148, %c0_149, %c0_150] : memref<9x8x8xf32, #tpu.memory_space<vmem>>, vector<1x8x8xf32>
    %206 = vector.shape_cast %205 : vector<1x8x8xf32> to vector<8x8xf32>
    %cst_151 = arith.constant dense<0.000000e+00> : vector<256x8xf32>
    %207 = tpu.matmul %204, %206, %cst_151 {dimension_numbers = #tpu.dot_dimension_numbers<[1], [0], [0], [1], [0, 0, 1, 1], [], []>} : vector<256x8xf32>, vector<8x8xf32>, vector<256x8xf32> -> vector<256x8xf32>
    %208 = arith.addf %201, %207 : vector<256x8xf32>
    %c17_152 = arith.constant 17 : index
    %c0_153 = arith.constant 0 : index
    %209 = vector.load %arg11[%c17_152, %c0_153] : memref<290x8xf32, #tpu.memory_space<vmem>>, vector<256x8xf32>
    %c4_154 = arith.constant 4 : index
    %c0_155 = arith.constant 0 : index
    %c0_156 = arith.constant 0 : index
    %210 = vector.load %arg5[%c4_154, %c0_155, %c0_156] : memref<9x8x8xf32, #tpu.memory_space<vmem>>, vector<1x8x8xf32>
    %211 = vector.shape_cast %210 : vector<1x8x8xf32> to vector<8x8xf32>
    %cst_157 = arith.constant dense<0.000000e+00> : vector<256x8xf32>
    %212 = tpu.matmul %209, %211, %cst_157 {dimension_numbers = #tpu.dot_dimension_numbers<[1], [0], [0], [1], [0, 0, 1, 1], [], []>} : vector<256x8xf32>, vector<8x8xf32>, vector<256x8xf32> -> vector<256x8xf32>
    %213 = arith.addf %208, %212 : vector<256x8xf32>
    %c18_158 = arith.constant 18 : index
    %c0_159 = arith.constant 0 : index
    %214 = vector.load %arg11[%c18_158, %c0_159] : memref<290x8xf32, #tpu.memory_space<vmem>>, vector<256x8xf32>
    %215 = vector.broadcast %38 : vector<256x1xf32> to vector<256x8xf32>
    %216 = arith.mulf %214, %215 : vector<256x8xf32>
    %c5_160 = arith.constant 5 : index
    %c0_161 = arith.constant 0 : index
    %c0_162 = arith.constant 0 : index
    %217 = vector.load %arg5[%c5_160, %c0_161, %c0_162] : memref<9x8x8xf32, #tpu.memory_space<vmem>>, vector<1x8x8xf32>
    %218 = vector.shape_cast %217 : vector<1x8x8xf32> to vector<8x8xf32>
    %cst_163 = arith.constant dense<0.000000e+00> : vector<256x8xf32>
    %219 = tpu.matmul %216, %218, %cst_163 {dimension_numbers = #tpu.dot_dimension_numbers<[1], [0], [0], [1], [0, 0, 1, 1], [], []>} : vector<256x8xf32>, vector<8x8xf32>, vector<256x8xf32> -> vector<256x8xf32>
    %220 = arith.addf %213, %219 : vector<256x8xf32>
    %c32_164 = arith.constant 32 : index
    %c0_165 = arith.constant 0 : index
    %221 = vector.load %arg11[%c32_164, %c0_165] : memref<290x8xf32, #tpu.memory_space<vmem>>, vector<256x8xf32>
    %222 = vector.broadcast %27 : vector<256x1xf32> to vector<256x8xf32>
    %223 = arith.mulf %221, %222 : vector<256x8xf32>
    %c6_166 = arith.constant 6 : index
    %c0_167 = arith.constant 0 : index
    %c0_168 = arith.constant 0 : index
    %224 = vector.load %arg5[%c6_166, %c0_167, %c0_168] : memref<9x8x8xf32, #tpu.memory_space<vmem>>, vector<1x8x8xf32>
    %225 = vector.shape_cast %224 : vector<1x8x8xf32> to vector<8x8xf32>
    %cst_169 = arith.constant dense<0.000000e+00> : vector<256x8xf32>
    %226 = tpu.matmul %223, %225, %cst_169 {dimension_numbers = #tpu.dot_dimension_numbers<[1], [0], [0], [1], [0, 0, 1, 1], [], []>} : vector<256x8xf32>, vector<8x8xf32>, vector<256x8xf32> -> vector<256x8xf32>
    %227 = arith.addf %220, %226 : vector<256x8xf32>
    %c33_170 = arith.constant 33 : index
    %c0_171 = arith.constant 0 : index
    %228 = vector.load %arg11[%c33_170, %c0_171] : memref<290x8xf32, #tpu.memory_space<vmem>>, vector<256x8xf32>
    %c7_172 = arith.constant 7 : index
    %c0_173 = arith.constant 0 : index
    %c0_174 = arith.constant 0 : index
    %229 = vector.load %arg5[%c7_172, %c0_173, %c0_174] : memref<9x8x8xf32, #tpu.memory_space<vmem>>, vector<1x8x8xf32>
    %230 = vector.shape_cast %229 : vector<1x8x8xf32> to vector<8x8xf32>
    %cst_175 = arith.constant dense<0.000000e+00> : vector<256x8xf32>
    %231 = tpu.matmul %228, %230, %cst_175 {dimension_numbers = #tpu.dot_dimension_numbers<[1], [0], [0], [1], [0, 0, 1, 1], [], []>} : vector<256x8xf32>, vector<8x8xf32>, vector<256x8xf32> -> vector<256x8xf32>
    %232 = arith.addf %227, %231 : vector<256x8xf32>
    %c34_176 = arith.constant 34 : index
    %c0_177 = arith.constant 0 : index
    %233 = vector.load %arg11[%c34_176, %c0_177] : memref<290x8xf32, #tpu.memory_space<vmem>>, vector<256x8xf32>
    %234 = vector.broadcast %38 : vector<256x1xf32> to vector<256x8xf32>
    %235 = arith.mulf %233, %234 : vector<256x8xf32>
    %c8_178 = arith.constant 8 : index
    %c0_179 = arith.constant 0 : index
    %c0_180 = arith.constant 0 : index
    %236 = vector.load %arg5[%c8_178, %c0_179, %c0_180] : memref<9x8x8xf32, #tpu.memory_space<vmem>>, vector<1x8x8xf32>
    %237 = vector.shape_cast %236 : vector<1x8x8xf32> to vector<8x8xf32>
    %cst_181 = arith.constant dense<0.000000e+00> : vector<256x8xf32>
    %238 = tpu.matmul %235, %237, %cst_181 {dimension_numbers = #tpu.dot_dimension_numbers<[1], [0], [0], [1], [0, 0, 1, 1], [], []>} : vector<256x8xf32>, vector<8x8xf32>, vector<256x8xf32> -> vector<256x8xf32>
    %239 = arith.addf %232, %238 : vector<256x8xf32>
    %c0_182 = arith.constant 0 : index
    %c0_183 = arith.constant 0 : index
    %240 = vector.load %arg8[%c0_182, %c0_183] : memref<1x8xf32, #tpu.memory_space<vmem>>, vector<1x8xf32>
    %241 = vector.broadcast %240 : vector<1x8xf32> to vector<256x8xf32>
    %242 = arith.addf %239, %241 : vector<256x8xf32>
    %243 = vector.extract_strided_slice %104 {offsets = [0, 16], sizes = [256, 8], strides = [1, 1]} : vector<256x24xf32> to vector<256x8xf32>
    %244 = arith.addf %243, %242 : vector<256x8xf32>
    %245 = math.tanh %244 : vector<256x8xf32>
    %cst_184 = arith.constant 1.000000e+00 : f32
    %246 = vector.broadcast %cst_184 : f32 to vector<256x8xf32>
    %247 = arith.subf %246, %178 : vector<256x8xf32>
    %248 = arith.mulf %106, %247 : vector<256x8xf32>
    %249 = arith.mulf %245, %178 : vector<256x8xf32>
    %250 = arith.addf %248, %249 : vector<256x8xf32>
    %c0_185 = arith.constant 0 : index
    %c0_186 = arith.constant 0 : index
    %c0_187 = arith.constant 0 : index
    %251 = vector.load %arg9[%c0_185, %c0_186, %c0_187] : memref<1x256x8xf32, #tpu.memory_space<vmem>>, vector<1x256x8xf32>
    %252 = vector.shape_cast %251 : vector<1x256x8xf32> to vector<256x8xf32>
    %253 = vector.shape_cast %250 : vector<256x8xf32> to vector<1x256x8xf32>
    tpu.vector_store %arg9[%c0_185, %c0_186, %c0_187], %253 {strides = array<i32>} : memref<1x256x8xf32, #tpu.memory_space<vmem>>, vector<1x256x8xf32>,
    return
  }
  func.func @transform_0(%arg0: i32) -> (i32, i32, i32) {
    %c0_i32 = arith.constant 0 : i32
    %c0_i32_0 = arith.constant 0 : i32
    %c0_i32_1 = arith.constant 0 : i32
    return %arg0, %c0_i32, %c0_i32_0 : i32, i32, i32
  }
  func.func @transform_1(%arg0: i32) -> (i32, i32, i32) {
    %c0_i32 = arith.constant 0 : i32
    %c0_i32_0 = arith.constant 0 : i32
    %c0_i32_1 = arith.constant 0 : i32
    return %arg0, %c0_i32, %c0_i32_0 : i32, i32, i32
  }
  func.func @transform_2(%arg0: i32) -> (i32, i32, i32) {
    %c0_i32 = arith.constant 0 : i32
    %c0_i32_0 = arith.constant 0 : i32
    %c0_i32_1 = arith.constant 0 : i32
    %c0_i32_2 = arith.constant 0 : i32
    return %c0_i32, %c0_i32_0, %c0_i32_1 : i32, i32, i32
  }
  func.func @transform_3(%arg0: i32) -> (i32, i32, i32) {
    %c0_i32 = arith.constant 0 : i32
    %c0_i32_0 = arith.constant 0 : i32
    %c0_i32_1 = arith.constant 0 : i32
    %c0_i32_2 = arith.constant 0 : i32
    return %c0_i32, %c0_i32_0, %c0_i32_1 : i32, i32, i32
  }
  func.func @transform_4(%arg0: i32) -> (i32, i32, i32) {
    %c0_i32 = arith.constant 0 : i32
    %c0_i32_0 = arith.constant 0 : i32
    %c0_i32_1 = arith.constant 0 : i32
    %c0_i32_2 = arith.constant 0 : i32
    return %c0_i32, %c0_i32_0, %c0_i32_1 : i32, i32, i32
  }
  func.func @transform_5(%arg0: i32) -> (i32, i32) {
    %c0_i32 = arith.constant 0 : i32
    %c0_i32_0 = arith.constant 0 : i32
    %c0_i32_1 = arith.constant 0 : i32
    return %c0_i32, %c0_i32_0 : i32, i32
  }
  func.func @transform_6(%arg0: i32) -> (i32, i32) {
    %c0_i32 = arith.constant 0 : i32
    %c0_i32_0 = arith.constant 0 : i32
    %c0_i32_1 = arith.constant 0 : i32
    return %c0_i32, %c0_i32_0 : i32, i32
  }
  func.func @transform_7(%arg0: i32) -> (i32, i32) {
    %c0_i32 = arith.constant 0 : i32
    %c0_i32_0 = arith.constant 0 : i32
    %c0_i32_1 = arith.constant 0 : i32
    return %c0_i32, %c0_i32_0 : i32, i32
  }
  func.func @transform_8(%arg0: i32) -> (i32, i32, i32) {
    %c0_i32 = arith.constant 0 : i32
    %c0_i32_0 = arith.constant 0 : i32
    %c0_i32_1 = arith.constant 0 : i32
    return %arg0, %c0_i32, %c0_i32_0 : i32, i32, i32
  }
}

</mosaic_0001>

<bundles_post_ra>
// kernel: convgru_cell_forward.1
= control target key start
LH: loop header
LB: loop body
LE: loop exit
PB: predicated region body
PF: predicated region fallthrough
CT: control target
= control target key end

     0   :  { %s17621_s27 = smov 0   ;;  %s21576_s0 = inlined_call_operand.vmem [shape: f32[2,256,4], index: 0, kind: input, shape index: {}]   ;;  %s21577_s1 = inlined_call_operand.vmem [shape: f32[2,256,8], index: 1, kind: input, shape index: {}]   ;;  %s21578_s2 = inlined_call_operand.vmem [shape: f32[9,4,24], index: 2, kind: input, shape index: {}]   ;;  %s21579_s3 = inlined_call_operand.vmem [shape: f32[9,8,16], index: 3, kind: input, shape index: {}]   ;;  %s21580_s4 = inlined_call_operand.vmem [shape: f32[9,8,8], index: 4, kind: input, shape index: {}]   ;;  %s21581_s5 = inlined_call_operand.vmem [shape: f32[1,24], index: 5, kind: input, shape index: {}]   ;;  %s21582_s6 = inlined_call_operand.vmem [shape: f32[1,16], index: 6, kind: input, shape index: {}]   ;;  %s21583_s7 = inlined_call_operand.vmem [shape: f32[1,8], index: 7, kind: input, shape index: {}]   ;;  %s21584_s8 = inlined_call_operand.vmem [shape: f32[2,256,8], index: 8, kind: output, shape index: {}]  }
   0x1 LB: > { %s13367_s28 = sadd.s32 4294967295, %s17570_s27   ;;  %p13371_p0 = scmp.ge.s32.totalorder %s17570_s27, 1  ;;  %s17570_s27 = sphi %s17621_s27, %s18_s27  }
   0x2   : > { %p272_p1 = scmp.lt.s32.totalorder %s17570_s27, 3 }
   0x4   : > { %p273_p2 = pnand %p13371_p0, %p272_p1 }
   0x6   : > { %276 = sbr.rel (%p273_p2) target bundleno = 2241 (0x8c1), region = 52 }
   0xd   : > { %v13410_v0 = vld [vmem:[%s21578_s2 + $0x4] sm:$0xf]  ;;  %vm1425_vm0 = vcmask 1043456   ;;  %vm1127_vm1 = vcmask 31744   ;;  %p17634_p3 = scmp.lt.s32.totalorder %s13367_s28, 1  ;;  %v21614_v1 = vmov 0.0   ;;  %v326_v36 = vlaneseq }
   0xe   : > { %15238 = vmatprep.subr.msk.mxu1 %vm1425_vm0, %v13410_v0  ;;  %1128 = vst.msk [vmem:[#allocation2] sm:$0xff] %vm1127_vm1, %v21614_v1  ;;  %1129 = vst.msk [vmem:[#allocation2 + $0x8] sm:$0xff] %vm1127_vm1, %v21614_v1  ;;  %v1294_v2 = vld [vmem:[%s21578_s2] sm:$0xf]  ;;  %v13545_v3 = vld [vmem:[%s21578_s2 + $0x10] sm:$0xf] }
   0xf   : > { %1130 = vst.msk [vmem:[#allocation2 + $0x10] sm:$0xff] %vm1127_vm1, %v21614_v1  ;;  %1131 = vst.msk [vmem:[#allocation2 + $0x18] sm:$0xff] %vm1127_vm1, %v21614_v1  ;;  %v17720_v4 = vld [vmem:[%s21578_s2 + $0x14] sm:$0xf]  ;;  %15239 = vmatpush3.msk.msra.mxu1 %vm1425_vm0, %v13410_v0  ;;  %15438 = vmatprep.subr.msk.mxu0 %vm1425_vm0, %v13545_v3  ;;  %s22638_s28 = smov (!%p17634_p3, %s13367_s28), 1  ;;  %v17813_v39 = vshrl.u32 %v326_v36, 7 }
  0x10   : > { %1132 = vst.msk [vmem:[#allocation2 + $0x20] sm:$0xff] %vm1127_vm1, %v21614_v1  ;;  %1133 = vst.msk [vmem:[#allocation2 + $0x28] sm:$0xff] %vm1127_vm1, %v21614_v1  ;;  %15288 = vmatprep.subr.msk.mxu1 %vm1425_vm0, %v1294_v2  ;;  %15439 = vmatpush3.msk.msra.mxu0 %vm1425_vm0, %v13545_v3  ;;  %s17730_s16 = sshll.u32 %s22638_s28, 8  ;;  %v17752_v11 = vld [vmem:[%s21578_s2 + $0x8] sm:$0xf]  ;;  %s17573_s21 = smov 120  }
  0x11   : > { %1134 = vst.msk [vmem:[#allocation2 + $0x30] sm:$0xff] %vm1127_vm1, %v21614_v1  ;;  %1135 = vst.msk [vmem:[#allocation2 + $0x38] sm:$0xff] %vm1127_vm1, %v21614_v1  ;;  %15488 = vmatprep.subr.msk.mxu0 %vm1425_vm0, %v17720_v4  ;;  %s17738_s19 = scalar_lea.vmem %s21576_s0, %s17730_s16  ;;  %v17801_v33 = vld [vmem:[%s21578_s2 + $0x18] sm:$0xf]  ;;  %v328_v46 = vadd.s32 8, %v17813_v39  ;;  %v330_v54 = vadd.s32 24, %v17813_v39  ;;  %s18518_s13 = scalar_lea.vmem %s21577_s1, %s17730_s16 }
  0x12   : > { %1136 = vst.msk [vmem:[#allocation2 + $0x40] sm:$0xff] %vm1127_vm1, %v21614_v1  ;;  %1137 = vst.msk [vmem:[#allocation2 + $0x48] sm:$0xff] %vm1127_vm1, %v21614_v1  ;;  %v1166_v5 = vld [vmem:[%s17738_s19] sm:$0xff]  ;;  %v1167_v6 = vld [vmem:[%s17738_s19 + $0x8] sm:$0xff]  ;;  %v332_v59 = vadd.s32 40, %v17813_v39  ;;  %v334_v0 = vadd.s32 56, %v17813_v39  ;;  %s21447_s24 = scalar_lea.vmem %s21584_s8, %s17730_s16 }
  0x13   : > { %1138 = vst.msk [vmem:[#allocation2 + $0x50] sm:$0xff] %vm1127_vm1, %v21614_v1  ;;  %1139 = vst.msk [vmem:[#allocation2 + $0x58] sm:$0xff] %vm1127_vm1, %v21614_v1  ;;  %v1168_v7 = vld [vmem:[%s17738_s19 + $0x10] sm:$0xff]  ;;  %v1169_v8 = vld [vmem:[%s17738_s19 + $0x18] sm:$0xff]  ;;  %v370_v53 = vand.u32 15, %v328_v46  ;;  %v384_v58 = vand.u32 15, %v330_v54 }
  0x14   : > { %1140 = vst.msk [vmem:[#allocation2 + $0x60] sm:$0xff] %vm1127_vm1, %v21614_v1  ;;  %1141 = vst.msk [vmem:[#allocation2 + $0x68] sm:$0xff] %vm1127_vm1, %v21614_v1  ;;  %v1170_v9 = vld [vmem:[%s17738_s19 + $0x20] sm:$0xff]  ;;  %v1171_v10 = vld [vmem:[%s17738_s19 + $0x28] sm:$0xff]  ;;  %v398_v63 = vand.u32 15, %v332_v59  ;;  %v331_v46 = vadd.s32 32, %v17813_v39 }
  0x15   : > { %1142 = vst.msk [vmem:[#allocation2 + $0x70] sm:$0xff] %vm1127_vm1, %v21614_v1  ;;  %1143 = vst.msk [vmem:[#allocation2 + $0x78] sm:$0xff] %vm1127_vm1, %v21614_v1  ;;  %v1295_v12 = vld [vmem:[#allocation2 + $0x1] sm:$0xff]  ;;  %v1172_v14 = vld [vmem:[%s17738_s19 + $0x30] sm:$0xff]  ;;  %v936_v57 = vadd.s32 1, %v370_v53  ;;  %v938_v62 = vadd.s32 1, %v384_v58 }
  0x16   : > { %1144 = vst.msk [vmem:[#allocation2 + $0x80] sm:$0xff] %vm1127_vm1, %v21614_v1  ;;  %1145 = vst.msk [vmem:[#allocation2 + $0x88] sm:$0xff] %vm1127_vm1, %v21614_v1  ;;  %v1296_v13 = vld [vmem:[#allocation2 + $0x9] sm:$0xff]  ;;  %15240 = vmatprep.mubr.msk.f32.mxu1 %vm1127_vm1, %v1295_v12  ;;  %v1173_v15 = vld [vmem:[%s17738_s19 + $0x38] sm:$0xff]  ;;  %v391_v58 = vand.u32 15, %v331_v46  ;;  %s17574_s26 = smov 16  }
  0x17   : > { %1146 = vst.msk [vmem:[#allocation2 + $0x90] sm:$0xff] %vm1127_vm1, %v21614_v1  ;;  %1147 = vst.msk [vmem:[#allocation2 + $0x98] sm:$0xff] %vm1127_vm1, %v21614_v1  ;;  %v1174_v16 = vld [vmem:[%s17738_s19 + $0x40] sm:$0xff]  ;;  %v1175_v17 = vld [vmem:[%s17738_s19 + $0x48] sm:$0xff]  ;;  %15241 = vmatmul.mubr.msk.f32.vlgmr.msra.gmra.mrb[0].mxu1 %vm1127_vm1, %v1296_v13  ;;  %vm1000_vm2 = vcmp.lt.s32.totalorder %v936_v57, 16  ;;  %vm1002_vm3 = vcmp.lt.s32.totalorder %v938_v62, 16 }
  0x18   : > { %1148 = vst.msk [vmem:[#allocation2 + $0xa0] sm:$0xff] %vm1127_vm1, %v21614_v1  ;;  %1149 = vst.msk [vmem:[#allocation2 + $0xa8] sm:$0xff] %vm1127_vm1, %v21614_v1  ;;  %v1176_v18 = vld [vmem:[%s17738_s19 + $0x50] sm:$0xff]  ;;  %v1177_v19 = vld [vmem:[%s17738_s19 + $0x58] sm:$0xff]  ;;  %15289 = vmatpush3.msk.msra.mxu1 %vm1425_vm0, %v1294_v2 }
  0x19   : > { %1150 = vst.msk [vmem:[#allocation2 + $0xb0] sm:$0xff] %vm1127_vm1, %v21614_v1  ;;  %1151 = vst.msk [vmem:[#allocation2 + $0xb8] sm:$0xff] %vm1127_vm1, %v21614_v1  ;;  %v1178_v20 = vld [vmem:[%s17738_s19 + $0x60] sm:$0xff]  ;;  %v1179_v21 = vld [vmem:[%s17738_s19 + $0x68] sm:$0xff]  ;;  %15338 = vmatprep.subr.msk.mxu1 %vm1425_vm0, %v17752_v11 }
  0x1a   : > { %1152 = vst.msk [vmem:[#allocation2 + $0xc0] sm:$0xff] %vm1127_vm1, %v21614_v1  ;;  %1153 = vst.msk [vmem:[#allocation2 + $0xc8] sm:$0xff] %vm1127_vm1, %v21614_v1  ;;  %v1180_v22 = vld [vmem:[%s17738_s19 + $0x70] sm:$0xff]  ;;  %v1181_v23 = vld [vmem:[%s17738_s19 + $0x78] sm:$0xff] }
  0x1b   : > { %1154 = vst.msk [vmem:[#allocation2 + $0xd0] sm:$0xff] %vm1127_vm1, %v21614_v1  ;;  %1155 = vst.msk [vmem:[#allocation2 + $0xd8] sm:$0xff] %vm1127_vm1, %v21614_v1  ;;  %v1182_v24 = vld [vmem:[%s17738_s19 + $0x80] sm:$0xff]  ;;  %v1183_v25 = vld [vmem:[%s17738_s19 + $0x88] sm:$0xff] }
  0x1c   : > { %1156 = vst.msk [vmem:[#allocation2 + $0xe0] sm:$0xff] %vm1127_vm1, %v21614_v1  ;;  %1157 = vst.msk [vmem:[#allocation2 + $0xe8] sm:$0xff] %vm1127_vm1, %v21614_v1  ;;  %v1184_v26 = vld [vmem:[%s17738_s19 + $0x90] sm:$0xff]  ;;  %v1185_v27 = vld [vmem:[%s17738_s19 + $0x98] sm:$0xff] }
  0x1d   : > { %1158 = vst.msk [vmem:[#allocation2 + $0xf0] sm:$0xff] %vm1127_vm1, %v21614_v1  ;;  %1159 = vst.msk [vmem:[#allocation2 + $0xf8] sm:$0xff] %vm1127_vm1, %v21614_v1  ;;  %v1186_v28 = vld [vmem:[%s17738_s19 + $0xa0] sm:$0xff]  ;;  %v1187_v29 = vld [vmem:[%s17738_s19 + $0xa8] sm:$0xff] }
  0x1e   : > { %1160 = vst.msk [vmem:[#allocation2 + $0x100] sm:$0xff] %vm1127_vm1, %v21614_v1  ;;  %1161 = vst.msk [vmem:[#allocation2 + $0x108] sm:$0xff] %vm1127_vm1, %v21614_v1  ;;  %v1188_v40 = vld [vmem:[%s17738_s19 + $0xb0] sm:$0xff]  ;;  %v1189_v41 = vld [vmem:[%s17738_s19 + $0xb8] sm:$0xff] }
  0x1f   : > { %1162 = vst.msk [vmem:[#allocation2 + $0x110] sm:$0xff] %vm1127_vm1, %v21614_v1  ;;  %1163 = vst.msk [vmem:[#allocation2 + $0x118] sm:$0xff] %vm1127_vm1, %v21614_v1  ;;  %v1190_v42 = vld [vmem:[%s17738_s19 + $0xc0] sm:$0xff]  ;;  %v1191_v44 = vld [vmem:[%s17738_s19 + $0xc8] sm:$0xff] }
  0x20   : > { %1198 = vst.msk [vmem:[#allocation2 + $0x11] sm:$0xff] %vm1127_vm1, %v1166_v5  ;;  %1199 = vst.msk [vmem:[#allocation2 + $0x19] sm:$0xff] %vm1127_vm1, %v1167_v6  ;;  %v1192_v47 = vld [vmem:[%s17738_s19 + $0xd0] sm:$0xff]  ;;  %v1193_v48 = vld [vmem:[%s17738_s19 + $0xd8] sm:$0xff]  ;;  %v336_v6 = vadd.s32 72, %v17813_v39 }
  0x21   : > { %1200 = vst.msk [vmem:[#allocation2 + $0x21] sm:$0xff] %vm1127_vm1, %v1168_v7  ;;  %1201 = vst.msk [vmem:[#allocation2 + $0x29] sm:$0xff] %vm1127_vm1, %v1169_v8  ;;  %v1194_v49 = vld [vmem:[%s17738_s19 + $0xe0] sm:$0xff]  ;;  %v1195_v50 = vld [vmem:[%s17738_s19 + $0xe8] sm:$0xff]  ;;  %v940_v8 = vadd.s32 1, %v398_v63  ;;  %v346_v63 = vadd.s32 152, %v17813_v39 }
  0x22   : > { %1202 = vst.msk [vmem:[#allocation2 + $0x31] sm:$0xff] %vm1127_vm1, %v1170_v9  ;;  %1203 = vst.msk [vmem:[#allocation2 + $0x39] sm:$0xff] %vm1127_vm1, %v1171_v10  ;;  %v412_v9 = vand.u32 15, %v334_v0  ;;  %v1196_v10 = vld [vmem:[%s17738_s19 + $0xf0] sm:$0xff]  ;;  %v1197_v12 = vld [vmem:[%s17738_s19 + $0xf8] sm:$0xff] }
  0x23   : > { %1204 = vst.msk [vmem:[#allocation2 + $0x41] sm:$0xff] %vm1127_vm1, %v1172_v14  ;;  %1205 = vst.msk [vmem:[#allocation2 + $0x49] sm:$0xff] %vm1127_vm1, %v1173_v15  ;;  %v17875_v15 = vsel %vm1002_vm3, 1.0, %v21614_v1  ;;  %vm1004_vm4 = vcmp.lt.s32.totalorder %v940_v8, 16  ;;  %v17915_v36 = vld [vmem:[%s21578_s2 + $0x1c] sm:$0xf] }
  0x24   : > { %1206 = vst.msk [vmem:[#allocation2 + $0x51] sm:$0xff] %vm1127_vm1, %v1174_v16  ;;  %1207 = vst.msk [vmem:[#allocation2 + $0x59] sm:$0xff] %vm1127_vm1, %v1175_v17 }
  0x25   : > { %1208 = vst.msk [vmem:[#allocation2 + $0x61] sm:$0xff] %vm1127_vm1, %v1176_v18  ;;  %1209 = vst.msk [vmem:[#allocation2 + $0x69] sm:$0xff] %vm1127_vm1, %v1177_v19  ;;  %v942_v19 = vadd.s32 1, %v412_v9 }
  0x26   : > { %1210 = vst.msk [vmem:[#allocation2 + $0x71] sm:$0xff] %vm1127_vm1, %v1178_v20  ;;  %1211 = vst.msk [vmem:[#allocation2 + $0x79] sm:$0xff] %vm1127_vm1, %v1179_v21  ;;  %v426_v20 = vand.u32 15, %v336_v6  ;;  %v338_v21 = vadd.s32 88, %v17813_v39  ;;  %v333_v6 = vadd.s32 48, %v17813_v39 }
  0x27   : > { %1212 = vst.msk [vmem:[#allocation2 + $0x81] sm:$0xff] %vm1127_vm1, %v1180_v22  ;;  %1213 = vst.msk [vmem:[#allocation2 + $0x89] sm:$0xff] %vm1127_vm1, %v1181_v23  ;;  %v1297_v30 = vld [vmem:[#allocation2 + $0x11] sm:$0xff]  ;;  %v1298_v31 = vld [vmem:[#allocation2 + $0x19] sm:$0xff]  ;;  %vm1006_vm5 = vcmp.lt.s32.totalorder %v942_v19, 16  ;;  %v348_v19 = vadd.s32 168, %v17813_v39 }
  0x28   : > { %1214 = vst.msk [vmem:[#allocation2 + $0x91] sm:$0xff] %vm1127_vm1, %v1182_v24  ;;  %1215 = vst.msk [vmem:[#allocation2 + $0x99] sm:$0xff] %vm1127_vm1, %v1183_v25  ;;  %v1299_v32 = vld [vmem:[#allocation2 + $0x21] sm:$0xff]  ;;  %15243 = vmatprep.mubr.msk.f32.mxu1 %vm1127_vm1, %v1297_v30  ;;  %15440 = vmatprep.mubr.msk.f32.mxu0 %vm1127_vm1, %v1297_v30  ;;  %v1300_v34 = vld [vmem:[#allocation2 + $0x29] sm:$0xff]  ;;  %v17890_v24 = vsel %vm1004_vm4, 1.0, %v21614_v1  ;;  %v340_v30 = vadd.s32 104, %v17813_v39 }
  0x29   : > { %1216 = vst.msk [vmem:[#allocation2 + $0xa1] sm:$0xff] %vm1127_vm1, %v1184_v26  ;;  %1217 = vst.msk [vmem:[#allocation2 + $0xa9] sm:$0xff] %vm1127_vm1, %v1185_v27  ;;  %15244 = vmatmul.mubr.msk.f32.gmra.mrb[2].mxu1 %vm1127_vm1, %v1298_v31  ;;  %15441 = vmatmul.mubr.msk.f32.vlgmr.msra.gmra.mrb[0].mxu0 %vm1127_vm1, %v1298_v31  ;;  %v1301_v35 = vld [vmem:[#allocation2 + $0x31] sm:$0xff]  ;;  %v1302_v37 = vld [vmem:[#allocation2 + $0x39] sm:$0xff] }
  0x2a   : > { %1218 = vst.msk [vmem:[#allocation2 + $0xb1] sm:$0xff] %vm1127_vm1, %v1186_v28  ;;  %1219 = vst.msk [vmem:[#allocation2 + $0xb9] sm:$0xff] %vm1127_vm1, %v1187_v29  ;;  %15246 = vmatprep.mubr.msk.f32.mxu1 %vm1127_vm1, %v1299_v32  ;;  %15443 = vmatprep.mubr.msk.f32.mxu0 %vm1127_vm1, %v1299_v32  ;;  %v1303_v38 = vld [vmem:[#allocation2 + $0x41] sm:$0xff]  ;;  %v1304_v43 = vld [vmem:[#allocation2 + $0x49] sm:$0xff]  ;;  %v944_v28 = vadd.s32 1, %v426_v20  ;;  %v440_v29 = vand.u32 15, %v338_v21 }
  0x2b   : > { %15489 = vmatpush3.msk.msra.mxu0 %vm1425_vm0, %v17720_v4  ;;  %1220 = vst.msk [vmem:[#allocation2 + $0xc1] sm:$0xff] %vm1127_vm1, %v1188_v40  ;;  %1221 = vst.msk [vmem:[#allocation2 + $0xc9] sm:$0xff] %vm1127_vm1, %v1189_v41  ;;  %v1305_v45 = vld [vmem:[#allocation2 + $0x51] sm:$0xff]  ;;  %v1306_v51 = vld [vmem:[#allocation2 + $0x59] sm:$0xff]  ;;  %v17858_v4 = vsel %vm1000_vm2, 1.0, %v21614_v1  ;;  %v454_v41 = vand.u32 15, %v340_v30 }
  0x2c   : > { %15538 = vmatprep.subr.msk.mxu0 %vm1425_vm0, %v17801_v33  ;;  %1222 = vst.msk [vmem:[#allocation2 + $0xd1] sm:$0xff] %vm1127_vm1, %v1190_v42  ;;  %1223 = vst.msk [vmem:[#allocation2 + $0xd9] sm:$0xff] %vm1127_vm1, %v1191_v44  ;;  %v1307_v52 = vld [vmem:[#allocation2 + $0x61] sm:$0xff]  ;;  %v1308_v55 = vld [vmem:[#allocation2 + $0x69] sm:$0xff]  ;;  %vm1008_vm6 = vcmp.lt.s32.totalorder %v944_v28, 16  ;;  %v946_v40 = vadd.s32 1, %v440_v29 }
  0x2d   : > { %15247 = vmatmul.mubr.msk.f32.gmra.mrb[4].mxu1 %vm1127_vm1, %v1300_v34  ;;  %15444 = vmatmul.mubr.msk.f32.gmra.mrb[2].mxu0 %vm1127_vm1, %v1300_v34  ;;  %1224 = vst.msk [vmem:[#allocation2 + $0xe1] sm:$0xff] %vm1127_vm1, %v1192_v47  ;;  %1225 = vst.msk [vmem:[#allocation2 + $0xe9] sm:$0xff] %vm1127_vm1, %v1193_v48  ;;  %v1309_v56 = vld [vmem:[#allocation2 + $0x71] sm:$0xff]  ;;  %v1310_v60 = vld [vmem:[#allocation2 + $0x79] sm:$0xff]  ;;  %v17907_v34 = vsel %vm1006_vm5, 1.0, %v21614_v1  ;;  %v363_v42 = vand.u32 15, %v17813_v39 }
  0x2e   : > { %15249 = vmatprep.mubr.msk.f32.mxu1 %vm1127_vm1, %v1301_v35  ;;  %15446 = vmatprep.mubr.msk.f32.mxu0 %vm1127_vm1, %v1301_v35  ;;  %1226 = vst.msk [vmem:[#allocation2 + $0xf1] sm:$0xff] %vm1127_vm1, %v1194_v49  ;;  %1227 = vst.msk [vmem:[#allocation2 + $0xf9] sm:$0xff] %vm1127_vm1, %v1195_v50  ;;  %v1311_v61 = vld [vmem:[#allocation2 + $0x81] sm:$0xff]  ;;  %v1312_v2 = vld [vmem:[#allocation2 + $0x89] sm:$0xff]  ;;  %v17933_v48 = vsel %vm1008_vm6, 1.0, %v21614_v1  ;;  %vm1010_vm7 = vcmp.lt.s32.totalorder %v946_v40, 16 }
  0x2f   : > { %v17855_v3 = vld [vmem:[#allocation2 + $0x12] sm:$0xff]  ;;  %21963 = vst [vmem:[#allocation4_spill] sm:$0xff] %v17858_v4  ;;  %v17860_v5 = vld [vmem:[#allocation2 + $0x1a] sm:$0xff]  ;;  %1228 = vst.msk [vmem:[#allocation2 + $0x101] sm:$0xff] %vm1127_vm1, %v1196_v10  ;;  %v948_v53 = vadd.s32 1, %v454_v41  ;;  %v743_v54 = vadd.s32 4294967295, %v363_v42 }
  0x30   : > { %v1313_v7 = vld [vmem:[#allocation2 + $0x91] sm:$0xff]  ;;  %1229 = vst.msk [vmem:[#allocation2 + $0x109] sm:$0xff] %vm1127_vm1, %v1197_v12  ;;  %v3245_v13 = vmul.f32 %v17858_v4, %v17860_v5  ;;  %v1314_v14 = vld [vmem:[#allocation2 + $0x99] sm:$0xff]  ;;  %21964 = vst [vmem:[#allocation5_spill] sm:$0xff] %v17875_v15  ;;  %v747_v10 = vadd.s32 4294967295, %v391_v58  ;;  %v335_v28 = vadd.s32 64, %v17813_v39 }
  0x31   : > { %15250 = vmatmul.mubr.msk.f32.gmra.mrb[6].mxu1 %vm1127_vm1, %v1302_v37  ;;  %15447 = vmatmul.mubr.msk.f32.gmra.mrb[4].mxu0 %vm1127_vm1, %v1302_v37  ;;  %v17877_v16 = vld [vmem:[#allocation2 + $0x2a] sm:$0xff]  ;;  %v1315_v17 = vld [vmem:[#allocation2 + $0xa1] sm:$0xff]  ;;  %21965 = vst [vmem:[#allocation6_spill] sm:$0xff] %v17890_v24  ;;  %v17894_v27 = vld [vmem:[#allocation2 + $0x32] sm:$0xff]  ;;  %vm1012_vm8 = vcmp.lt.s32.totalorder %v948_v53, 16  ;;  %vm775_vm9 = vcmp.ge.s32.totalorder %v743_v54, 0 }
  0x32   : > { %15252 = vmatprep.mubr.msk.f32.mxu1 %vm1127_vm1, %v1303_v38  ;;  %15449 = vmatprep.mubr.msk.f32.mxu0 %vm1127_vm1, %v1303_v38  ;;  %v17879_v18 = vld [vmem:[#allocation2 + $0x22] sm:$0xff]  ;;  %v3247_v22 = vmul.f32 %v17875_v15, %v17877_v16  ;;  %v17892_v25 = vld [vmem:[#allocation2 + $0x3a] sm:$0xff]  ;;  %v1317_v26 = vld [vmem:[#allocation2 + $0xb1] sm:$0xff]  ;;  %21966 = vst [vmem:[#allocation7_spill] sm:$0xff] %v17907_v34  ;;  %vm779_vm13 = vcmp.ge.s32.totalorder %v747_v10, 0  ;;  %v510_v40 = vand.u32 15, %v348_v19 }
  0x33   : > { %v1316_v23 = vld [vmem:[#allocation2 + $0xa9] sm:$0xff]  ;;  %v3249_v31 = vmul.f32 %v17890_v24, %v17892_v25  ;;  %v1318_v32 = vld [vmem:[#allocation2 + $0xb9] sm:$0xff]  ;;  %v1319_v37 = vld [vmem:[#allocation2 + $0xc1] sm:$0xff]  ;;  %21967 = vst [vmem:[#allocation8_spill] sm:$0xff] %v17933_v48  ;;  %v350_v41 = vadd.s32 184, %v17813_v39  ;;  %v419_v46 = vand.u32 15, %v335_v28 }
  0x34   : > { %v17909_v35 = vld [vmem:[#allocation2 + $0x4a] sm:$0xff]  ;;  %v17917_v38 = vld [vmem:[#allocation2 + $0x42] sm:$0xff]  ;;  %v17935_v49 = vld [vmem:[#allocation2 + $0x5a] sm:$0xff]  ;;  %v18008_v53 = vsel %vm779_vm13, 1.0, %v21614_v1 }
  0x35   : > { %15253 = vmatmul.mubr.msk.f32.gmra.mrb[8].mxu1 %vm1127_vm1, %v1304_v43  ;;  %15450 = vmatmul.mubr.msk.f32.gmra.mrb[6].mxu0 %vm1127_vm1, %v1304_v43  ;;  %v329_v43 = vadd.s32 16, %v17813_v39  ;;  %v3251_v44 = vmul.f32 %v17907_v34, %v17909_v35  ;;  %v1320_v47 = vld [vmem:[#allocation2 + $0xc9] sm:$0xff]  ;;  %v1322_v59 = vld [vmem:[#allocation2 + $0xd9] sm:$0xff]  ;;  %v1323_v0 = vld [vmem:[#allocation2 + $0xe1] sm:$0xff]  ;;  %21976 = vst [vmem:[#allocation17_spill] sm:$0xff] %v18008_v53  ;;  %v524_v58 = vand.u32 15, %v350_v41 }
  0x36   : > { %15255 = vmatprep.mubr.msk.f32.mxu1 %vm1127_vm1, %v1305_v45  ;;  %15452 = vmatprep.mubr.msk.f32.mxu0 %vm1127_vm1, %v1305_v45  ;;  %v344_v45 = vadd.s32 136, %v17813_v39  ;;  %v1324_v12 = vld [vmem:[#allocation2 + $0xe9] sm:$0xff]  ;;  %v1325_v20 = vld [vmem:[#allocation2 + $0xf1] sm:$0xff] }
  0x37   : > { %v17968_v21 = vld [vmem:[#allocation2 + $0x72] sm:$0xff]  ;;  %v17989_v42 = vld [vmem:[#allocation2 + $0x82] sm:$0xff]  ;;  %v18042_v19 = vld [vmem:[#allocation2 + $0xaa] sm:$0xff] }
  0x38   : > { %v482_v57 = vand.u32 15, %v344_v45  ;;  %21972 = vst [vmem:[#allocation13_spill] sm:$0xff] %v17989_v42  ;;  %v1231_v54 = vld [vmem:[#allocation2 + $0x8] sm:$0xff]  ;;  %21982 = vst [vmem:[#allocation23_spill] sm:$0xff] %v18042_v19 }
  0x39   : > { %15256 = vmatmul.mubr.msk.f32.gmra.mrb[10].mxu1 %vm1127_vm1, %v1306_v51  ;;  %15453 = vmatmul.mubr.msk.f32.gmra.mrb[8].mxu0 %vm1127_vm1, %v1306_v51  ;;  %v1321_v51 = vld [vmem:[#allocation2 + $0xd1] sm:$0xff]  ;;  %v18066_v41 = vld [vmem:[#allocation2 + $0x28] sm:$0xff] }
  0x3a   : > { %15258 = vmatprep.mubr.msk.f32.mxu1 %vm1127_vm1, %v1307_v52  ;;  %15455 = vmatprep.mubr.msk.f32.mxu0 %vm1127_vm1, %v1307_v52  ;;  %v17937_v52 = vld [vmem:[#allocation2 + $0x52] sm:$0xff]  ;;  %v952_v9 = vadd.s32 1, %v482_v57  ;;  %v956_v57 = vadd.s32 1, %v510_v40  ;;  %21986 = vst [vmem:[#allocation27_spill] sm:$0xff] %v18066_v41 }
  0x3c   : > { %vm1016_vm12 = vcmp.lt.s32.totalorder %v952_v9, 16  ;;  %vm1020_vm2 = vcmp.lt.s32.totalorder %v956_v57, 16 }
  0x3d   : > { %15259 = vmatmul.mubr.msk.f32.gmra.mrb[12].mxu1 %vm1127_vm1, %v1308_v55  ;;  %15456 = vmatmul.mubr.msk.f32.gmra.mrb[10].mxu0 %vm1127_vm1, %v1308_v55  ;;  %v377_v55 = vand.u32 15, %v329_v43 }
  0x3e   : > { %15261 = vmatprep.mubr.msk.f32.mxu1 %vm1127_vm1, %v1309_v56  ;;  %15458 = vmatprep.mubr.msk.f32.mxu0 %vm1127_vm1, %v1309_v56  ;;  %v3253_v56 = vmul.f32 %v17933_v48, %v17935_v49 }
  0x41   : > { %15262 = vmatmul.mubr.msk.f32.gmra.mrb[14].mxu1 %vm1127_vm1, %v1310_v60  ;;  %15459 = vmatmul.mubr.msk.f32.gmra.mrb[12].mxu0 %vm1127_vm1, %v1310_v60  ;;  %v17947_v60 = vsel %vm1010_vm7, 1.0, %v21614_v1 }
  0x42   : > { %15264 = vmatprep.mubr.msk.f32.mxu1 %vm1127_vm1, %v1311_v61  ;;  %15461 = vmatprep.mubr.msk.f32.mxu0 %vm1127_vm1, %v1311_v61  ;;  %21968 = vst [vmem:[#allocation9_spill] sm:$0xff] %v17947_v60  ;;  %v17949_v61 = vld [vmem:[#allocation2 + $0x6a] sm:$0xff] }
  0x43   : > { %v3255_v8 = vmul.f32 %v17947_v60, %v17949_v61 }
  0x45   : > { %15265 = vmatmul.mubr.msk.f32.gmra.mrb[16].mxu1 %vm1127_vm1, %v1312_v2  ;;  %15462 = vmatmul.mubr.msk.f32.gmra.mrb[14].mxu0 %vm1127_vm1, %v1312_v2  ;;  %v17952_v2 = vld [vmem:[#allocation2 + $0x62] sm:$0xff] }
  0x46   : > { %15267 = vmatprep.mubr.msk.f32.mxu1 %vm1127_vm1, %v1313_v7  ;;  %15490 = vmatprep.mubr.msk.f32.mxu0 %vm1127_vm1, %v17855_v3  ;;  %v745_v7 = vadd.s32 4294967295, %v377_v55 }
  0x48   : > { %vm777_vm11 = vcmp.ge.s32.totalorder %v745_v7, 0  ;;  %v339_v7 = vadd.s32 96, %v17813_v39 }
  0x49   : > { %15268 = vmatmul.mubr.msk.f32.gmra.mrb[18].mxu1 %vm1127_vm1, %v1314_v14  ;;  %15491 = vmatmul.mubr.msk.f32.vlgmr.msra.gmra.mrb[0].mxu0 %vm1127_vm1, %v3245_v13  ;;  %v17963_v13 = vsel %vm1012_vm8, 1.0, %v21614_v1  ;;  %v17965_v14 = vld [vmem:[#allocation2 + $0x7a] sm:$0xff]  ;;  %v17993_v43 = vsel %vm777_vm11, 1.0, %v21614_v1 }
  0x4a   : > { %15270 = vmatprep.mubr.msk.f32.mxu1 %vm1127_vm1, %v1315_v17  ;;  %15493 = vmatprep.mubr.msk.f32.mxu0 %vm1127_vm1, %v17879_v18  ;;  %21969 = vst [vmem:[#allocation10_spill] sm:$0xff] %v17963_v13  ;;  %v496_v17 = vand.u32 15, %v346_v63  ;;  %v3257_v29 = vmul.f32 %v17963_v13, %v17965_v14  ;;  %21973 = vst [vmem:[#allocation14_spill] sm:$0xff] %v17993_v43 }
  0x4b   : > { %15539 = vmatpush3.msk.msra.mxu0 %vm1425_vm0, %v17801_v33  ;;  %v342_v33 = vadd.s32 120, %v17813_v39 }
  0x4c   : > { %15588 = vmatprep.subr.msk.mxu0 %vm1425_vm0, %v17915_v36 }
  0x4d   : > { %15271 = vmatmul.mubr.msk.f32.gmra.mrb[20].mxu1 %vm1127_vm1, %v1316_v23  ;;  %15494 = vmatmul.mubr.msk.f32.gmra.mrb[2].mxu0 %vm1127_vm1, %v3247_v22  ;;  %v468_v50 = vand.u32 15, %v342_v33  ;;  %v17972_v22 = vsel %vm775_vm9, 1.0, %v21614_v1  ;;  %v1230_v23 = vld [vmem:[#allocation2] sm:$0xff]  ;;  %v17986_v33 = vld [vmem:[#allocation2 + $0x8a] sm:$0xff] }
  0x4e   : > { %15273 = vmatprep.mubr.msk.f32.mxu1 %vm1127_vm1, %v1317_v26  ;;  %15496 = vmatprep.mubr.msk.f32.mxu0 %vm1127_vm1, %v17894_v27  ;;  %21970 = vst [vmem:[#allocation11_spill] sm:$0xff] %v17972_v22  ;;  %v405_v26 = vand.u32 15, %v333_v6  ;;  %v18020_v6 = vld [vmem:[#allocation2 + $0x92] sm:$0xff] }
  0x4f   : > { %v950_v62 = vadd.s32 1, %v468_v50  ;;  %21979 = vst [vmem:[#allocation20_spill] sm:$0xff] %v18020_v6 }
  0x50   : > { %v749_v45 = vadd.s32 4294967295, %v405_v26  ;;  %v18050_v26 = vld [vmem:[#allocation2 + $0xa2] sm:$0xff] }
  0x51   : > { %15274 = vmatmul.mubr.msk.f32.gmra.mrb[22].mxu1 %vm1127_vm1, %v1318_v32  ;;  %15497 = vmatmul.mubr.msk.f32.gmra.mrb[4].mxu0 %vm1127_vm1, %v3249_v31  ;;  %vm1014_vm10 = vcmp.lt.s32.totalorder %v950_v62, 16  ;;  %v1326_v31 = vld [vmem:[#allocation2 + $0xf9] sm:$0xff]  ;;  %v1262_v32 = vmul.f32 %v17972_v22, %v1230_v23  ;;  %v751_v62 = vadd.s32 4294967295, %v419_v46  ;;  %v958_v23 = vadd.s32 1, %v524_v58  ;;  %21984 = vst [vmem:[#allocation25_spill] sm:$0xff] %v18050_v26 }
  0x52   : > { %15276 = vmatprep.mubr.msk.f32.mxu1 %vm1127_vm1, %v1319_v37  ;;  %15499 = vmatprep.mubr.msk.f32.mxu0 %vm1127_vm1, %v17917_v38  ;;  %v17980_v30 = vsel %vm1014_vm10, 1.0, %v21614_v1  ;;  %v954_v37 = vadd.s32 1, %v496_v17  ;;  %vm781_vm15 = vcmp.ge.s32.totalorder %v749_v45, 0  ;;  %v18072_v46 = vsel %vm1020_vm2, 1.0, %v21614_v1 }
  0x53   : > { %21971 = vst [vmem:[#allocation12_spill] sm:$0xff] %v17980_v30  ;;  %v3259_v50 = vmul.f32 %v17980_v30, %v17986_v33  ;;  %vm783_vm3 = vcmp.ge.s32.totalorder %v751_v62, 0  ;;  %21987 = vst [vmem:[#allocation28_spill] sm:$0xff] %v18072_v46  ;;  %vm1022_vm4 = vcmp.lt.s32.totalorder %v958_v23, 16 }
  0x54   : > { %vm1018_vm14 = vcmp.lt.s32.totalorder %v954_v37, 16  ;;  %v341_v37 = vadd.s32 112, %v17813_v39 }
  0x55   : > { %15277 = vmatmul.mubr.msk.f32.gmra.mrb[24].mxu1 %vm1127_vm1, %v1320_v47  ;;  %15500 = vmatmul.mubr.msk.f32.gmra.mrb[6].mxu0 %vm1127_vm1, %v3251_v44  ;;  %v17995_v44 = vld [vmem:[#allocation2 + $0x10] sm:$0xff]  ;;  %v337_v47 = vadd.s32 80, %v17813_v39  ;;  %v18033_v10 = vsel %vm1018_vm14, 1.0, %v21614_v1  ;;  %vm1164_vm14 = vcmask 25600  }
  0x56   : > { %15279 = vmatprep.mubr.msk.f32.mxu1 %vm1127_vm1, %v1321_v51  ;;  %15502 = vmatprep.mubr.msk.f32.mxu0 %vm1127_vm1, %v17937_v52  ;;  %21974 = vst [vmem:[#allocation15_spill] sm:$0xff] %v17995_v44  ;;  %v18004_v51 = vsel %vm1016_vm12, 1.0, %v21614_v1  ;;  %v1264_v55 = vmul.f32 %v17993_v43, %v17995_v44  ;;  %21980 = vst [vmem:[#allocation21_spill] sm:$0xff] %v18033_v10  ;;  %v3263_v40 = vmul.f32 %v18033_v10, %v18042_v19 }
  0x57   : > { %21975 = vst [vmem:[#allocation16_spill] sm:$0xff] %v18004_v51  ;;  %v433_v63 = vand.u32 15, %v337_v47  ;;  %v18074_v47 = vld [vmem:[#allocation2 + $0xba] sm:$0xff]  ;;  %v461_v57 = vand.u32 15, %v341_v37  ;;  %1165 = vst.msk [vmem:[#allocation2 + $0x120] sm:$0x3] %vm1164_vm14, %v21614_v1 }
  0x58   : > { %21988 = vst [vmem:[#allocation29_spill] sm:$0xff] %v18074_v47  ;;  %v3265_v62 = vmul.f32 %v18072_v46, %v18074_v47  ;;  %v347_v46 = vadd.s32 160, %v17813_v39 }
  0x59   : > { %15280 = vmatmul.mubr.msk.f32.gmra.mrb[26].mxu1 %vm1127_vm1, %v1322_v59  ;;  %15503 = vmatmul.mubr.msk.f32.gmra.mrb[8].mxu0 %vm1127_vm1, %v3253_v56  ;;  %v18015_v56 = vld [vmem:[#allocation2 + $0x9a] sm:$0xff]  ;;  %v753_v28 = vadd.s32 4294967295, %v433_v63  ;;  %v757_v47 = vadd.s32 4294967295, %v461_v57  ;;  %v18131_v57 = vld [vmem:[#allocation2 + $0xd2] sm:$0xff] }
  0x5a   : > { %15282 = vmatprep.mubr.msk.f32.mxu1 %vm1127_vm1, %v1323_v0  ;;  %15505 = vmatprep.mubr.msk.f32.mxu0 %vm1127_vm1, %v17952_v2  ;;  %21977 = vst [vmem:[#allocation18_spill] sm:$0xff] %v18015_v56  ;;  %v18017_v59 = vld [vmem:[#allocation2 + $0x20] sm:$0xff]  ;;  %v352_v0 = vadd.s32 200, %v17813_v39  ;;  %v3261_v9 = vmul.f32 %v18004_v51, %v18015_v56  ;;  %22000 = vst [vmem:[#allocation41_spill] sm:$0xff] %v18131_v57  ;;  %v353_v56 = vadd.s32 208, %v17813_v39 }
  0x5b   : > { %21978 = vst [vmem:[#allocation19_spill] sm:$0xff] %v18017_v59  ;;  %v1266_v17 = vmul.f32 %v18008_v53, %v18017_v59  ;;  %vm785_vm5 = vcmp.ge.s32.totalorder %v753_v28, 0  ;;  %vm789_vm9 = vcmp.ge.s32.totalorder %v757_v47, 0  ;;  %v18154_v47 = vld [vmem:[#allocation2 + $0xea] sm:$0xff] }
  0x5c   : > { %v18106_v37 = vsel %vm785_vm5, 1.0, %v21614_v1  ;;  %22005 = vst [vmem:[#allocation46_spill] sm:$0xff] %v18154_v47 }
  0x5d   : > { %15283 = vmatmul.mubr.msk.f32.gmra.mrb[28].mxu1 %vm1127_vm1, %v1324_v12  ;;  %15506 = vmatmul.mubr.msk.f32.gmra.mrb[10].mxu0 %vm1127_vm1, %v3255_v8  ;;  %v18026_v8 = vld [vmem:[%s21578_s2 + $0xc] sm:$0xf]  ;;  %v18038_v12 = vld [vmem:[#allocation2 + $0x18] sm:$0xff]  ;;  %21994 = vst [vmem:[#allocation35_spill] sm:$0xff] %v18106_v37 }
  0x5e   : > { %15285 = vmatprep.mubr.msk.f32.mxu1 %vm1127_vm1, %v1325_v20  ;;  %15508 = vmatprep.mubr.msk.f32.mxu0 %vm1127_vm1, %v17968_v21  ;;  %21981 = vst [vmem:[#allocation22_spill] sm:$0xff] %v18038_v12  ;;  %v18046_v20 = vsel %vm781_vm15, 1.0, %v21614_v1 }
  0x5f   : > { %21983 = vst [vmem:[#allocation24_spill] sm:$0xff] %v18046_v20 }
  0x61   : > { %15286 = vmatmul.mubr.msk.f32.gmra.mrb[30].mxu1 %vm1127_vm1, %v1326_v31  ;;  %15509 = vmatmul.mubr.msk.f32.gmra.mrb[12].mxu0 %vm1127_vm1, %v3257_v29  ;;  %v538_v29 = vand.u32 15, %v352_v0  ;;  %v354_v31 = vadd.s32 216, %v17813_v39  ;;  %v356_v0 = vadd.s32 232, %v17813_v39 }
  0x62   : > { %15290 = vmatprep.mubr.msk.f32.mxu1 %vm1127_vm1, %v1262_v32  ;;  %15511 = vmatprep.mubr.msk.f32.mxu0 %vm1127_vm1, %v17989_v42  ;;  %v447_v32 = vand.u32 15, %v339_v7 }
  0x63   : > { %v960_v58 = vadd.s32 1, %v538_v29  ;;  %v552_v63 = vand.u32 15, %v354_v31  ;;  %v18100_v31 = vsel %vm1022_vm4, 1.0, %v21614_v1  ;;  %v566_v44 = vand.u32 15, %v356_v0 }
  0x64   : > { %v755_v7 = vadd.s32 4294967295, %v447_v32  ;;  %21992 = vst [vmem:[#allocation33_spill] sm:$0xff] %v18100_v31  ;;  %v18102_v32 = vld [vmem:[#allocation2 + $0xca] sm:$0xff] }
  0x65   : > { %15291 = vmatmul.mubr.msk.f32.vlgmr.msra.gmra.mrb[0].mxu1 %vm1127_vm1, %v1231_v54  ;;  %15512 = vmatmul.mubr.msk.f32.gmra.mrb[14].mxu0 %vm1127_vm1, %v3259_v50  ;;  %v18078_v50 = vsel %vm783_vm3, 1.0, %v21614_v1  ;;  %v18080_v54 = vld [vmem:[#allocation2 + $0xb2] sm:$0xff]  ;;  %21993 = vst [vmem:[#allocation34_spill] sm:$0xff] %v18102_v32  ;;  %vm1024_vm6 = vcmp.lt.s32.totalorder %v960_v58, 16  ;;  %v3267_v28 = vmul.f32 %v18100_v31, %v18102_v32  ;;  %v18122_v58 = vld [vmem:[#allocation2 + $0x48] sm:$0xff] }
  0x66   : > { %15339 = vmatpush3.msk.msra.mxu1 %vm1425_vm0, %v17752_v11  ;;  %15293 = vmatprep.mubr.msk.f32.mxu1 %vm1127_vm1, %v1264_v55  ;;  %v18052_v11 = vld [vmem:[#allocation2 + $0x30] sm:$0xff]  ;;  %21989 = vst [vmem:[#allocation30_spill] sm:$0xff] %v18078_v50  ;;  %21990 = vst [vmem:[#allocation31_spill] sm:$0xff] %v18080_v54  ;;  %v18082_v55 = vld [vmem:[#allocation2 + $0x40] sm:$0xff]  ;;  %vm787_vm7 = vcmp.ge.s32.totalorder %v755_v7, 0  ;;  %v18127_v0 = vsel %vm1024_vm6, 1.0, %v21614_v1 }
  0x67   : > { %15514 = vmatprep.mubr.msk.f32.mxu0 %vm1127_vm1, %v18020_v6  ;;  %21985 = vst [vmem:[#allocation26_spill] sm:$0xff] %v18052_v11  ;;  %15388 = vmatprep.subr.msk.mxu1 %vm1425_vm0, %v18026_v8  ;;  %v1268_v45 = vmul.f32 %v18046_v20, %v18052_v11  ;;  %21991 = vst [vmem:[#allocation32_spill] sm:$0xff] %v18082_v55  ;;  %v1270_v29 = vmul.f32 %v18078_v50, %v18082_v55  ;;  %v18129_v7 = vld [vmem:[#allocation2 + $0xda] sm:$0xff] }
  0x68   : > { %21997 = vst [vmem:[#allocation38_spill] sm:$0xff] %v18122_v58  ;;  %21998 = vst [vmem:[#allocation39_spill] sm:$0xff] %v18127_v0  ;;  %v3269_v19 = vmul.f32 %v18127_v0, %v18129_v7  ;;  %v349_v0 = vadd.s32 176, %v17813_v39 }
  0x69   : > { %15294 = vmatmul.mubr.msk.f32.gmra.mrb[2].mxu1 %vm1127_vm1, %v18038_v12  ;;  %15515 = vmatmul.mubr.msk.f32.gmra.mrb[16].mxu0 %vm1127_vm1, %v3261_v9  ;;  %v343_v9 = vadd.s32 128, %v17813_v39  ;;  %v962_v12 = vadd.s32 1, %v552_v63  ;;  %21999 = vst [vmem:[#allocation40_spill] sm:$0xff] %v18129_v7  ;;  %v503_v7 = vand.u32 15, %v347_v46 }
  0x6a   : > { %15296 = vmatprep.mubr.msk.f32.mxu1 %vm1127_vm1, %v1266_v17  ;;  %15517 = vmatprep.mubr.msk.f32.mxu0 %vm1127_vm1, %v18050_v26  ;;  %v18094_v17 = vld [vmem:[#allocation2 + $0x38] sm:$0xff]  ;;  %v345_v26 = vadd.s32 144, %v17813_v39 }
  0x6b   : > { %v475_v23 = vand.u32 15, %v343_v9  ;;  %v18134_v9 = vsel %vm787_vm7, 1.0, %v21614_v1  ;;  %vm1026_vm8 = vcmp.lt.s32.totalorder %v962_v12, 16  ;;  %vm4939_vm7 = vcmask 64512  }
  0x6c   : > { %22001 = vst [vmem:[#allocation42_spill] sm:$0xff] %v18134_v9  ;;  %v489_v31 = vand.u32 15, %v345_v26  ;;  %v18152_v26 = vsel %vm1026_vm8, 1.0, %v21614_v1 }
  0x6d   : > { %15297 = vmatmul.mubr.msk.f32.gmra.mrb[4].mxu1 %vm1127_vm1, %v18066_v41  ;;  %15518 = vmatmul.mubr.msk.f32.gmra.mrb[18].mxu0 %vm1127_vm1, %v3263_v40  ;;  %v18108_v40 = vld [vmem:[#allocation2 + $0xc2] sm:$0xff]  ;;  %v759_v32 = vadd.s32 4294967295, %v475_v23  ;;  %22004 = vst [vmem:[#allocation45_spill] sm:$0xff] %v18152_v26  ;;  %v18159_v23 = vsel %vm789_vm9, 1.0, %v21614_v1  ;;  %v3271_v6 = vmul.f32 %v18152_v26, %v18154_v47  ;;  %v517_v26 = vand.u32 15, %v349_v0 }
  0x6e   : > { %15299 = vmatprep.mubr.msk.f32.mxu1 %vm1127_vm1, %v1268_v45  ;;  %15520 = vmatprep.mubr.msk.f32.mxu0 %vm1127_vm1, %v18080_v54  ;;  %21995 = vst [vmem:[#allocation36_spill] sm:$0xff] %v18108_v40  ;;  %v18110_v45 = vld [vmem:[#allocation2 + $0x50] sm:$0xff]  ;;  %v358_v54 = vadd.s32 248, %v17813_v39  ;;  %22007 = vst [vmem:[#allocation48_spill] sm:$0xff] %v18159_v23  ;;  %v18186_v47 = vld [vmem:[#allocation2 + $0x80] sm:$0xff] }
  0x6f   : > { %21996 = vst [vmem:[#allocation37_spill] sm:$0xff] %v18110_v45  ;;  %v1272_v63 = vmul.f32 %v18106_v37, %v18110_v45  ;;  %vm791_vm11 = vcmp.ge.s32.totalorder %v759_v32, 0  ;;  %v18179_v32 = vld [vmem:[#allocation2 + $0xfa] sm:$0xff]  ;;  %22013 = vst [vmem:[#allocation54_spill] sm:$0xff] %v18186_v47 }
  0x70   : > { %22011 = vst [vmem:[#allocation52_spill] sm:$0xff] %v18179_v32 }
  0x71   : > { %15300 = vmatmul.mubr.msk.f32.gmra.mrb[6].mxu1 %vm1127_vm1, %v18094_v17  ;;  %15521 = vmatmul.mubr.msk.f32.gmra.mrb[20].mxu0 %vm1127_vm1, %v3265_v62  ;;  %v18136_v62 = vld [vmem:[#allocation2 + $0x60] sm:$0xff] }
  0x72   : > { %15302 = vmatprep.mubr.msk.f32.mxu1 %vm1127_vm1, %v1270_v29  ;;  %15523 = vmatprep.mubr.msk.f32.mxu0 %vm1127_vm1, %v18108_v40  ;;  %22002 = vst [vmem:[#allocation43_spill] sm:$0xff] %v18136_v62  ;;  %v964_v29 = vadd.s32 1, %v566_v44  ;;  %v580_v40 = vand.u32 15, %v358_v54  ;;  %v18147_v44 = vld [vmem:[#allocation2 + $0x58] sm:$0xff]  ;;  %v1274_v12 = vmul.f32 %v18134_v9, %v18136_v62  ;;  %v18156_v54 = vld [vmem:[#allocation2 + $0xe2] sm:$0xff] }
  0x73   : > { %22003 = vst [vmem:[#allocation44_spill] sm:$0xff] %v18147_v44  ;;  %22006 = vst [vmem:[#allocation47_spill] sm:$0xff] %v18156_v54 }
  0x74   : > { %vm1028_vm10 = vcmp.lt.s32.totalorder %v964_v29, 16  ;;  %v18172_v29 = vld [vmem:[#allocation2 + $0x68] sm:$0xff] }
  0x75   : > { %15303 = vmatmul.mubr.msk.f32.gmra.mrb[8].mxu1 %vm1127_vm1, %v18122_v58  ;;  %15524 = vmatmul.mubr.msk.f32.gmra.mrb[22].mxu0 %vm1127_vm1, %v3267_v28  ;;  %v18161_v28 = vld [vmem:[#allocation2 + $0x70] sm:$0xff]  ;;  %22009 = vst [vmem:[#allocation50_spill] sm:$0xff] %v18172_v29 }
  0x76   : > { %15305 = vmatprep.mubr.msk.f32.mxu1 %vm1127_vm1, %v1272_v63  ;;  %15526 = vmatprep.mubr.msk.f32.mxu0 %vm1127_vm1, %v18131_v57  ;;  %22008 = vst [vmem:[#allocation49_spill] sm:$0xff] %v18161_v28  ;;  %v966_v63 = vadd.s32 1, %v580_v40  ;;  %v761_v57 = vadd.s32 4294967295, %v489_v31  ;;  %v1276_v46 = vmul.f32 %v18159_v23, %v18161_v28  ;;  %v18177_v31 = vsel %vm1028_vm10, 1.0, %v21614_v1  ;;  %v18181_v40 = vld [vmem:[#allocation2 + $0xf2] sm:$0xff] }
  0x77   : > { %22010 = vst [vmem:[#allocation51_spill] sm:$0xff] %v18177_v31  ;;  %22012 = vst [vmem:[#allocation53_spill] sm:$0xff] %v18181_v40  ;;  %v3273_v10 = vmul.f32 %v18177_v31, %v18179_v32  ;;  %v18212_v31 = vld [vmem:[#allocation2 + $0x90] sm:$0xff] }
  0x78   : > { %vm1030_vm12 = vcmp.lt.s32.totalorder %v966_v63, 16  ;;  %vm793_vm13 = vcmp.ge.s32.totalorder %v761_v57, 0  ;;  %v18198_v63 = vld [vmem:[#allocation2 + $0x78] sm:$0xff]  ;;  %v18205_v57 = vld [vmem:[#allocation2 + $0x10a] sm:$0xff] }
  0x79   : > { %15306 = vmatmul.mubr.msk.f32.gmra.mrb[10].mxu1 %vm1127_vm1, %v18147_v44  ;;  %15527 = vmatmul.mubr.msk.f32.gmra.mrb[24].mxu0 %vm1127_vm1, %v3269_v19  ;;  %v18184_v19 = vsel %vm791_vm11, 1.0, %v21614_v1  ;;  %22015 = vst [vmem:[#allocation56_spill] sm:$0xff] %v18205_v57  ;;  %v18210_v32 = vsel %vm793_vm13, 1.0, %v21614_v1 }
  0x7a   : > { %15308 = vmatprep.mubr.msk.f32.mxu1 %vm1127_vm1, %v1274_v12  ;;  %15529 = vmatprep.mubr.msk.f32.mxu0 %vm1127_vm1, %v18156_v54  ;;  %v351_v12 = vadd.s32 192, %v17813_v39  ;;  %v763_v54 = vadd.s32 4294967295, %v503_v7  ;;  %v1278_v0 = vmul.f32 %v18184_v19, %v18186_v47  ;;  %v18203_v7 = vsel %vm1030_vm12, 1.0, %v21614_v1  ;;  %22017 = vst [vmem:[#allocation58_spill] sm:$0xff] %v18210_v32  ;;  %v18223_v1 = vld [vmem:[#allocation2 + $0x88] sm:$0xff] }
  0x7b   : > { %22014 = vst [vmem:[#allocation55_spill] sm:$0xff] %v18203_v7  ;;  %v3275_v42 = vmul.f32 %v18203_v7, %v18205_v57  ;;  %v545_v7 = vand.u32 15, %v353_v56 }
  0x7c   : > { %vm795_vm15 = vcmp.ge.s32.totalorder %v763_v54, 0  ;;  %v3666_v54 = vmul.f32 %v17972_v22, %v18017_v59 }
  0x7d   : > { %15309 = vmatmul.mubr.msk.f32.gmra.mrb[12].mxu1 %vm1127_vm1, %v18172_v29  ;;  %15530 = vmatmul.mubr.msk.f32.gmra.mrb[26].mxu0 %vm1127_vm1, %v3271_v6  ;;  %v18207_v6 = vld [vmem:[#allocation2 + $0x102] sm:$0xff]  ;;  %v769_v22 = vadd.s32 4294967295, %v545_v7  ;;  %v3670_v7 = vmul.f32 %v18008_v53, %v18082_v55 }
  0x7e   : > { %15311 = vmatprep.mubr.msk.f32.mxu1 %vm1127_vm1, %v1276_v46  ;;  %15532 = vmatprep.mubr.msk.f32.mxu0 %vm1127_vm1, %v18181_v40  ;;  %22016 = vst [vmem:[#allocation57_spill] sm:$0xff] %v18207_v6  ;;  %v765_v46 = vadd.s32 4294967295, %v517_v26  ;;  %v531_v40 = vand.u32 15, %v351_v12  ;;  %v1280_v26 = vmul.f32 %v18210_v32, %v18212_v31  ;;  %v22018_v12 = vmov 0.0  }
  0x7f   : > { %v18230_v51 = vsel %vm795_vm15, 1.0, %v22018_v12  ;;  %vm801_vm4 = vcmp.ge.s32.totalorder %v769_v22, 0  ;;  %v3672_v22 = vmul.f32 %v18046_v20, %v18110_v45  ;;  %v3674_v45 = vmul.f32 %v18078_v50, %v18136_v62  ;;  %4940 = vst.msk [vmem:[#allocation3] sm:$0xff] %vm4939_vm7, %v22018_v12  ;;  %4941 = vst.msk [vmem:[#allocation3 + $0x8] sm:$0xff] %vm4939_vm7, %v22018_v12 }
  0x80   : > { %22019 = vst [vmem:[#allocation59_spill] sm:$0xff] %v18230_v51  ;;  %vm797_vm2 = vcmp.ge.s32.totalorder %v765_v46, 0  ;;  %v767_v57 = vadd.s32 4294967295, %v531_v40  ;;  %v3668_v40 = vmul.f32 %v17993_v43, %v18052_v11  ;;  %v18249_v46 = vld [vmem:[#allocation2 + $0xb0] sm:$0xff]  ;;  %v3676_v62 = vmul.f32 %v18106_v37, %v18161_v28  ;;  %4942 = vst.msk [vmem:[#allocation3 + $0x10] sm:$0xff] %vm4939_vm7, %v22018_v12 }
  0x81   : > { %15312 = vmatmul.mubr.msk.f32.gmra.mrb[14].mxu1 %vm1127_vm1, %v18198_v63  ;;  %15533 = vmatmul.mubr.msk.f32.gmra.mrb[28].mxu0 %vm1127_vm1, %v3273_v10  ;;  %v18232_v10 = vld [vmem:[#allocation2 + $0xa0] sm:$0xff]  ;;  %v18247_v56 = vsel %vm797_vm2, 1.0, %v22018_v12  ;;  %v3678_v28 = vmul.f32 %v18134_v9, %v18186_v47  ;;  %4943 = vst.msk [vmem:[#allocation3 + $0x18] sm:$0xff] %vm4939_vm7, %v22018_v12  ;;  %4944 = vst.msk [vmem:[#allocation3 + $0x20] sm:$0xff] %vm4939_vm7, %v22018_v12 }
  0x82   : > { %15314 = vmatprep.mubr.msk.f32.mxu1 %vm1127_vm1, %v1278_v0  ;;  %15535 = vmatprep.mubr.msk.f32.mxu0 %vm1127_vm1, %v18207_v6  ;;  %v355_v0 = vadd.s32 224, %v17813_v39  ;;  %v18240_v6 = vld [vmem:[#allocation2 + $0x98] sm:$0xff]  ;;  %v1282_v59 = vmul.f32 %v18230_v51, %v18232_v10  ;;  %22020 = vst [vmem:[#allocation60_spill] sm:$0xff] %v18247_v56  ;;  %vm799_vm3 = vcmp.ge.s32.totalorder %v767_v57, 0  ;;  %v18263_v57 = vld [vmem:[#allocation2 + $0xa8] sm:$0xff]  ;;  %4945 = vst.msk [vmem:[#allocation3 + $0x28] sm:$0xff] %vm4939_vm7, %v22018_v12 }
  0x83   : > { %4946 = vst.msk [vmem:[#allocation3 + $0x30] sm:$0xff] %vm4939_vm7, %v22018_v12  ;;  %4947 = vst.msk [vmem:[#allocation3 + $0x38] sm:$0xff] %vm4939_vm7, %v22018_v12 }
  0x84   : > { %4948 = vst.msk [vmem:[#allocation3 + $0x40] sm:$0xff] %vm4939_vm7, %v22018_v12  ;;  %4949 = vst.msk [vmem:[#allocation3 + $0x48] sm:$0xff] %vm4939_vm7, %v22018_v12 }
  0x85   : > { %15315 = vmatmul.mubr.msk.f32.gmra.mrb[16].mxu1 %vm1127_vm1, %v18223_v1  ;;  %15536 = vmatmul.mubr.msk.f32.gmra.mrb[30].mxu0 %vm1127_vm1, %v3275_v42  ;;  %v559_v42 = vand.u32 15, %v355_v0  ;;  %v18270_v0 = vsel %vm799_vm3, 1.0, %v22018_v12  ;;  %4950 = vst.msk [vmem:[#allocation3 + $0x50] sm:$0xff] %vm4939_vm7, %v22018_v12  ;;  %4951 = vst.msk [vmem:[#allocation3 + $0x58] sm:$0xff] %vm4939_vm7, %v22018_v12 }
  0x86   : > { %15317 = vmatprep.mubr.msk.f32.mxu1 %vm1127_vm1, %v1280_v26  ;;  %15540 = vmatprep.mubr.msk.f32.mxu0 %vm1127_vm1, %v3666_v54  ;;  %v357_v26 = vadd.s32 240, %v17813_v39  ;;  %v18259_v54 = vld [vmem:[%s21578_s2 + $0x20] sm:$0xf]  ;;  %v1284_v39 = vmul.f32 %v18247_v56, %v18249_v46  ;;  %22021 = vst [vmem:[#allocation61_spill] sm:$0xff] %v18270_v0  ;;  %4952 = vst.msk [vmem:[#allocation3 + $0x60] sm:$0xff] %vm4939_vm7, %v22018_v12 }
  0x87   : > { %4953 = vst.msk [vmem:[#allocation3 + $0x68] sm:$0xff] %vm4939_vm7, %v22018_v12  ;;  %4954 = vst.msk [vmem:[#allocation3 + $0x70] sm:$0xff] %vm4939_vm7, %v22018_v12 }
  0x88   : > { %v573_v11 = vand.u32 15, %v357_v26  ;;  %v18293_v26 = vld [vmem:[#allocation2 + $0xd0] sm:$0xff]  ;;  %4955 = vst.msk [vmem:[#allocation3 + $0x78] sm:$0xff] %vm4939_vm7, %v22018_v12  ;;  %4956 = vst.msk [vmem:[#allocation3 + $0x80] sm:$0xff] %vm4939_vm7, %v22018_v12 }
  0x89   : > { %15318 = vmatmul.mubr.msk.f32.gmra.mrb[18].mxu1 %vm1127_vm1, %v18240_v6  ;;  %15541 = vmatmul.mubr.msk.f32.vlgmr.msra.gmra.mrb[0].mxu0 %vm1127_vm1, %v18066_v41  ;;  %v18272_v41 = vld [vmem:[#allocation2 + $0xc0] sm:$0xff]  ;;  %4957 = vst.msk [vmem:[#allocation3 + $0x88] sm:$0xff] %vm4939_vm7, %v22018_v12  ;;  %4958 = vst.msk [vmem:[#allocation3 + $0x90] sm:$0xff] %vm4939_vm7, %v22018_v12 }
  0x8a   : > { %15320 = vmatprep.mubr.msk.f32.mxu1 %vm1127_vm1, %v1282_v59  ;;  %15543 = vmatprep.mubr.msk.f32.mxu0 %vm1127_vm1, %v3668_v40  ;;  %v771_v59 = vadd.s32 4294967295, %v559_v42  ;;  %v18284_v40 = vld [vmem:[#allocation2 + $0xb8] sm:$0xff]  ;;  %v18291_v42 = vsel %vm801_vm4, 1.0, %v22018_v12  ;;  %v773_v55 = vadd.s32 4294967295, %v573_v11  ;;  %4959 = vst.msk [vmem:[#allocation3 + $0x98] sm:$0xff] %vm4939_vm7, %v22018_v12  ;;  %4960 = vst.msk [vmem:[#allocation3 + $0xa0] sm:$0xff] %vm4939_vm7, %v22018_v12 }
  0x8b   : > { %15589 = vmatpush3.msk.msra.mxu0 %vm1425_vm0, %v17915_v36  ;;  %v1286_v36 = vmul.f32 %v18270_v0, %v18272_v41  ;;  %22022 = vst [vmem:[#allocation62_spill] sm:$0xff] %v18291_v42  ;;  %4961 = vst.msk [vmem:[#allocation3 + $0xa8] sm:$0xff] %vm4939_vm7, %v22018_v12 }
  0x8c   : > { %15638 = vmatprep.subr.msk.mxu0 %vm1425_vm0, %v18259_v54  ;;  %vm803_vm5 = vcmp.ge.s32.totalorder %v771_v59, 0  ;;  %v18310_v59 = vld [vmem:[#allocation2 + $0xe0] sm:$0xff]  ;;  %vm805_vm6 = vcmp.ge.s32.totalorder %v773_v55, 0  ;;  %4962 = vst.msk [vmem:[#allocation3 + $0xb0] sm:$0xff] %vm4939_vm7, %v22018_v12  ;;  %4963 = vst.msk [vmem:[#allocation3 + $0xb8] sm:$0xff] %vm4939_vm7, %v22018_v12 }
  0x8d   : > { %15321 = vmatmul.mubr.msk.f32.gmra.mrb[20].mxu1 %vm1127_vm1, %v18263_v57  ;;  %15544 = vmatmul.mubr.msk.f32.gmra.mrb[2].mxu0 %vm1127_vm1, %v18094_v17  ;;  %v18308_v11 = vsel %vm803_vm5, 1.0, %v22018_v12  ;;  %v18325_v55 = vsel %vm805_vm6, 1.0, %v22018_v12  ;;  %4964 = vst.msk [vmem:[#allocation3 + $0xc0] sm:$0xff] %vm4939_vm7, %v22018_v12  ;;  %4965 = vst.msk [vmem:[#allocation3 + $0xc8] sm:$0xff] %vm4939_vm7, %v22018_v12 }
  0x8e   : > { %15323 = vmatprep.mubr.msk.f32.mxu1 %vm1127_vm1, %v1284_v39  ;;  %15546 = vmatprep.mubr.msk.f32.mxu0 %vm1127_vm1, %v3670_v7  ;;  %v18301_v39 = vld [vmem:[#allocation2 + $0xc8] sm:$0xff]  ;;  %v1288_v7 = vmul.f32 %v18291_v42, %v18293_v26  ;;  %22023 = vst [vmem:[#allocation63_spill] sm:$0xff] %v18308_v11  ;;  %22024 = vst [vmem:[#allocation64_spill] sm:$0xff] %v18325_v55 }
  0x8f   : > { %4966 = vst.msk [vmem:[#allocation3 + $0xd0] sm:$0xff] %vm4939_vm7, %v22018_v12  ;;  %4967 = vst.msk [vmem:[#allocation3 + $0xd8] sm:$0xff] %vm4939_vm7, %v22018_v12 }
  0x90   : > { %4968 = vst.msk [vmem:[#allocation3 + $0xe0] sm:$0xff] %vm4939_vm7, %v22018_v12  ;;  %4969 = vst.msk [vmem:[#allocation3 + $0xe8] sm:$0xff] %vm4939_vm7, %v22018_v12 }
  0x91   : > { %15324 = vmatmul.mubr.msk.f32.gmra.mrb[22].mxu1 %vm1127_vm1, %v18284_v40  ;;  %15547 = vmatmul.mubr.msk.f32.gmra.mrb[4].mxu0 %vm1127_vm1, %v18122_v58  ;;  %v18327_v58 = vld [vmem:[#allocation2 + $0xf0] sm:$0xff]  ;;  %4970 = vst.msk [vmem:[#allocation3 + $0xf0] sm:$0xff] %vm4939_vm7, %v22018_v12  ;;  %4971 = vst.msk [vmem:[#allocation3 + $0xf8] sm:$0xff] %vm4939_vm7, %v22018_v12 }
  0x92   : > { %15326 = vmatprep.mubr.msk.f32.mxu1 %vm1127_vm1, %v1286_v36  ;;  %15549 = vmatprep.mubr.msk.f32.mxu0 %vm1127_vm1, %v3672_v22  ;;  %v18318_v36 = vld [vmem:[#allocation2 + $0xd8] sm:$0xff]  ;;  %v1290_v22 = vmul.f32 %v18308_v11, %v18310_v59  ;;  %4972 = vst.msk [vmem:[#allocation3 + $0x100] sm:$0xff] %vm4939_vm7, %v22018_v12  ;;  %4973 = vst.msk [vmem:[#allocation3 + $0x108] sm:$0xff] %vm4939_vm7, %v22018_v12 }
  0x93   : > { %4974 = vst.msk [vmem:[#allocation3 + $0x110] sm:$0xff] %vm4939_vm7, %v22018_v12  ;;  %4975 = vst.msk [vmem:[#allocation3 + $0x118] sm:$0xff] %vm4939_vm7, %v22018_v12  ;;  %v18736_v12 = vld [vmem:[#allocation2 + $0xc1] sm:$0xff] }
  0x95   : > { %15327 = vmatmul.mubr.msk.f32.gmra.mrb[24].mxu1 %vm1127_vm1, %v18301_v39  ;;  %15550 = vmatmul.mubr.msk.f32.gmra.mrb[6].mxu0 %vm1127_vm1, %v18147_v44  ;;  %v1978_v44 = vld [vmem:[#allocation2 + $0x2] sm:$0xff] }
  0x96   : > { %15329 = vmatprep.mubr.msk.f32.mxu1 %vm1127_vm1, %v1288_v7  ;;  %15552 = vmatprep.mubr.msk.f32.mxu0 %vm1127_vm1, %v3674_v45  ;;  %v18335_v45 = vld [vmem:[#allocation2 + $0xe8] sm:$0xff]  ;;  %v1292_v7 = vmul.f32 %v18325_v55, %v18327_v58 }
  0x99   : > { %15330 = vmatmul.mubr.msk.f32.gmra.mrb[26].mxu1 %vm1127_vm1, %v18318_v36  ;;  %15553 = vmatmul.mubr.msk.f32.gmra.mrb[8].mxu0 %vm1127_vm1, %v18172_v29  ;;  %v1979_v29 = vld [vmem:[#allocation2 + $0xa] sm:$0xff] }
  0x9a   : > { %15332 = vmatprep.mubr.msk.f32.mxu1 %vm1127_vm1, %v1290_v22  ;;  %15555 = vmatprep.mubr.msk.f32.mxu0 %vm1127_vm1, %v3676_v62  ;;  %v18347_v22 = vld [vmem:[#allocation2 + $0xf8] sm:$0xff]  ;;  %v3680_v62 = vmul.f32 %v18159_v23, %v18212_v31  ;;  %v2011_v47 = vmul.f32 %v17858_v4, %v1979_v29  ;;  %v2023_v29 = vmul.f32 %v17963_v13, %v17949_v61 }
  0x9b   : > { %v2025_v61 = vmul.f32 %v17980_v30, %v17965_v14  ;;  %v18526_v14 = vld [vmem:[%s18518_s13 + $0x8] sm:$0xff] }
  0x9c   : > { %22026 = vst [vmem:[#allocation66_spill] sm:$0xff] %v18526_v14  ;;  %4979 = vst.msk [vmem:[#allocation3 + $0x19] sm:$0xff] %vm4939_vm7, %v18526_v14 }
  0x9d   : > { %15333 = vmatmul.mubr.msk.f32.gmra.mrb[28].mxu1 %vm1127_vm1, %v18335_v45  ;;  %15556 = vmatmul.mubr.msk.f32.gmra.mrb[10].mxu0 %vm1127_vm1, %v18198_v63 }
  0x9e   : > { %15335 = vmatprep.mubr.msk.f32.mxu1 %vm1127_vm1, %v1292_v7  ;;  %15558 = vmatprep.mubr.msk.f32.mxu0 %vm1127_vm1, %v3678_v28  ;;  %v3682_v28 = vmul.f32 %v18184_v19, %v18232_v10  ;;  %v2013_v7 = vmul.f32 %v17875_v15, %v17860_v5  ;;  %v3686_v5 = vmul.f32 %v18230_v51, %v18272_v41 }
  0xa1   : > { %15336 = vmatmul.mubr.msk.f32.gmra.mrb[30].mxu1 %vm1127_vm1, %v18347_v22  ;;  %15559 = vmatmul.mubr.msk.f32.gmra.mrb[12].mxu0 %vm1127_vm1, %v18223_v1 }
  0xa2   : > { %15340 = vmatprep.mubr.msk.f32.mxu1 %vm1127_vm1, %v1978_v44  ;;  %15561 = vmatprep.mubr.msk.f32.mxu0 %vm1127_vm1, %v3680_v62  ;;  %v3684_v44 = vmul.f32 %v18210_v32, %v18249_v46 }
  0xa5   : > { %15341 = vmatmul.mubr.msk.f32.vlgmr.msra.gmra.mrb[0].mxu1 %vm1127_vm1, %v2011_v47  ;;  %15562 = vmatmul.mubr.msk.f32.gmra.mrb[14].mxu0 %vm1127_vm1, %v18240_v6  ;;  %v18375_v47 = vld [vmem:[%s21578_s2 + $0x10] sm:$0xf] }
  0xa6   : > { %15389 = vmatpush3.msk.msra.mxu1 %vm1425_vm0, %v18026_v8  ;;  %15343 = vmatprep.mubr.msk.f32.mxu1 %vm1127_vm1, %v17855_v3  ;;  %v2015_v3 = vmul.f32 %v17890_v24, %v17877_v16  ;;  %v2017_v8 = vmul.f32 %v17907_v34, %v17892_v25  ;;  %v3688_v16 = vmul.f32 %v18247_v56, %v18293_v26 }
  0xa7   : > { %15564 = vmatprep.mubr.msk.f32.mxu0 %vm1127_vm1, %v3682_v28  ;;  %16588 = vmatprep.subr.msk.mxu1 %vm1425_vm0, %v18375_v47  ;;  %v3690_v25 = vmul.f32 %v18270_v0, %v18310_v59  ;;  %v18521_v28 = vld [vmem:[%s18518_s13] sm:$0xff] }
  0xa8   : > { %22025 = vst [vmem:[#allocation65_spill] sm:$0xff] %v18521_v28  ;;  %4978 = vst.msk [vmem:[#allocation3 + $0x11] sm:$0xff] %vm4939_vm7, %v18521_v28 }
  0xa9   : > { %15344 = vmatmul.mubr.msk.f32.gmra.mrb[2].mxu1 %vm1127_vm1, %v2013_v7  ;;  %15565 = vmatmul.mubr.msk.f32.gmra.mrb[16].mxu0 %vm1127_vm1, %v18263_v57 }
  0xaa   : > { %15346 = vmatprep.mubr.msk.f32.mxu1 %vm1127_vm1, %v17879_v18  ;;  %15567 = vmatprep.mubr.msk.f32.mxu0 %vm1127_vm1, %v3684_v44  ;;  %v2019_v18 = vmul.f32 %v17933_v48, %v17909_v35  ;;  %v3692_v35 = vmul.f32 %v18291_v42, %v18327_v58  ;;  %v22028_v44 = vld [vmem:[#allocation13_spill] sm:$0xff] }
  0xad   : > { %15347 = vmatmul.mubr.msk.f32.gmra.mrb[4].mxu1 %vm1127_vm1, %v2015_v3  ;;  %15568 = vmatmul.mubr.msk.f32.gmra.mrb[18].mxu0 %vm1127_vm1, %v18284_v40  ;;  %v3665_v3 = vld [vmem:[#allocation2 + $0x118] sm:$0xff] }
  0xae   : > { %15349 = vmatprep.mubr.msk.f32.mxu1 %vm1127_vm1, %v17894_v27  ;;  %15570 = vmatprep.mubr.msk.f32.mxu0 %vm1127_vm1, %v3686_v5  ;;  %v2021_v27 = vmul.f32 %v17947_v60, %v17935_v49  ;;  %v4056_v5 = vld [vmem:[#allocation2 + $0x21] sm:$0xff] }
  0xb1   : > { %15350 = vmatmul.mubr.msk.f32.gmra.mrb[6].mxu1 %vm1127_vm1, %v2017_v8  ;;  %15571 = vmatmul.mubr.msk.f32.gmra.mrb[20].mxu0 %vm1127_vm1, %v18301_v39  ;;  %v18539_v8 = vld [vmem:[%s18518_s13 + $0x10] sm:$0xff] }
  0xb2   : > { %15352 = vmatprep.mubr.msk.f32.mxu1 %vm1127_vm1, %v17917_v38  ;;  %15573 = vmatprep.mubr.msk.f32.mxu0 %vm1127_vm1, %v3688_v16  ;;  %v18419_v38 = vld [vmem:[#allocation2 + $0x100] sm:$0xff]  ;;  %22029 = vst [vmem:[#allocation13_spill] sm:$0xff] %v18539_v8  ;;  %4980 = vst.msk [vmem:[#allocation3 + $0x21] sm:$0xff] %vm4939_vm7, %v18539_v8  ;;  %v18544_v16 = vld [vmem:[%s18518_s13 + $0x18] sm:$0xff] }
  0xb3   : > { %v3694_v49 = vmul.f32 %v18308_v11, %v18419_v38  ;;  %22030 = vst [vmem:[#allocation67_spill] sm:$0xff] %v18544_v16  ;;  %4981 = vst.msk [vmem:[#allocation3 + $0x29] sm:$0xff] %vm4939_vm7, %v18544_v16  ;;  %v18643_v16 = vld [vmem:[%s18518_s13 + $0x70] sm:$0xff]  ;;  %v22065_v8 = vld [vmem:[#allocation11_spill] sm:$0xff] }
  0xb4   : > { %4992 = vst.msk [vmem:[#allocation3 + $0x81] sm:$0xff] %vm4939_vm7, %v18643_v16 }
  0xb5   : > { %15353 = vmatmul.mubr.msk.f32.gmra.mrb[8].mxu1 %vm1127_vm1, %v2019_v18  ;;  %15574 = vmatmul.mubr.msk.f32.gmra.mrb[22].mxu0 %vm1127_vm1, %v18318_v36  ;;  %v22032_v18 = vld [vmem:[#allocation21_spill] sm:$0xff] }
  0xb6   : > { %15355 = vmatprep.mubr.msk.f32.mxu1 %vm1127_vm1, %v17937_v52  ;;  %15576 = vmatprep.mubr.msk.f32.mxu0 %vm1127_vm1, %v3690_v25  ;;  %v3664_v52 = vld [vmem:[#allocation2 + $0x110] sm:$0xff] }
  0xb7   : > { %v3696_v62 = vmul.f32 %v18325_v55, %v3664_v52  ;;  %v18561_v52 = vld [vmem:[%s18518_s13 + $0x28] sm:$0xff] }
  0xb8   : > { %4983 = vst.msk [vmem:[#allocation3 + $0x39] sm:$0xff] %vm4939_vm7, %v18561_v52 }
  0xb9   : > { %15356 = vmatmul.mubr.msk.f32.gmra.mrb[10].mxu1 %vm1127_vm1, %v2021_v27  ;;  %15577 = vmatmul.mubr.msk.f32.gmra.mrb[24].mxu0 %vm1127_vm1, %v18335_v45  ;;  %v22033_v27 = vld [vmem:[#allocation20_spill] sm:$0xff] }
  0xba   : > { %15358 = vmatprep.mubr.msk.f32.mxu1 %vm1127_vm1, %v17952_v2  ;;  %15579 = vmatprep.mubr.msk.f32.mxu0 %vm1127_vm1, %v3692_v35  ;;  %v18511_v2 = vld [vmem:[#allocation2 + $0x108] sm:$0xff]  ;;  %22035 = vst [vmem:[#allocation20_spill] sm:$0xff] %v18561_v52  ;;  %v18609_v52 = vld [vmem:[%s18518_s13 + $0x50] sm:$0xff] }
  0xbb   : > { %v4057_v35 = vld [vmem:[#allocation2 + $0x29] sm:$0xff]  ;;  %4988 = vst.msk [vmem:[#allocation3 + $0x61] sm:$0xff] %vm4939_vm7, %v18609_v52 }
  0xbd   : > { %15359 = vmatmul.mubr.msk.f32.gmra.mrb[12].mxu1 %vm1127_vm1, %v2023_v29  ;;  %15580 = vmatmul.mubr.msk.f32.gmra.mrb[26].mxu0 %vm1127_vm1, %v18347_v22  ;;  %v4058_v29 = vld [vmem:[#allocation2 + $0x31] sm:$0xff] }
  0xbe   : > { %15361 = vmatprep.mubr.msk.f32.mxu1 %vm1127_vm1, %v17968_v21  ;;  %15582 = vmatprep.mubr.msk.f32.mxu0 %vm1127_vm1, %v3694_v49  ;;  %v22027_v21 = vld [vmem:[#allocation16_spill] sm:$0xff]  ;;  %v18556_v49 = vld [vmem:[%s18518_s13 + $0x20] sm:$0xff] }
  0xbf   : > { %v2027_v7 = vmul.f32 %v22027_v21, %v17986_v33  ;;  %v22031_v33 = vld [vmem:[#allocation18_spill] sm:$0xff]  ;;  %4982 = vst.msk [vmem:[#allocation3 + $0x31] sm:$0xff] %vm4939_vm7, %v18556_v49 }
  0xc0   : > { %v2029_v25 = vmul.f32 %v22032_v18, %v22031_v33  ;;  %22034 = vst [vmem:[#allocation18_spill] sm:$0xff] %v18556_v49  ;;  %v18575_v33 = vld [vmem:[%s18518_s13 + $0x30] sm:$0xff]  ;;  %v18626_v49 = vld [vmem:[%s18518_s13 + $0x60] sm:$0xff] }
  0xc1   : > { %15362 = vmatmul.mubr.msk.f32.gmra.mrb[14].mxu1 %vm1127_vm1, %v2025_v61  ;;  %15583 = vmatmul.mubr.msk.f32.gmra.mrb[28].mxu0 %vm1127_vm1, %v18511_v2  ;;  %v22036_v61 = vld [vmem:[#allocation23_spill] sm:$0xff]  ;;  %4984 = vst.msk [vmem:[#allocation3 + $0x41] sm:$0xff] %vm4939_vm7, %v18575_v33  ;;  %4990 = vst.msk [vmem:[#allocation3 + $0x71] sm:$0xff] %vm4939_vm7, %v18626_v49 }
  0xc2   : > { %15364 = vmatprep.mubr.msk.f32.mxu1 %vm1127_vm1, %v22028_v44  ;;  %15585 = vmatprep.mubr.msk.f32.mxu0 %vm1127_vm1, %v3696_v62  ;;  %v22037_v62 = vld [vmem:[#allocation28_spill] sm:$0xff]  ;;  %v22038_v44 = vld [vmem:[#allocation25_spill] sm:$0xff]  ;;  %22039 = vst [vmem:[#allocation23_spill] sm:$0xff] %v18575_v33  ;;  %v18592_v33 = vld [vmem:[%s18518_s13 + $0x40] sm:$0xff] }
  0xc3   : > { %4986 = vst.msk [vmem:[#allocation3 + $0x51] sm:$0xff] %vm4939_vm7, %v18592_v33 }
  0xc5   : > { %15365 = vmatmul.mubr.msk.f32.gmra.mrb[16].mxu1 %vm1127_vm1, %v2027_v7  ;;  %15586 = vmatmul.mubr.msk.f32.gmra.mrb[30].mxu0 %vm1127_vm1, %v3665_v3  ;;  %v2031_v7 = vmul.f32 %v22037_v62, %v22036_v61  ;;  %v4059_v3 = vld [vmem:[#allocation2 + $0x39] sm:$0xff]  ;;  %v22043_v61 = vld [vmem:[#allocation31_spill] sm:$0xff] }
  0xc6   : > { %15367 = vmatprep.mubr.msk.f32.mxu1 %vm1127_vm1, %v22033_v27  ;;  %15590 = vmatprep.mubr.msk.f32.mxu0 %vm1127_vm1, %v4056_v5  ;;  %v4060_v5 = vld [vmem:[#allocation2 + $0x41] sm:$0xff]  ;;  %v22041_v27 = vld [vmem:[#allocation29_spill] sm:$0xff] }
  0xc7   : > { %22044 = vst [vmem:[#allocation29_spill] sm:$0xff] %v18592_v33  ;;  %v4064_v33 = vld [vmem:[#allocation2 + $0x61] sm:$0xff] }
  0xc9   : > { %15368 = vmatmul.mubr.msk.f32.gmra.mrb[18].mxu1 %vm1127_vm1, %v2029_v25  ;;  %15591 = vmatmul.mubr.msk.f32.vlgmr.msra.gmra.mrb[0].mxu0 %vm1127_vm1, %v4057_v35  ;;  %v18580_v25 = vld [vmem:[%s18518_s13 + $0x38] sm:$0xff] }
  0xca   : > { %15370 = vmatprep.mubr.msk.f32.mxu1 %vm1127_vm1, %v22038_v44  ;;  %15593 = vmatprep.mubr.msk.f32.mxu0 %vm1127_vm1, %v4058_v29  ;;  %22040 = vst [vmem:[#allocation25_spill] sm:$0xff] %v18580_v25  ;;  %v22042_v35 = vld [vmem:[#allocation33_spill] sm:$0xff]  ;;  %4985 = vst.msk [vmem:[#allocation3 + $0x49] sm:$0xff] %vm4939_vm7, %v18580_v25 }
  0xcb   : > { %15639 = vmatpush3.msk.msra.mxu0 %vm1425_vm0, %v18259_v54  ;;  %v2033_v29 = vmul.f32 %v22042_v35, %v22041_v27  ;;  %v4061_v54 = vld [vmem:[#allocation2 + $0x49] sm:$0xff]  ;;  %v4062_v44 = vld [vmem:[#allocation2 + $0x51] sm:$0xff] }
  0xcc   : > { %v22047_v27 = vld [vmem:[#allocation39_spill] sm:$0xff] }
  0xcd   : > { %15371 = vmatmul.mubr.msk.f32.gmra.mrb[20].mxu1 %vm1127_vm1, %v2031_v7  ;;  %15594 = vmatmul.mubr.msk.f32.gmra.mrb[2].mxu0 %vm1127_vm1, %v4059_v3  ;;  %v18597_v7 = vld [vmem:[%s18518_s13 + $0x48] sm:$0xff]  ;;  %v22046_v3 = vld [vmem:[#allocation34_spill] sm:$0xff] }
  0xce   : > { %15373 = vmatprep.mubr.msk.f32.mxu1 %vm1127_vm1, %v22043_v61  ;;  %15596 = vmatprep.mubr.msk.f32.mxu0 %vm1127_vm1, %v4060_v5  ;;  %22045 = vst [vmem:[#allocation31_spill] sm:$0xff] %v18597_v7  ;;  %v2035_v25 = vmul.f32 %v22047_v27, %v22046_v3  ;;  %4987 = vst.msk [vmem:[#allocation3 + $0x59] sm:$0xff] %vm4939_vm7, %v18597_v7  ;;  %v22048_v5 = vld [vmem:[#allocation36_spill] sm:$0xff]  ;;  %v4063_v61 = vld [vmem:[#allocation2 + $0x59] sm:$0xff] }
  0xcf   : > { %22049 = vst [vmem:[#allocation34_spill] sm:$0xff] %v18609_v52  ;;  %v22052_v3 = vld [vmem:[#allocation45_spill] sm:$0xff] }
  0xd0   : > { %v4066_v52 = vld [vmem:[#allocation2 + $0x71] sm:$0xff] }
  0xd1   : > { %15374 = vmatmul.mubr.msk.f32.gmra.mrb[22].mxu1 %vm1127_vm1, %v2033_v29  ;;  %15597 = vmatmul.mubr.msk.f32.gmra.mrb[4].mxu0 %vm1127_vm1, %v4061_v54  ;;  %v18614_v29 = vld [vmem:[%s18518_s13 + $0x58] sm:$0xff]  ;;  %v22051_v54 = vld [vmem:[#allocation40_spill] sm:$0xff] }
  0xd2   : > { %15376 = vmatprep.mubr.msk.f32.mxu1 %vm1127_vm1, %v22048_v5  ;;  %15599 = vmatprep.mubr.msk.f32.mxu0 %vm1127_vm1, %v4062_v44  ;;  %22050 = vst [vmem:[#allocation36_spill] sm:$0xff] %v18614_v29  ;;  %v2037_v7 = vmul.f32 %v22052_v3, %v22051_v54  ;;  %4989 = vst.msk [vmem:[#allocation3 + $0x69] sm:$0xff] %vm4939_vm7, %v18614_v29  ;;  %v22053_v44 = vld [vmem:[#allocation41_spill] sm:$0xff]  ;;  %v4065_v5 = vld [vmem:[#allocation2 + $0x69] sm:$0xff] }
  0xd3   : > { %22054 = vst [vmem:[#allocation40_spill] sm:$0xff] %v18626_v49  ;;  %v22057_v54 = vld [vmem:[#allocation51_spill] sm:$0xff] }
  0xd4   : > { %v4068_v49 = vld [vmem:[#allocation2 + $0x81] sm:$0xff] }
  0xd5   : > { %15377 = vmatmul.mubr.msk.f32.gmra.mrb[24].mxu1 %vm1127_vm1, %v2035_v25  ;;  %15600 = vmatmul.mubr.msk.f32.gmra.mrb[6].mxu0 %vm1127_vm1, %v4063_v61  ;;  %v18631_v25 = vld [vmem:[%s18518_s13 + $0x68] sm:$0xff]  ;;  %v22056_v61 = vld [vmem:[#allocation46_spill] sm:$0xff] }
  0xd6   : > { %15379 = vmatprep.mubr.msk.f32.mxu1 %vm1127_vm1, %v22053_v44  ;;  %15602 = vmatprep.mubr.msk.f32.mxu0 %vm1127_vm1, %v4064_v33  ;;  %22055 = vst [vmem:[#allocation41_spill] sm:$0xff] %v18631_v25  ;;  %v2039_v29 = vmul.f32 %v22057_v54, %v22056_v61  ;;  %4991 = vst.msk [vmem:[#allocation3 + $0x79] sm:$0xff] %vm4939_vm7, %v18631_v25  ;;  %v22058_v33 = vld [vmem:[#allocation47_spill] sm:$0xff]  ;;  %v4067_v44 = vld [vmem:[#allocation2 + $0x79] sm:$0xff] }
  0xd7   : > { %22059 = vst [vmem:[#allocation46_spill] sm:$0xff] %v18643_v16  ;;  %v22062_v61 = vld [vmem:[#allocation55_spill] sm:$0xff] }
  0xd8   : > { %v4069_v25 = vld [vmem:[#allocation2 + $0x89] sm:$0xff] }
  0xd9   : > { %15380 = vmatmul.mubr.msk.f32.gmra.mrb[26].mxu1 %vm1127_vm1, %v2037_v7  ;;  %15603 = vmatmul.mubr.msk.f32.gmra.mrb[8].mxu0 %vm1127_vm1, %v4065_v5  ;;  %v18648_v7 = vld [vmem:[%s18518_s13 + $0x78] sm:$0xff]  ;;  %v22061_v5 = vld [vmem:[#allocation52_spill] sm:$0xff]  ;;  %v22064_v16 = vld [vmem:[#allocation15_spill] sm:$0xff] }
  0xda   : > { %15382 = vmatprep.mubr.msk.f32.mxu1 %vm1127_vm1, %v22058_v33  ;;  %15605 = vmatprep.mubr.msk.f32.mxu0 %vm1127_vm1, %v4066_v52  ;;  %22060 = vst [vmem:[#allocation47_spill] sm:$0xff] %v18648_v7  ;;  %v2041_v33 = vmul.f32 %v22062_v61, %v22061_v5  ;;  %4993 = vst.msk [vmem:[#allocation3 + $0x89] sm:$0xff] %vm4939_vm7, %v18648_v7  ;;  %v22063_v52 = vld [vmem:[#allocation53_spill] sm:$0xff]  ;;  %v2432_v14 = vmul.f32 %v22065_v8, %v22064_v16  ;;  %v18669_v5 = vld [vmem:[%s18518_s13 + $0x88] sm:$0xff] }
  0xdb   : > { %22067 = vst [vmem:[#allocation53_spill] sm:$0xff] %v18669_v5  ;;  %4995 = vst.msk [vmem:[#allocation3 + $0x99] sm:$0xff] %vm4939_vm7, %v18669_v5  ;;  %v18678_v16 = vld [vmem:[#allocation2 + $0x99] sm:$0xff]  ;;  %v18685_v7 = vld [vmem:[#allocation2 + $0xa1] sm:$0xff] }
  0xdc   : > { %v22072_v5 = vld [vmem:[#allocation26_spill] sm:$0xff] }
  0xdd   : > { %15383 = vmatmul.mubr.msk.f32.gmra.mrb[28].mxu1 %vm1127_vm1, %v2039_v29  ;;  %15606 = vmatmul.mubr.msk.f32.gmra.mrb[10].mxu0 %vm1127_vm1, %v4067_v44  ;;  %v18661_v29 = vld [vmem:[#allocation2 + $0x91] sm:$0xff]  ;;  %v18664_v44 = vld [vmem:[%s18518_s13 + $0x80] sm:$0xff] }
  0xde   : > { %15385 = vmatprep.mubr.msk.f32.mxu1 %vm1127_vm1, %v22063_v52  ;;  %15608 = vmatprep.mubr.msk.f32.mxu0 %vm1127_vm1, %v4068_v49  ;;  %22066 = vst [vmem:[#allocation52_spill] sm:$0xff] %v18664_v44  ;;  %4994 = vst.msk [vmem:[#allocation3 + $0x91] sm:$0xff] %vm4939_vm7, %v18664_v44  ;;  %v22068_v49 = vld [vmem:[#allocation19_spill] sm:$0xff]  ;;  %v18683_v44 = vld [vmem:[%s18518_s13 + $0x90] sm:$0xff] }
  0xdf   : > { %v2434_v52 = vmul.f32 %v17993_v43, %v22068_v49  ;;  %22069 = vst [vmem:[#allocation15_spill] sm:$0xff] %v18683_v44  ;;  %4996 = vst.msk [vmem:[#allocation3 + $0xa1] sm:$0xff] %vm4939_vm7, %v18683_v44  ;;  %v18706_v49 = vld [vmem:[#allocation2 + $0xa9] sm:$0xff]  ;;  %v2436_v44 = vmul.f32 %v18008_v53, %v22072_v5  ;;  %v18732_v5 = vld [vmem:[#allocation2 + $0xb9] sm:$0xff] }
  0xe0   : > { %v18782_v53 = vld [vmem:[#allocation2 + $0xe1] sm:$0xff]  ;;  %v18805_v43 = vld [vmem:[#allocation2 + $0xf1] sm:$0xff] }
  0xe1   : > { %15386 = vmatmul.mubr.msk.f32.gmra.mrb[30].mxu1 %vm1127_vm1, %v2041_v33  ;;  %15609 = vmatmul.mubr.msk.f32.gmra.mrb[12].mxu0 %vm1127_vm1, %v4069_v25  ;;  %v18690_v25 = vld [vmem:[%s21579_s3 + $0x8] sm:$0xff]  ;;  %v22071_v33 = vld [vmem:[#allocation22_spill] sm:$0xff] }
  0xe2   : > { %15390 = vmatprep.mubr.msk.f32.mxu1 %vm1127_vm1, %v2432_v14  ;;  %15611 = vmatprep.mubr.msk.f32.mxu0 %vm1127_vm1, %v18661_v29  ;;  %v18695_v14 = vld [vmem:[%s18518_s13 + $0x98] sm:$0xff]  ;;  %v18808_v8 = vld [vmem:[%s18518_s13 + $0xe0] sm:$0xff] }
  0xe3   : > { %22070 = vst [vmem:[#allocation19_spill] sm:$0xff] %v18695_v14  ;;  %4997 = vst.msk [vmem:[#allocation3 + $0xa9] sm:$0xff] %vm4939_vm7, %v18695_v14  ;;  %v18716_v14 = vld [vmem:[%s18518_s13 + $0xa0] sm:$0xff] }
  0xe4   : > { %22073 = vst [vmem:[#allocation22_spill] sm:$0xff] %v18716_v14  ;;  %4998 = vst.msk [vmem:[#allocation3 + $0xb1] sm:$0xff] %vm4939_vm7, %v18716_v14  ;;  %v22076_v14 = vld [vmem:[#allocation32_spill] sm:$0xff] }
  0xe5   : > { %15391 = vmatmul.mubr.msk.f32.vlgmr.msra.gmra.mrb[0].mxu1 %vm1127_vm1, %v22071_v33  ;;  %15612 = vmatmul.mubr.msk.f32.gmra.mrb[14].mxu0 %vm1127_vm1, %v18678_v16  ;;  %v18712_v33 = vld [vmem:[#allocation2 + $0xb1] sm:$0xff]  ;;  %v2438_v28 = vmul.f32 %v18046_v20, %v22076_v14  ;;  %5006 = vst.msk [vmem:[#allocation3 + $0xf1] sm:$0xff] %vm4939_vm7, %v18808_v8 }
  0xe6   : > { %16589 = vmatpush3.msk.msra.mxu1 %vm1425_vm0, %v18375_v47  ;;  %15393 = vmatprep.mubr.msk.f32.mxu1 %vm1127_vm1, %v2434_v52  ;;  %v18721_v47 = vld [vmem:[%s18518_s13 + $0xa8] sm:$0xff]  ;;  %v22079_v14 = vld [vmem:[#allocation37_spill] sm:$0xff]  ;;  %vm4976_vm0 = vcmask 58368  }
  0xe7   : > { %15614 = vmatprep.mubr.msk.f32.mxu0 %vm1127_vm1, %v18685_v7  ;;  %15688 = vmatprep.subr.mxu1 %v18690_v25  ;;  %22074 = vst [vmem:[#allocation26_spill] sm:$0xff] %v18721_v47  ;;  %v22075_v52 = vld [vmem:[#allocation27_spill] sm:$0xff]  ;;  %4999 = vst.msk [vmem:[#allocation3 + $0xb9] sm:$0xff] %vm4939_vm7, %v18721_v47  ;;  %v18744_v47 = vld [vmem:[%s18518_s13 + $0xb8] sm:$0xff] }
  0xe8   : > { %22078 = vst [vmem:[#allocation32_spill] sm:$0xff] %v18744_v47  ;;  %5001 = vst.msk [vmem:[#allocation3 + $0xc9] sm:$0xff] %vm4939_vm7, %v18744_v47  ;;  %v18759_v20 = vld [vmem:[#allocation2 + $0xd1] sm:$0xff]  ;;  %v18767_v47 = vld [vmem:[%s18518_s13 + $0xc8] sm:$0xff] }
  0xe9   : > { %15394 = vmatmul.mubr.msk.f32.gmra.mrb[2].mxu1 %vm1127_vm1, %v22075_v52  ;;  %15615 = vmatmul.mubr.msk.f32.gmra.mrb[16].mxu0 %vm1127_vm1, %v18706_v49  ;;  %v18739_v52 = vld [vmem:[%s18518_s13 + $0xb0] sm:$0xff]  ;;  %22081 = vst [vmem:[#allocation68_spill] sm:$0xff] %v18767_v47  ;;  %5003 = vst.msk [vmem:[#allocation3 + $0xd9] sm:$0xff] %vm4939_vm7, %v18767_v47  ;;  %v18790_v47 = vld [vmem:[%s18518_s13 + $0xd8] sm:$0xff] }
  0xea   : > { %15396 = vmatprep.mubr.msk.f32.mxu1 %vm1127_vm1, %v2436_v44  ;;  %15617 = vmatprep.mubr.msk.f32.mxu0 %vm1127_vm1, %v18712_v33  ;;  %22077 = vst [vmem:[#allocation27_spill] sm:$0xff] %v18739_v52  ;;  %5000 = vst.msk [vmem:[#allocation3 + $0xc1] sm:$0xff] %vm4939_vm7, %v18739_v52  ;;  %v18755_v44 = vld [vmem:[#allocation2 + $0xc9] sm:$0xff]  ;;  %v2440_v52 = vmul.f32 %v18078_v50, %v22079_v14  ;;  %v18778_v14 = vld [vmem:[#allocation2 + $0xd9] sm:$0xff] }
  0xeb   : > { %5005 = vst.msk [vmem:[#allocation3 + $0xe9] sm:$0xff] %vm4939_vm7, %v18790_v47 }
  0xed   : > { %15397 = vmatmul.mubr.msk.f32.gmra.mrb[4].mxu1 %vm1127_vm1, %v18094_v17  ;;  %15618 = vmatmul.mubr.msk.f32.gmra.mrb[18].mxu0 %vm1127_vm1, %v18732_v5  ;;  %v18762_v17 = vld [vmem:[%s18518_s13 + $0xc0] sm:$0xff] }
  0xee   : > { %15399 = vmatprep.mubr.msk.f32.mxu1 %vm1127_vm1, %v2438_v28  ;;  %15620 = vmatprep.mubr.msk.f32.mxu0 %vm1127_vm1, %v18736_v12  ;;  %22080 = vst [vmem:[#allocation37_spill] sm:$0xff] %v18762_v17  ;;  %5002 = vst.msk [vmem:[#allocation3 + $0xd1] sm:$0xff] %vm4939_vm7, %v18762_v17  ;;  %v22082_v28 = vld [vmem:[#allocation38_spill] sm:$0xff]  ;;  %v22083_v17 = vld [vmem:[#allocation43_spill] sm:$0xff] }
  0xef   : > { %v2442_v50 = vmul.f32 %v18106_v37, %v22083_v17  ;;  %22085 = vst [vmem:[#allocation43_spill] sm:$0xff] %v18790_v47  ;;  %v18801_v17 = vld [vmem:[#allocation2 + $0xe9] sm:$0xff]  ;;  %v22087_v37 = vld [vmem:[#allocation49_spill] sm:$0xff]  ;;  %v22090_v47 = vld [vmem:[#allocation50_spill] sm:$0xff] }
  0xf1   : > { %15400 = vmatmul.mubr.msk.f32.gmra.mrb[6].mxu1 %vm1127_vm1, %v22082_v28  ;;  %15621 = vmatmul.mubr.msk.f32.gmra.mrb[20].mxu0 %vm1127_vm1, %v18755_v44  ;;  %v18785_v28 = vld [vmem:[%s18518_s13 + $0xd0] sm:$0xff] }
  0xf2   : > { %15402 = vmatprep.mubr.msk.f32.mxu1 %vm1127_vm1, %v2440_v52  ;;  %15623 = vmatprep.mubr.msk.f32.mxu0 %vm1127_vm1, %v18759_v20  ;;  %22084 = vst [vmem:[#allocation38_spill] sm:$0xff] %v18785_v28  ;;  %5004 = vst.msk [vmem:[#allocation3 + $0xe1] sm:$0xff] %vm4939_vm7, %v18785_v28  ;;  %v22086_v52 = vld [vmem:[#allocation44_spill] sm:$0xff]  ;;  %v2444_v28 = vmul.f32 %v18134_v9, %v22087_v37  ;;  %v22091_v37 = vld [vmem:[#allocation54_spill] sm:$0xff] }
  0xf3   : > { %22088 = vst [vmem:[#allocation44_spill] sm:$0xff] %v18808_v8  ;;  %v2446_v8 = vmul.f32 %v18159_v23, %v22091_v37  ;;  %v18828_v9 = vld [vmem:[#allocation2 + $0x101] sm:$0xff]  ;;  %v4447_v37 = vld [vmem:[#allocation2 + $0x2a] sm:$0xff] }
  0xf4   : > { %v4446_v23 = vld [vmem:[#allocation2 + $0x22] sm:$0xff] }
  0xf5   : > { %15403 = vmatmul.mubr.msk.f32.gmra.mrb[8].mxu1 %vm1127_vm1, %v22086_v52  ;;  %15624 = vmatmul.mubr.msk.f32.gmra.mrb[22].mxu0 %vm1127_vm1, %v18778_v14  ;;  %v18813_v52 = vld [vmem:[%s18518_s13 + $0xe8] sm:$0xff] }
  0xf6   : > { %15405 = vmatprep.mubr.msk.f32.mxu1 %vm1127_vm1, %v2442_v50  ;;  %15626 = vmatprep.mubr.msk.f32.mxu0 %vm1127_vm1, %v18782_v53  ;;  %22089 = vst [vmem:[#allocation49_spill] sm:$0xff] %v18813_v52  ;;  %5007 = vst.msk [vmem:[#allocation3 + $0xf9] sm:$0xff] %vm4939_vm7, %v18813_v52  ;;  %v18824_v50 = vld [vmem:[#allocation2 + $0xf9] sm:$0xff]  ;;  %v4086_v52 = vld [vmem:[#allocation2 + $0x111] sm:$0xff] }
  0xf9   : > { %15406 = vmatmul.mubr.msk.f32.gmra.mrb[10].mxu1 %vm1127_vm1, %v22090_v47  ;;  %15627 = vmatmul.mubr.msk.f32.gmra.mrb[24].mxu0 %vm1127_vm1, %v18801_v17  ;;  %v18837_v47 = vld [vmem:[#allocation2 + $0x109] sm:$0xff] }
  0xfa   : > { %15408 = vmatprep.mubr.msk.f32.mxu1 %vm1127_vm1, %v2444_v28  ;;  %15629 = vmatprep.mubr.msk.f32.mxu0 %vm1127_vm1, %v18805_v43  ;;  %v2448_v28 = vmul.f32 %v18184_v19, %v18212_v31  ;;  %v2452_v31 = vmul.f32 %v18230_v51, %v18249_v46 }
  0xfd   : > { %15409 = vmatmul.mubr.msk.f32.gmra.mrb[12].mxu1 %vm1127_vm1, %v18198_v63  ;;  %15630 = vmatmul.mubr.msk.f32.gmra.mrb[26].mxu0 %vm1127_vm1, %v18824_v50  ;;  %v4087_v63 = vld [vmem:[#allocation2 + $0x119] sm:$0xff] }
  0xfe   : > { %15411 = vmatprep.mubr.msk.f32.mxu1 %vm1127_vm1, %v2446_v8  ;;  %15632 = vmatprep.mubr.msk.f32.mxu0 %vm1127_vm1, %v18828_v9  ;;  %v2450_v8 = vmul.f32 %v18210_v32, %v18232_v10  ;;  %v2454_v10 = vmul.f32 %v18247_v56, %v18272_v41 }
 0x101   : > { %15412 = vmatmul.mubr.msk.f32.gmra.mrb[14].mxu1 %vm1127_vm1, %v18223_v1  ;;  %15633 = vmatmul.mubr.msk.f32.gmra.mrb[28].mxu0 %vm1127_vm1, %v18837_v47  ;;  %v4479_v1 = vmul.f32 %v17858_v4, %v4447_v37  ;;  %v4452_v37 = vld [vmem:[#allocation2 + $0x52] sm:$0xff] }
 0x102   : > { %15414 = vmatprep.mubr.msk.f32.mxu1 %vm1127_vm1, %v2448_v28  ;;  %15635 = vmatprep.mubr.msk.f32.mxu0 %vm1127_vm1, %v4086_v52  ;;  %v4449_v52 = vld [vmem:[#allocation2 + $0x3a] sm:$0xff]  ;;  %v4448_v28 = vld [vmem:[#allocation2 + $0x32] sm:$0xff] }
 0x105   : > { %15415 = vmatmul.mubr.msk.f32.gmra.mrb[16].mxu1 %vm1127_vm1, %v18240_v6  ;;  %15636 = vmatmul.mubr.msk.f32.gmra.mrb[30].mxu0 %vm1127_vm1, %v4087_v63  ;;  %v4481_v6 = vmul.f32 %v17875_v15, %v4449_v52  ;;  %v4450_v63 = vld [vmem:[#allocation2 + $0x42] sm:$0xff]  ;;  %v4457_v52 = vld [vmem:[#allocation2 + $0x7a] sm:$0xff] }
 0x106   : > { %15417 = vmatprep.mubr.msk.f32.mxu1 %vm1127_vm1, %v2450_v8  ;;  %15640 = vmatprep.mubr.msk.f32.mxu0 %vm1127_vm1, %v4446_v23  ;;  %v4451_v23 = vld [vmem:[#allocation2 + $0x4a] sm:$0xff]  ;;  %v4453_v8 = vld [vmem:[#allocation2 + $0x5a] sm:$0xff] }
 0x107   : > { %v4483_v46 = vmul.f32 %v17890_v24, %v4451_v23  ;;  %v4485_v41 = vmul.f32 %v17907_v34, %v4453_v8  ;;  %v4460_v23 = vld [vmem:[#allocation2 + $0x92] sm:$0xff]  ;;  %v4466_v8 = vld [vmem:[#allocation2 + $0xc2] sm:$0xff] }
 0x109   : > { %15418 = vmatmul.mubr.msk.f32.gmra.mrb[18].mxu1 %vm1127_vm1, %v18263_v57  ;;  %15641 = vmatmul.mubr.msk.f32.vlgmr.msra.gmra.mrb[0].mxu0 %vm1127_vm1, %v4479_v1  ;;  %v2456_v57 = vmul.f32 %v18270_v0, %v18293_v26  ;;  %v4455_v1 = vld [vmem:[#allocation2 + $0x6a] sm:$0xff] }
 0x10a   : > { %15420 = vmatprep.mubr.msk.f32.mxu1 %vm1127_vm1, %v2452_v31  ;;  %15643 = vmatprep.mubr.msk.f32.mxu0 %vm1127_vm1, %v4448_v28  ;;  %v4454_v31 = vld [vmem:[#allocation2 + $0x62] sm:$0xff]  ;;  %v4487_v26 = vmul.f32 %v17933_v48, %v4455_v1  ;;  %v4456_v28 = vld [vmem:[#allocation2 + $0x72] sm:$0xff]  ;;  %v4477_v1 = vld [vmem:[#allocation2 + $0x11a] sm:$0xff] }
 0x10d   : > { %15421 = vmatmul.mubr.msk.f32.gmra.mrb[20].mxu1 %vm1127_vm1, %v18284_v40  ;;  %15644 = vmatmul.mubr.msk.f32.gmra.mrb[2].mxu0 %vm1127_vm1, %v4481_v6  ;;  %v2458_v40 = vmul.f32 %v18291_v42, %v18310_v59  ;;  %v4489_v59 = vmul.f32 %v17947_v60, %v4457_v52  ;;  %v4459_v6 = vld [vmem:[#allocation2 + $0x8a] sm:$0xff] }
 0x10e   : > { %15423 = vmatprep.mubr.msk.f32.mxu1 %vm1127_vm1, %v2454_v10  ;;  %15646 = vmatprep.mubr.msk.f32.mxu0 %vm1127_vm1, %v4450_v63  ;;  %v4458_v10 = vld [vmem:[#allocation2 + $0x82] sm:$0xff] }
 0x10f   : > { %v4462_v63 = vld [vmem:[#allocation2 + $0xa2] sm:$0xff] }
 0x110   : > { %v18984_v52 = vld [vmem:[#allocation3 + $0x21] sm:$0xff] }
 0x111   : > { %15424 = vmatmul.mubr.msk.f32.gmra.mrb[22].mxu1 %vm1127_vm1, %v18301_v39  ;;  %15647 = vmatmul.mubr.msk.f32.gmra.mrb[4].mxu0 %vm1127_vm1, %v4483_v46  ;;  %v2460_v39 = vmul.f32 %v18308_v11, %v18327_v58  ;;  %v4491_v58 = vmul.f32 %v17963_v13, %v4459_v6  ;;  %v5074_v46 = vld [vmem:[%s21579_s3] sm:$0xff]  ;;  %v19001_v6 = vld [vmem:[#allocation3 + $0x41] sm:$0xff] }
 0x112   : > { %15426 = vmatprep.mubr.msk.f32.mxu1 %vm1127_vm1, %v2456_v57  ;;  %15649 = vmatprep.mubr.msk.f32.mxu0 %vm1127_vm1, %v4452_v37  ;;  %v4464_v57 = vld [vmem:[#allocation2 + $0xb2] sm:$0xff]  ;;  %22100 = vst [vmem:[#allocation71_spill] sm:$0xff] %v19001_v6 }
 0x113   : > { %v4468_v37 = vld [vmem:[#allocation2 + $0xd2] sm:$0xff] }
 0x115   : > { %15427 = vmatmul.mubr.msk.f32.gmra.mrb[24].mxu1 %vm1127_vm1, %v18318_v36  ;;  %15650 = vmatmul.mubr.msk.f32.gmra.mrb[6].mxu0 %vm1127_vm1, %v4485_v41  ;;  %v2462_v36 = vmul.f32 %v18325_v55, %v18419_v38  ;;  %v4470_v41 = vld [vmem:[#allocation2 + $0xe2] sm:$0xff] }
 0x116   : > { %15429 = vmatprep.mubr.msk.f32.mxu1 %vm1127_vm1, %v2458_v40  ;;  %15652 = vmatprep.mubr.msk.f32.mxu0 %vm1127_vm1, %v4454_v31  ;;  %v4472_v40 = vld [vmem:[#allocation2 + $0xf2] sm:$0xff] }
 0x117   : > { %v4476_v31 = vld [vmem:[#allocation2 + $0x112] sm:$0xff] }
 0x119   : > { %15430 = vmatmul.mubr.msk.f32.gmra.mrb[26].mxu1 %vm1127_vm1, %v18335_v45  ;;  %15653 = vmatmul.mubr.msk.f32.gmra.mrb[8].mxu0 %vm1127_vm1, %v4487_v26  ;;  %v4461_v45 = vld [vmem:[#allocation2 + $0x9a] sm:$0xff]  ;;  %v5075_v26 = vld [vmem:[#allocation3 + $0x1] sm:$0xff] }
 0x11a   : > { %15432 = vmatprep.mubr.msk.f32.mxu1 %vm1127_vm1, %v2460_v39  ;;  %15655 = vmatprep.mubr.msk.f32.mxu0 %vm1127_vm1, %v4456_v28  ;;  %v4493_v38 = vmul.f32 %v17980_v30, %v4461_v45  ;;  %v18971_v39 = vld [vmem:[#allocation3 + $0x11] sm:$0xff]  ;;  %v18991_v28 = vld [vmem:[#allocation3 + $0x29] sm:$0xff]  ;;  %v19015_v45 = vld [vmem:[#allocation3 + $0x59] sm:$0xff] }
 0x11b   : > { %22094 = vst [vmem:[#allocation50_spill] sm:$0xff] %v18971_v39  ;;  %22103 = vst [vmem:[#allocation74_spill] sm:$0xff] %v19015_v45 }
 0x11d   : > { %15433 = vmatmul.mubr.msk.f32.gmra.mrb[28].mxu1 %vm1127_vm1, %v18347_v22  ;;  %15656 = vmatmul.mubr.msk.f32.gmra.mrb[10].mxu0 %vm1127_vm1, %v4489_v59  ;;  %v4463_v22 = vld [vmem:[#allocation2 + $0xaa] sm:$0xff]  ;;  %v18993_v59 = vld [vmem:[#allocation3 + $0x31] sm:$0xff] }
 0x11e   : > { %15435 = vmatprep.mubr.msk.f32.mxu1 %vm1127_vm1, %v2462_v36  ;;  %15658 = vmatprep.mubr.msk.f32.mxu0 %vm1127_vm1, %v4458_v10  ;;  %22098 = vst [vmem:[#allocation69_spill] sm:$0xff] %v18993_v59  ;;  %v18999_v36 = vld [vmem:[#allocation3 + $0x39] sm:$0xff]  ;;  %v19007_v10 = vld [vmem:[#allocation3 + $0x49] sm:$0xff] }
 0x11f   : > { %22099 = vst [vmem:[#allocation70_spill] sm:$0xff] %v18999_v36  ;;  %22101 = vst [vmem:[#allocation72_spill] sm:$0xff] %v19007_v10 }
 0x121   : > { %15436 = vmatmul.mubr.msk.f32.gmra.mrb[30].mxu1 %vm1127_vm1, %v18511_v2  ;;  %15659 = vmatmul.mubr.msk.f32.gmra.mrb[12].mxu0 %vm1127_vm1, %v4491_v58  ;;  %v4495_v2 = vmul.f32 %v22027_v21, %v4463_v22  ;;  %v19009_v58 = vld [vmem:[#allocation3 + $0x51] sm:$0xff] }
 0x122   : > { %15464 = vmatprep.mubr.msk.f32.mxu1 %vm1127_vm1, %v18661_v29  ;;  %15661 = vmatprep.mubr.msk.f32.mxu0 %vm1127_vm1, %v4460_v23  ;;  %v4465_v29 = vld [vmem:[#allocation2 + $0xba] sm:$0xff]  ;;  %22102 = vst [vmem:[#allocation73_spill] sm:$0xff] %v19009_v58  ;;  %v19017_v23 = vld [vmem:[#allocation3 + $0x61] sm:$0xff] }
 0x123   : > { %22104 = vst [vmem:[#allocation75_spill] sm:$0xff] %v19017_v23  ;;  %v19025_v22 = vld [vmem:[#allocation3 + $0x71] sm:$0xff] }
 0x124   : > { %22106 = vst [vmem:[#allocation77_spill] sm:$0xff] %v19025_v22 }
 0x125   : > { %15465 = vmatmul.mubr.msk.f32.vlgmr.msra.gmra.mrb[16].mxu1 %vm1127_vm1, %v18678_v16  ;;  %15662 = vmatmul.mubr.msk.f32.gmra.mrb[14].mxu0 %vm1127_vm1, %v4493_v38  ;;  %v4497_v16 = vmul.f32 %v22032_v18, %v4465_v29  ;;  %v19023_v38 = vld [vmem:[#allocation3 + $0x69] sm:$0xff]  ;;  %v19041_v29 = vld [vmem:[#allocation3 + $0x91] sm:$0xff] }
 0x126   : > { %15689 = vmatpush3.msra.mxu1 %v18690_v25  ;;  %15467 = vmatprep.mubr.msk.f32.mxu1 %vm1127_vm1, %v18685_v7  ;;  %v4467_v25 = vld [vmem:[#allocation2 + $0xca] sm:$0xff]  ;;  %22105 = vst [vmem:[#allocation76_spill] sm:$0xff] %v19023_v38  ;;  %22110 = vst [vmem:[#allocation81_spill] sm:$0xff] %v19041_v29 }
 0x127   : > { %15664 = vmatprep.mubr.msk.f32.mxu0 %vm1127_vm1, %v4462_v63  ;;  %15738 = vmatprep.subr.mxu1 %v5074_v46  ;;  %v4499_v7 = vmul.f32 %v22037_v62, %v4467_v25  ;;  %v19031_v63 = vld [vmem:[#allocation3 + $0x79] sm:$0xff]  ;;  %v19055_v25 = vld [vmem:[#allocation3 + $0xa9] sm:$0xff] }
 0x128   : > { %22107 = vst [vmem:[#allocation78_spill] sm:$0xff] %v19031_v63  ;;  %22113 = vst [vmem:[#allocation84_spill] sm:$0xff] %v19055_v25 }
 0x129   : > { %15468 = vmatmul.mubr.msk.f32.gmra.mrb[18].mxu1 %vm1127_vm1, %v18706_v49  ;;  %15665 = vmatmul.mubr.msk.f32.gmra.mrb[16].mxu0 %vm1127_vm1, %v4495_v2  ;;  %v4469_v49 = vld [vmem:[#allocation2 + $0xda] sm:$0xff]  ;;  %v19039_v2 = vld [vmem:[#allocation3 + $0x89] sm:$0xff] }
 0x12a   : > { %15470 = vmatprep.mubr.msk.f32.mxu1 %vm1127_vm1, %v18712_v33  ;;  %15667 = vmatprep.mubr.msk.f32.mxu0 %vm1127_vm1, %v4464_v57  ;;  %v4501_v33 = vmul.f32 %v22042_v35, %v4469_v49  ;;  %22109 = vst [vmem:[#allocation80_spill] sm:$0xff] %v19039_v2  ;;  %v19047_v57 = vld [vmem:[#allocation3 + $0x99] sm:$0xff]  ;;  %v19065_v49 = vld [vmem:[#allocation3 + $0xc1] sm:$0xff] }
 0x12b   : > { %22111 = vst [vmem:[#allocation82_spill] sm:$0xff] %v19047_v57  ;;  %22116 = vst [vmem:[#allocation87_spill] sm:$0xff] %v19065_v49 }
 0x12d   : > { %15471 = vmatmul.mubr.msk.f32.gmra.mrb[20].mxu1 %vm1127_vm1, %v18732_v5  ;;  %15668 = vmatmul.mubr.msk.f32.gmra.mrb[18].mxu0 %vm1127_vm1, %v4497_v16  ;;  %v4471_v5 = vld [vmem:[#allocation2 + $0xea] sm:$0xff] }
 0x12e   : > { %15473 = vmatprep.mubr.msk.f32.mxu1 %vm1127_vm1, %v18736_v12  ;;  %15670 = vmatprep.mubr.msk.f32.mxu0 %vm1127_vm1, %v4466_v8  ;;  %v4503_v12 = vmul.f32 %v22047_v27, %v4471_v5  ;;  %v19049_v16 = vld [vmem:[#allocation3 + $0xa1] sm:$0xff]  ;;  %v19057_v8 = vld [vmem:[#allocation3 + $0xb1] sm:$0xff]  ;;  %v19079_v5 = vld [vmem:[#allocation3 + $0xd9] sm:$0xff] }
 0x12f   : > { %22112 = vst [vmem:[#allocation83_spill] sm:$0xff] %v19049_v16  ;;  %22114 = vst [vmem:[#allocation85_spill] sm:$0xff] %v19057_v8 }
 0x130   : > { %22119 = vst [vmem:[#allocation90_spill] sm:$0xff] %v19079_v5 }
 0x131   : > { %15474 = vmatmul.mubr.msk.f32.gmra.mrb[22].mxu1 %vm1127_vm1, %v18755_v44  ;;  %15671 = vmatmul.mubr.msk.f32.gmra.mrb[20].mxu0 %vm1127_vm1, %v4499_v7  ;;  %v4473_v44 = vld [vmem:[#allocation2 + $0xfa] sm:$0xff] }
 0x132   : > { %15476 = vmatprep.mubr.msk.f32.mxu1 %vm1127_vm1, %v18759_v20  ;;  %15673 = vmatprep.mubr.msk.f32.mxu0 %vm1127_vm1, %v4468_v37  ;;  %v4505_v20 = vmul.f32 %v22052_v3, %v4473_v44  ;;  %v19063_v7 = vld [vmem:[#allocation3 + $0xb9] sm:$0xff]  ;;  %v19071_v37 = vld [vmem:[#allocation3 + $0xc9] sm:$0xff] }
 0x133   : > { %22115 = vst [vmem:[#allocation86_spill] sm:$0xff] %v19063_v7  ;;  %22117 = vst [vmem:[#allocation88_spill] sm:$0xff] %v19071_v37  ;;  %v19092_v44 = vld [vmem:[#allocation3 + $0xe9] sm:$0xff] }
 0x134   : > { %22122 = vst [vmem:[#allocation93_spill] sm:$0xff] %v19092_v44 }
 0x135   : > { %15477 = vmatmul.mubr.msk.f32.gmra.mrb[24].mxu1 %vm1127_vm1, %v18778_v14  ;;  %15674 = vmatmul.mubr.msk.f32.gmra.mrb[22].mxu0 %vm1127_vm1, %v4501_v33  ;;  %v19073_v33 = vld [vmem:[#allocation3 + $0xd1] sm:$0xff] }
 0x136   : > { %15479 = vmatprep.mubr.msk.f32.mxu1 %vm1127_vm1, %v18782_v53  ;;  %15676 = vmatprep.mubr.msk.f32.mxu0 %vm1127_vm1, %v4470_v41  ;;  %v22092_v53 = vld [vmem:[#allocation56_spill] sm:$0xff]  ;;  %22118 = vst [vmem:[#allocation89_spill] sm:$0xff] %v19073_v33 }
 0x137   : > { %v4507_v14 = vmul.f32 %v22057_v54, %v22092_v53  ;;  %22096 = vst [vmem:[#allocation56_spill] sm:$0xff] %v18984_v52  ;;  %v19082_v41 = vld [vmem:[%s18518_s13 + $0xf0] sm:$0xff]  ;;  %v19100_v53 = vld [vmem:[#allocation3 + $0xf9] sm:$0xff] }
 0x138   : > { %22120 = vst [vmem:[#allocation91_spill] sm:$0xff] %v19082_v41  ;;  %5008 = vst.msk [vmem:[#allocation3 + $0x101] sm:$0xff] %vm4939_vm7, %v19082_v41  ;;  %v19115_v41 = vld [vmem:[%s21579_s3 + $0x18] sm:$0xff] }
 0x139   : > { %15480 = vmatmul.mubr.msk.f32.gmra.mrb[26].mxu1 %vm1127_vm1, %v18801_v17  ;;  %15677 = vmatmul.mubr.msk.f32.gmra.mrb[24].mxu0 %vm1127_vm1, %v4503_v12  ;;  %v22093_v17 = vld [vmem:[#allocation57_spill] sm:$0xff]  ;;  %v19084_v12 = vld [vmem:[#allocation3 + $0xe1] sm:$0xff]  ;;  %22124 = vst [vmem:[#allocation95_spill] sm:$0xff] %v19100_v53 }
 0x13a   : > { %15482 = vmatprep.mubr.msk.f32.mxu1 %vm1127_vm1, %v18805_v43  ;;  %15679 = vmatprep.mubr.msk.f32.mxu0 %vm1127_vm1, %v4472_v40  ;;  %v4509_v43 = vmul.f32 %v22062_v61, %v4477_v1  ;;  %22097 = vst [vmem:[#allocation57_spill] sm:$0xff] %v18991_v28  ;;  %22121 = vst [vmem:[#allocation92_spill] sm:$0xff] %v19084_v12  ;;  %v19094_v40 = vld [vmem:[#allocation3 + $0xf1] sm:$0xff] }
 0x13b   : > { %22123 = vst [vmem:[#allocation94_spill] sm:$0xff] %v19094_v40  ;;  %v19103_v1 = vld [vmem:[#allocation3 + $0x10] sm:$0xff] }
 0x13d   : > { %15483 = vmatmul.mubr.msk.f32.gmra.mrb[28].mxu1 %vm1127_vm1, %v18824_v50  ;;  %15680 = vmatmul.mubr.msk.f32.gmra.mrb[26].mxu0 %vm1127_vm1, %v4505_v20  ;;  %v5076_v50 = vld [vmem:[#allocation3 + $0x9] sm:$0xff]  ;;  %v5010_v20 = vld [vmem:[#allocation3] sm:$0xff] }
 0x13e   : > { %15485 = vmatprep.mubr.msk.f32.mxu1 %vm1127_vm1, %v18828_v9  ;;  %15682 = vmatprep.mubr.msk.f32.mxu0 %vm1127_vm1, %v22093_v17  ;;  %v18976_v9 = vld [vmem:[%s21579_s3 + $0x10] sm:$0xff] }
 0x141   : > { %15486 = vmatmul.mubr.msk.f32.gmra.mrb[30].mxu1 %vm1127_vm1, %v18837_v47  ;;  %15683 = vmatmul.mubr.msk.f32.gmra.mrb[28].mxu0 %vm1127_vm1, %v4507_v14  ;;  %v18982_v47 = vld [vmem:[#allocation3 + $0x19] sm:$0xff] }
 0x142   : > { %15685 = vmatprep.mubr.msk.f32.mxu0 %vm1127_vm1, %v4476_v31  ;;  %15690 = vmatprep.mubr.msk.f32.mxu1 %vm4939_vm7, %v5075_v26  ;;  %22095 = vst [vmem:[#allocation54_spill] sm:$0xff] %v18982_v47  ;;  %v22125_v14 = vld [vmem:[#allocation11_spill] sm:$0xff]  ;;  %v5011_v31 = vld [vmem:[#allocation3 + $0x8] sm:$0xff]  ;;  %v22126_v26 = vld [vmem:[#allocation14_spill] sm:$0xff] }
 0x143   : > { %v5042_v17 = vmul.f32 %v22125_v14, %v5010_v20  ;;  %v19120_v20 = vld [vmem:[#allocation3 + $0x18] sm:$0xff] }
 0x145   : > { %15686 = vmatmul.mubr.msk.f32.gmra.mrb[30].mxu0 %vm1127_vm1, %v4509_v43  ;;  %15691 = vmatmul.mubr.msk.f32.vlgmr.msra.gmra.mrb[32].mxu1 %vm4939_vm7, %v5076_v50  ;;  %v5044_v43 = vmul.f32 %v22126_v26, %v19103_v1  ;;  %v19110_v50 = vld [vmem:[#allocation3 + $0x20] sm:$0xff] }
 0x146   : > { %15739 = vmatpush3.msra.mxu1 %v5074_v46  ;;  %15693 = vmatprep.mubr.msk.f32.mxu1 %vm4939_vm7, %v18971_v39  ;;  %v19033_v46 = vld [vmem:[#allocation3 + $0x81] sm:$0xff]  ;;  %v19233_v39 = vld [vmem:[#allocation3 + $0xf0] sm:$0xff] }
 0x147   : > { %15788 = vmatprep.subr.mxu1 %v18976_v9  ;;  %22108 = vst [vmem:[#allocation79_spill] sm:$0xff] %v19033_v46  ;;  %22142 = vst [vmem:[#allocation97_spill] sm:$0xff] %v19233_v39 }
 0x149   : > { %15694 = vmatmul.mubr.msk.f32.gmra.mrb[34].mxu1 %vm4939_vm7, %v18982_v47 }
 0x14a   : > { %15696 = vmatprep.mubr.msk.f32.mxu1 %vm4939_vm7, %v18984_v52  ;;  %v19224_v52 = vld [vmem:[#allocation3 + $0xe0] sm:$0xff] }
 0x14b   : > { %v5070_v47 = vmul.f32 %v18308_v11, %v19224_v52  ;;  %v5072_v11 = vmul.f32 %v18325_v55, %v19233_v39  ;;  %v19268_v39 = vld [vmem:[#allocation3 + $0x1a] sm:$0xff] }
 0x14c   : > { %22146 = vst [vmem:[#allocation101_spill] sm:$0xff] %v19268_v39 }
 0x14d   : > { %15697 = vmatmul.mubr.msk.f32.gmra.mrb[36].mxu1 %vm4939_vm7, %v18991_v28 }
 0x14e   : > { %15699 = vmatprep.mubr.msk.f32.mxu1 %vm4939_vm7, %v18993_v59  ;;  %v19215_v59 = vld [vmem:[#allocation3 + $0xd0] sm:$0xff] }
 0x14f   : > { %v5068_v28 = vmul.f32 %v18291_v42, %v19215_v59 }
 0x151   : > { %15700 = vmatmul.mubr.msk.f32.gmra.mrb[38].mxu1 %vm4939_vm7, %v18999_v36 }
 0x152   : > { %15702 = vmatprep.mubr.msk.f32.mxu1 %vm4939_vm7, %v19001_v6  ;;  %v19206_v6 = vld [vmem:[#allocation3 + $0xc0] sm:$0xff] }
 0x153   : > { %v5066_v36 = vmul.f32 %v18270_v0, %v19206_v6  ;;  %v19238_v0 = vld [vmem:[%s18518_s13 + $0xf8] sm:$0xff] }
 0x154   : > { %22143 = vst [vmem:[#allocation98_spill] sm:$0xff] %v19238_v0  ;;  %5009 = vst.msk [vmem:[#allocation3 + $0x109] sm:$0xff] %vm4939_vm7, %v19238_v0  ;;  %v5751_v0 = vld [vmem:[#allocation3 + $0x2] sm:$0xff] }
 0x155   : > { %15703 = vmatmul.mubr.msk.f32.gmra.mrb[40].mxu1 %vm4939_vm7, %v19007_v10 }
 0x156   : > { %15705 = vmatprep.mubr.msk.f32.mxu1 %vm4939_vm7, %v19009_v58  ;;  %v19197_v58 = vld [vmem:[#allocation3 + $0xb0] sm:$0xff] }
 0x157   : > { %22134 = vst [vmem:[#allocation14_spill] sm:$0xff] %v19197_v58  ;;  %v5064_v10 = vmul.f32 %v18247_v56, %v19197_v58  ;;  %v19277_v56 = vld [vmem:[%s21579_s3 + $0x20] sm:$0xff] }
 0x159   : > { %15706 = vmatmul.mubr.msk.f32.gmra.mrb[42].mxu1 %vm4939_vm7, %v19015_v45 }
 0x15a   : > { %15708 = vmatprep.mubr.msk.f32.mxu1 %vm4939_vm7, %v19017_v23  ;;  %v19188_v23 = vld [vmem:[#allocation3 + $0xa0] sm:$0xff] }
 0x15b   : > { %v5062_v45 = vmul.f32 %v18230_v51, %v19188_v23 }
 0x15d   : > { %15709 = vmatmul.mubr.msk.f32.gmra.mrb[44].mxu1 %vm4939_vm7, %v19023_v38 }
 0x15e   : > { %15711 = vmatprep.mubr.msk.f32.mxu1 %vm4939_vm7, %v19025_v22  ;;  %v19179_v22 = vld [vmem:[#allocation3 + $0x90] sm:$0xff] }
 0x15f   : > { %v5060_v38 = vmul.f32 %v18210_v32, %v19179_v22 }
 0x161   : > { %15712 = vmatmul.mubr.msk.f32.gmra.mrb[46].mxu1 %vm4939_vm7, %v19031_v63 }
 0x162   : > { %15714 = vmatprep.mubr.msk.f32.mxu1 %vm4939_vm7, %v19033_v46  ;;  %v19170_v46 = vld [vmem:[#allocation3 + $0x80] sm:$0xff] }
 0x163   : > { %v5058_v63 = vmul.f32 %v18184_v19, %v19170_v46 }
 0x165   : > { %15715 = vmatmul.mubr.msk.f32.gmra.mrb[48].mxu1 %vm4939_vm7, %v19039_v2 }
 0x166   : > { %15717 = vmatprep.mubr.msk.f32.mxu1 %vm4939_vm7, %v19041_v29  ;;  %v22132_v29 = vld [vmem:[#allocation48_spill] sm:$0xff] }
 0x167   : > { %22140 = vst [vmem:[#allocation48_spill] sm:$0xff] %v19224_v52 }
 0x169   : > { %15718 = vmatmul.mubr.msk.f32.gmra.mrb[50].mxu1 %vm4939_vm7, %v19047_v57  ;;  %v19161_v57 = vld [vmem:[#allocation3 + $0x70] sm:$0xff] }
 0x16a   : > { %15720 = vmatprep.mubr.msk.f32.mxu1 %vm4939_vm7, %v19049_v16  ;;  %v5056_v2 = vmul.f32 %v22132_v29, %v19161_v57 }
 0x16d   : > { %15721 = vmatmul.mubr.msk.f32.gmra.mrb[52].mxu1 %vm4939_vm7, %v19055_v25  ;;  %v22131_v25 = vld [vmem:[#allocation42_spill] sm:$0xff] }
 0x16e   : > { %15723 = vmatprep.mubr.msk.f32.mxu1 %vm4939_vm7, %v19057_v8  ;;  %v19152_v8 = vld [vmem:[#allocation3 + $0x60] sm:$0xff] }
 0x16f   : > { %v5054_v16 = vmul.f32 %v22131_v25, %v19152_v8 }
 0x171   : > { %15724 = vmatmul.mubr.msk.f32.gmra.mrb[54].mxu1 %vm4939_vm7, %v19063_v7 }
 0x172   : > { %15726 = vmatprep.mubr.msk.f32.mxu1 %vm4939_vm7, %v19065_v49  ;;  %v22130_v49 = vld [vmem:[#allocation35_spill] sm:$0xff] }
 0x173   : > { %22138 = vst [vmem:[#allocation35_spill] sm:$0xff] %v19215_v59 }
 0x175   : > { %15727 = vmatmul.mubr.msk.f32.gmra.mrb[56].mxu1 %vm4939_vm7, %v19071_v37  ;;  %v19143_v37 = vld [vmem:[#allocation3 + $0x50] sm:$0xff] }
 0x176   : > { %15729 = vmatprep.mubr.msk.f32.mxu1 %vm4939_vm7, %v19073_v33  ;;  %v5052_v7 = vmul.f32 %v22130_v49, %v19143_v37 }
 0x179   : > { %15730 = vmatmul.mubr.msk.f32.gmra.mrb[58].mxu1 %vm4939_vm7, %v19079_v5  ;;  %v22129_v5 = vld [vmem:[#allocation30_spill] sm:$0xff] }
 0x17a   : > { %15732 = vmatprep.mubr.msk.f32.mxu1 %vm4939_vm7, %v19084_v12  ;;  %v19139_v12 = vld [vmem:[#allocation3 + $0x38] sm:$0xff] }
 0x17d   : > { %15733 = vmatmul.mubr.msk.f32.gmra.mrb[60].mxu1 %vm4939_vm7, %v19092_v44  ;;  %v19130_v44 = vld [vmem:[#allocation3 + $0x28] sm:$0xff] }
 0x17e   : > { %15735 = vmatprep.mubr.msk.f32.mxu1 %vm4939_vm7, %v19094_v40  ;;  %v19124_v40 = vld [vmem:[#allocation3 + $0x30] sm:$0xff] }
 0x181   : > { %15736 = vmatmul.mubr.msk.f32.gmra.mrb[62].mxu1 %vm4939_vm7, %v19100_v53 }
 0x182   : > { %15740 = vmatprep.mubr.msk.f32.mxu1 %vm4939_vm7, %v5042_v17  ;;  %v22127_v17 = vld [vmem:[#allocation17_spill] sm:$0xff] }
 0x183   : > { %v5046_v53 = vmul.f32 %v22127_v17, %v19110_v50 }
 0x185   : > { %15741 = vmatmul.mubr.msk.f32.vlgmr.msra.gmra.mrb[32].mxu1 %vm4939_vm7, %v5011_v31 }
 0x186   : > { %15789 = vmatpush3.msra.mxu1 %v18976_v9  ;;  %15743 = vmatprep.mubr.msk.f32.mxu1 %vm4939_vm7, %v5044_v43  ;;  %v22128_v9 = vld [vmem:[#allocation24_spill] sm:$0xff]  ;;  %v19134_v43 = vld [vmem:[#allocation3 + $0x40] sm:$0xff] }
 0x187   : > { %15838 = vmatprep.subr.mxu1 %v19115_v41  ;;  %v5048_v31 = vmul.f32 %v22128_v9, %v19124_v40  ;;  %v5050_v33 = vmul.f32 %v22129_v5, %v19134_v43  ;;  %22136 = vst [vmem:[#allocation24_spill] sm:$0xff] %v19206_v6 }
 0x189   : > { %15744 = vmatmul.mubr.msk.f32.gmra.mrb[34].mxu1 %vm4939_vm7, %v19120_v20 }
 0x18a   : > { %15746 = vmatprep.mubr.msk.f32.mxu1 %vm4939_vm7, %v5046_v53  ;;  %v19148_v53 = vld [vmem:[#allocation3 + $0x48] sm:$0xff] }
 0x18d   : > { %15747 = vmatmul.mubr.msk.f32.gmra.mrb[36].mxu1 %vm4939_vm7, %v19130_v44 }
 0x18e   : > { %15749 = vmatprep.mubr.msk.f32.mxu1 %vm4939_vm7, %v5048_v31  ;;  %v19157_v31 = vld [vmem:[#allocation3 + $0x58] sm:$0xff] }
 0x191   : > { %15750 = vmatmul.mubr.msk.f32.gmra.mrb[38].mxu1 %vm4939_vm7, %v19139_v12 }
 0x192   : > { %15752 = vmatprep.mubr.msk.f32.mxu1 %vm4939_vm7, %v5050_v33  ;;  %v19166_v33 = vld [vmem:[#allocation3 + $0x68] sm:$0xff] }
 0x195   : > { %15753 = vmatmul.mubr.msk.f32.gmra.mrb[40].mxu1 %vm4939_vm7, %v19148_v53 }
 0x196   : > { %15755 = vmatprep.mubr.msk.f32.mxu1 %vm4939_vm7, %v5052_v7  ;;  %v19175_v7 = vld [vmem:[#allocation3 + $0x78] sm:$0xff] }
 0x199   : > { %15756 = vmatmul.mubr.msk.f32.gmra.mrb[42].mxu1 %vm4939_vm7, %v19157_v31 }
 0x19a   : > { %15758 = vmatprep.mubr.msk.f32.mxu1 %vm4939_vm7, %v5054_v16  ;;  %v19184_v16 = vld [vmem:[#allocation3 + $0x88] sm:$0xff] }
 0x19d   : > { %15759 = vmatmul.mubr.msk.f32.gmra.mrb[44].mxu1 %vm4939_vm7, %v19166_v33 }
 0x19e   : > { %15761 = vmatprep.mubr.msk.f32.mxu1 %vm4939_vm7, %v5056_v2  ;;  %v19193_v2 = vld [vmem:[#allocation3 + $0x98] sm:$0xff] }
 0x19f   : > { %22133 = vst [vmem:[#allocation11_spill] sm:$0xff] %v19193_v2 }
 0x1a1   : > { %15762 = vmatmul.mubr.msk.f32.gmra.mrb[46].mxu1 %vm4939_vm7, %v19175_v7 }
 0x1a2   : > { %15764 = vmatprep.mubr.msk.f32.mxu1 %vm4939_vm7, %v5058_v63  ;;  %v19202_v63 = vld [vmem:[#allocation3 + $0xa8] sm:$0xff] }
 0x1a3   : > { %22135 = vst [vmem:[#allocation17_spill] sm:$0xff] %v19202_v63 }
 0x1a5   : > { %15765 = vmatmul.mubr.msk.f32.gmra.mrb[48].mxu1 %vm4939_vm7, %v19184_v16 }
 0x1a6   : > { %15767 = vmatprep.mubr.msk.f32.mxu1 %vm4939_vm7, %v5060_v38  ;;  %v19211_v38 = vld [vmem:[#allocation3 + $0xb8] sm:$0xff] }
 0x1a7   : > { %22137 = vst [vmem:[#allocation30_spill] sm:$0xff] %v19211_v38 }
 0x1a9   : > { %15768 = vmatmul.mubr.msk.f32.gmra.mrb[50].mxu1 %vm4939_vm7, %v19193_v2 }
 0x1aa   : > { %15770 = vmatprep.mubr.msk.f32.mxu1 %vm4939_vm7, %v5062_v45  ;;  %v19220_v45 = vld [vmem:[#allocation3 + $0xc8] sm:$0xff] }
 0x1ab   : > { %22139 = vst [vmem:[#allocation42_spill] sm:$0xff] %v19220_v45 }
 0x1ad   : > { %15771 = vmatmul.mubr.msk.f32.gmra.mrb[52].mxu1 %vm4939_vm7, %v19202_v63 }
 0x1ae   : > { %15773 = vmatprep.mubr.msk.f32.mxu1 %vm4939_vm7, %v5064_v10  ;;  %v19229_v10 = vld [vmem:[#allocation3 + $0xd8] sm:$0xff] }
 0x1af   : > { %22141 = vst [vmem:[#allocation96_spill] sm:$0xff] %v19229_v10 }
 0x1b1   : > { %15774 = vmatmul.mubr.msk.f32.gmra.mrb[54].mxu1 %vm4939_vm7, %v19211_v38 }
 0x1b2   : > { %15776 = vmatprep.mubr.msk.f32.mxu1 %vm4939_vm7, %v5066_v36 }
 0x1b5   : > { %15777 = vmatmul.mubr.msk.f32.gmra.mrb[56].mxu1 %vm4939_vm7, %v19220_v45  ;;  %v5752_v45 = vld [vmem:[#allocation3 + $0xa] sm:$0xff] }
 0x1b6   : > { %15779 = vmatprep.mubr.msk.f32.mxu1 %vm4939_vm7, %v5068_v28  ;;  %v19247_v28 = vld [vmem:[#allocation3 + $0xe8] sm:$0xff]  ;;  %v5784_v55 = vmul.f32 %v17858_v4, %v5752_v45  ;;  %v5786_v45 = vmul.f32 %v17875_v15, %v19268_v39  ;;  %v19303_v15 = vld [vmem:[#allocation3 + $0x32] sm:$0xff] }
 0x1b7   : > { %22144 = vst [vmem:[#allocation99_spill] sm:$0xff] %v19247_v28  ;;  %v19289_v4 = vld [vmem:[#allocation3 + $0x22] sm:$0xff]  ;;  %22151 = vst [vmem:[#allocation106_spill] sm:$0xff] %v19303_v15 }
 0x1b8   : > { %v19235_v36 = vpop.f32.mrb[0].mxu1  ;;  %22149 = vst [vmem:[#allocation104_spill] sm:$0xff] %v19289_v4 }
 0x1b9   : > { %v19240_v38 = vpop.f32.mrb[1].mxu1  ;;  %15780 = vmatmul.mubr.msk.f32.gmra.mrb[58].mxu1 %vm4939_vm7, %v19229_v10  ;;  %v19258_v10 = vld [vmem:[#allocation3 + $0xf8] sm:$0xff] }
 0x1ba   : > { %15782 = vmatprep.mubr.msk.f32.mxu1 %vm4939_vm7, %v5070_v47  ;;  %22145 = vst [vmem:[#allocation100_spill] sm:$0xff] %v19258_v10 }
 0x1bc   : > { %v19251_v42 = vpop.f32.mrb[2].mxu1 }
 0x1bd   : > { %v19253_v52 = vpop.f32.mrb[3].mxu1  ;;  %15783 = vmatmul.mubr.msk.f32.gmra.mrb[60].mxu1 %vm4939_vm7, %v19247_v28  ;;  %v19270_v28 = vld [vmem:[#allocation3 + $0x12] sm:$0xff] }
 0x1be   : > { %15785 = vmatprep.mubr.msk.f32.mxu1 %vm4939_vm7, %v5072_v11  ;;  %22147 = vst [vmem:[#allocation102_spill] sm:$0xff] %v19270_v28 }
 0x1c0   : > { %v19260_v59 = vpop.f32.mrb[4].mxu1 }
 0x1c1   : > { %v19262_v47 = vpop.f32.mrb[5].mxu1  ;;  %15786 = vmatmul.mubr.msk.f32.gmra.mrb[62].mxu1 %vm4939_vm7, %v19258_v10 }
 0x1c2   : > { %15790 = vmatprep.mubr.msk.f32.mxu1 %vm4939_vm7, %v5751_v0  ;;  %v19287_v0 = vld [vmem:[#allocation3 + $0x2a] sm:$0xff] }
 0x1c3   : > { %22148 = vst [vmem:[#allocation103_spill] sm:$0xff] %v19287_v0 }
 0x1c4   : > { %v19272_v11 = vpop.f32.mrb[6].mxu1 }
 0x1c5   : > { %v19279_v6 = vpop.f32.mrb[7].mxu1  ;;  %15791 = vmatmul.mubr.msk.f32.vlgmr.msra.gmra.mrb[32].mxu1 %vm4939_vm7, %v5784_v55  ;;  %v5788_v55 = vmul.f32 %v17890_v24, %v19287_v0  ;;  %v19316_v24 = vld [vmem:[#allocation3 + $0x42] sm:$0xff] }
 0x1c6   : > { %15839 = vmatpush3.msra.mxu1 %v19115_v41  ;;  %15793 = vmatprep.mubr.msk.f32.mxu1 %vm4939_vm7, %v19270_v28  ;;  %v19301_v41 = vld [vmem:[#allocation3 + $0x3a] sm:$0xff]  ;;  %22153 = vst [vmem:[#allocation108_spill] sm:$0xff] %v19316_v24 }
 0x1c7   : > { %15888 = vmatprep.subr.mxu1 %v19277_v56  ;;  %22150 = vst [vmem:[#allocation105_spill] sm:$0xff] %v19301_v41  ;;  %v5790_v51 = vmul.f32 %v17907_v34, %v19301_v41  ;;  %v19329_v34 = vld [vmem:[#allocation3 + $0x52] sm:$0xff] }
 0x1c8   : > { %v19292_v10 = vpop.f32.mrb[8].mxu1  ;;  %22155 = vst [vmem:[#allocation110_spill] sm:$0xff] %v19329_v34 }
 0x1c9   : > { %v19294_v63 = vpop.f32.mrb[9].mxu1  ;;  %15794 = vmatmul.mubr.msk.f32.gmra.mrb[34].mxu1 %vm4939_vm7, %v5786_v45  ;;  %v19314_v45 = vld [vmem:[#allocation3 + $0x4a] sm:$0xff] }
 0x1ca   : > { %15796 = vmatprep.mubr.msk.f32.mxu1 %vm4939_vm7, %v19289_v4  ;;  %22152 = vst [vmem:[#allocation107_spill] sm:$0xff] %v19314_v45  ;;  %v5792_v58 = vmul.f32 %v17933_v48, %v19314_v45  ;;  %v19342_v48 = vld [vmem:[#allocation3 + $0x62] sm:$0xff]  ;;  %v19349_v45 = vld [vmem:[#allocation3 + $0x7a] sm:$0xff] }
 0x1cb   : > { %22157 = vst [vmem:[#allocation112_spill] sm:$0xff] %v19342_v48 }
 0x1cc   : > { %v19305_v28 = vpop.f32.mrb[10].mxu1 }
 0x1cd   : > { %v19307_v39 = vpop.f32.mrb[11].mxu1  ;;  %15797 = vmatmul.mubr.msk.f32.gmra.mrb[36].mxu1 %vm4939_vm7, %v5788_v55  ;;  %v19327_v55 = vld [vmem:[#allocation3 + $0x5a] sm:$0xff] }
 0x1ce   : > { %15799 = vmatprep.mubr.msk.f32.mxu1 %vm4939_vm7, %v19303_v15  ;;  %22154 = vst [vmem:[#allocation109_spill] sm:$0xff] %v19327_v55  ;;  %v5794_v2 = vmul.f32 %v17947_v60, %v19327_v55 }
 0x1d0   : > { %v19318_v4 = vpop.f32.mrb[12].mxu1 }
 0x1d1   : > { %v19320_v0 = vpop.f32.mrb[13].mxu1  ;;  %15800 = vmatmul.mubr.msk.f32.gmra.mrb[38].mxu1 %vm4939_vm7, %v5790_v51  ;;  %v19340_v51 = vld [vmem:[#allocation3 + $0x6a] sm:$0xff] }
 0x1d2   : > { %15802 = vmatprep.mubr.msk.f32.mxu1 %vm4939_vm7, %v19316_v24  ;;  %22156 = vst [vmem:[#allocation111_spill] sm:$0xff] %v19340_v51  ;;  %v5796_v24 = vmul.f32 %v17963_v13, %v19340_v51  ;;  %v19364_v13 = vld [vmem:[#allocation3 + $0x8a] sm:$0xff] }
 0x1d4   : > { %v19331_v15 = vpop.f32.mrb[14].mxu1 }
 0x1d5   : > { %v19333_v41 = vpop.f32.mrb[15].mxu1  ;;  %15803 = vmatmul.mubr.msk.f32.gmra.mrb[40].mxu1 %vm4939_vm7, %v5792_v58  ;;  %v19351_v58 = vld [vmem:[#allocation3 + $0x72] sm:$0xff] }
 0x1d6   : > { %15805 = vmatprep.mubr.msk.f32.mxu1 %vm4939_vm7, %v19329_v34 }
 0x1d9   : > { %15806 = vmatmul.mubr.msk.f32.gmra.mrb[42].mxu1 %vm4939_vm7, %v5794_v2  ;;  %v5798_v2 = vmul.f32 %v17980_v30, %v19349_v45 }
 0x1da   : > { %15808 = vmatprep.mubr.msk.f32.mxu1 %vm4939_vm7, %v19342_v48  ;;  %v19366_v48 = vld [vmem:[#allocation3 + $0x82] sm:$0xff] }
 0x1dc   : > { %v15642_v60 = vpop.f32.mrb[0].mxu0 }
 0x1dd   : > { %v19354_v55 = vadd.f32 %v15642_v60, %v19235_v36  ;;  %v4677_v34 = vpop.f32.mrb[1].mxu0  ;;  %15809 = vmatmul.mubr.msk.f32.gmra.mrb[44].mxu1 %vm4939_vm7, %v5796_v24  ;;  %v5800_v24 = vmul.f32 %v22027_v21, %v19364_v13 }
 0x1de   : > { %v19360_v32 = vadd.f32 %v4677_v34, %v19240_v38  ;;  %15811 = vmatprep.mubr.msk.f32.mxu1 %vm4939_vm7, %v19351_v58  ;;  %v19379_v38 = vld [vmem:[#allocation3 + $0x9a] sm:$0xff] }
 0x1df   : > { %22158 = vst [vmem:[#allocation113_spill] sm:$0xff] %v19354_v55 }
 0x1e0   : > { %22159 = vst [vmem:[#allocation114_spill] sm:$0xff] %v19360_v32  ;;  %v15645_v51 = vpop.f32.mrb[2].mxu0  ;;  %v19381_v32 = vld [vmem:[#allocation3 + $0x92] sm:$0xff] }
 0x1e1   : > { %v19369_v60 = vadd.f32 %v15645_v51, %v19251_v42  ;;  %v4687_v36 = vpop.f32.mrb[3].mxu0  ;;  %15812 = vmatmul.mubr.msk.f32.gmra.mrb[46].mxu1 %vm4939_vm7, %v5798_v2  ;;  %v5802_v2 = vmul.f32 %v22032_v18, %v19379_v38 }
 0x1e2   : > { %v19375_v34 = vadd.f32 %v4687_v36, %v19253_v52  ;;  %15814 = vmatprep.mubr.msk.f32.mxu1 %vm4939_vm7, %v19366_v48  ;;  %v19394_v36 = vld [vmem:[#allocation3 + $0xaa] sm:$0xff] }
 0x1e3   : > { %22160 = vst [vmem:[#allocation115_spill] sm:$0xff] %v19369_v60 }
 0x1e4   : > { %22161 = vst [vmem:[#allocation116_spill] sm:$0xff] %v19375_v34  ;;  %v15648_v55 = vpop.f32.mrb[4].mxu0  ;;  %v19396_v34 = vld [vmem:[#allocation3 + $0xa2] sm:$0xff] }
 0x1e5   : > { %v19384_v42 = vadd.f32 %v15648_v55, %v19260_v59  ;;  %v4697_v51 = vpop.f32.mrb[5].mxu0  ;;  %15815 = vmatmul.mubr.msk.f32.gmra.mrb[48].mxu1 %vm4939_vm7, %v5800_v24  ;;  %v5804_v24 = vmul.f32 %v22037_v62, %v19394_v36 }
 0x1e6   : > { %v19390_v52 = vadd.f32 %v4697_v51, %v19262_v47  ;;  %15817 = vmatprep.mubr.msk.f32.mxu1 %vm4939_vm7, %v19381_v32  ;;  %v19409_v51 = vld [vmem:[#allocation3 + $0xba] sm:$0xff] }
 0x1e7   : > { %22162 = vst [vmem:[#allocation117_spill] sm:$0xff] %v19384_v42 }
 0x1e8   : > { %22163 = vst [vmem:[#allocation118_spill] sm:$0xff] %v19390_v52  ;;  %v15651_v60 = vpop.f32.mrb[6].mxu0  ;;  %v19411_v52 = vld [vmem:[#allocation3 + $0xb2] sm:$0xff] }
 0x1e9   : > { %v19399_v59 = vadd.f32 %v15651_v60, %v19272_v11  ;;  %v4707_v55 = vpop.f32.mrb[7].mxu0  ;;  %15818 = vmatmul.mubr.msk.f32.gmra.mrb[50].mxu1 %vm4939_vm7, %v5802_v2  ;;  %v5806_v2 = vmul.f32 %v22042_v35, %v19409_v51 }
 0x1ea   : > { %v19405_v47 = vadd.f32 %v4707_v55, %v19279_v6  ;;  %15820 = vmatprep.mubr.msk.f32.mxu1 %vm4939_vm7, %v19396_v34  ;;  %v19424_v55 = vld [vmem:[#allocation3 + $0xca] sm:$0xff] }
 0x1eb   : > { %22164 = vst [vmem:[#allocation119_spill] sm:$0xff] %v19399_v59 }
 0x1ec   : > { %22165 = vst [vmem:[#allocation120_spill] sm:$0xff] %v19405_v47  ;;  %v15654_v42 = vpop.f32.mrb[8].mxu0  ;;  %v19426_v47 = vld [vmem:[#allocation3 + $0xc2] sm:$0xff] }
 0x1ed   : > { %v19414_v11 = vadd.f32 %v15654_v42, %v19292_v10  ;;  %v4717_v60 = vpop.f32.mrb[9].mxu0  ;;  %15821 = vmatmul.mubr.msk.f32.gmra.mrb[52].mxu1 %vm4939_vm7, %v5804_v24  ;;  %v5808_v24 = vmul.f32 %v22047_v27, %v19424_v55 }
 0x1ee   : > { %v19420_v6 = vadd.f32 %v4717_v60, %v19294_v63  ;;  %15823 = vmatprep.mubr.msk.f32.mxu1 %vm4939_vm7, %v19411_v52  ;;  %v19439_v60 = vld [vmem:[#allocation3 + $0xda] sm:$0xff] }
 0x1ef   : > { %22166 = vst [vmem:[#allocation121_spill] sm:$0xff] %v19414_v11 }
 0x1f0   : > { %22167 = vst [vmem:[#allocation122_spill] sm:$0xff] %v19420_v6  ;;  %v15657_v59 = vpop.f32.mrb[10].mxu0  ;;  %v19441_v6 = vld [vmem:[#allocation3 + $0xd2] sm:$0xff] }
 0x1f1   : > { %v19429_v10 = vadd.f32 %v15657_v59, %v19305_v28  ;;  %v4727_v42 = vpop.f32.mrb[11].mxu0  ;;  %15824 = vmatmul.mubr.msk.f32.gmra.mrb[54].mxu1 %vm4939_vm7, %v5806_v2  ;;  %22170 = vst [vmem:[#allocation125_spill] sm:$0xff] %v19441_v6  ;;  %v5810_v2 = vmul.f32 %v22052_v3, %v19439_v60 }
 0x1f2   : > { %v19435_v63 = vadd.f32 %v4727_v42, %v19307_v39  ;;  %15826 = vmatprep.mubr.msk.f32.mxu1 %vm4939_vm7, %v19426_v47  ;;  %v19454_v42 = vld [vmem:[#allocation3 + $0xea] sm:$0xff] }
 0x1f3   : > { %22168 = vst [vmem:[#allocation123_spill] sm:$0xff] %v19429_v10 }
 0x1f4   : > { %22169 = vst [vmem:[#allocation124_spill] sm:$0xff] %v19435_v63  ;;  %v15660_v11 = vpop.f32.mrb[12].mxu0  ;;  %v19456_v63 = vld [vmem:[#allocation3 + $0xe2] sm:$0xff] }
 0x1f5   : > { %v19444_v28 = vadd.f32 %v15660_v11, %v19318_v4  ;;  %v4737_v59 = vpop.f32.mrb[13].mxu0  ;;  %15827 = vmatmul.mubr.msk.f32.gmra.mrb[56].mxu1 %vm4939_vm7, %v5808_v24  ;;  %22173 = vst [vmem:[#allocation128_spill] sm:$0xff] %v19456_v63 }
 0x1f6   : > { %v19450_v39 = vadd.f32 %v4737_v59, %v19320_v0  ;;  %15829 = vmatprep.mubr.msk.f32.mxu1 %vm4939_vm7, %v19441_v6  ;;  %v5812_v0 = vmul.f32 %v22057_v54, %v19454_v42 }
 0x1f7   : > { %22171 = vst [vmem:[#allocation126_spill] sm:$0xff] %v19444_v28  ;;  %v19471_v28 = vld [vmem:[#allocation3 + $0xf2] sm:$0xff] }
 0x1f8   : > { %22172 = vst [vmem:[#allocation127_spill] sm:$0xff] %v19450_v39  ;;  %v15466_v10 = vpop.f32.mrb[16].mxu1  ;;  %v15663_v27 = vpop.f32.mrb[14].mxu0  ;;  %v19469_v39 = vld [vmem:[#allocation3 + $0xfa] sm:$0xff] }
 0x1f9   : > { %v19459_v4 = vadd.f32 %v15663_v27, %v19331_v15  ;;  %v3101_v11 = vpop.f32.mrb[17].mxu1  ;;  %v4747_v24 = vpop.f32.mrb[15].mxu0  ;;  %15830 = vmatmul.mubr.msk.f32.gmra.mrb[58].mxu1 %vm4939_vm7, %v5810_v2  ;;  %v5814_v2 = vmul.f32 %v22062_v61, %v19469_v39 }
 0x1fa   : > { %v19465_v59 = vadd.f32 %v4747_v24, %v19333_v41  ;;  %15832 = vmatprep.mubr.msk.f32.mxu1 %vm4939_vm7, %v19456_v63  ;;  %v6202_v24 = vmul.f32 %v22125_v14, %v19103_v1  ;;  %v19495_v1 = vld [vmem:[%s21579_s3 + $0x28] sm:$0xff] }
 0x1fb   : > { %22174 = vst [vmem:[#allocation129_spill] sm:$0xff] %v19459_v4 }
 0x1fc   : > { %22175 = vst [vmem:[#allocation130_spill] sm:$0xff] %v19465_v59  ;;  %v15469_v3 = vpop.f32.mrb[18].mxu1  ;;  %v15666_v15 = vpop.f32.mrb[16].mxu0 }
 0x1fd   : > { %v19473_v27 = vadd.f32 %v15666_v15, %v15466_v10  ;;  %v3111_v4 = vpop.f32.mrb[19].mxu1  ;;  %v4757_v6 = vpop.f32.mrb[17].mxu0  ;;  %15833 = vmatmul.mubr.msk.f32.gmra.mrb[60].mxu1 %vm4939_vm7, %v5812_v0 }
 0x1fe   : > { %v19478_v41 = vadd.f32 %v4757_v6, %v3101_v11  ;;  %15835 = vmatprep.mubr.msk.f32.mxu1 %vm4939_vm7, %v19471_v28  ;;  %v6204_v6 = vmul.f32 %v22126_v26, %v19110_v50  ;;  %v6206_v50 = vmul.f32 %v22127_v17, %v19124_v40 }
 0x200   : > { %22176 = vst [vmem:[#allocation131_spill] sm:$0xff] %v19478_v41  ;;  %v15472_v59 = vpop.f32.mrb[20].mxu1  ;;  %v15669_v54 = vpop.f32.mrb[18].mxu0 }
 0x201   : > { %v19484_v63 = vadd.f32 %v15669_v54, %v15469_v3  ;;  %v3121_v10 = vpop.f32.mrb[21].mxu1  ;;  %v4767_v15 = vpop.f32.mrb[19].mxu0  ;;  %15836 = vmatmul.mubr.msk.f32.gmra.mrb[62].mxu1 %vm4939_vm7, %v5814_v2 }
 0x202   : > { %v19487_v0 = vadd.f32 %v4767_v15, %v3111_v4  ;;  %15840 = vmatprep.mubr.msk.f32.mxu1 %vm4939_vm7, %v6202_v24 }
 0x203   : > { %22177 = vst [vmem:[#allocation132_spill] sm:$0xff] %v19484_v63 }
 0x204   : > { %v15475_v11 = vpop.f32.mrb[22].mxu1  ;;  %v15672_v41 = vpop.f32.mrb[20].mxu0 }
 0x205   : > { %v19497_v3 = vadd.f32 %v15672_v41, %v15472_v59  ;;  %v3131_v54 = vpop.f32.mrb[23].mxu1  ;;  %v4777_v63 = vpop.f32.mrb[21].mxu0  ;;  %15841 = vmatmul.mubr.msk.f32.vlgmr.msra.gmra.mrb[32].mxu1 %vm4939_vm7, %v19120_v20 }
 0x206   : > { %v19501_v4 = vadd.f32 %v4777_v63, %v3121_v10  ;;  %15889 = vmatpush3.msra.mxu1 %v19277_v56  ;;  %15843 = vmatprep.mubr.msk.f32.mxu1 %vm4939_vm7, %v6204_v6  ;;  %v6208_v56 = vmul.f32 %v22128_v9, %v19134_v43 }
 0x207   : > { %15938 = vmatprep.subr.mxu1 %v19495_v1 }
 0x208   : > { %22178 = vst [vmem:[#allocation133_spill] sm:$0xff] %v19501_v4  ;;  %v15478_v2 = vpop.f32.mrb[24].mxu1  ;;  %v15675_v24 = vpop.f32.mrb[22].mxu0 }
 0x209   : > { %v19508_v59 = vadd.f32 %v15675_v24, %v15475_v11  ;;  %v3141_v41 = vpop.f32.mrb[25].mxu1  ;;  %v4787_v15 = vpop.f32.mrb[23].mxu0  ;;  %15844 = vmatmul.mubr.msk.f32.gmra.mrb[34].mxu1 %vm4939_vm7, %v19130_v44  ;;  %v6210_v44 = vmul.f32 %v22129_v5, %v19143_v37 }
 0x20a   : > { %v19512_v20 = vadd.f32 %v4787_v15, %v3131_v54  ;;  %15846 = vmatprep.mubr.msk.f32.mxu1 %vm4939_vm7, %v6206_v50 }
 0x20c   : > { %v15481_v63 = vpop.f32.mrb[26].mxu1  ;;  %v15678_v40 = vpop.f32.mrb[24].mxu0 }
 0x20d   : > { %v19517_v10 = vadd.f32 %v15678_v40, %v15478_v2  ;;  %v3151_v6 = vpop.f32.mrb[27].mxu1  ;;  %v4797_v4 = vpop.f32.mrb[25].mxu0  ;;  %15847 = vmatmul.mubr.msk.f32.gmra.mrb[36].mxu1 %vm4939_vm7, %v19139_v12  ;;  %v6212_v12 = vmul.f32 %v22130_v49, %v19152_v8  ;;  %v19549_v8 = vld [vmem:[%s21581_s5] ss:$0 sm:$0xff] }
 0x20e   : > { %v19521_v11 = vadd.f32 %v4797_v4, %v3141_v41  ;;  %15849 = vmatprep.mubr.msk.f32.mxu1 %vm4939_vm7, %v6208_v56 }
 0x20f   : > { %22179 = vst [vmem:[#allocation134_spill] sm:$0xff] %v19517_v10 }
 0x210   : > { %22180 = vst [vmem:[#allocation135_spill] sm:$0xff] %v19521_v11  ;;  %v15484_v54 = vpop.f32.mrb[28].mxu1  ;;  %v15681_v50 = vpop.f32.mrb[26].mxu0  ;;  %v22247_v11 = vld [vmem:[#allocation108_spill] sm:$0xff] }
 0x211   : > { %v19526_v24 = vadd.f32 %v15681_v50, %v15481_v63  ;;  %v3161_v43 = vpop.f32.mrb[29].mxu1  ;;  %v4807_v15 = vpop.f32.mrb[27].mxu0  ;;  %15850 = vmatmul.mubr.msk.f32.gmra.mrb[38].mxu1 %vm4939_vm7, %v19148_v53  ;;  %v6214_v53 = vmul.f32 %v22131_v25, %v19161_v57 }
 0x212   : > { %v19530_v2 = vadd.f32 %v4807_v15, %v3151_v6  ;;  %15852 = vmatprep.mubr.msk.f32.mxu1 %vm4939_vm7, %v6210_v44 }
 0x213   : > { %22181 = vst [vmem:[#allocation136_spill] sm:$0xff] %v19526_v24 }
 0x214   : > { %22182 = vst [vmem:[#allocation137_spill] sm:$0xff] %v19530_v2  ;;  %v15487_v4 = vpop.f32.mrb[30].mxu1  ;;  %v15684_v41 = vpop.f32.mrb[28].mxu0  ;;  %v22245_v2 = vld [vmem:[#allocation107_spill] sm:$0xff] }
 0x215   : > { %v19535_v56 = vadd.f32 %v15684_v41, %v15484_v54  ;;  %v3171_v37 = vpop.f32.mrb[31].mxu1  ;;  %v4817_v40 = vpop.f32.mrb[29].mxu0  ;;  %15853 = vmatmul.mubr.msk.f32.gmra.mrb[40].mxu1 %vm4939_vm7, %v19157_v31  ;;  %v6216_v31 = vmul.f32 %v22132_v29, %v19170_v46  ;;  %v22188_v46 = vld [vmem:[#allocation11_spill] sm:$0xff]  ;;  %v22191_v41 = vld [vmem:[#allocation17_spill] sm:$0xff] }
 0x216   : > { %v19539_v63 = vadd.f32 %v4817_v40, %v3161_v43  ;;  %15855 = vmatprep.mubr.msk.f32.mxu1 %vm4939_vm7, %v6212_v12  ;;  %v22187_v43 = vld [vmem:[#allocation58_spill] sm:$0xff] }
 0x217   : > { %22183 = vst [vmem:[#allocation138_spill] sm:$0xff] %v19535_v56  ;;  %v6220_v15 = vmul.f32 %v22187_v43, %v19188_v23  ;;  %v22189_v12 = vld [vmem:[#allocation14_spill] sm:$0xff]  ;;  %v22195_v23 = vld [vmem:[#allocation35_spill] sm:$0xff] }
 0x218   : > { %22184 = vst [vmem:[#allocation139_spill] sm:$0xff] %v19539_v63  ;;  %v15687_v6 = vpop.f32.mrb[30].mxu0  ;;  %v22194_v40 = vld [vmem:[#allocation30_spill] sm:$0xff] }
 0x219   : > { %v16620_v44 = vadd.f32 %v15687_v6, %v15487_v4  ;;  %v4827_v50 = vpop.f32.mrb[31].mxu0  ;;  %15856 = vmatmul.mubr.msk.f32.gmra.mrb[42].mxu1 %vm4939_vm7, %v19166_v33  ;;  %v6218_v33 = vmul.f32 %v18184_v19, %v19179_v22  ;;  %v22192_v22 = vld [vmem:[#allocation24_spill] sm:$0xff]  ;;  %v22243_v63 = vld [vmem:[#allocation6_spill] sm:$0xff] }
 0x21a   : > { %v19551_v54 = vadd.f32 %v4827_v50, %v3171_v37  ;;  %15858 = vmatprep.mubr.msk.f32.mxu1 %vm4939_vm7, %v6214_v53  ;;  %v22196_v53 = vld [vmem:[#allocation61_spill] sm:$0xff]  ;;  %v22198_v50 = vld [vmem:[#allocation48_spill] sm:$0xff] }
 0x21b   : > { %v19557_v57 = vadd.f32 %v16620_v44, %v19549_v8  ;;  %v6226_v6 = vmul.f32 %v22196_v53, %v22195_v23  ;;  %v22197_v44 = vld [vmem:[#allocation42_spill] sm:$0xff]  ;;  %v22205_v23 = vld [vmem:[#allocation100_spill] sm:$0xff] }
 0x21c   : > { %22185 = vst [vmem:[#allocation140_spill] sm:$0xff] %v19551_v54  ;;  %v22241_v54 = vld [vmem:[#allocation104_spill] sm:$0xff] }
 0x21d   : > { %22186 = vst [vmem:[#allocation141_spill] sm:$0xff] %v19557_v57  ;;  %15859 = vmatmul.mubr.msk.f32.gmra.mrb[44].mxu1 %vm4939_vm7, %v19175_v7  ;;  %v22190_v7 = vld [vmem:[#allocation59_spill] sm:$0xff] }
 0x21e   : > { %15861 = vmatprep.mubr.msk.f32.mxu1 %vm4939_vm7, %v6216_v31  ;;  %v6222_v4 = vmul.f32 %v22190_v7, %v22189_v12  ;;  %v22199_v31 = vld [vmem:[#allocation62_spill] sm:$0xff]  ;;  %v22202_v12 = vld [vmem:[#allocation63_spill] sm:$0xff] }
 0x221   : > { %15862 = vmatmul.mubr.msk.f32.gmra.mrb[46].mxu1 %vm4939_vm7, %v19184_v16  ;;  %v22193_v16 = vld [vmem:[#allocation60_spill] sm:$0xff] }
 0x222   : > { %15864 = vmatprep.mubr.msk.f32.mxu1 %vm4939_vm7, %v6218_v33  ;;  %v6224_v37 = vmul.f32 %v22193_v16, %v22192_v22  ;;  %v6228_v33 = vmul.f32 %v22199_v31, %v22198_v50  ;;  %v22203_v22 = vld [vmem:[#allocation99_spill] sm:$0xff]  ;;  %v13913_v50 = vld [vmem:[%s21579_s3 + $0x30] sm:$0xff] }
 0x225   : > { %15865 = vmatmul.mubr.msk.f32.gmra.mrb[48].mxu1 %vm4939_vm7, %v22188_v46  ;;  %v22201_v46 = vld [vmem:[#allocation97_spill] sm:$0xff] }
 0x226   : > { %15867 = vmatprep.mubr.msk.f32.mxu1 %vm4939_vm7, %v6220_v15  ;;  %v22200_v15 = vld [vmem:[#allocation96_spill] sm:$0xff] }
 0x229   : > { %15868 = vmatmul.mubr.msk.f32.gmra.mrb[50].mxu1 %vm4939_vm7, %v22191_v41  ;;  %v19594_v41 = vld [vmem:[#allocation3 + $0x100] sm:$0xff] }
 0x22a   : > { %15870 = vmatprep.mubr.msk.f32.mxu1 %vm4939_vm7, %v6222_v4  ;;  %v6230_v4 = vmul.f32 %v22202_v12, %v22201_v46  ;;  %v22209_v46 = vld [vmem:[#allocation57_spill] sm:$0xff] }
 0x22d   : > { %15871 = vmatmul.mubr.msk.f32.gmra.mrb[52].mxu1 %vm4939_vm7, %v22194_v40 }
 0x22e   : > { %15873 = vmatprep.mubr.msk.f32.mxu1 %vm4939_vm7, %v6224_v37  ;;  %v22204_v37 = vld [vmem:[#allocation64_spill] sm:$0xff] }
 0x22f   : > { %v6232_v40 = vmul.f32 %v22204_v37, %v19594_v41 }
 0x231   : > { %15874 = vmatmul.mubr.msk.f32.gmra.mrb[54].mxu1 %vm4939_vm7, %v22197_v44  ;;  %v22206_v44 = vld [vmem:[#allocation50_spill] sm:$0xff] }
 0x232   : > { %15876 = vmatprep.mubr.msk.f32.mxu1 %vm4939_vm7, %v6226_v6  ;;  %v19604_v6 = vld [vmem:[#allocation3 + $0x108] sm:$0xff] }
 0x235   : > { %15877 = vmatmul.mubr.msk.f32.gmra.mrb[56].mxu1 %vm4939_vm7, %v22200_v15  ;;  %v22208_v15 = vld [vmem:[#allocation56_spill] sm:$0xff] }
 0x236   : > { %15879 = vmatprep.mubr.msk.f32.mxu1 %vm4939_vm7, %v6228_v33  ;;  %v22207_v33 = vld [vmem:[#allocation54_spill] sm:$0xff] }
 0x239   : > { %15880 = vmatmul.mubr.msk.f32.gmra.mrb[58].mxu1 %vm4939_vm7, %v22203_v22  ;;  %v22211_v22 = vld [vmem:[#allocation70_spill] sm:$0xff] }
 0x23a   : > { %15882 = vmatprep.mubr.msk.f32.mxu1 %vm4939_vm7, %v6230_v4  ;;  %v22210_v4 = vld [vmem:[#allocation69_spill] sm:$0xff] }
 0x23d   : > { %15883 = vmatmul.mubr.msk.f32.gmra.mrb[60].mxu1 %vm4939_vm7, %v22205_v23  ;;  %v22213_v23 = vld [vmem:[#allocation72_spill] sm:$0xff] }
 0x23e   : > { %15885 = vmatprep.mubr.msk.f32.mxu1 %vm4939_vm7, %v6232_v40  ;;  %v22212_v40 = vld [vmem:[#allocation71_spill] sm:$0xff] }
 0x241   : > { %15886 = vmatmul.mubr.msk.f32.gmra.mrb[62].mxu1 %vm4939_vm7, %v19604_v6 }
 0x242   : > { %15890 = vmatprep.mubr.msk.f32.mxu1 %vm4939_vm7, %v22206_v44  ;;  %v22215_v44 = vld [vmem:[#allocation74_spill] sm:$0xff] }
 0x245   : > { %15891 = vmatmul.mubr.msk.f32.vlgmr.msra.gmra.mrb[32].mxu1 %vm4939_vm7, %v22207_v33  ;;  %v22216_v33 = vld [vmem:[#allocation75_spill] sm:$0xff] }
 0x246   : > { %15939 = vmatpush3.msra.mxu1 %v19495_v1  ;;  %15893 = vmatprep.mubr.msk.f32.mxu1 %vm4939_vm7, %v22208_v15  ;;  %v22214_v1 = vld [vmem:[#allocation73_spill] sm:$0xff]  ;;  %v22217_v15 = vld [vmem:[#allocation76_spill] sm:$0xff] }
 0x247   : > { %15988 = vmatprep.subr.mxu1 %v13913_v50 }
 0x249   : > { %15894 = vmatmul.mubr.msk.f32.gmra.mrb[34].mxu1 %vm4939_vm7, %v22209_v46  ;;  %v22218_v46 = vld [vmem:[#allocation77_spill] sm:$0xff] }
 0x24a   : > { %15896 = vmatprep.mubr.msk.f32.mxu1 %vm4939_vm7, %v22210_v4  ;;  %v22219_v4 = vld [vmem:[#allocation78_spill] sm:$0xff] }
 0x24d   : > { %15897 = vmatmul.mubr.msk.f32.gmra.mrb[36].mxu1 %vm4939_vm7, %v22211_v22  ;;  %v22220_v22 = vld [vmem:[#allocation79_spill] sm:$0xff] }
 0x24e   : > { %15899 = vmatprep.mubr.msk.f32.mxu1 %vm4939_vm7, %v22212_v40  ;;  %v22221_v40 = vld [vmem:[#allocation80_spill] sm:$0xff] }
 0x251   : > { %15900 = vmatmul.mubr.msk.f32.gmra.mrb[38].mxu1 %vm4939_vm7, %v22213_v23  ;;  %v22222_v23 = vld [vmem:[#allocation81_spill] sm:$0xff] }
 0x252   : > { %15902 = vmatprep.mubr.msk.f32.mxu1 %vm4939_vm7, %v22214_v1  ;;  %v22223_v1 = vld [vmem:[#allocation82_spill] sm:$0xff] }
 0x255   : > { %15903 = vmatmul.mubr.msk.f32.gmra.mrb[40].mxu1 %vm4939_vm7, %v22215_v44  ;;  %v22224_v44 = vld [vmem:[#allocation83_spill] sm:$0xff] }
 0x256   : > { %15905 = vmatprep.mubr.msk.f32.mxu1 %vm4939_vm7, %v22216_v33  ;;  %v22225_v33 = vld [vmem:[#allocation84_spill] sm:$0xff] }
 0x259   : > { %15906 = vmatmul.mubr.msk.f32.gmra.mrb[42].mxu1 %vm4939_vm7, %v22217_v15  ;;  %v22226_v15 = vld [vmem:[#allocation85_spill] sm:$0xff] }
 0x25a   : > { %15908 = vmatprep.mubr.msk.f32.mxu1 %vm4939_vm7, %v22218_v46  ;;  %v22227_v46 = vld [vmem:[#allocation86_spill] sm:$0xff] }
 0x25d   : > { %15909 = vmatmul.mubr.msk.f32.gmra.mrb[44].mxu1 %vm4939_vm7, %v22219_v4  ;;  %v22228_v4 = vld [vmem:[#allocation87_spill] sm:$0xff] }
 0x25e   : > { %15911 = vmatprep.mubr.msk.f32.mxu1 %vm4939_vm7, %v22220_v22  ;;  %v22229_v22 = vld [vmem:[#allocation88_spill] sm:$0xff] }
 0x261   : > { %15912 = vmatmul.mubr.msk.f32.gmra.mrb[46].mxu1 %vm4939_vm7, %v22221_v40  ;;  %v22230_v40 = vld [vmem:[#allocation89_spill] sm:$0xff] }
 0x262   : > { %15914 = vmatprep.mubr.msk.f32.mxu1 %vm4939_vm7, %v22222_v23  ;;  %v22231_v23 = vld [vmem:[#allocation90_spill] sm:$0xff] }
 0x265   : > { %15915 = vmatmul.mubr.msk.f32.gmra.mrb[48].mxu1 %vm4939_vm7, %v22223_v1  ;;  %v22232_v1 = vld [vmem:[#allocation92_spill] sm:$0xff] }
 0x266   : > { %15917 = vmatprep.mubr.msk.f32.mxu1 %vm4939_vm7, %v22224_v44  ;;  %v22233_v44 = vld [vmem:[#allocation93_spill] sm:$0xff] }
 0x269   : > { %15918 = vmatmul.mubr.msk.f32.gmra.mrb[50].mxu1 %vm4939_vm7, %v22225_v33  ;;  %v22234_v33 = vld [vmem:[#allocation94_spill] sm:$0xff] }
 0x26a   : > { %15920 = vmatprep.mubr.msk.f32.mxu1 %vm4939_vm7, %v22226_v15  ;;  %v19670_v15 = vld [vmem:[#allocation3 + $0x101] sm:$0xff] }
 0x26d   : > { %15921 = vmatmul.mubr.msk.f32.gmra.mrb[52].mxu1 %vm4939_vm7, %v22227_v46  ;;  %v22235_v46 = vld [vmem:[#allocation95_spill] sm:$0xff] }
 0x26e   : > { %15923 = vmatprep.mubr.msk.f32.mxu1 %vm4939_vm7, %v22228_v4  ;;  %v19676_v4 = vld [vmem:[#allocation3 + $0x109] sm:$0xff] }
 0x271   : > { %15924 = vmatmul.mubr.msk.f32.gmra.mrb[54].mxu1 %vm4939_vm7, %v22229_v22  ;;  %v22236_v22 = vld [vmem:[#allocation101_spill] sm:$0xff] }
 0x272   : > { %15926 = vmatprep.mubr.msk.f32.mxu1 %vm4939_vm7, %v22230_v40  ;;  %v22237_v40 = vld [vmem:[#allocation4_spill] sm:$0xff] }
 0x275   : > { %15927 = vmatmul.mubr.msk.f32.gmra.mrb[56].mxu1 %vm4939_vm7, %v22231_v23  ;;  %v7009_v23 = vmul.f32 %v22237_v40, %v22236_v22  ;;  %v22242_v22 = vld [vmem:[#allocation105_spill] sm:$0xff] }
 0x276   : > { %15929 = vmatprep.mubr.msk.f32.mxu1 %vm4939_vm7, %v22232_v1  ;;  %v22238_v1 = vld [vmem:[#allocation102_spill] sm:$0xff]  ;;  %v7013_v56 = vmul.f32 %v22243_v63, %v22242_v22  ;;  %v22251_v22 = vld [vmem:[#allocation111_spill] sm:$0xff] }
 0x279   : > { %15930 = vmatmul.mubr.msk.f32.gmra.mrb[58].mxu1 %vm4939_vm7, %v22233_v44  ;;  %v13946_v44 = vld [vmem:[%s21579_s3 + $0x38] sm:$0xff] }
 0x27a   : > { %15932 = vmatprep.mubr.msk.f32.mxu1 %vm4939_vm7, %v22234_v33  ;;  %v22239_v33 = vld [vmem:[#allocation103_spill] sm:$0xff] }
 0x27d   : > { %15933 = vmatmul.mubr.msk.f32.gmra.mrb[60].mxu1 %vm4939_vm7, %v22235_v46  ;;  %v22240_v46 = vld [vmem:[#allocation5_spill] sm:$0xff] }
 0x27e   : > { %15935 = vmatprep.mubr.msk.f32.mxu1 %vm4939_vm7, %v19670_v15  ;;  %v7011_v57 = vmul.f32 %v22240_v46, %v22239_v33 }
 0x281   : > { %15936 = vmatmul.mubr.msk.f32.gmra.mrb[62].mxu1 %vm4939_vm7, %v19676_v4 }
 0x282   : > { %15940 = vmatprep.mubr.msk.f32.mxu1 %vm4939_vm7, %v22238_v1  ;;  %v22244_v1 = vld [vmem:[#allocation106_spill] sm:$0xff] }
 0x285   : > { %15941 = vmatmul.mubr.msk.f32.vlgmr.msra.gmra.mrb[32].mxu1 %vm4939_vm7, %v7009_v23  ;;  %v22246_v23 = vld [vmem:[#allocation7_spill] sm:$0xff] }
 0x286   : > { %15989 = vmatpush3.msra.mxu1 %v13913_v50  ;;  %15943 = vmatprep.mubr.msk.f32.mxu1 %vm4939_vm7, %v22241_v54  ;;  %v7015_v24 = vmul.f32 %v22246_v23, %v22245_v2  ;;  %v22248_v54 = vld [vmem:[#allocation109_spill] sm:$0xff]  ;;  %v22249_v50 = vld [vmem:[#allocation8_spill] sm:$0xff] }
 0x287   : > { %16038 = vmatprep.subr.mxu1 %v13946_v44  ;;  %v7017_v33 = vmul.f32 %v22249_v50, %v22248_v54  ;;  %v7025_v54 = vmul.f32 %v22027_v21, %v19379_v38  ;;  %v22257_v38 = vld [vmem:[#allocation45_spill] sm:$0xff] }
 0x289   : > { %15944 = vmatmul.mubr.msk.f32.gmra.mrb[34].mxu1 %vm4939_vm7, %v7011_v57  ;;  %v22250_v57 = vld [vmem:[#allocation110_spill] sm:$0xff] }
 0x28a   : > { %15946 = vmatprep.mubr.msk.f32.mxu1 %vm4939_vm7, %v22244_v1  ;;  %v22252_v1 = vld [vmem:[#allocation9_spill] sm:$0xff] }
 0x28b   : > { %v7019_v10 = vmul.f32 %v22252_v1, %v22251_v22  ;;  %v7397_v22 = vld [vmem:[#allocation3 + $0x30] sm:$0xff] }
 0x28d   : > { %15947 = vmatmul.mubr.msk.f32.gmra.mrb[36].mxu1 %vm4939_vm7, %v7013_v56  ;;  %v22253_v56 = vld [vmem:[#allocation112_spill] sm:$0xff] }
 0x28e   : > { %15949 = vmatprep.mubr.msk.f32.mxu1 %vm4939_vm7, %v22247_v11  ;;  %v22254_v11 = vld [vmem:[#allocation10_spill] sm:$0xff] }
 0x28f   : > { %v7021_v2 = vmul.f32 %v22254_v11, %v19349_v45  ;;  %v7027_v45 = vmul.f32 %v22032_v18, %v19394_v36  ;;  %v22258_v36 = vld [vmem:[#allocation128_spill] sm:$0xff] }
 0x291   : > { %15950 = vmatmul.mubr.msk.f32.gmra.mrb[38].mxu1 %vm4939_vm7, %v7015_v24  ;;  %v7023_v24 = vmul.f32 %v17980_v30, %v19364_v13  ;;  %v7031_v13 = vmul.f32 %v22042_v35, %v19424_v55  ;;  %v22260_v55 = vmov 0.0  }
 0x292   : > { %15952 = vmatprep.mubr.msk.f32.mxu1 %vm4939_vm7, %v22250_v57  ;;  %4977 = vst.msk [vmem:[#allocation3 + $0x120] sm:$0x3] %vm4976_vm0, %v22260_v55  ;;  %v7404_v55 = vld [vmem:[#allocation3 + $0x68] sm:$0xff] }
 0x295   : > { %15953 = vmatmul.mubr.msk.f32.gmra.mrb[40].mxu1 %vm4939_vm7, %v7017_v33  ;;  %v7395_v33 = vld [vmem:[#allocation3 + $0x20] sm:$0xff] }
 0x296   : > { %15955 = vmatprep.mubr.msk.f32.mxu1 %vm4939_vm7, %v22253_v56  ;;  %v7427_v57 = vmul.f32 %v22125_v14, %v7395_v33  ;;  %v7396_v56 = vld [vmem:[#allocation3 + $0x28] sm:$0xff] }
 0x299   : > { %15956 = vmatmul.mubr.msk.f32.gmra.mrb[42].mxu1 %vm4939_vm7, %v7019_v10  ;;  %v19760_v10 = vld [vmem:[#allocation3 + $0x102] sm:$0xff] }
 0x29a   : > { %15958 = vmatprep.mubr.msk.f32.mxu1 %vm4939_vm7, %v19351_v58 }
 0x29d   : > { %15959 = vmatmul.mubr.msk.f32.gmra.mrb[44].mxu1 %vm4939_vm7, %v7021_v2  ;;  %v7429_v2 = vmul.f32 %v22126_v26, %v7397_v22 }
 0x29e   : > { %15961 = vmatprep.mubr.msk.f32.mxu1 %vm4939_vm7, %v19366_v48  ;;  %v7029_v48 = vmul.f32 %v22037_v62, %v19409_v51 }
 0x2a1   : > { %15962 = vmatmul.mubr.msk.f32.gmra.mrb[46].mxu1 %vm4939_vm7, %v7023_v24  ;;  %v7399_v24 = vld [vmem:[#allocation3 + $0x40] sm:$0xff] }
 0x2a2   : > { %15964 = vmatprep.mubr.msk.f32.mxu1 %vm4939_vm7, %v19381_v32  ;;  %v22255_v32 = vld [vmem:[#allocation39_spill] sm:$0xff] }
 0x2a3   : > { %v7033_v58 = vmul.f32 %v22255_v32, %v19439_v60  ;;  %v19758_v60 = vld [vmem:[#allocation3 + $0x10a] sm:$0xff] }
 0x2a5   : > { %15965 = vmatmul.mubr.msk.f32.gmra.mrb[48].mxu1 %vm4939_vm7, %v7025_v54  ;;  %v19774_v54 = vld [vmem:[%s21579_s3 + $0x40] sm:$0xff] }
 0x2a6   : > { %15967 = vmatprep.mubr.msk.f32.mxu1 %vm4939_vm7, %v19396_v34  ;;  %v22256_v34 = vld [vmem:[#allocation125_spill] sm:$0xff] }
 0x2a9   : > { %15968 = vmatmul.mubr.msk.f32.gmra.mrb[50].mxu1 %vm4939_vm7, %v7027_v45  ;;  %v7398_v45 = vld [vmem:[#allocation3 + $0x38] sm:$0xff] }
 0x2aa   : > { %15970 = vmatprep.mubr.msk.f32.mxu1 %vm4939_vm7, %v19411_v52  ;;  %v7035_v52 = vmul.f32 %v22257_v38, %v19454_v42  ;;  %v7039_v42 = vmul.f32 %v22062_v61, %v19758_v60 }
 0x2ad   : > { %15971 = vmatmul.mubr.msk.f32.gmra.mrb[52].mxu1 %vm4939_vm7, %v7029_v48  ;;  %v7431_v48 = vmul.f32 %v22127_v17, %v7399_v24 }
 0x2ae   : > { %15973 = vmatprep.mubr.msk.f32.mxu1 %vm4939_vm7, %v19426_v47  ;;  %v22259_v47 = vld [vmem:[#allocation51_spill] sm:$0xff] }
 0x2af   : > { %v7037_v51 = vmul.f32 %v22259_v47, %v19469_v39 }
 0x2b1   : > { %15974 = vmatmul.mubr.msk.f32.gmra.mrb[54].mxu1 %vm4939_vm7, %v7031_v13  ;;  %v7401_v13 = vld [vmem:[#allocation3 + $0x50] sm:$0xff] }
 0x2b2   : > { %15976 = vmatprep.mubr.msk.f32.mxu1 %vm4939_vm7, %v22256_v34  ;;  %v7433_v34 = vmul.f32 %v22128_v9, %v7401_v13 }
 0x2b5   : > { %15977 = vmatmul.mubr.msk.f32.gmra.mrb[56].mxu1 %vm4939_vm7, %v7033_v58  ;;  %v7400_v58 = vld [vmem:[#allocation3 + $0x48] sm:$0xff] }
 0x2b6   : > { %15979 = vmatprep.mubr.msk.f32.mxu1 %vm4939_vm7, %v22258_v36 }
 0x2b9   : > { %15980 = vmatmul.mubr.msk.f32.gmra.mrb[58].mxu1 %vm4939_vm7, %v7035_v52  ;;  %v7403_v52 = vld [vmem:[#allocation3 + $0x60] sm:$0xff] }
 0x2ba   : > { %15982 = vmatprep.mubr.msk.f32.mxu1 %vm4939_vm7, %v19471_v28  ;;  %v7435_v36 = vmul.f32 %v22129_v5, %v7403_v52 }
 0x2bd   : > { %15983 = vmatmul.mubr.msk.f32.gmra.mrb[60].mxu1 %vm4939_vm7, %v7037_v51  ;;  %v7405_v51 = vld [vmem:[#allocation3 + $0x70] sm:$0xff] }
 0x2be   : > { %15985 = vmatprep.mubr.msk.f32.mxu1 %vm4939_vm7, %v19760_v10  ;;  %v7437_v33 = vmul.f32 %v22130_v49, %v7405_v51 }
 0x2c1   : > { %15986 = vmatmul.mubr.msk.f32.gmra.mrb[62].mxu1 %vm4939_vm7, %v7039_v42  ;;  %v7407_v42 = vld [vmem:[#allocation3 + $0x80] sm:$0xff] }
 0x2c2   : > { %15990 = vmatprep.mubr.msk.f32.mxu1 %vm4939_vm7, %v7427_v57  ;;  %v7406_v57 = vld [vmem:[#allocation3 + $0x78] sm:$0xff]  ;;  %v7439_v22 = vmul.f32 %v22131_v25, %v7407_v42 }
 0x2c5   : > { %15991 = vmatmul.mubr.msk.f32.vlgmr.msra.gmra.mrb[32].mxu1 %vm4939_vm7, %v7396_v56  ;;  %v7409_v56 = vld [vmem:[#allocation3 + $0x90] sm:$0xff] }
 0x2c6   : > { %16039 = vmatpush3.msra.mxu1 %v13946_v44  ;;  %15993 = vmatprep.mubr.msk.f32.mxu1 %vm4939_vm7, %v7429_v2  ;;  %v7402_v44 = vld [vmem:[#allocation3 + $0x58] sm:$0xff]  ;;  %v7408_v2 = vld [vmem:[#allocation3 + $0x88] sm:$0xff]  ;;  %v7441_v24 = vmul.f32 %v22132_v29, %v7409_v56 }
 0x2c7   : > { %16088 = vmatprep.subr.mxu1 %v19774_v54 }
 0x2c9   : > { %15994 = vmatmul.mubr.msk.f32.gmra.mrb[34].mxu1 %vm4939_vm7, %v7398_v45  ;;  %v7411_v45 = vld [vmem:[#allocation3 + $0xa0] sm:$0xff] }
 0x2ca   : > { %15996 = vmatprep.mubr.msk.f32.mxu1 %vm4939_vm7, %v7431_v48  ;;  %v7410_v48 = vld [vmem:[#allocation3 + $0x98] sm:$0xff]  ;;  %v7443_v13 = vmul.f32 %v18184_v19, %v7411_v45 }
 0x2cd   : > { %15997 = vmatmul.mubr.msk.f32.gmra.mrb[36].mxu1 %vm4939_vm7, %v7400_v58  ;;  %v7413_v58 = vld [vmem:[#allocation3 + $0xb0] sm:$0xff] }
 0x2ce   : > { %15999 = vmatprep.mubr.msk.f32.mxu1 %vm4939_vm7, %v7433_v34  ;;  %v7412_v34 = vld [vmem:[#allocation3 + $0xa8] sm:$0xff]  ;;  %v7445_v52 = vmul.f32 %v22187_v43, %v7413_v58  ;;  %v7425_v58 = vld [vmem:[#allocation3 + $0x110] sm:$0xff] }
 0x2d1   : > { %16000 = vmatmul.mubr.msk.f32.gmra.mrb[38].mxu1 %vm4939_vm7, %v7402_v44  ;;  %v7415_v44 = vld [vmem:[#allocation3 + $0xc0] sm:$0xff] }
 0x2d2   : > { %16002 = vmatprep.mubr.msk.f32.mxu1 %vm4939_vm7, %v7435_v36  ;;  %v7414_v36 = vld [vmem:[#allocation3 + $0xb8] sm:$0xff]  ;;  %v7447_v51 = vmul.f32 %v22190_v7, %v7415_v44  ;;  %v7814_v44 = vld [vmem:[#allocation3 + $0x21] sm:$0xff] }
 0x2d5   : > { %16003 = vmatmul.mubr.msk.f32.gmra.mrb[40].mxu1 %vm4939_vm7, %v7404_v55  ;;  %v7417_v55 = vld [vmem:[#allocation3 + $0xd0] sm:$0xff] }
 0x2d6   : > { %16005 = vmatprep.mubr.msk.f32.mxu1 %vm4939_vm7, %v7437_v33  ;;  %v7416_v33 = vld [vmem:[#allocation3 + $0xc8] sm:$0xff]  ;;  %v7449_v42 = vmul.f32 %v22193_v16, %v7417_v55 }
 0x2d7   : > { %v7818_v55 = vld [vmem:[#allocation3 + $0x41] sm:$0xff] }
 0x2d9   : > { %16006 = vmatmul.mubr.msk.f32.gmra.mrb[42].mxu1 %vm4939_vm7, %v7406_v57  ;;  %v7419_v57 = vld [vmem:[#allocation3 + $0xe0] sm:$0xff] }
 0x2da   : > { %16008 = vmatprep.mubr.msk.f32.mxu1 %vm4939_vm7, %v7439_v22  ;;  %v7418_v22 = vld [vmem:[#allocation3 + $0xd8] sm:$0xff]  ;;  %v7451_v56 = vmul.f32 %v22196_v53, %v7419_v57  ;;  %v7822_v57 = vld [vmem:[#allocation3 + $0x61] sm:$0xff] }
 0x2dd   : > { %16009 = vmatmul.mubr.msk.f32.gmra.mrb[44].mxu1 %vm4939_vm7, %v7408_v2  ;;  %v7421_v2 = vld [vmem:[#allocation3 + $0xf0] sm:$0xff] }
 0x2de   : > { %16011 = vmatprep.mubr.msk.f32.mxu1 %vm4939_vm7, %v7441_v24  ;;  %v7420_v24 = vld [vmem:[#allocation3 + $0xe8] sm:$0xff]  ;;  %v7453_v45 = vmul.f32 %v22199_v31, %v7421_v2 }
 0x2df   : > { %v7826_v2 = vld [vmem:[#allocation3 + $0x81] sm:$0xff] }
 0x2e1   : > { %16012 = vmatmul.mubr.msk.f32.gmra.mrb[46].mxu1 %vm4939_vm7, %v7410_v48  ;;  %v7422_v48 = vld [vmem:[#allocation3 + $0xf8] sm:$0xff] }
 0x2e2   : > { %16014 = vmatprep.mubr.msk.f32.mxu1 %vm4939_vm7, %v7443_v13  ;;  %v7455_v13 = vmul.f32 %v22202_v12, %v19594_v41  ;;  %v7816_v41 = vld [vmem:[#allocation3 + $0x31] sm:$0xff] }
 0x2e5   : > { %16015 = vmatmul.mubr.msk.f32.gmra.mrb[48].mxu1 %vm4939_vm7, %v7412_v34  ;;  %v7457_v34 = vmul.f32 %v22204_v37, %v7425_v58  ;;  %v7831_v58 = vld [vmem:[#allocation3 + $0xa9] sm:$0xff] }
 0x2e6   : > { %16017 = vmatprep.mubr.msk.f32.mxu1 %vm4939_vm7, %v7445_v52  ;;  %v7426_v52 = vld [vmem:[#allocation3 + $0x118] sm:$0xff] }
 0x2e9   : > { %16018 = vmatmul.mubr.msk.f32.gmra.mrb[50].mxu1 %vm4939_vm7, %v7414_v36  ;;  %v7815_v36 = vld [vmem:[#allocation3 + $0x29] sm:$0xff] }
 0x2ea   : > { %16020 = vmatprep.mubr.msk.f32.mxu1 %vm4939_vm7, %v7447_v51  ;;  %v7817_v51 = vld [vmem:[#allocation3 + $0x39] sm:$0xff] }
 0x2ed   : > { %16021 = vmatmul.mubr.msk.f32.gmra.mrb[52].mxu1 %vm4939_vm7, %v7416_v33  ;;  %v7820_v33 = vld [vmem:[#allocation3 + $0x51] sm:$0xff] }
 0x2ee   : > { %16023 = vmatprep.mubr.msk.f32.mxu1 %vm4939_vm7, %v7449_v42  ;;  %v7821_v42 = vld [vmem:[#allocation3 + $0x59] sm:$0xff] }
 0x2f1   : > { %16024 = vmatmul.mubr.msk.f32.gmra.mrb[54].mxu1 %vm4939_vm7, %v7418_v22  ;;  %v7824_v22 = vld [vmem:[#allocation3 + $0x71] sm:$0xff] }
 0x2f2   : > { %16026 = vmatprep.mubr.msk.f32.mxu1 %vm4939_vm7, %v7451_v56  ;;  %v7825_v56 = vld [vmem:[#allocation3 + $0x79] sm:$0xff] }
 0x2f5   : > { %16027 = vmatmul.mubr.msk.f32.gmra.mrb[56].mxu1 %vm4939_vm7, %v7420_v24  ;;  %v7827_v24 = vld [vmem:[#allocation3 + $0x89] sm:$0xff] }
 0x2f6   : > { %16029 = vmatprep.mubr.msk.f32.mxu1 %vm4939_vm7, %v7453_v45  ;;  %v7828_v45 = vld [vmem:[#allocation3 + $0x91] sm:$0xff] }
 0x2f9   : > { %16030 = vmatmul.mubr.msk.f32.gmra.mrb[58].mxu1 %vm4939_vm7, %v7422_v48  ;;  %v7829_v48 = vld [vmem:[#allocation3 + $0x99] sm:$0xff] }
 0x2fa   : > { %16032 = vmatprep.mubr.msk.f32.mxu1 %vm4939_vm7, %v7455_v13  ;;  %v7830_v13 = vld [vmem:[#allocation3 + $0xa1] sm:$0xff] }
 0x2fd   : > { %16033 = vmatmul.mubr.msk.f32.gmra.mrb[60].mxu1 %vm4939_vm7, %v19604_v6  ;;  %v7819_v6 = vld [vmem:[#allocation3 + $0x49] sm:$0xff] }
 0x2fe   : > { %16035 = vmatprep.mubr.msk.f32.mxu1 %vm4939_vm7, %v7457_v34  ;;  %v7832_v34 = vld [vmem:[#allocation3 + $0xb1] sm:$0xff] }
 0x301   : > { %16036 = vmatmul.mubr.msk.f32.gmra.mrb[62].mxu1 %vm4939_vm7, %v7426_v52  ;;  %v7833_v52 = vld [vmem:[#allocation3 + $0xb9] sm:$0xff] }
 0x302   : > { %16040 = vmatprep.mubr.msk.f32.mxu1 %vm4939_vm7, %v7814_v44  ;;  %v7834_v44 = vld [vmem:[#allocation3 + $0xc1] sm:$0xff] }
 0x305   : > { %16041 = vmatmul.mubr.msk.f32.vlgmr.msra.gmra.mrb[32].mxu1 %vm4939_vm7, %v7815_v36  ;;  %v7835_v36 = vld [vmem:[#allocation3 + $0xc9] sm:$0xff] }
 0x306   : > { %16089 = vmatpush3.msra.mxu1 %v19774_v54  ;;  %16043 = vmatprep.mubr.msk.f32.mxu1 %vm4939_vm7, %v7816_v41  ;;  %v7823_v54 = vld [vmem:[#allocation3 + $0x69] sm:$0xff]  ;;  %v7836_v41 = vld [vmem:[#allocation3 + $0xd1] sm:$0xff] }
 0x309   : > { %16044 = vmatmul.mubr.msk.f32.gmra.mrb[34].mxu1 %vm4939_vm7, %v7817_v51  ;;  %v7837_v51 = vld [vmem:[#allocation3 + $0xd9] sm:$0xff] }
 0x30a   : > { %16046 = vmatprep.mubr.msk.f32.mxu1 %vm4939_vm7, %v7818_v55  ;;  %v7838_v55 = vld [vmem:[#allocation3 + $0xe1] sm:$0xff] }
 0x30d   : > { %16047 = vmatmul.mubr.msk.f32.gmra.mrb[36].mxu1 %vm4939_vm7, %v7819_v6  ;;  %v7839_v6 = vld [vmem:[#allocation3 + $0xe9] sm:$0xff] }
 0x30e   : > { %16049 = vmatprep.mubr.msk.f32.mxu1 %vm4939_vm7, %v7820_v33  ;;  %v7840_v33 = vld [vmem:[#allocation3 + $0xf1] sm:$0xff] }
 0x311   : > { %16050 = vmatmul.mubr.msk.f32.gmra.mrb[38].mxu1 %vm4939_vm7, %v7821_v42  ;;  %v7841_v42 = vld [vmem:[#allocation3 + $0xf9] sm:$0xff] }
 0x312   : > { %16052 = vmatprep.mubr.msk.f32.mxu1 %vm4939_vm7, %v7822_v57  ;;  %v7844_v57 = vld [vmem:[#allocation3 + $0x111] sm:$0xff] }
 0x315   : > { %16053 = vmatmul.mubr.msk.f32.gmra.mrb[40].mxu1 %vm4939_vm7, %v7823_v54  ;;  %v7845_v54 = vld [vmem:[#allocation3 + $0x119] sm:$0xff] }
 0x316   : > { %16055 = vmatprep.mubr.msk.f32.mxu1 %vm4939_vm7, %v7824_v22  ;;  %v8202_v22 = vld [vmem:[#allocation3 + $0x2a] sm:$0xff] }
 0x319   : > { %16056 = vmatmul.mubr.msk.f32.gmra.mrb[42].mxu1 %vm4939_vm7, %v7825_v56  ;;  %v8201_v56 = vld [vmem:[#allocation3 + $0x22] sm:$0xff] }
 0x31a   : > { %16058 = vmatprep.mubr.msk.f32.mxu1 %vm4939_vm7, %v7826_v2  ;;  %v8234_v2 = vmul.f32 %v22237_v40, %v8202_v22  ;;  %v8215_v22 = vld [vmem:[#allocation3 + $0x92] sm:$0xff] }
 0x31d   : > { %16059 = vmatmul.mubr.msk.f32.gmra.mrb[44].mxu1 %vm4939_vm7, %v7827_v24  ;;  %v8204_v24 = vld [vmem:[#allocation3 + $0x3a] sm:$0xff] }
 0x31e   : > { %16061 = vmatprep.mubr.msk.f32.mxu1 %vm4939_vm7, %v7828_v45  ;;  %v8203_v45 = vld [vmem:[#allocation3 + $0x32] sm:$0xff] }
 0x321   : > { %16062 = vmatmul.mubr.msk.f32.gmra.mrb[46].mxu1 %vm4939_vm7, %v7829_v48  ;;  %v8205_v48 = vld [vmem:[#allocation3 + $0x42] sm:$0xff] }
 0x322   : > { %16064 = vmatprep.mubr.msk.f32.mxu1 %vm4939_vm7, %v7830_v13 }
 0x325   : > { %16065 = vmatmul.mubr.msk.f32.gmra.mrb[48].mxu1 %vm4939_vm7, %v7831_v58  ;;  %v8208_v58 = vld [vmem:[#allocation3 + $0x5a] sm:$0xff] }
 0x326   : > { %16067 = vmatprep.mubr.msk.f32.mxu1 %vm4939_vm7, %v7832_v34  ;;  %v8207_v34 = vld [vmem:[#allocation3 + $0x52] sm:$0xff] }
 0x329   : > { %16068 = vmatmul.mubr.msk.f32.gmra.mrb[50].mxu1 %vm4939_vm7, %v7833_v52  ;;  %v8240_v52 = vmul.f32 %v22246_v23, %v8208_v58  ;;  %v8221_v58 = vld [vmem:[#allocation3 + $0xc2] sm:$0xff] }
 0x32a   : > { %16070 = vmatprep.mubr.msk.f32.mxu1 %vm4939_vm7, %v7834_v44  ;;  %v8210_v44 = vld [vmem:[#allocation3 + $0x6a] sm:$0xff] }
 0x32d   : > { %16071 = vmatmul.mubr.msk.f32.gmra.mrb[52].mxu1 %vm4939_vm7, %v7835_v36  ;;  %v8209_v36 = vld [vmem:[#allocation3 + $0x62] sm:$0xff] }
 0x32e   : > { %16073 = vmatprep.mubr.msk.f32.mxu1 %vm4939_vm7, %v7836_v41  ;;  %v8242_v41 = vmul.f32 %v22249_v50, %v8210_v44  ;;  %v8223_v44 = vld [vmem:[#allocation3 + $0xd2] sm:$0xff] }
 0x331   : > { %16074 = vmatmul.mubr.msk.f32.gmra.mrb[54].mxu1 %vm4939_vm7, %v7837_v51  ;;  %v8212_v51 = vld [vmem:[#allocation3 + $0x7a] sm:$0xff] }
 0x332   : > { %16076 = vmatprep.mubr.msk.f32.mxu1 %vm4939_vm7, %v7838_v55  ;;  %v8211_v55 = vld [vmem:[#allocation3 + $0x72] sm:$0xff] }
 0x335   : > { %16077 = vmatmul.mubr.msk.f32.gmra.mrb[56].mxu1 %vm4939_vm7, %v7839_v6  ;;  %v8244_v6 = vmul.f32 %v22252_v1, %v8212_v51  ;;  %v8225_v51 = vld [vmem:[#allocation3 + $0xe2] sm:$0xff] }
 0x336   : > { %16079 = vmatprep.mubr.msk.f32.mxu1 %vm4939_vm7, %v7840_v33  ;;  %v8214_v33 = vld [vmem:[#allocation3 + $0x8a] sm:$0xff] }
 0x339   : > { %16080 = vmatmul.mubr.msk.f32.gmra.mrb[58].mxu1 %vm4939_vm7, %v7841_v42  ;;  %v8213_v42 = vld [vmem:[#allocation3 + $0x82] sm:$0xff] }
 0x33a   : > { %16082 = vmatprep.mubr.msk.f32.mxu1 %vm4939_vm7, %v19670_v15  ;;  %v8236_v15 = vmul.f32 %v22240_v46, %v8204_v24  ;;  %v8217_v24 = vld [vmem:[#allocation3 + $0xa2] sm:$0xff] }
 0x33d   : > { %16083 = vmatmul.mubr.msk.f32.gmra.mrb[60].mxu1 %vm4939_vm7, %v19676_v4  ;;  %v8206_v4 = vld [vmem:[#allocation3 + $0x4a] sm:$0xff] }
 0x33e   : > { %16085 = vmatprep.mubr.msk.f32.mxu1 %vm4939_vm7, %v7844_v57  ;;  %v8238_v13 = vmul.f32 %v22243_v63, %v8206_v4  ;;  %v8246_v57 = vmul.f32 %v22254_v11, %v8214_v33  ;;  %v8219_v4 = vld [vmem:[#allocation3 + $0xb2] sm:$0xff]  ;;  %v8262_v33 = vmul.f32 %v22259_v47, %v19758_v60 }
 0x341   : > { %16086 = vmatmul.mubr.msk.f32.gmra.mrb[62].mxu1 %vm4939_vm7, %v7845_v54  ;;  %v8216_v54 = vld [vmem:[#allocation3 + $0x9a] sm:$0xff] }
 0x342   : > { %16090 = vmatprep.mubr.msk.f32.mxu1 %vm4939_vm7, %v8201_v56  ;;  %v8248_v56 = vmul.f32 %v17980_v30, %v8216_v54 }
 0x345   : > { %16091 = vmatmul.mubr.msk.f32.vlgmr.msra.gmra.mrb[32].mxu1 %vm4939_vm7, %v8234_v2  ;;  %v8218_v2 = vld [vmem:[#allocation3 + $0xaa] sm:$0xff] }
 0x346   : > { %16093 = vmatprep.mubr.msk.f32.mxu1 %vm4939_vm7, %v8203_v45  ;;  %v8250_v45 = vmul.f32 %v22027_v21, %v8218_v2 }
 0x349   : > { %16094 = vmatmul.mubr.msk.f32.gmra.mrb[34].mxu1 %vm4939_vm7, %v8236_v15  ;;  %v8220_v15 = vld [vmem:[#allocation3 + $0xba] sm:$0xff] }
 0x34a   : > { %16096 = vmatprep.mubr.msk.f32.mxu1 %vm4939_vm7, %v8205_v48  ;;  %v8252_v48 = vmul.f32 %v22032_v18, %v8220_v15 }
 0x34d   : > { %16097 = vmatmul.mubr.msk.f32.gmra.mrb[36].mxu1 %vm4939_vm7, %v8238_v13  ;;  %v8222_v13 = vld [vmem:[#allocation3 + $0xca] sm:$0xff] }
 0x34e   : > { %16099 = vmatprep.mubr.msk.f32.mxu1 %vm4939_vm7, %v8207_v34  ;;  %v8254_v34 = vmul.f32 %v22037_v62, %v8222_v13 }
 0x351   : > { %16100 = vmatmul.mubr.msk.f32.gmra.mrb[38].mxu1 %vm4939_vm7, %v8240_v52  ;;  %v8224_v52 = vld [vmem:[#allocation3 + $0xda] sm:$0xff] }
 0x352   : > { %16102 = vmatprep.mubr.msk.f32.mxu1 %vm4939_vm7, %v8209_v36  ;;  %v8256_v36 = vmul.f32 %v22042_v35, %v8224_v52 }
 0x355   : > { %16103 = vmatmul.mubr.msk.f32.gmra.mrb[40].mxu1 %vm4939_vm7, %v8242_v41  ;;  %v8226_v41 = vld [vmem:[#allocation3 + $0xea] sm:$0xff] }
 0x356   : > { %16105 = vmatprep.mubr.msk.f32.mxu1 %vm4939_vm7, %v8211_v55  ;;  %v8258_v55 = vmul.f32 %v22255_v32, %v8226_v41  ;;  %v22267_v41 = vld [vmem:[#allocation116_spill] sm:$0xff] }
 0x359   : > { %16106 = vmatmul.mubr.msk.f32.gmra.mrb[42].mxu1 %vm4939_vm7, %v8244_v6  ;;  %v8260_v6 = vmul.f32 %v22257_v38, %v19469_v39  ;;  %v19917_v39 = vld [vmem:[%s21582_s6] ss:$0 sm:$0xff] }
 0x35a   : > { %16108 = vmatprep.mubr.msk.f32.mxu1 %vm4939_vm7, %v8213_v42  ;;  %v8232_v42 = vld [vmem:[#allocation3 + $0x11a] sm:$0xff] }
 0x35b   : > { %v8264_v54 = vmul.f32 %v22062_v61, %v8232_v42  ;;  %v22328_v61 = vld [vmem:[#allocation139_spill] sm:$0xff] }
 0x35d   : > { %16109 = vmatmul.mubr.msk.f32.gmra.mrb[44].mxu1 %vm4939_vm7, %v8246_v57  ;;  %v8231_v57 = vld [vmem:[#allocation3 + $0x112] sm:$0xff] }
 0x35e   : > { %16111 = vmatprep.mubr.msk.f32.mxu1 %vm4939_vm7, %v8215_v22 }
 0x361   : > { %16112 = vmatmul.mubr.msk.f32.gmra.mrb[46].mxu1 %vm4939_vm7, %v8248_v56 }
 0x362   : > { %16114 = vmatprep.mubr.msk.f32.mxu1 %vm4939_vm7, %v8217_v24  ;;  %v22263_v24 = vld [vmem:[#allocation114_spill] sm:$0xff] }
 0x365   : > { %16115 = vmatmul.mubr.msk.f32.gmra.mrb[48].mxu1 %vm4939_vm7, %v8250_v45  ;;  %v19926_v45 = vadd.f32 %v22263_v24, %v19549_v8 }
 0x366   : > { %16117 = vmatprep.mubr.msk.f32.mxu1 %vm4939_vm7, %v8219_v4 }
 0x367   : > { %22264 = vst [vmem:[#allocation11_spill] sm:$0xff] %v19926_v45 }
 0x369   : > { %16118 = vmatmul.mubr.msk.f32.gmra.mrb[50].mxu1 %vm4939_vm7, %v8252_v48 }
 0x36a   : > { %16120 = vmatprep.mubr.msk.f32.mxu1 %vm4939_vm7, %v8221_v58  ;;  %v22265_v58 = vld [vmem:[#allocation115_spill] sm:$0xff] }
 0x36d   : > { %16121 = vmatmul.mubr.msk.f32.gmra.mrb[52].mxu1 %vm4939_vm7, %v8254_v34  ;;  %v19933_v34 = vadd.f32 %v22265_v58, %v19549_v8 }
 0x36e   : > { %16123 = vmatprep.mubr.msk.f32.mxu1 %vm4939_vm7, %v8223_v44 }
 0x36f   : > { %22266 = vst [vmem:[#allocation14_spill] sm:$0xff] %v19933_v34 }
 0x371   : > { %16124 = vmatmul.mubr.msk.f32.gmra.mrb[54].mxu1 %vm4939_vm7, %v8256_v36 }
 0x372   : > { %16126 = vmatprep.mubr.msk.f32.mxu1 %vm4939_vm7, %v8225_v51  ;;  %v19938_v51 = vadd.f32 %v22267_v41, %v19549_v8 }
 0x374   : > { %22268 = vst [vmem:[#allocation59_spill] sm:$0xff] %v19938_v51 }
 0x375   : > { %16127 = vmatmul.mubr.msk.f32.gmra.mrb[56].mxu1 %vm4939_vm7, %v8258_v55 }
 0x376   : > { %16129 = vmatprep.mubr.msk.f32.mxu1 %vm4939_vm7, %v19471_v28  ;;  %v14045_v28 = vld [vmem:[%s21580_s4 + $0x8] sm:$0xff] }
 0x377   : > { %16138 = vmatprep.subr.mxu0 %v14045_v28 }
 0x378   : > { %16139 = vmatpush3.msra.mxu0 %v14045_v28 }
 0x379   : > { %16130 = vmatmul.mubr.msk.f32.gmra.mrb[58].mxu1 %vm4939_vm7, %v8260_v6 }
 0x37a   : > { %16132 = vmatprep.mubr.msk.f32.mxu1 %vm4939_vm7, %v19760_v10  ;;  %v22261_v10 = vld [vmem:[#allocation113_spill] sm:$0xff] }
 0x37b   : > { %v19921_v22 = vadd.f32 %v22261_v10, %v19549_v8 }
 0x37d   : > { %16133 = vmatmul.mubr.msk.f32.gmra.mrb[60].mxu1 %vm4939_vm7, %v8262_v33  ;;  %22262 = vst [vmem:[#allocation58_spill] sm:$0xff] %v19921_v22 }
 0x37e   : > { %16135 = vmatprep.mubr.msk.f32.mxu1 %vm4939_vm7, %v8231_v57 }
 0x381   : > { %16136 = vmatmul.mubr.msk.f32.gmra.mrb[62].mxu1 %vm4939_vm7, %v8264_v54  ;;  %v22269_v54 = vld [vmem:[#allocation117_spill] sm:$0xff] }
 0x382   : > { %v19945_v28 = vadd.f32 %v22269_v54, %v19549_v8 }
 0x384   : > { %22270 = vst [vmem:[#allocation17_spill] sm:$0xff] %v19945_v28 }
 0x418   : > { %v16092_v60 = vpop.f32.mrb[32].mxu1 }
 0x419   : > { %v8628_v56 = vadd.f32 %v16092_v60, %v19917_v39  ;;  %v8429_v2 = vpop.f32.mrb[33].mxu1 }
 0x41a   : > { %v8627_v15 = vadd.f32 %v19917_v39, %v8429_v2  ;;  %v22271_v2 = vld [vmem:[#allocation118_spill] sm:$0xff] }
 0x41b   : > { %v8660_v4 = vadd.f32 %v8628_v56, %v19921_v22  ;;  %v19950_v24 = vadd.f32 %v22271_v2, %v19549_v8  ;;  %v22277_v2 = vld [vmem:[#allocation121_spill] sm:$0xff] }
 0x41c   : > { %v8659_v48 = vadd.f32 %v8627_v15, %v19926_v45  ;;  %v16095_v13 = vpop.f32.mrb[34].mxu1 }
 0x41d   : > { %v14014_v52 = vmul.f32 -1.442695, %v8660_v4  ;;  %v8630_v44 = vadd.f32 %v16095_v13, %v19917_v39  ;;  %v8439_v36 = vpop.f32.mrb[35].mxu1  ;;  %22272 = vst [vmem:[#allocation24_spill] sm:$0xff] %v19950_v24 }
 0x41e   : > { %v14013_v55 = vmul.f32 -1.442695, %v8659_v48  ;;  %v8629_v6 = vadd.f32 %v19917_v39, %v8439_v36 }
 0x41f   : > { %17370 = vpow2.f32 %v14014_v52  ;;  %v8662_v33 = vadd.f32 %v8630_v44, %v19933_v34  ;;  %v22273_v52 = vld [vmem:[#allocation119_spill] sm:$0xff] }
 0x420   : > { %17372 = vpow2.f32 %v14013_v55  ;;  %v8661_v42 = vadd.f32 %v8629_v6, %v19938_v51  ;;  %v16098_v57 = vpop.f32.mrb[36].mxu1  ;;  %v19957_v44 = vadd.f32 %v22273_v52, %v19549_v8  ;;  %v22275_v6 = vld [vmem:[#allocation120_spill] sm:$0xff] }
 0x421   : > { %v14016_v60 = vmul.f32 -1.442695, %v8662_v33  ;;  %v8632_v10 = vadd.f32 %v16098_v57, %v19917_v39  ;;  %v8449_v56 = vpop.f32.mrb[37].mxu1  ;;  %v19962_v33 = vadd.f32 %v22275_v6, %v19549_v8 }
 0x422   : > { %v14015_v15 = vmul.f32 -1.442695, %v8661_v42  ;;  %v8631_v4 = vadd.f32 %v19917_v39, %v8449_v56  ;;  %22274 = vst [vmem:[#allocation60_spill] sm:$0xff] %v19957_v44 }
 0x423   : > { %17374 = vpow2.f32 %v14016_v60  ;;  %v8664_v48 = vadd.f32 %v8632_v10, %v19945_v28  ;;  %22276 = vst [vmem:[#allocation30_spill] sm:$0xff] %v19962_v33 }
 0x424   : > { %17376 = vpow2.f32 %v14015_v15  ;;  %v8663_v13 = vadd.f32 %v8631_v4, %v19950_v24  ;;  %v16101_v58 = vpop.f32.mrb[38].mxu1  ;;  %v19969_v15 = vadd.f32 %v22277_v2, %v19549_v8 }
 0x425   : > { %v14018_v36 = vmul.f32 -1.442695, %v8664_v48  ;;  %v8634_v41 = vadd.f32 %v16101_v58, %v19917_v39  ;;  %v8459_v55 = vpop.f32.mrb[39].mxu1 }
 0x426   : > { %v14017_v42 = vmul.f32 -1.442695, %v8663_v13  ;;  %v8633_v57 = vadd.f32 %v19917_v39, %v8459_v55  ;;  %22278 = vst [vmem:[#allocation35_spill] sm:$0xff] %v19969_v15  ;;  %v22279_v13 = vld [vmem:[#allocation122_spill] sm:$0xff] }
 0x427   : > { %17378 = vpow2.f32 %v14018_v36  ;;  %v8666_v54 = vadd.f32 %v8634_v41, %v19957_v44  ;;  %v19974_v55 = vadd.f32 %v22279_v13, %v19549_v8 }
 0x428   : > { %17380 = vpow2.f32 %v14017_v42  ;;  %v8665_v60 = vadd.f32 %v8633_v57, %v19962_v33  ;;  %v16104_v10 = vpop.f32.mrb[40].mxu1 }
 0x429   : > { %v17371_v56 = vpop.eup %17370  ;;  %v14020_v4 = vmul.f32 -1.442695, %v8666_v54  ;;  %v8636_v48 = vadd.f32 %v16104_v10, %v19917_v39  ;;  %v8469_v58 = vpop.f32.mrb[41].mxu1  ;;  %22280 = vst [vmem:[#allocation61_spill] sm:$0xff] %v19974_v55  ;;  %v22281_v10 = vld [vmem:[#allocation123_spill] sm:$0xff] }
 0x42a   : > { %v17373_v52 = vpop.eup %17372  ;;  %v14019_v36 = vmul.f32 -1.442695, %v8665_v60  ;;  %v8635_v41 = vadd.f32 %v19917_v39, %v8469_v58  ;;  %v8788_v57 = vadd.f32 1.0, %v17371_v56  ;;  %v19981_v44 = vadd.f32 %v22281_v10, %v19549_v8  ;;  %v22283_v58 = vld [vmem:[#allocation124_spill] sm:$0xff] }
 0x42b   : > { %v8787_v6 = vadd.f32 1.0, %v17373_v52  ;;  %17382 = vpow2.f32 %v14020_v4  ;;  %v8668_v42 = vadd.f32 %v8636_v48, %v19969_v15  ;;  %v19986_v4 = vadd.f32 %v22283_v58, %v19549_v8 }
 0x42c   : > { %v8667_v2 = vadd.f32 %v8635_v41, %v19974_v55  ;;  %v16107_v33 = vpop.f32.mrb[42].mxu1  ;;  %22282 = vst [vmem:[#allocation42_spill] sm:$0xff] %v19981_v44  ;;  %v22285_v55 = vld [vmem:[#allocation126_spill] sm:$0xff] }
 0x42d   : > { %v17375_v54 = vpop.eup %17374  ;;  %17384 = vrcp.f32 %v8787_v6  ;;  %v14022_v24 = vmul.f32 -1.442695, %v8668_v42  ;;  %v8638_v13 = vadd.f32 %v16107_v33, %v19917_v39  ;;  %v8479_v60 = vpop.f32.mrb[43].mxu1  ;;  %22284 = vst [vmem:[#allocation48_spill] sm:$0xff] %v19986_v4  ;;  %v19993_v15 = vadd.f32 %v22285_v55, %v19549_v8  ;;  %v22289_v55 = vld [vmem:[#allocation129_spill] sm:$0xff] }
 0x42e   : > { %v17377_v28 = vpop.eup %17376  ;;  %17386 = vpow2.f32 %v14019_v36  ;;  %v14021_v56 = vmul.f32 -1.442695, %v8667_v2  ;;  %v8637_v48 = vadd.f32 %v19917_v39, %v8479_v60  ;;  %v8790_v10 = vadd.f32 1.0, %v17375_v54 }
 0x42f   : > { %v8789_v52 = vadd.f32 1.0, %v17377_v28  ;;  %17388 = vpow2.f32 %v14022_v24  ;;  %v8670_v41 = vadd.f32 %v8638_v13, %v19981_v44  ;;  %22286 = vst [vmem:[#allocation62_spill] sm:$0xff] %v19993_v15  ;;  %v22287_v28 = vld [vmem:[#allocation127_spill] sm:$0xff] }
 0x430   : > { %17390 = vrcp.f32 %v8788_v57  ;;  %v8669_v6 = vadd.f32 %v8637_v48, %v19986_v4  ;;  %v16110_v42 = vpop.f32.mrb[44].mxu1  ;;  %v19998_v24 = vadd.f32 %v22287_v28, %v19549_v8  ;;  %v22291_v28 = vld [vmem:[#allocation130_spill] sm:$0xff] }
 0x431   : > { %v17379_v33 = vpop.eup %17378  ;;  %17392 = vrcp.f32 %v8789_v52  ;;  %v14024_v58 = vmul.f32 -1.442695, %v8670_v41  ;;  %v8640_v36 = vadd.f32 %v16110_v42, %v19917_v39  ;;  %v8489_v2 = vpop.f32.mrb[45].mxu1  ;;  %v20004_v52 = vadd.f32 %v22289_v55, %v19549_v8 }
 0x432   : > { %v17381_v60 = vpop.eup %17380  ;;  %22288 = vst [vmem:[#allocation96_spill] sm:$0xff] %v19998_v24  ;;  %17394 = vpow2.f32 %v14021_v56  ;;  %v14023_v57 = vmul.f32 -1.442695, %v8669_v6  ;;  %v8639_v54 = vadd.f32 %v19917_v39, %v8489_v2  ;;  %v8792_v41 = vadd.f32 1.0, %v17379_v33 }
 0x433   : > { %v8791_v13 = vadd.f32 1.0, %v17381_v60  ;;  %17396 = vpow2.f32 %v14024_v58  ;;  %v8672_v48 = vadd.f32 %v8640_v36, %v19993_v15  ;;  %22290 = vst [vmem:[#allocation97_spill] sm:$0xff] %v20004_v52  ;;  %v20009_v56 = vadd.f32 %v22291_v28, %v19549_v8  ;;  %v9140_v36 = vld [vmem:[#allocation3 + $0x1] sm:$0xff]  ;;  %v9141_v60 = vld [vmem:[#allocation3 + $0x9] sm:$0xff] }
 0x434   : > { %17398 = vrcp.f32 %v8790_v10  ;;  %v8671_v42 = vadd.f32 %v8639_v54, %v19998_v24  ;;  %v16113_v4 = vpop.f32.mrb[46].mxu1  ;;  %v9139_v10 = vld [vmem:[%s21580_s4] sm:$0xff]  ;;  %16140 = vmatprep.mubr.msk.f32.mxu0 %vm4939_vm7, %v9140_v36 }
 0x435   : > { %v17383_v44 = vpop.eup %17382  ;;  %22292 = vst [vmem:[#allocation99_spill] sm:$0xff] %v20009_v56  ;;  %17400 = vrcp.f32 %v8791_v13  ;;  %v14026_v6 = vmul.f32 -1.442695, %v8672_v48  ;;  %v8642_v58 = vadd.f32 %v16113_v4, %v19917_v39  ;;  %v8499_v2 = vpop.f32.mrb[47].mxu1  ;;  %16188 = vmatprep.subr.mxu0 %v9139_v10  ;;  %16141 = vmatmul.mubr.msk.f32.vlgmr.msra.gmra.mrb[32].mxu0 %vm4939_vm7, %v9141_v60  ;;  %v20023_v48 = vadd.f32 %v19473_v27, %v19549_v8 }
 0x436   : > { %v8794_v33 = vadd.f32 1.0, %v17383_v44  ;;  %17402 = vpow2.f32 %v14023_v57  ;;  %v14025_v54 = vmul.f32 -1.442695, %v8671_v42  ;;  %v8641_v55 = vadd.f32 %v19917_v39, %v8499_v2  ;;  %v22295_v44 = vld [vmem:[#allocation131_spill] sm:$0xff]  ;;  %16189 = vmatpush3.msra.mxu0 %v9139_v10 }
 0x437   : > { %v20017_v28 = vpop.eup %17384  ;;  %17404 = vpow2.f32 %v14026_v6  ;;  %v8674_v4 = vadd.f32 %v8642_v58, %v20004_v52  ;;  %22294 = vst [vmem:[#allocation50_spill] sm:$0xff] %v20023_v48  ;;  %v20027_v57 = vadd.f32 %v22295_v44, %v19549_v8 }
 0x438   : > { %22293 = vst [vmem:[#allocation100_spill] sm:$0xff] %v20017_v28  ;;  %v17387_v13 = vpop.eup %17386  ;;  %17406 = vrcp.f32 %v8792_v41  ;;  %v8673_v42 = vadd.f32 %v8641_v55, %v20009_v56  ;;  %8915 = vrot.lane.b32.xlu0 %v20017_v28, %s17573_s21  ;;  %v16116_v6 = vpop.f32.mrb[48].mxu1 }
 0x439   : > { %22296 = vst [vmem:[#allocation54_spill] sm:$0xff] %v20027_v57  ;;  %v17389_v58 = vpop.eup %17388  ;;  %v8793_v2 = vadd.f32 1.0, %v17387_v13  ;;  %17408 = vpow2.f32 %v14025_v54  ;;  %v14028_v36 = vmul.f32 -1.442695, %v8674_v4  ;;  %v8644_v27 = vadd.f32 %v16116_v6, %v19917_v39  ;;  %v8509_v60 = vpop.f32.mrb[49].mxu1  ;;  %v22299_v13 = vld [vmem:[#allocation132_spill] sm:$0xff] }
 0x43a   : > { %v20033_v52 = vpop.eup %17390  ;;  %17410 = vrcp.f32 %v8794_v33  ;;  %v8796_v44 = vadd.f32 1.0, %v17389_v58  ;;  %v14027_v41 = vmul.f32 -1.442695, %v8673_v42  ;;  %v8643_v55 = vadd.f32 %v19917_v39, %v8509_v60 }
 0x43b   : > { %22297 = vst [vmem:[#allocation56_spill] sm:$0xff] %v20033_v52  ;;  %v20036_v56 = vpop.eup %17392  ;;  %17412 = vrcp.f32 %v8793_v2  ;;  %v8676_v24 = vadd.f32 %v8644_v27, %v20023_v48  ;;  %v20041_v54 = vadd.f32 %v22299_v13, %v19549_v8  ;;  %v20045_v4 = vadd.f32 %v19487_v0, %v19549_v8 }
 0x43c   : > { %22298 = vst [vmem:[#allocation57_spill] sm:$0xff] %v20036_v56  ;;  %v17395_v10 = vpop.eup %17394  ;;  %17414 = vrcp.f32 %v8796_v44  ;;  %v8675_v33 = vadd.f32 %v8643_v55, %v20027_v57  ;;  %8917 = vrot.lane.b32.xlu0 %v20033_v52, %s17573_s21  ;;  %8919 = vrot.lane.b32.xlu1 %v20036_v56, %s17573_s21  ;;  %v16119_v42 = vpop.f32.mrb[50].mxu1 }
 0x43d   : > { %22300 = vst [vmem:[#allocation69_spill] sm:$0xff] %v20041_v54  ;;  %22301 = vst [vmem:[#allocation70_spill] sm:$0xff] %v20045_v4  ;;  %v17397_v6 = vpop.eup %17396  ;;  %v8795_v58 = vadd.f32 1.0, %v17395_v10  ;;  %17416 = vpow2.f32 %v14028_v36  ;;  %v14030_v2 = vmul.f32 -1.442695, %v8676_v24  ;;  %v8646_v27 = vadd.f32 %v16119_v42, %v19917_v39  ;;  %v8519_v60 = vpop.f32.mrb[51].mxu1 }
 0x43e   : > { %v20053_v13 = vpop.eup %17398  ;;  %v8798_v0 = vadd.f32 1.0, %v17397_v6  ;;  %17418 = vpow2.f32 %v14027_v41  ;;  %v14029_v8 = vmul.f32 -1.442695, %v8675_v33  ;;  %v8645_v44 = vadd.f32 %v19917_v39, %v8519_v60  ;;  %v20062_v24 = vld [vmem:[%s21581_s5] ss:$0 sm:$0xff] }
 0x43f   : > { %22302 = vst [vmem:[#allocation71_spill] sm:$0xff] %v20053_v13  ;;  %v20056_v55 = vpop.eup %17400  ;;  %17420 = vrcp.f32 %v8795_v58  ;;  %v8678_v57 = vadd.f32 %v8646_v27, %v20041_v54  ;;  %v20066_v36 = vadd.f32 %v20062_v24, %v19497_v3  ;;  %v22306_v3 = vld [vmem:[#allocation133_spill] sm:$0xff]  ;;  %v20156_v47 = vadd.f32 %v20062_v24, %v22328_v61 }
 0x440   : > { %22303 = vst [vmem:[#allocation72_spill] sm:$0xff] %v20056_v55  ;;  %v17403_v48 = vpop.eup %17402  ;;  %17422 = vrcp.f32 %v8798_v0  ;;  %v8677_v41 = vadd.f32 %v8645_v44, %v20045_v4  ;;  %8921 = vrot.lane.b32.xlu1 %v20053_v13, %s17573_s21  ;;  %8923 = vrot.lane.b32.xlu0 %v20056_v55, %s17573_s21  ;;  %v16122_v10 = vpop.f32.mrb[52].mxu1  ;;  %v20078_v0 = vadd.f32 %v20062_v24, %v22306_v3 }
 0x441   : > { %22304 = vst [vmem:[#allocation73_spill] sm:$0xff] %v20066_v36  ;;  %v17405_v33 = vpop.eup %17404  ;;  %v8797_v42 = vadd.f32 1.0, %v17403_v48  ;;  %17424 = vpow2.f32 %v14030_v2  ;;  %v14032_v6 = vmul.f32 -1.442695, %v8678_v57  ;;  %v8648_v58 = vadd.f32 %v16122_v10, %v19917_v39  ;;  %v8529_v27 = vpop.f32.mrb[53].mxu1  ;;  %22329 = vst [vmem:[#allocation92_spill] sm:$0xff] %v20156_v47 }
 0x442   : > { %v20074_v60 = vpop.eup %17406  ;;  %22307 = vst [vmem:[#allocation75_spill] sm:$0xff] %v20078_v0  ;;  %v8800_v44 = vadd.f32 1.0, %v17405_v33  ;;  %17426 = vpow2.f32 %v14029_v8  ;;  %v8647_v4 = vadd.f32 %v19917_v39, %v8529_v27  ;;  %v14031_v15 = vmul.f32 -1.442695, %v8677_v41 }
 0x443   : > { %22305 = vst [vmem:[#allocation74_spill] sm:$0xff] %v20074_v60  ;;  %v17409_v54 = vpop.eup %17408  ;;  %17428 = vrcp.f32 %v8797_v42  ;;  %v8680_v48 = vadd.f32 %v8648_v58, %v20066_v36  ;;  %v20091_v8 = vadd.f32 %v20062_v24, %v19508_v59 }
 0x444   : > { %v20082_v2 = vpop.eup %17410  ;;  %17430 = vrcp.f32 %v8800_v44  ;;  %v8799_v57 = vadd.f32 1.0, %v17409_v54  ;;  %v8679_v10 = vadd.f32 %v8647_v4, %v20078_v0  ;;  %8925 = vrot.lane.b32.xlu1 %v20074_v60, %s17573_s21  ;;  %v16125_v3 = vpop.f32.mrb[54].mxu1  ;;  %v20098_v54 = vadd.f32 %v20062_v24, %v19512_v20 }
 0x445   : > { %22308 = vst [vmem:[#allocation76_spill] sm:$0xff] %v20082_v2  ;;  %v20087_v51 = vpop.eup %17412  ;;  %22310 = vst [vmem:[#allocation78_spill] sm:$0xff] %v20091_v8  ;;  %17432 = vpow2.f32 %v14032_v6  ;;  %v14034_v41 = vmul.f32 -1.442695, %v8680_v48  ;;  %v8650_v33 = vadd.f32 %v16125_v3, %v19917_v39  ;;  %v8539_v42 = vpop.f32.mrb[55].mxu1  ;;  %v22313_v48 = vld [vmem:[#allocation134_spill] sm:$0xff] }
 0x446   : > { %22309 = vst [vmem:[#allocation77_spill] sm:$0xff] %v20087_v51  ;;  %v20094_v58 = vpop.eup %17414  ;;  %22312 = vst [vmem:[#allocation80_spill] sm:$0xff] %v20098_v54  ;;  %17434 = vrcp.f32 %v8799_v57  ;;  %v14033_v4 = vmul.f32 -1.442695, %v8679_v10  ;;  %8927 = vrot.lane.b32.xlu0 %v20087_v51, %s17573_s21  ;;  %v8649_v27 = vadd.f32 %v19917_v39, %v8539_v42  ;;  %v20106_v3 = vadd.f32 %v20062_v24, %v22313_v48  ;;  %v22317_v48 = vld [vmem:[#allocation135_spill] sm:$0xff] }
 0x447   : > { %22311 = vst [vmem:[#allocation79_spill] sm:$0xff] %v20094_v58  ;;  %v17417_v59 = vpop.eup %17416  ;;  %17436 = vpow2.f32 %v14031_v15  ;;  %v8682_v6 = vadd.f32 %v8650_v33, %v20091_v8 }
 0x448   : > { %v17419_v44 = vpop.eup %17418  ;;  %22314 = vst [vmem:[#allocation81_spill] sm:$0xff] %v20106_v3  ;;  %v8802_v0 = vadd.f32 1.0, %v17417_v59  ;;  %17438 = vpow2.f32 %v14034_v41  ;;  %v8681_v20 = vadd.f32 %v8649_v27, %v20098_v54  ;;  %8929 = vrot.lane.b32.xlu1 %v20082_v2, %s17573_s21  ;;  %v16128_v57 = vpop.f32.mrb[56].mxu1  ;;  %v20118_v59 = vadd.f32 %v20062_v24, %v22317_v48 }
 0x449   : > { %v20111_v10 = vpop.eup %17420  ;;  %v8801_v42 = vadd.f32 1.0, %v17419_v44  ;;  %17440 = vpow2.f32 %v14033_v4  ;;  %v14036_v15 = vmul.f32 -1.442695, %v8682_v6  ;;  %v8652_v33 = vadd.f32 %v16128_v57, %v19917_v39  ;;  %v8549_v8 = vpop.f32.mrb[57].mxu1  ;;  %v22319_v44 = vld [vmem:[#allocation136_spill] sm:$0xff] }
 0x44a   : > { %22315 = vst [vmem:[#allocation82_spill] sm:$0xff] %v20111_v10  ;;  %v20114_v36 = vpop.eup %17422  ;;  %22318 = vst [vmem:[#allocation84_spill] sm:$0xff] %v20118_v59  ;;  %17442 = vrcp.f32 %v8802_v0  ;;  %v14035_v41 = vmul.f32 -1.442695, %v8681_v20  ;;  %8931 = vrot.lane.b32.xlu0 %v20111_v10, %s17573_s21  ;;  %v8651_v27 = vadd.f32 %v19917_v39, %v8549_v8  ;;  %v20126_v57 = vadd.f32 %v20062_v24, %v22319_v44  ;;  %v22323_v44 = vld [vmem:[#allocation137_spill] sm:$0xff] }
 0x44b   : > { %22316 = vst [vmem:[#allocation83_spill] sm:$0xff] %v20114_v36  ;;  %v17425_v54 = vpop.eup %17424  ;;  %17444 = vrcp.f32 %v8801_v42  ;;  %v8684_v4 = vadd.f32 %v8652_v33, %v20106_v3 }
 0x44c   : > { %v17427_v6 = vpop.eup %17426  ;;  %22320 = vst [vmem:[#allocation85_spill] sm:$0xff] %v20126_v57  ;;  %v8804_v34 = vadd.f32 1.0, %v17425_v54  ;;  %17446 = vpow2.f32 %v14036_v15  ;;  %v8683_v48 = vadd.f32 %v8651_v27, %v20118_v59  ;;  %8933 = vrot.lane.b32.xlu1 %v20094_v58, %s17573_s21  ;;  %v16131_v0 = vpop.f32.mrb[58].mxu1  ;;  %v20138_v54 = vadd.f32 %v20062_v24, %v22323_v44 }
 0x44d   : > { %v20131_v20 = vpop.eup %17428  ;;  %v8803_v8 = vadd.f32 1.0, %v17427_v6  ;;  %17448 = vpow2.f32 %v14035_v41  ;;  %v14038_v42 = vmul.f32 -1.442695, %v8684_v4  ;;  %v8654_v33 = vadd.f32 %v16131_v0, %v19917_v39  ;;  %v8559_v3 = vpop.f32.mrb[59].mxu1  ;;  %v22326_v6 = vld [vmem:[#allocation138_spill] sm:$0xff] }
 0x44e   : > { %22321 = vst [vmem:[#allocation86_spill] sm:$0xff] %v20131_v20  ;;  %v20134_v45 = vpop.eup %17430  ;;  %22324 = vst [vmem:[#allocation88_spill] sm:$0xff] %v20138_v54  ;;  %17450 = vrcp.f32 %v8804_v34  ;;  %v14037_v15 = vmul.f32 -1.442695, %v8683_v48  ;;  %8935 = vrot.lane.b32.xlu0 %v20131_v20, %s17573_s21  ;;  %v8653_v27 = vadd.f32 %v19917_v39, %v8559_v3  ;;  %v20148_v0 = vadd.f32 %v20062_v24, %v22326_v6 }
 0x44f   : > { %22322 = vst [vmem:[#allocation87_spill] sm:$0xff] %v20134_v45  ;;  %v17433_v59 = vpop.eup %17432  ;;  %17452 = vrcp.f32 %v8803_v8  ;;  %v8686_v41 = vadd.f32 %v8654_v33, %v20126_v57 }
 0x450   : > { %v20144_v4 = vpop.eup %17434  ;;  %22327 = vst [vmem:[#allocation90_spill] sm:$0xff] %v20148_v0  ;;  %17454 = vpow2.f32 %v14038_v42  ;;  %v8685_v44 = vadd.f32 %v8653_v27, %v20138_v54  ;;  %8937 = vrot.lane.b32.xlu1 %v20114_v36, %s17573_s21  ;;  %v16134_v34 = vpop.f32.mrb[60].mxu1  ;;  %v8806_v22 = vadd.f32 1.0, %v17433_v59 }
 0x451   : > { %22325 = vst [vmem:[#allocation89_spill] sm:$0xff] %v20144_v4  ;;  %v17437_v48 = vpop.eup %17436  ;;  %17456 = vpow2.f32 %v14037_v15  ;;  %v14040_v3 = vmul.f32 -1.442695, %v8686_v41  ;;  %v8656_v8 = vadd.f32 %v16134_v34, %v19917_v39  ;;  %v8569_v33 = vpop.f32.mrb[61].mxu1 }
 0x452   : > { %v17439_v57 = vpop.eup %17438  ;;  %v8805_v6 = vadd.f32 1.0, %v17437_v48  ;;  %8939 = vrot.lane.b32.xlu0 %v20144_v4, %s17573_s21  ;;  %v8655_v42 = vadd.f32 %v19917_v39, %v8569_v33  ;;  %v14039_v54 = vmul.f32 -1.442695, %v8685_v44 }
 0x453   : > { %v17441_v27 = vpop.eup %17440  ;;  %17458 = vpow2.f32 %v14040_v3  ;;  %v8688_v59 = vadd.f32 %v8656_v8, %v20148_v0  ;;  %v8808_v38 = vadd.f32 1.0, %v17439_v57  ;;  %v22332_v8 = vld [vmem:[#allocation140_spill] sm:$0xff] }
 0x454   : > { %v20162_v15 = vpop.eup %17442  ;;  %17460 = vrcp.f32 %v8805_v6  ;;  %v8807_v41 = vadd.f32 1.0, %v17441_v27  ;;  %v8687_v34 = vadd.f32 %v8655_v42, %v20156_v47  ;;  %8941 = vrot.lane.b32.xlu1 %v20134_v45, %s17573_s21  ;;  %v16137_v61 = vpop.f32.mrb[62].mxu1  ;;  %v20172_v0 = vadd.f32 %v20062_v24, %v22332_v8 }
 0x455   : > { %22330 = vst [vmem:[#allocation93_spill] sm:$0xff] %v20162_v15  ;;  %v20167_v48 = vpop.eup %17444  ;;  %17462 = vrcp.f32 %v8806_v22  ;;  %v14042_v33 = vmul.f32 -1.442695, %v8688_v59  ;;  %v8658_v3 = vadd.f32 %v16137_v61, %v19917_v39  ;;  %v8579_v44 = vpop.f32.mrb[63].mxu1  ;;  %v22334_v22 = vld [vmem:[#allocation141_spill] sm:$0xff] }
 0x456   : > { %22331 = vst [vmem:[#allocation94_spill] sm:$0xff] %v20167_v48  ;;  %v17447_v32 = vpop.eup %17446  ;;  %22333 = vst [vmem:[#allocation95_spill] sm:$0xff] %v20172_v0  ;;  %17464 = vrcp.f32 %v8807_v41  ;;  %8943 = vrot.lane.b32.xlu0 %v20167_v48, %s17573_s21  ;;  %v8657_v6 = vadd.f32 %v19917_v39, %v8579_v44  ;;  %v14041_v27 = vmul.f32 -1.442695, %v8687_v34 }
 0x457   : > { %v17449_v42 = vpop.eup %17448  ;;  %17466 = vpow2.f32 %v14039_v54  ;;  %v8690_v57 = vadd.f32 %v8658_v3, %v22334_v22  ;;  %v8810_v41 = vadd.f32 1.0, %v17447_v32 }
 0x458   : > { %v20178_v59 = vpop.eup %17450  ;;  %v8809_v61 = vadd.f32 1.0, %v17449_v42  ;;  %17468 = vpow2.f32 %v14042_v33  ;;  %v8689_v47 = vadd.f32 %v8657_v6, %v20172_v0  ;;  %8945 = vrot.lane.b32.xlu1 %v20162_v15, %s17573_s21 }
 0x459   : > { %22335 = vst [vmem:[#allocation101_spill] sm:$0xff] %v20178_v59  ;;  %v20183_v24 = vpop.eup %17452  ;;  %17470 = vrcp.f32 %v8808_v38  ;;  %v14044_v8 = vmul.f32 -1.442695, %v8690_v57 }
 0x45a   : > { %22336 = vst [vmem:[#allocation102_spill] sm:$0xff] %v20183_v24  ;;  %v17455_v39 = vpop.eup %17454  ;;  %17472 = vrcp.f32 %v8809_v61  ;;  %8947 = vrot.lane.b32.xlu0 %v20183_v24, %s17573_s21  ;;  %v14043_v34 = vmul.f32 -1.442695, %v8689_v47 }
 0x45b   : > { %v17457_v54 = vpop.eup %17456  ;;  %17474 = vpow2.f32 %v14041_v27  ;;  %v8812_v44 = vadd.f32 1.0, %v17455_v39 }
 0x45c   : > { %v8811_v3 = vadd.f32 1.0, %v17457_v54  ;;  %17476 = vpow2.f32 %v14044_v8  ;;  %8949 = vrot.lane.b32.xlu1 %v20178_v59, %s17573_s21 }
 0x45d   : > { %v17459_v33 = vpop.eup %17458  ;;  %17478 = vrcp.f32 %v8810_v41 }
 0x45e   : > { %v20189_v6 = vpop.eup %17460  ;;  %17480 = vrcp.f32 %v8811_v3  ;;  %v8814_v42 = vadd.f32 1.0, %v17459_v33 }
 0x45f   : > { %22337 = vst [vmem:[#allocation103_spill] sm:$0xff] %v20189_v6  ;;  %v20191_v32 = vpop.eup %17462  ;;  %17482 = vpow2.f32 %v14043_v34  ;;  %8951 = vrot.lane.b32.xlu0 %v20189_v6, %s17573_s21 }
 0x460   : > { %22338 = vst [vmem:[#allocation104_spill] sm:$0xff] %v20191_v32  ;;  %v20195_v38 = vpop.eup %17464  ;;  %8953 = vrot.lane.b32.xlu1 %v20191_v32, %s17573_s21  ;;  %17484 = vrcp.f32 %v8812_v44 }
 0x461   : > { %22339 = vst [vmem:[#allocation105_spill] sm:$0xff] %v20195_v38  ;;  %v17467_v47 = vpop.eup %17466 }
 0x462   : > { %v17469_v27 = vpop.eup %17468  ;;  %v8813_v57 = vadd.f32 1.0, %v17467_v47 }
 0x463   : > { %v20199_v61 = vpop.eup %17470  ;;  %8955 = vrot.lane.b32.xlu0 %v20195_v38, %s17573_s21  ;;  %v8816_v39 = vadd.f32 1.0, %v17469_v27 }
 0x464   : > { %22340 = vst [vmem:[#allocation106_spill] sm:$0xff] %v20199_v61  ;;  %v20203_v41 = vpop.eup %17472  ;;  %17486 = vrcp.f32 %v8813_v57  ;;  %8957 = vrot.lane.b32.xlu1 %v20199_v61, %s17573_s21 }
 0x465   : > { %22341 = vst [vmem:[#allocation107_spill] sm:$0xff] %v20203_v41  ;;  %v17475_v8 = vpop.eup %17474  ;;  %17488 = vrcp.f32 %v8814_v42 }
 0x466   : > { %v17477_v54 = vpop.eup %17476  ;;  %v8815_v34 = vadd.f32 1.0, %v17475_v8 }
 0x467   : > { %v20207_v3 = vpop.eup %17478  ;;  %8959 = vrot.lane.b32.xlu0 %v20203_v41, %s17573_s21  ;;  %v8818_v47 = vadd.f32 1.0, %v17477_v54  ;;  %v20240_v54 = vld [vmem:[%s21580_s4 + $0x10] sm:$0xff] }
 0x468   : > { %22342 = vst [vmem:[#allocation108_spill] sm:$0xff] %v20207_v3  ;;  %v20211_v33 = vpop.eup %17480  ;;  %17490 = vrcp.f32 %v8815_v34  ;;  %8961 = vrot.lane.b32.xlu1 %v20207_v3, %s17573_s21  ;;  %16238 = vmatprep.subr.mxu0 %v20240_v54 }
 0x469   : > { %22343 = vst [vmem:[#allocation109_spill] sm:$0xff] %v20211_v33  ;;  %v17483_v44 = vpop.eup %17482  ;;  %17492 = vrcp.f32 %v8816_v39 }
 0x46a   : > { %v8817_v57 = vadd.f32 1.0, %v17483_v44  ;;  %v20215_v0 = vpop.eup %17484 }
 0x46b   : > { %22344 = vst [vmem:[#allocation110_spill] sm:$0xff] %v20215_v0  ;;  %8963 = vrot.lane.b32.xlu0 %v20211_v33, %s17573_s21 }
 0x46c   : > { %17494 = vrcp.f32 %v8817_v57  ;;  %8965 = vrot.lane.b32.xlu1 %v20215_v0, %s17573_s21  ;;  %v22351_v57 = vld [vmem:[#allocation65_spill] sm:$0xff] }
 0x46d   : > { %17496 = vrcp.f32 %v8818_v47 }
 0x46e   : > { %v20221_v42 = vpop.eup %17486 }
 0x46f   : > { %22345 = vst [vmem:[#allocation111_spill] sm:$0xff] %v20221_v42  ;;  %v20223_v27 = vpop.eup %17488  ;;  %8967 = vrot.lane.b32.xlu0 %v20221_v42, %s17573_s21  ;;  %v22405_v42 = vld [vmem:[#allocation49_spill] sm:$0xff] }
 0x470   : > { %22346 = vst [vmem:[#allocation112_spill] sm:$0xff] %v20223_v27  ;;  %8969 = vrot.lane.b32.xlu1 %v20223_v27, %s17573_s21 }
 0x472   : > { %v20229_v8 = vpop.eup %17490 }
 0x473   : > { %22347 = vst [vmem:[#allocation125_spill] sm:$0xff] %v20229_v8  ;;  %v20231_v39 = vpop.eup %17492  ;;  %8971 = vrot.lane.b32.xlu0 %v20229_v8, %s17573_s21  ;;  %v22401_v8 = vld [vmem:[#allocation43_spill] sm:$0xff] }
 0x474   : > { %22348 = vst [vmem:[#allocation128_spill] sm:$0xff] %v20231_v39  ;;  %8973 = vrot.lane.b32.xlu1 %v20231_v39, %s17573_s21 }
 0x476   : > { %v20242_v34 = vpop.eup %17494 }
 0x477   : > { %22349 = vst [vmem:[#allocation113_spill] sm:$0xff] %v20242_v34  ;;  %v20245_v44 = vpop.eup %17496  ;;  %8975 = vrot.lane.b32.xlu0 %v20242_v34, %s17573_s21  ;;  %v22397_v34 = vld [vmem:[#allocation68_spill] sm:$0xff] }
 0x478   : > { %22350 = vst [vmem:[#allocation114_spill] sm:$0xff] %v20245_v44  ;;  %8977 = vrot.lane.b32.xlu1 %v20245_v44, %s17573_s21  ;;  %s17575_s21 = smov 112  }
 0x47b   : > { %12980 = vrot.lane.b32.xlu0 %v20017_v28, %s17574_s26 }
 0x47c   : > { %12982 = vrot.lane.b32.xlu1 %v20033_v52, %s17574_s26  ;;  %v22393_v52 = vld [vmem:[#allocation32_spill] sm:$0xff] }
 0x47f   : > { %12984 = vrot.lane.b32.xlu0 %v20036_v56, %s17574_s26 }
 0x480   : > { %12986 = vrot.lane.b32.xlu1 %v20053_v13, %s17574_s26 }
 0x483   : > { %12988 = vrot.lane.b32.xlu0 %v20056_v55, %s17574_s26 }
 0x484   : > { %12990 = vrot.lane.b32.xlu1 %v20074_v60, %s17574_s26 }
 0x487   : > { %12992 = vrot.lane.b32.xlu0 %v20087_v51, %s17574_s26  ;;  %v22367_v51 = vld [vmem:[#allocation34_spill] sm:$0xff] }
 0x488   : > { %12994 = vrot.lane.b32.xlu1 %v20082_v2, %s17574_s26 }
 0x48b   : > { %12996 = vrot.lane.b32.xlu0 %v20111_v10, %s17574_s26 }
 0x48c   : > { %12998 = vrot.lane.b32.xlu1 %v20094_v58, %s17574_s26 }
 0x48f   : > { %13000 = vrot.lane.b32.xlu0 %v20131_v20, %s17574_s26 }
 0x490   : > { %13002 = vrot.lane.b32.xlu1 %v20114_v36, %s17574_s26 }
 0x493   : > { %13004 = vrot.lane.b32.xlu0 %v20144_v4, %s17574_s26 }
 0x494   : > { %13006 = vrot.lane.b32.xlu1 %v20134_v45, %s17574_s26 }
 0x497   : > { %13008 = vrot.lane.b32.xlu0 %v20167_v48, %s17574_s26 }
 0x498   : > { %13010 = vrot.lane.b32.xlu1 %v20162_v15, %s17574_s26 }
 0x49b   : > { %13012 = vrot.lane.b32.xlu0 %v20183_v24, %s17574_s26 }
 0x49c   : > { %13014 = vrot.lane.b32.xlu1 %v20178_v59, %s17574_s26  ;;  %v22353_v59 = vld [vmem:[#allocation13_spill] sm:$0xff] }
 0x49f   : > { %13016 = vrot.lane.b32.xlu0 %v20189_v6, %s17574_s26 }
 0x4a0   : > { %13018 = vrot.lane.b32.xlu1 %v20191_v32, %s17574_s26 }
 0x4a3   : > { %13020 = vrot.lane.b32.xlu0 %v20195_v38, %s17574_s26 }
 0x4a4   : > { %13022 = vrot.lane.b32.xlu1 %v20199_v61, %s17574_s26  ;;  %v22352_v61 = vld [vmem:[#allocation66_spill] sm:$0xff] }
 0x4a7   : > { %13024 = vrot.lane.b32.xlu0 %v20203_v41, %s17574_s26 }
 0x4a8   : > { %13026 = vrot.lane.b32.xlu1 %v20207_v3, %s17574_s26 }
 0x4aa   : > { %v8916_v47 = vpop.permute.xlu0 %8915 }
 0x4ab   : > { %13028 = vrot.lane.b32.xlu0 %v20211_v33, %s17574_s26  ;;  %v9011_v6 = vmul.f32 %v8916_v47, %v22351_v57  ;;  %v22354_v33 = vld [vmem:[#allocation67_spill] sm:$0xff]  ;;  %v22355_v47 = vld [vmem:[#allocation18_spill] sm:$0xff] }
 0x4ac   : > { %13030 = vrot.lane.b32.xlu1 %v20215_v0, %s17574_s26 }
 0x4ad   : > { %9043 = vst.msk [vmem:[#allocation3 + $0x11] sm:$0xff] %vm4939_vm7, %v9011_v6 }
 0x4ae   : > { %v8918_v38 = vpop.permute.xlu0 %8917  ;;  %v8920_v32 = vpop.permute.xlu1 %8919 }
 0x4af   : > { %v9012_v24 = vmul.f32 %v8918_v38, %v22352_v61  ;;  %v9013_v41 = vmul.f32 %v8920_v32, %v22353_v59  ;;  %v22357_v32 = vld [vmem:[#allocation20_spill] sm:$0xff]  ;;  %v22389_v61 = vld [vmem:[#allocation26_spill] sm:$0xff] }
 0x4b1   : > { %9044 = vst.msk [vmem:[#allocation3 + $0x19] sm:$0xff] %vm4939_vm7, %v9012_v24  ;;  %9045 = vst.msk [vmem:[#allocation3 + $0x21] sm:$0xff] %vm4939_vm7, %v9013_v41 }
 0x4b2   : > { %v8922_v3 = vpop.permute.xlu1 %8921  ;;  %v8924_v48 = vpop.permute.xlu0 %8923 }
 0x4b3   : > { %v9014_v15 = vmul.f32 %v8922_v3, %v22354_v33  ;;  %v9015_v4 = vmul.f32 %v8924_v48, %v22355_v47  ;;  %v22360_v48 = vld [vmem:[#allocation23_spill] sm:$0xff] }
 0x4b4   : > { %v20311_v45 = vld [vmem:[#allocation3 + $0x11] sm:$0xff] }
 0x4b5   : > { %22356 = vst [vmem:[#allocation115_spill] sm:$0xff] %v20311_v45  ;;  %9046 = vst.msk [vmem:[#allocation3 + $0x29] sm:$0xff] %vm4939_vm7, %v9014_v15  ;;  %16143 = vmatprep.mubr.msk.f32.mxu0 %vm4939_vm7, %v20311_v45  ;;  %v22361_v15 = vld [vmem:[#allocation25_spill] sm:$0xff] }
 0x4b6   : > { %9047 = vst.msk [vmem:[#allocation3 + $0x31] sm:$0xff] %vm4939_vm7, %v9015_v4  ;;  %v8926_v6 = vpop.permute.xlu1 %8925 }
 0x4b7   : > { %v9016_v24 = vmul.f32 %v8926_v6, %v22357_v32 }
 0x4b8   : > { %v8928_v38 = vpop.permute.xlu0 %8927  ;;  %v20318_v41 = vld [vmem:[#allocation3 + $0x19] sm:$0xff]  ;;  %v20320_v0 = vld [vmem:[#allocation3 + $0x21] sm:$0xff] }
 0x4b9   : > { %22358 = vst [vmem:[#allocation116_spill] sm:$0xff] %v20318_v41  ;;  %22359 = vst [vmem:[#allocation117_spill] sm:$0xff] %v20320_v0  ;;  %v9017_v3 = vmul.f32 %v8928_v38, %v22360_v48  ;;  %16144 = vmatmul.mubr.msk.f32.gmra.mrb[34].mxu0 %vm4939_vm7, %v20318_v41  ;;  %v9817_v41 = vld [vmem:[#allocation3 + $0xa] sm:$0xff]  ;;  %v20634_v45 = vld [vmem:[#allocation3 + $0x1a] sm:$0xff] }
 0x4ba   : > { %9048 = vst.msk [vmem:[#allocation3 + $0x39] sm:$0xff] %vm4939_vm7, %v9016_v24  ;;  %16146 = vmatprep.mubr.msk.f32.mxu0 %vm4939_vm7, %v20320_v0  ;;  %v8930_v4 = vpop.permute.xlu1 %8929  ;;  %v22364_v24 = vld [vmem:[#allocation29_spill] sm:$0xff] }
 0x4bb   : > { %9049 = vst.msk [vmem:[#allocation3 + $0x41] sm:$0xff] %vm4939_vm7, %v9017_v3  ;;  %v9018_v6 = vmul.f32 %v8930_v4, %v22361_v15  ;;  %v22365_v3 = vld [vmem:[#allocation31_spill] sm:$0xff] }
 0x4bc   : > { %v8932_v20 = vpop.permute.xlu0 %8931  ;;  %v20330_v36 = vld [vmem:[#allocation3 + $0x29] sm:$0xff] }
 0x4bd   : > { %22362 = vst [vmem:[#allocation118_spill] sm:$0xff] %v20330_v36  ;;  %v20332_v10 = vld [vmem:[#allocation3 + $0x31] sm:$0xff]  ;;  %9050 = vst.msk [vmem:[#allocation3 + $0x49] sm:$0xff] %vm4939_vm7, %v9018_v6  ;;  %v9019_v38 = vmul.f32 %v8932_v20, %v22364_v24  ;;  %16147 = vmatmul.mubr.msk.f32.gmra.mrb[36].mxu0 %vm4939_vm7, %v20330_v36 }
 0x4be   : > { %22363 = vst [vmem:[#allocation119_spill] sm:$0xff] %v20332_v10  ;;  %16149 = vmatprep.mubr.msk.f32.mxu0 %vm4939_vm7, %v20332_v10  ;;  %v8934_v48 = vpop.permute.xlu1 %8933 }
 0x4bf   : > { %9051 = vst.msk [vmem:[#allocation3 + $0x51] sm:$0xff] %vm4939_vm7, %v9019_v38  ;;  %v9020_v4 = vmul.f32 %v8934_v48, %v22365_v3  ;;  %v22369_v38 = vld [vmem:[#allocation36_spill] sm:$0xff] }
 0x4c0   : > { %v8936_v58 = vpop.permute.xlu0 %8935 }
 0x4c1   : > { %v20342_v15 = vld [vmem:[#allocation3 + $0x39] sm:$0xff]  ;;  %9052 = vst.msk [vmem:[#allocation3 + $0x59] sm:$0xff] %vm4939_vm7, %v9020_v4  ;;  %v9021_v6 = vmul.f32 %v8936_v58, %v22367_v51  ;;  %v22371_v4 = vld [vmem:[#allocation40_spill] sm:$0xff] }
 0x4c2   : > { %22366 = vst [vmem:[#allocation120_spill] sm:$0xff] %v20342_v15  ;;  %16150 = vmatmul.mubr.msk.f32.gmra.mrb[38].mxu0 %vm4939_vm7, %v20342_v15  ;;  %v20348_v20 = vld [vmem:[#allocation3 + $0x41] sm:$0xff]  ;;  %v8938_v24 = vpop.permute.xlu1 %8937 }
 0x4c3   : > { %22368 = vst [vmem:[#allocation121_spill] sm:$0xff] %v20348_v20  ;;  %9053 = vst.msk [vmem:[#allocation3 + $0x61] sm:$0xff] %vm4939_vm7, %v9021_v6  ;;  %16152 = vmatprep.mubr.msk.f32.mxu0 %vm4939_vm7, %v20348_v20  ;;  %v9022_v48 = vmul.f32 %v8938_v24, %v22369_v38  ;;  %v22373_v6 = vld [vmem:[#allocation41_spill] sm:$0xff] }
 0x4c4   : > { %v8940_v3 = vpop.permute.xlu0 %8939  ;;  %v20354_v47 = vld [vmem:[#allocation3 + $0x49] sm:$0xff] }
 0x4c5   : > { %22370 = vst [vmem:[#allocation122_spill] sm:$0xff] %v20354_v47  ;;  %9054 = vst.msk [vmem:[#allocation3 + $0x69] sm:$0xff] %vm4939_vm7, %v9022_v48  ;;  %v9023_v58 = vmul.f32 %v8940_v3, %v22371_v4  ;;  %v22375_v48 = vld [vmem:[#allocation46_spill] sm:$0xff] }
 0x4c6   : > { %16153 = vmatmul.mubr.msk.f32.gmra.mrb[40].mxu0 %vm4939_vm7, %v20354_v47  ;;  %v20360_v51 = vld [vmem:[#allocation3 + $0x51] sm:$0xff]  ;;  %v8942_v2 = vpop.permute.xlu1 %8941 }
 0x4c7   : > { %22372 = vst [vmem:[#allocation123_spill] sm:$0xff] %v20360_v51  ;;  %9055 = vst.msk [vmem:[#allocation3 + $0x71] sm:$0xff] %vm4939_vm7, %v9023_v58  ;;  %16155 = vmatprep.mubr.msk.f32.mxu0 %vm4939_vm7, %v20360_v51  ;;  %v9024_v24 = vmul.f32 %v8942_v2, %v22373_v6  ;;  %v22377_v58 = vld [vmem:[#allocation47_spill] sm:$0xff] }
 0x4c8   : > { %v8944_v38 = vpop.permute.xlu0 %8943  ;;  %v20366_v32 = vld [vmem:[#allocation3 + $0x59] sm:$0xff] }
 0x4c9   : > { %22374 = vst [vmem:[#allocation124_spill] sm:$0xff] %v20366_v32  ;;  %9056 = vst.msk [vmem:[#allocation3 + $0x79] sm:$0xff] %vm4939_vm7, %v9024_v24  ;;  %v9025_v3 = vmul.f32 %v8944_v38, %v22375_v48  ;;  %v22379_v24 = vld [vmem:[#allocation52_spill] sm:$0xff] }
 0x4ca   : > { %16156 = vmatmul.mubr.msk.f32.gmra.mrb[42].mxu0 %vm4939_vm7, %v20366_v32  ;;  %v20372_v4 = vld [vmem:[#allocation3 + $0x61] sm:$0xff]  ;;  %v8946_v55 = vpop.permute.xlu1 %8945 }
 0x4cb   : > { %22376 = vst [vmem:[#allocation126_spill] sm:$0xff] %v20372_v4  ;;  %9057 = vst.msk [vmem:[#allocation3 + $0x81] sm:$0xff] %vm4939_vm7, %v9025_v3  ;;  %16158 = vmatprep.mubr.msk.f32.mxu0 %vm4939_vm7, %v20372_v4  ;;  %v9026_v2 = vmul.f32 %v8946_v55, %v22377_v58  ;;  %v22381_v3 = vld [vmem:[#allocation53_spill] sm:$0xff] }
 0x4cc   : > { %v8948_v6 = vpop.permute.xlu0 %8947  ;;  %v20378_v59 = vld [vmem:[#allocation3 + $0x69] sm:$0xff] }
 0x4cd   : > { %22378 = vst [vmem:[#allocation127_spill] sm:$0xff] %v20378_v59  ;;  %9058 = vst.msk [vmem:[#allocation3 + $0x89] sm:$0xff] %vm4939_vm7, %v9026_v2  ;;  %v9027_v38 = vmul.f32 %v8948_v6, %v22379_v24  ;;  %v22383_v6 = vld [vmem:[#allocation15_spill] sm:$0xff] }
 0x4ce   : > { %16159 = vmatmul.mubr.msk.f32.gmra.mrb[44].mxu0 %vm4939_vm7, %v20378_v59  ;;  %v20384_v48 = vld [vmem:[#allocation3 + $0x71] sm:$0xff]  ;;  %v8950_v60 = vpop.permute.xlu1 %8949 }
 0x4cf   : > { %22380 = vst [vmem:[#allocation129_spill] sm:$0xff] %v20384_v48  ;;  %9059 = vst.msk [vmem:[#allocation3 + $0x91] sm:$0xff] %vm4939_vm7, %v9027_v38  ;;  %16161 = vmatprep.mubr.msk.f32.mxu0 %vm4939_vm7, %v20384_v48  ;;  %v9028_v55 = vmul.f32 %v8950_v60, %v22381_v3  ;;  %v22385_v38 = vld [vmem:[#allocation19_spill] sm:$0xff]  ;;  %v22387_v3 = vld [vmem:[#allocation22_spill] sm:$0xff] }
 0x4d0   : > { %v20390_v58 = vld [vmem:[#allocation3 + $0x79] sm:$0xff] }
 0x4d1   : > { %22382 = vst [vmem:[#allocation130_spill] sm:$0xff] %v20390_v58  ;;  %9060 = vst.msk [vmem:[#allocation3 + $0x99] sm:$0xff] %vm4939_vm7, %v9028_v55  ;;  %v8952_v2 = vpop.permute.xlu0 %8951 }
 0x4d2   : > { %16162 = vmatmul.mubr.msk.f32.gmra.mrb[46].mxu0 %vm4939_vm7, %v20390_v58  ;;  %v9029_v24 = vmul.f32 %v8952_v2, %v22383_v6  ;;  %v20396_v33 = vld [vmem:[#allocation3 + $0x81] sm:$0xff]  ;;  %v8954_v56 = vpop.permute.xlu1 %8953 }
 0x4d3   : > { %22384 = vst [vmem:[#allocation131_spill] sm:$0xff] %v20396_v33  ;;  %16164 = vmatprep.mubr.msk.f32.mxu0 %vm4939_vm7, %v20396_v33  ;;  %v9030_v57 = vmul.f32 %v8954_v56, %v22385_v38  ;;  %v22391_v38 = vld [vmem:[#allocation27_spill] sm:$0xff] }
 0x4d4   : > { %9061 = vst.msk [vmem:[#allocation3 + $0xa1] sm:$0xff] %vm4939_vm7, %v9029_v24  ;;  %v20402_v60 = vld [vmem:[#allocation3 + $0x89] sm:$0xff] }
 0x4d5   : > { %22386 = vst [vmem:[#allocation132_spill] sm:$0xff] %v20402_v60  ;;  %9062 = vst.msk [vmem:[#allocation3 + $0xa9] sm:$0xff] %vm4939_vm7, %v9030_v57  ;;  %v8956_v55 = vpop.permute.xlu0 %8955 }
 0x4d6   : > { %16165 = vmatmul.mubr.msk.f32.gmra.mrb[48].mxu0 %vm4939_vm7, %v20402_v60  ;;  %v9031_v2 = vmul.f32 %v8956_v55, %v22387_v3  ;;  %v20408_v6 = vld [vmem:[#allocation3 + $0x91] sm:$0xff]  ;;  %v8958_v13 = vpop.permute.xlu1 %8957 }
 0x4d7   : > { %22388 = vst [vmem:[#allocation133_spill] sm:$0xff] %v20408_v6  ;;  %16167 = vmatprep.mubr.msk.f32.mxu0 %vm4939_vm7, %v20408_v6  ;;  %v9032_v56 = vmul.f32 %v8958_v13, %v22389_v61  ;;  %v20567_v6 = vld [vmem:[#allocation3 + $0x88] sm:$0xff] }
 0x4d8   : > { %9063 = vst.msk [vmem:[#allocation3 + $0xb1] sm:$0xff] %vm4939_vm7, %v9031_v2  ;;  %v20414_v24 = vld [vmem:[#allocation3 + $0x99] sm:$0xff] }
 0x4d9   : > { %22390 = vst [vmem:[#allocation134_spill] sm:$0xff] %v20414_v24  ;;  %9064 = vst.msk [vmem:[#allocation3 + $0xb9] sm:$0xff] %vm4939_vm7, %v9032_v56  ;;  %v8960_v57 = vpop.permute.xlu0 %8959  ;;  %v22395_v56 = vld [vmem:[#allocation37_spill] sm:$0xff]  ;;  %v20576_v33 = vld [vmem:[#allocation3 + $0x98] sm:$0xff] }
 0x4da   : > { %16168 = vmatmul.mubr.msk.f32.gmra.mrb[50].mxu0 %vm4939_vm7, %v20414_v24  ;;  %v9033_v55 = vmul.f32 %v8960_v57, %v22391_v38  ;;  %v8962_v3 = vpop.permute.xlu1 %8961 }
 0x4db   : > { %v20420_v28 = vld [vmem:[#allocation3 + $0xa1] sm:$0xff]  ;;  %v9034_v22 = vmul.f32 %v8962_v3, %v22393_v52  ;;  %v22399_v52 = vld [vmem:[#allocation38_spill] sm:$0xff] }
 0x4dc   : > { %22392 = vst [vmem:[#allocation135_spill] sm:$0xff] %v20420_v28  ;;  %9065 = vst.msk [vmem:[#allocation3 + $0xc1] sm:$0xff] %vm4939_vm7, %v9033_v55  ;;  %16170 = vmatprep.mubr.msk.f32.mxu0 %vm4939_vm7, %v20420_v28  ;;  %v20426_v13 = vld [vmem:[#allocation3 + $0xa9] sm:$0xff]  ;;  %v20558_v28 = vld [vmem:[#allocation3 + $0x78] sm:$0xff] }
 0x4dd   : > { %22394 = vst [vmem:[#allocation136_spill] sm:$0xff] %v20426_v13  ;;  %9066 = vst.msk [vmem:[#allocation3 + $0xc9] sm:$0xff] %vm4939_vm7, %v9034_v22  ;;  %v8964_v2 = vpop.permute.xlu0 %8963  ;;  %v20585_v48 = vld [vmem:[#allocation3 + $0xa8] sm:$0xff] }
 0x4de   : > { %16171 = vmatmul.mubr.msk.f32.gmra.mrb[52].mxu0 %vm4939_vm7, %v20426_v13  ;;  %v9035_v57 = vmul.f32 %v8964_v2, %v22395_v56  ;;  %v8966_v38 = vpop.permute.xlu1 %8965 }
 0x4df   : > { %v20432_v61 = vld [vmem:[#allocation3 + $0xb1] sm:$0xff]  ;;  %v9036_v3 = vmul.f32 %v8966_v38, %v22397_v34  ;;  %v22403_v34 = vld [vmem:[#allocation44_spill] sm:$0xff] }
 0x4e0   : > { %22396 = vst [vmem:[#allocation137_spill] sm:$0xff] %v20432_v61  ;;  %9067 = vst.msk [vmem:[#allocation3 + $0xd1] sm:$0xff] %vm4939_vm7, %v9035_v57  ;;  %16173 = vmatprep.mubr.msk.f32.mxu0 %vm4939_vm7, %v20432_v61  ;;  %v20438_v55 = vld [vmem:[#allocation3 + $0xb9] sm:$0xff]  ;;  %v20549_v61 = vld [vmem:[#allocation3 + $0x68] sm:$0xff] }
 0x4e1   : > { %22398 = vst [vmem:[#allocation138_spill] sm:$0xff] %v20438_v55  ;;  %9068 = vst.msk [vmem:[#allocation3 + $0xd9] sm:$0xff] %vm4939_vm7, %v9036_v3  ;;  %v8968_v22 = vpop.permute.xlu0 %8967  ;;  %v20594_v4 = vld [vmem:[#allocation3 + $0xb8] sm:$0xff] }
 0x4e2   : > { %16174 = vmatmul.mubr.msk.f32.gmra.mrb[54].mxu0 %vm4939_vm7, %v20438_v55  ;;  %v9037_v2 = vmul.f32 %v8968_v22, %v22399_v52  ;;  %v8970_v56 = vpop.permute.xlu1 %8969 }
 0x4e3   : > { %v20444_v44 = vld [vmem:[#allocation3 + $0xc1] sm:$0xff]  ;;  %v9038_v38 = vmul.f32 %v8970_v56, %v22401_v8 }
 0x4e4   : > { %22400 = vst [vmem:[#allocation139_spill] sm:$0xff] %v20444_v44  ;;  %9069 = vst.msk [vmem:[#allocation3 + $0xe1] sm:$0xff] %vm4939_vm7, %v9037_v2  ;;  %16176 = vmatprep.mubr.msk.f32.mxu0 %vm4939_vm7, %v20444_v44  ;;  %v20450_v57 = vld [vmem:[#allocation3 + $0xc9] sm:$0xff]  ;;  %v22407_v8 = vld [vmem:[#allocation91_spill] sm:$0xff] }
 0x4e5   : > { %22402 = vst [vmem:[#allocation140_spill] sm:$0xff] %v20450_v57  ;;  %9070 = vst.msk [vmem:[#allocation3 + $0xe9] sm:$0xff] %vm4939_vm7, %v9038_v38  ;;  %v8972_v3 = vpop.permute.xlu0 %8971  ;;  %v20540_v44 = vld [vmem:[#allocation3 + $0x58] sm:$0xff]  ;;  %v20603_v51 = vld [vmem:[#allocation3 + $0xc8] sm:$0xff] }
 0x4e6   : > { %16177 = vmatmul.mubr.msk.f32.gmra.mrb[56].mxu0 %vm4939_vm7, %v20450_v57  ;;  %v9039_v22 = vmul.f32 %v8972_v3, %v22403_v34  ;;  %v8974_v52 = vpop.permute.xlu1 %8973  ;;  %v22409_v57 = vld [vmem:[#allocation98_spill] sm:$0xff] }
 0x4e7   : > { %v20456_v39 = vld [vmem:[#allocation3 + $0xd1] sm:$0xff]  ;;  %v9040_v56 = vmul.f32 %v8974_v52, %v22405_v42  ;;  %v9075_v42 = vld [vmem:[#allocation3] sm:$0xff] }
 0x4e8   : > { %22404 = vst [vmem:[#allocation142_spill] sm:$0xff] %v20456_v39  ;;  %9071 = vst.msk [vmem:[#allocation3 + $0xf1] sm:$0xff] %vm4939_vm7, %v9039_v22  ;;  %16179 = vmatprep.mubr.msk.f32.mxu0 %vm4939_vm7, %v20456_v39  ;;  %v20462_v2 = vld [vmem:[#allocation3 + $0xd9] sm:$0xff] }
 0x4e9   : > { %22406 = vst [vmem:[#allocation143_spill] sm:$0xff] %v20462_v2  ;;  %9072 = vst.msk [vmem:[#allocation3 + $0xf9] sm:$0xff] %vm4939_vm7, %v9040_v56  ;;  %v8976_v38 = vpop.permute.xlu0 %8975  ;;  %v9107_v56 = vmul.f32 %v22125_v14, %v9075_v42  ;;  %v20496_v42 = vld [vmem:[%s21580_s4 + $0x18] sm:$0xff]  ;;  %v20612_v20 = vld [vmem:[#allocation3 + $0xd8] sm:$0xff] }
 0x4ea   : > { %16180 = vmatmul.mubr.msk.f32.gmra.mrb[58].mxu0 %vm4939_vm7, %v20462_v2  ;;  %v9041_v3 = vmul.f32 %v8976_v38, %v22407_v8  ;;  %v8978_v34 = vpop.permute.xlu1 %8977  ;;  %v20531_v2 = vld [vmem:[#allocation3 + $0x48] sm:$0xff] }
 0x4eb   : > { %v20468_v27 = vld [vmem:[#allocation3 + $0xe1] sm:$0xff]  ;;  %v9042_v52 = vmul.f32 %v8978_v34, %v22409_v57 }
 0x4ec   : > { %22408 = vst [vmem:[#allocation144_spill] sm:$0xff] %v20468_v27  ;;  %9073 = vst.msk [vmem:[#allocation3 + $0x101] sm:$0xff] %vm4939_vm7, %v9041_v3  ;;  %16182 = vmatprep.mubr.msk.f32.mxu0 %vm4939_vm7, %v20468_v27  ;;  %v20474_v22 = vld [vmem:[#allocation3 + $0xe9] sm:$0xff]  ;;  %v20499_v57 = vld [vmem:[#allocation3 + $0x20] sm:$0xff] }
 0x4ed   : > { %22410 = vst [vmem:[#allocation145_spill] sm:$0xff] %v20474_v22  ;;  %9074 = vst.msk [vmem:[#allocation3 + $0x109] sm:$0xff] %vm4939_vm7, %v9042_v52  ;;  %v20488_v3 = vld [vmem:[#allocation3 + $0x10] sm:$0xff]  ;;  %v9076_v52 = vld [vmem:[#allocation3 + $0x8] sm:$0xff] }
 0x4ee   : > { %16183 = vmatmul.mubr.msk.f32.gmra.mrb[60].mxu0 %vm4939_vm7, %v20474_v22  ;;  %v9109_v8 = vmul.f32 %v22126_v26, %v20488_v3  ;;  %v20522_v22 = vld [vmem:[#allocation3 + $0x38] sm:$0xff]  ;;  %v20621_v10 = vld [vmem:[#allocation3 + $0xe8] sm:$0xff] }
 0x4ef   : > { %v20480_v38 = vld [vmem:[#allocation3 + $0xf1] sm:$0xff] }
 0x4f0   : > { %22411 = vst [vmem:[#allocation146_spill] sm:$0xff] %v20480_v38  ;;  %16185 = vmatprep.mubr.msk.f32.mxu0 %vm4939_vm7, %v20480_v38  ;;  %v20484_v34 = vld [vmem:[#allocation3 + $0xf9] sm:$0xff]  ;;  %v20510_v38 = vld [vmem:[#allocation3 + $0x30] sm:$0xff] }
 0x4f1   : > { %22412 = vst [vmem:[#allocation147_spill] sm:$0xff] %v20484_v34  ;;  %v20628_v0 = vld [vmem:[#allocation3 + $0xf8] sm:$0xff] }
 0x4f2   : > { %16186 = vmatmul.mubr.msk.f32.gmra.mrb[62].mxu0 %vm4939_vm7, %v20484_v34  ;;  %v9111_v34 = vmul.f32 %v22127_v17, %v20499_v57  ;;  %22413 = vst [vmem:[#allocation148_spill] sm:$0xff] %v20628_v0 }
 0x4f3   : > { %16190 = vmatprep.mubr.msk.f32.mxu0 %vm4939_vm7, %v9107_v56  ;;  %v20504_v56 = vld [vmem:[#allocation3 + $0x18] sm:$0xff] }
 0x4f6   : > { %16191 = vmatmul.mubr.msk.f32.vlgmr.msra.gmra.mrb[32].mxu0 %vm4939_vm7, %v9076_v52  ;;  %v20513_v52 = vld [vmem:[#allocation3 + $0x28] sm:$0xff] }
 0x4f7   : > { %16239 = vmatpush3.msra.mxu0 %v20240_v54  ;;  %16193 = vmatprep.mubr.msk.f32.mxu0 %vm4939_vm7, %v9109_v8  ;;  %v9113_v54 = vmul.f32 %v22128_v9, %v20510_v38  ;;  %v20519_v8 = vld [vmem:[#allocation3 + $0x40] sm:$0xff] }
 0x4f8   : > { %16288 = vmatprep.subr.mxu0 %v20496_v42  ;;  %v9115_v27 = vmul.f32 %v22129_v5, %v20519_v8 }
 0x4fa   : > { %16194 = vmatmul.mubr.msk.f32.gmra.mrb[34].mxu0 %vm4939_vm7, %v20504_v56 }
 0x4fb   : > { %16196 = vmatprep.mubr.msk.f32.mxu0 %vm4939_vm7, %v9111_v34  ;;  %v20528_v34 = vld [vmem:[#allocation3 + $0x50] sm:$0xff] }
 0x4fc   : > { %v9117_v39 = vmul.f32 %v22130_v49, %v20528_v34 }
 0x4fe   : > { %16197 = vmatmul.mubr.msk.f32.gmra.mrb[36].mxu0 %vm4939_vm7, %v20513_v52 }
 0x4ff   : > { %16199 = vmatprep.mubr.msk.f32.mxu0 %vm4939_vm7, %v9113_v54  ;;  %v20537_v54 = vld [vmem:[#allocation3 + $0x60] sm:$0xff] }
 0x500   : > { %v9119_v55 = vmul.f32 %v22131_v25, %v20537_v54 }
 0x502   : > { %16200 = vmatmul.mubr.msk.f32.gmra.mrb[38].mxu0 %vm4939_vm7, %v20522_v22 }
 0x503   : > { %16202 = vmatprep.mubr.msk.f32.mxu0 %vm4939_vm7, %v9115_v27  ;;  %v20546_v27 = vld [vmem:[#allocation3 + $0x70] sm:$0xff] }
 0x504   : > { %v9121_v13 = vmul.f32 %v22132_v29, %v20546_v27 }
 0x506   : > { %16203 = vmatmul.mubr.msk.f32.gmra.mrb[40].mxu0 %vm4939_vm7, %v20531_v2 }
 0x507   : > { %16205 = vmatprep.mubr.msk.f32.mxu0 %vm4939_vm7, %v9117_v39  ;;  %v20555_v39 = vld [vmem:[#allocation3 + $0x80] sm:$0xff] }
 0x508   : > { %v9123_v24 = vmul.f32 %v18184_v19, %v20555_v39 }
 0x50a   : > { %16206 = vmatmul.mubr.msk.f32.gmra.mrb[42].mxu0 %vm4939_vm7, %v20540_v44 }
 0x50b   : > { %16208 = vmatprep.mubr.msk.f32.mxu0 %vm4939_vm7, %v9119_v55  ;;  %v20564_v55 = vld [vmem:[#allocation3 + $0x90] sm:$0xff] }
 0x50c   : > { %v9125_v60 = vmul.f32 %v22187_v43, %v20564_v55 }
 0x50e   : > { %16209 = vmatmul.mubr.msk.f32.gmra.mrb[44].mxu0 %vm4939_vm7, %v20549_v61 }
 0x50f   : > { %16211 = vmatprep.mubr.msk.f32.mxu0 %vm4939_vm7, %v9121_v13  ;;  %v20573_v13 = vld [vmem:[#allocation3 + $0xa0] sm:$0xff] }
 0x510   : > { %v9127_v58 = vmul.f32 %v22190_v7, %v20573_v13 }
 0x512   : > { %16212 = vmatmul.mubr.msk.f32.gmra.mrb[46].mxu0 %vm4939_vm7, %v20558_v28 }
 0x513   : > { %16214 = vmatprep.mubr.msk.f32.mxu0 %vm4939_vm7, %v9123_v24  ;;  %v20582_v24 = vld [vmem:[#allocation3 + $0xb0] sm:$0xff] }
 0x514   : > { %v9129_v59 = vmul.f32 %v22193_v16, %v20582_v24 }
 0x516   : > { %16215 = vmatmul.mubr.msk.f32.gmra.mrb[48].mxu0 %vm4939_vm7, %v20567_v6 }
 0x517   : > { %16217 = vmatprep.mubr.msk.f32.mxu0 %vm4939_vm7, %v9125_v60  ;;  %v20591_v60 = vld [vmem:[#allocation3 + $0xc0] sm:$0xff] }
 0x518   : > { %v9131_v32 = vmul.f32 %v22196_v53, %v20591_v60 }
 0x51a   : > { %16218 = vmatmul.mubr.msk.f32.gmra.mrb[50].mxu0 %vm4939_vm7, %v20576_v33 }
 0x51b   : > { %16220 = vmatprep.mubr.msk.f32.mxu0 %vm4939_vm7, %v9127_v58  ;;  %v20600_v58 = vld [vmem:[#allocation3 + $0xd0] sm:$0xff] }
 0x51c   : > { %v9133_v47 = vmul.f32 %v22199_v31, %v20600_v58 }
 0x51e   : > { %16221 = vmatmul.mubr.msk.f32.gmra.mrb[52].mxu0 %vm4939_vm7, %v20585_v48 }
 0x51f   : > { %16223 = vmatprep.mubr.msk.f32.mxu0 %vm4939_vm7, %v9129_v59  ;;  %v20609_v59 = vld [vmem:[#allocation3 + $0xe0] sm:$0xff] }
 0x520   : > { %v9135_v15 = vmul.f32 %v22202_v12, %v20609_v59 }
 0x522   : > { %16224 = vmatmul.mubr.msk.f32.gmra.mrb[54].mxu0 %vm4939_vm7, %v20594_v4 }
 0x523   : > { %16226 = vmatprep.mubr.msk.f32.mxu0 %vm4939_vm7, %v9131_v32  ;;  %v20618_v32 = vld [vmem:[#allocation3 + $0xf0] sm:$0xff] }
 0x524   : > { %v9137_v36 = vmul.f32 %v22204_v37, %v20618_v32  ;;  %v20639_v37 = vld [vmem:[%s21580_s4 + $0x20] sm:$0xff] }
 0x526   : > { %16227 = vmatmul.mubr.msk.f32.gmra.mrb[56].mxu0 %vm4939_vm7, %v20603_v51 }
 0x527   : > { %16229 = vmatprep.mubr.msk.f32.mxu0 %vm4939_vm7, %v9133_v47  ;;  %v9816_v47 = vld [vmem:[#allocation3 + $0x2] sm:$0xff] }
 0x52a   : > { %16230 = vmatmul.mubr.msk.f32.gmra.mrb[58].mxu0 %vm4939_vm7, %v20612_v20 }
 0x52b   : > { %16232 = vmatprep.mubr.msk.f32.mxu0 %vm4939_vm7, %v9135_v15  ;;  %v9849_v15 = vmul.f32 %v22237_v40, %v9817_v41  ;;  %v20650_v41 = vld [vmem:[#allocation3 + $0x2a] sm:$0xff]  ;;  %v20653_v40 = vld [vmem:[#allocation3 + $0x22] sm:$0xff] }
 0x52c   : > { %22415 = vst [vmem:[#allocation150_spill] sm:$0xff] %v20650_v41  ;;  %22416 = vst [vmem:[#allocation151_spill] sm:$0xff] %v20653_v40 }
 0x52e   : > { %16233 = vmatmul.mubr.msk.f32.gmra.mrb[60].mxu0 %vm4939_vm7, %v20621_v10 }
 0x52f   : > { %16235 = vmatprep.mubr.msk.f32.mxu0 %vm4939_vm7, %v9137_v36  ;;  %v20642_v36 = vld [vmem:[#allocation3 + $0x12] sm:$0xff] }
 0x530   : > { %22414 = vst [vmem:[#allocation149_spill] sm:$0xff] %v20642_v36 }
 0x532   : > { %16236 = vmatmul.mubr.msk.f32.gmra.mrb[62].mxu0 %vm4939_vm7, %v20628_v0 }
 0x533   : > { %16240 = vmatprep.mubr.msk.f32.mxu0 %vm4939_vm7, %v9816_v47  ;;  %v9851_v47 = vmul.f32 %v22240_v46, %v20634_v45  ;;  %v20668_v46 = vld [vmem:[#allocation3 + $0x4a] sm:$0xff] }
 0x536   : > { %16241 = vmatmul.mubr.msk.f32.vlgmr.msra.gmra.mrb[32].mxu0 %vm4939_vm7, %v9849_v15  ;;  %v20659_v15 = vld [vmem:[#allocation3 + $0x3a] sm:$0xff] }
 0x537   : > { %16289 = vmatpush3.msra.mxu0 %v20496_v42  ;;  %16243 = vmatprep.mubr.msk.f32.mxu0 %vm4939_vm7, %v20642_v36  ;;  %v9853_v42 = vmul.f32 %v22243_v63, %v20650_v41  ;;  %v20662_v36 = vld [vmem:[#allocation3 + $0x32] sm:$0xff]  ;;  %v20677_v63 = vld [vmem:[#allocation3 + $0x5a] sm:$0xff] }
 0x538   : > { %16338 = vmatprep.subr.mxu0 %v20639_v37  ;;  %22417 = vst [vmem:[#allocation152_spill] sm:$0xff] %v20662_v36 }
 0x53a   : > { %16244 = vmatmul.mubr.msk.f32.gmra.mrb[34].mxu0 %vm4939_vm7, %v9851_v47  ;;  %v9855_v47 = vmul.f32 %v22246_v23, %v20659_v15  ;;  %v20686_v23 = vld [vmem:[#allocation3 + $0x6a] sm:$0xff] }
 0x53b   : > { %16246 = vmatprep.mubr.msk.f32.mxu0 %vm4939_vm7, %v20653_v40  ;;  %v20671_v40 = vld [vmem:[#allocation3 + $0x42] sm:$0xff] }
 0x53c   : > { %22418 = vst [vmem:[#allocation153_spill] sm:$0xff] %v20671_v40 }
 0x53e   : > { %16247 = vmatmul.mubr.msk.f32.gmra.mrb[36].mxu0 %vm4939_vm7, %v9853_v42  ;;  %v9857_v42 = vmul.f32 %v22249_v50, %v20668_v46  ;;  %v20695_v50 = vld [vmem:[#allocation3 + $0x7a] sm:$0xff] }
 0x53f   : > { %16249 = vmatprep.mubr.msk.f32.mxu0 %vm4939_vm7, %v20662_v36  ;;  %v20680_v36 = vld [vmem:[#allocation3 + $0x52] sm:$0xff]  ;;  %22421 = vst [vmem:[#allocation156_spill] sm:$0xff] %v20695_v50 }
 0x540   : > { %22419 = vst [vmem:[#allocation154_spill] sm:$0xff] %v20680_v36 }
 0x542   : > { %16250 = vmatmul.mubr.msk.f32.gmra.mrb[38].mxu0 %vm4939_vm7, %v9855_v47  ;;  %v9859_v47 = vmul.f32 %v22252_v1, %v20677_v63  ;;  %v20704_v1 = vld [vmem:[#allocation3 + $0x8a] sm:$0xff] }
 0x543   : > { %16252 = vmatprep.mubr.msk.f32.mxu0 %vm4939_vm7, %v20671_v40  ;;  %v20689_v40 = vld [vmem:[#allocation3 + $0x62] sm:$0xff]  ;;  %22423 = vst [vmem:[#allocation158_spill] sm:$0xff] %v20704_v1 }
 0x544   : > { %22420 = vst [vmem:[#allocation155_spill] sm:$0xff] %v20689_v40 }
 0x546   : > { %16253 = vmatmul.mubr.msk.f32.gmra.mrb[40].mxu0 %vm4939_vm7, %v9857_v42  ;;  %v9861_v42 = vmul.f32 %v22254_v11, %v20686_v23  ;;  %v20713_v11 = vld [vmem:[#allocation3 + $0x9a] sm:$0xff] }
 0x547   : > { %16255 = vmatprep.mubr.msk.f32.mxu0 %vm4939_vm7, %v20680_v36  ;;  %v20698_v36 = vld [vmem:[#allocation3 + $0x72] sm:$0xff]  ;;  %22425 = vst [vmem:[#allocation160_spill] sm:$0xff] %v20713_v11 }
 0x548   : > { %22422 = vst [vmem:[#allocation157_spill] sm:$0xff] %v20698_v36 }
 0x54a   : > { %16256 = vmatmul.mubr.msk.f32.gmra.mrb[42].mxu0 %vm4939_vm7, %v9859_v47  ;;  %v9863_v47 = vmul.f32 %v17980_v30, %v20695_v50  ;;  %v20722_v30 = vld [vmem:[#allocation3 + $0xaa] sm:$0xff] }
 0x54b   : > { %16258 = vmatprep.mubr.msk.f32.mxu0 %vm4939_vm7, %v20689_v40  ;;  %v20707_v40 = vld [vmem:[#allocation3 + $0x82] sm:$0xff]  ;;  %22427 = vst [vmem:[#allocation162_spill] sm:$0xff] %v20722_v30 }
 0x54c   : > { %22424 = vst [vmem:[#allocation159_spill] sm:$0xff] %v20707_v40 }
 0x54e   : > { %16259 = vmatmul.mubr.msk.f32.gmra.mrb[44].mxu0 %vm4939_vm7, %v9861_v42  ;;  %v9865_v42 = vmul.f32 %v22027_v21, %v20704_v1  ;;  %v20731_v21 = vld [vmem:[#allocation3 + $0xba] sm:$0xff] }
 0x54f   : > { %16261 = vmatprep.mubr.msk.f32.mxu0 %vm4939_vm7, %v20698_v36  ;;  %v20716_v36 = vld [vmem:[#allocation3 + $0x92] sm:$0xff]  ;;  %22429 = vst [vmem:[#allocation164_spill] sm:$0xff] %v20731_v21 }
 0x550   : > { %22426 = vst [vmem:[#allocation161_spill] sm:$0xff] %v20716_v36 }
 0x552   : > { %16262 = vmatmul.mubr.msk.f32.gmra.mrb[46].mxu0 %vm4939_vm7, %v9863_v47  ;;  %v9867_v47 = vmul.f32 %v22032_v18, %v20713_v11  ;;  %v20740_v18 = vld [vmem:[#allocation3 + $0xca] sm:$0xff] }
 0x553   : > { %16264 = vmatprep.mubr.msk.f32.mxu0 %vm4939_vm7, %v20707_v40  ;;  %v20725_v40 = vld [vmem:[#allocation3 + $0xa2] sm:$0xff]  ;;  %22431 = vst [vmem:[#allocation166_spill] sm:$0xff] %v20740_v18 }
 0x554   : > { %22428 = vst [vmem:[#allocation163_spill] sm:$0xff] %v20725_v40 }
 0x556   : > { %16265 = vmatmul.mubr.msk.f32.gmra.mrb[48].mxu0 %vm4939_vm7, %v9865_v42  ;;  %v9869_v42 = vmul.f32 %v22037_v62, %v20722_v30  ;;  %v22433_v62 = vld [vmem:[#allocation39_spill] sm:$0xff] }
 0x557   : > { %16267 = vmatprep.mubr.msk.f32.mxu0 %vm4939_vm7, %v20716_v36  ;;  %v20734_v36 = vld [vmem:[#allocation3 + $0xb2] sm:$0xff]  ;;  %v20749_v30 = vld [vmem:[#allocation3 + $0xda] sm:$0xff] }
 0x558   : > { %22430 = vst [vmem:[#allocation165_spill] sm:$0xff] %v20734_v36  ;;  %22434 = vst [vmem:[#allocation168_spill] sm:$0xff] %v20749_v30 }
 0x55a   : > { %16268 = vmatmul.mubr.msk.f32.gmra.mrb[50].mxu0 %vm4939_vm7, %v9867_v47  ;;  %v9871_v47 = vmul.f32 %v22042_v35, %v20731_v21  ;;  %v22436_v35 = vld [vmem:[#allocation45_spill] sm:$0xff] }
 0x55b   : > { %16270 = vmatprep.mubr.msk.f32.mxu0 %vm4939_vm7, %v20725_v40  ;;  %v20743_v40 = vld [vmem:[#allocation3 + $0xc2] sm:$0xff]  ;;  %v20758_v21 = vld [vmem:[#allocation3 + $0xea] sm:$0xff] }
 0x55c   : > { %22432 = vst [vmem:[#allocation167_spill] sm:$0xff] %v20743_v40 }
 0x55e   : > { %16271 = vmatmul.mubr.msk.f32.gmra.mrb[52].mxu0 %vm4939_vm7, %v9869_v42  ;;  %v9873_v42 = vmul.f32 %v22433_v62, %v20740_v18  ;;  %v22437_v62 = vld [vmem:[#allocation51_spill] sm:$0xff] }
 0x55f   : > { %16273 = vmatprep.mubr.msk.f32.mxu0 %vm4939_vm7, %v20734_v36  ;;  %v20752_v36 = vld [vmem:[#allocation3 + $0xd2] sm:$0xff]  ;;  %v20767_v18 = vld [vmem:[#allocation3 + $0xfa] sm:$0xff] }
 0x560   : > { %22435 = vst [vmem:[#allocation169_spill] sm:$0xff] %v20752_v36 }
 0x562   : > { %16274 = vmatmul.mubr.msk.f32.gmra.mrb[54].mxu0 %vm4939_vm7, %v9871_v47  ;;  %v9875_v47 = vmul.f32 %v22436_v35, %v20749_v30  ;;  %v22438_v35 = vld [vmem:[#allocation55_spill] sm:$0xff]  ;;  %v10267_v30 = vmul.f32 %v22125_v14, %v20488_v3  ;;  %v10271_v3 = vmul.f32 %v22127_v17, %v20510_v38 }
 0x563   : > { %16276 = vmatprep.mubr.msk.f32.mxu0 %vm4939_vm7, %v20743_v40  ;;  %v20761_v40 = vld [vmem:[#allocation3 + $0xe2] sm:$0xff] }
 0x566   : > { %16277 = vmatmul.mubr.msk.f32.gmra.mrb[56].mxu0 %vm4939_vm7, %v9873_v42  ;;  %v9877_v42 = vmul.f32 %v22437_v62, %v20758_v21  ;;  %v10269_v62 = vmul.f32 %v22126_v26, %v20499_v57 }
 0x567   : > { %16279 = vmatprep.mubr.msk.f32.mxu0 %vm4939_vm7, %v20752_v36  ;;  %v20770_v36 = vld [vmem:[#allocation3 + $0xf2] sm:$0xff] }
 0x56a   : > { %16280 = vmatmul.mubr.msk.f32.gmra.mrb[58].mxu0 %vm4939_vm7, %v9875_v47  ;;  %v9879_v47 = vmul.f32 %v22438_v35, %v20767_v18 }
 0x56b   : > { %16282 = vmatprep.mubr.msk.f32.mxu0 %vm4939_vm7, %v20761_v40 }
 0x56e   : > { %16283 = vmatmul.mubr.msk.f32.gmra.mrb[60].mxu0 %vm4939_vm7, %v9877_v42  ;;  %v14209_v42 = vld [vmem:[%s21580_s4 + $0x28] sm:$0xff] }
 0x56f   : > { %16285 = vmatprep.mubr.msk.f32.mxu0 %vm4939_vm7, %v20770_v36 }
 0x572   : > { %16286 = vmatmul.mubr.msk.f32.gmra.mrb[62].mxu0 %vm4939_vm7, %v9879_v47  ;;  %v10281_v47 = vmul.f32 %v22132_v29, %v20555_v39 }
 0x573   : > { %16290 = vmatprep.mubr.msk.f32.mxu0 %vm4939_vm7, %v10267_v30  ;;  %v10273_v30 = vmul.f32 %v22128_v9, %v20519_v8 }
 0x576   : > { %16291 = vmatmul.mubr.msk.f32.vlgmr.msra.gmra.mrb[32].mxu0 %vm4939_vm7, %v20504_v56  ;;  %v10279_v56 = vmul.f32 %v22131_v25, %v20546_v27 }
 0x577   : > { %16339 = vmatpush3.msra.mxu0 %v20639_v37  ;;  %16293 = vmatprep.mubr.msk.f32.mxu0 %vm4939_vm7, %v10269_v62  ;;  %v10275_v62 = vmul.f32 %v22129_v5, %v20528_v34  ;;  %v10277_v37 = vmul.f32 %v22130_v49, %v20537_v54 }
 0x578   : > { %16388 = vmatprep.subr.mxu0 %v14209_v42 }
 0x57a   : > { %16294 = vmatmul.mubr.msk.f32.gmra.mrb[34].mxu0 %vm4939_vm7, %v20513_v52 }
 0x57b   : > { %16296 = vmatprep.mubr.msk.f32.mxu0 %vm4939_vm7, %v10271_v3  ;;  %v10283_v3 = vmul.f32 %v18184_v19, %v20564_v55 }
 0x57e   : > { %16297 = vmatmul.mubr.msk.f32.gmra.mrb[36].mxu0 %vm4939_vm7, %v20522_v22 }
 0x57f   : > { %16299 = vmatprep.mubr.msk.f32.mxu0 %vm4939_vm7, %v10273_v30  ;;  %v10285_v30 = vmul.f32 %v22187_v43, %v20573_v13 }
 0x582   : > { %16300 = vmatmul.mubr.msk.f32.gmra.mrb[38].mxu0 %vm4939_vm7, %v20531_v2 }
 0x583   : > { %16302 = vmatprep.mubr.msk.f32.mxu0 %vm4939_vm7, %v10275_v62  ;;  %v10287_v62 = vmul.f32 %v22190_v7, %v20582_v24 }
 0x586   : > { %16303 = vmatmul.mubr.msk.f32.gmra.mrb[40].mxu0 %vm4939_vm7, %v20540_v44 }
 0x587   : > { %16305 = vmatprep.mubr.msk.f32.mxu0 %vm4939_vm7, %v10277_v37  ;;  %v10289_v37 = vmul.f32 %v22193_v16, %v20591_v60 }
 0x58a   : > { %16306 = vmatmul.mubr.msk.f32.gmra.mrb[42].mxu0 %vm4939_vm7, %v20549_v61 }
 0x58b   : > { %16308 = vmatprep.mubr.msk.f32.mxu0 %vm4939_vm7, %v10279_v56  ;;  %v10291_v56 = vmul.f32 %v22196_v53, %v20600_v58 }
 0x58e   : > { %16309 = vmatmul.mubr.msk.f32.gmra.mrb[44].mxu0 %vm4939_vm7, %v20558_v28 }
 0x58f   : > { %16311 = vmatprep.mubr.msk.f32.mxu0 %vm4939_vm7, %v10281_v47  ;;  %v10293_v47 = vmul.f32 %v22199_v31, %v20609_v59 }
 0x592   : > { %16312 = vmatmul.mubr.msk.f32.gmra.mrb[46].mxu0 %vm4939_vm7, %v20567_v6 }
 0x593   : > { %16314 = vmatprep.mubr.msk.f32.mxu0 %vm4939_vm7, %v10283_v3  ;;  %v10295_v3 = vmul.f32 %v22202_v12, %v20618_v32  ;;  %v22443_v12 = vld [vmem:[#allocation116_spill] sm:$0xff] }
 0x596   : > { %16315 = vmatmul.mubr.msk.f32.gmra.mrb[48].mxu0 %vm4939_vm7, %v20576_v33 }
 0x597   : > { %16317 = vmatprep.mubr.msk.f32.mxu0 %vm4939_vm7, %v10285_v30  ;;  %v20853_v30 = vld [vmem:[#allocation3 + $0x100] sm:$0xff] }
 0x598   : > { %22439 = vst [vmem:[#allocation55_spill] sm:$0xff] %v20853_v30 }
 0x59a   : > { %16318 = vmatmul.mubr.msk.f32.gmra.mrb[50].mxu0 %vm4939_vm7, %v20585_v48 }
 0x59b   : > { %16320 = vmatprep.mubr.msk.f32.mxu0 %vm4939_vm7, %v10287_v62  ;;  %v22440_v62 = vld [vmem:[#allocation64_spill] sm:$0xff] }
 0x59e   : > { %16321 = vmatmul.mubr.msk.f32.gmra.mrb[52].mxu0 %vm4939_vm7, %v20594_v4 }
 0x59f   : > { %16323 = vmatprep.mubr.msk.f32.mxu0 %vm4939_vm7, %v10289_v37  ;;  %v10297_v37 = vmul.f32 %v22440_v62, %v20853_v30  ;;  %v22444_v62 = vld [vmem:[#allocation117_spill] sm:$0xff]  ;;  %v22449_v30 = vld [vmem:[#allocation122_spill] sm:$0xff] }
 0x5a2   : > { %16324 = vmatmul.mubr.msk.f32.gmra.mrb[54].mxu0 %vm4939_vm7, %v20603_v51 }
 0x5a3   : > { %16326 = vmatprep.mubr.msk.f32.mxu0 %vm4939_vm7, %v10291_v56  ;;  %v20861_v56 = vld [vmem:[#allocation3 + $0x108] sm:$0xff] }
 0x5a4   : > { %22441 = vst [vmem:[#allocation170_spill] sm:$0xff] %v20861_v56 }
 0x5a6   : > { %16327 = vmatmul.mubr.msk.f32.gmra.mrb[56].mxu0 %vm4939_vm7, %v20612_v20 }
 0x5a7   : > { %16329 = vmatprep.mubr.msk.f32.mxu0 %vm4939_vm7, %v10293_v47  ;;  %v22442_v47 = vld [vmem:[#allocation115_spill] sm:$0xff] }
 0x5aa   : > { %16330 = vmatmul.mubr.msk.f32.gmra.mrb[58].mxu0 %vm4939_vm7, %v20621_v10 }
 0x5ab   : > { %16332 = vmatprep.mubr.msk.f32.mxu0 %vm4939_vm7, %v10295_v3  ;;  %v14242_v3 = vld [vmem:[%s21580_s4 + $0x30] sm:$0xff] }
 0x5ae   : > { %16333 = vmatmul.mubr.msk.f32.gmra.mrb[60].mxu0 %vm4939_vm7, %v20628_v0  ;;  %v22446_v0 = vld [vmem:[#allocation119_spill] sm:$0xff] }
 0x5af   : > { %16335 = vmatprep.mubr.msk.f32.mxu0 %vm4939_vm7, %v10297_v37  ;;  %v22445_v37 = vld [vmem:[#allocation118_spill] sm:$0xff] }
 0x5b2   : > { %16336 = vmatmul.mubr.msk.f32.gmra.mrb[62].mxu0 %vm4939_vm7, %v20861_v56  ;;  %v22447_v56 = vld [vmem:[#allocation120_spill] sm:$0xff] }
 0x5b3   : > { %16340 = vmatprep.mubr.msk.f32.mxu0 %vm4939_vm7, %v22442_v47  ;;  %v22448_v47 = vld [vmem:[#allocation121_spill] sm:$0xff] }
 0x5b6   : > { %16341 = vmatmul.mubr.msk.f32.vlgmr.msra.gmra.mrb[32].mxu0 %vm4939_vm7, %v22443_v12  ;;  %v22450_v12 = vld [vmem:[#allocation123_spill] sm:$0xff] }
 0x5b7   : > { %16389 = vmatpush3.msra.mxu0 %v14209_v42  ;;  %16343 = vmatprep.mubr.msk.f32.mxu0 %vm4939_vm7, %v22444_v62  ;;  %v22451_v42 = vld [vmem:[#allocation124_spill] sm:$0xff]  ;;  %v22452_v62 = vld [vmem:[#allocation126_spill] sm:$0xff] }
 0x5b8   : > { %16438 = vmatprep.subr.mxu0 %v14242_v3 }
 0x5ba   : > { %16344 = vmatmul.mubr.msk.f32.gmra.mrb[34].mxu0 %vm4939_vm7, %v22445_v37  ;;  %v22453_v37 = vld [vmem:[#allocation127_spill] sm:$0xff] }
 0x5bb   : > { %16346 = vmatprep.mubr.msk.f32.mxu0 %vm4939_vm7, %v22446_v0  ;;  %v22454_v0 = vld [vmem:[#allocation129_spill] sm:$0xff] }
 0x5be   : > { %16347 = vmatmul.mubr.msk.f32.gmra.mrb[36].mxu0 %vm4939_vm7, %v22447_v56  ;;  %v22455_v56 = vld [vmem:[#allocation130_spill] sm:$0xff] }
 0x5bf   : > { %16349 = vmatprep.mubr.msk.f32.mxu0 %vm4939_vm7, %v22448_v47  ;;  %v22456_v47 = vld [vmem:[#allocation131_spill] sm:$0xff] }
 0x5c2   : > { %16350 = vmatmul.mubr.msk.f32.gmra.mrb[38].mxu0 %vm4939_vm7, %v22449_v30  ;;  %v22457_v30 = vld [vmem:[#allocation132_spill] sm:$0xff] }
 0x5c3   : > { %16352 = vmatprep.mubr.msk.f32.mxu0 %vm4939_vm7, %v22450_v12  ;;  %v22458_v12 = vld [vmem:[#allocation133_spill] sm:$0xff] }
 0x5c6   : > { %16353 = vmatmul.mubr.msk.f32.gmra.mrb[40].mxu0 %vm4939_vm7, %v22451_v42  ;;  %v22459_v42 = vld [vmem:[#allocation134_spill] sm:$0xff] }
 0x5c7   : > { %16355 = vmatprep.mubr.msk.f32.mxu0 %vm4939_vm7, %v22452_v62  ;;  %v22460_v62 = vld [vmem:[#allocation135_spill] sm:$0xff] }
 0x5ca   : > { %16356 = vmatmul.mubr.msk.f32.gmra.mrb[42].mxu0 %vm4939_vm7, %v22453_v37  ;;  %v22461_v37 = vld [vmem:[#allocation136_spill] sm:$0xff] }
 0x5cb   : > { %16358 = vmatprep.mubr.msk.f32.mxu0 %vm4939_vm7, %v22454_v0  ;;  %v22462_v0 = vld [vmem:[#allocation137_spill] sm:$0xff] }
 0x5ce   : > { %16359 = vmatmul.mubr.msk.f32.gmra.mrb[44].mxu0 %vm4939_vm7, %v22455_v56  ;;  %v22463_v56 = vld [vmem:[#allocation138_spill] sm:$0xff] }
 0x5cf   : > { %16361 = vmatprep.mubr.msk.f32.mxu0 %vm4939_vm7, %v22456_v47  ;;  %v22464_v47 = vld [vmem:[#allocation139_spill] sm:$0xff] }
 0x5d2   : > { %16362 = vmatmul.mubr.msk.f32.gmra.mrb[46].mxu0 %vm4939_vm7, %v22457_v30  ;;  %v22465_v30 = vld [vmem:[#allocation140_spill] sm:$0xff] }
 0x5d3   : > { %16364 = vmatprep.mubr.msk.f32.mxu0 %vm4939_vm7, %v22458_v12  ;;  %v22466_v12 = vld [vmem:[#allocation142_spill] sm:$0xff] }
 0x5d6   : > { %16365 = vmatmul.mubr.msk.f32.gmra.mrb[48].mxu0 %vm4939_vm7, %v22459_v42  ;;  %v22467_v42 = vld [vmem:[#allocation143_spill] sm:$0xff] }
 0x5d7   : > { %16367 = vmatprep.mubr.msk.f32.mxu0 %vm4939_vm7, %v22460_v62  ;;  %v22468_v62 = vld [vmem:[#allocation144_spill] sm:$0xff] }
 0x5da   : > { %16368 = vmatmul.mubr.msk.f32.gmra.mrb[50].mxu0 %vm4939_vm7, %v22461_v37  ;;  %v22469_v37 = vld [vmem:[#allocation145_spill] sm:$0xff] }
 0x5db   : > { %16370 = vmatprep.mubr.msk.f32.mxu0 %vm4939_vm7, %v22462_v0  ;;  %v22470_v0 = vld [vmem:[#allocation146_spill] sm:$0xff] }
 0x5de   : > { %16371 = vmatmul.mubr.msk.f32.gmra.mrb[52].mxu0 %vm4939_vm7, %v22463_v56  ;;  %v22471_v56 = vld [vmem:[#allocation147_spill] sm:$0xff] }
 0x5df   : > { %16373 = vmatprep.mubr.msk.f32.mxu0 %vm4939_vm7, %v22464_v47  ;;  %v20928_v47 = vld [vmem:[#allocation3 + $0x101] sm:$0xff] }
 0x5e0   : > { %22472 = vst [vmem:[#allocation115_spill] sm:$0xff] %v20928_v47 }
 0x5e2   : > { %16374 = vmatmul.mubr.msk.f32.gmra.mrb[54].mxu0 %vm4939_vm7, %v22465_v30  ;;  %v20932_v30 = vld [vmem:[#allocation3 + $0x109] sm:$0xff] }
 0x5e3   : > { %16376 = vmatprep.mubr.msk.f32.mxu0 %vm4939_vm7, %v22466_v12  ;;  %22473 = vst [vmem:[#allocation116_spill] sm:$0xff] %v20932_v30  ;;  %v22474_v12 = vld [vmem:[#allocation149_spill] sm:$0xff] }
 0x5e6   : > { %16377 = vmatmul.mubr.msk.f32.gmra.mrb[56].mxu0 %vm4939_vm7, %v22467_v42  ;;  %v22475_v42 = vld [vmem:[#allocation4_spill] sm:$0xff] }
 0x5e7   : > { %16379 = vmatprep.mubr.msk.f32.mxu0 %vm4939_vm7, %v22468_v62  ;;  %v11074_v62 = vmul.f32 %v22475_v42, %v20634_v45  ;;  %v22479_v45 = vld [vmem:[#allocation6_spill] sm:$0xff] }
 0x5e8   : > { %v11078_v42 = vmul.f32 %v22479_v45, %v20659_v15 }
 0x5ea   : > { %16380 = vmatmul.mubr.msk.f32.gmra.mrb[58].mxu0 %vm4939_vm7, %v22469_v37  ;;  %v14275_v37 = vld [vmem:[%s21580_s4 + $0x38] sm:$0xff] }
 0x5eb   : > { %16382 = vmatprep.mubr.msk.f32.mxu0 %vm4939_vm7, %v22470_v0  ;;  %v22476_v0 = vld [vmem:[#allocation151_spill] sm:$0xff] }
 0x5ee   : > { %16383 = vmatmul.mubr.msk.f32.gmra.mrb[60].mxu0 %vm4939_vm7, %v22471_v56  ;;  %v22477_v56 = vld [vmem:[#allocation5_spill] sm:$0xff] }
 0x5ef   : > { %16385 = vmatprep.mubr.msk.f32.mxu0 %vm4939_vm7, %v20928_v47  ;;  %v11076_v47 = vmul.f32 %v22477_v56, %v20650_v41  ;;  %v22482_v56 = vld [vmem:[#allocation154_spill] sm:$0xff] }
 0x5f2   : > { %16386 = vmatmul.mubr.msk.f32.gmra.mrb[62].mxu0 %vm4939_vm7, %v20932_v30  ;;  %v22480_v30 = vld [vmem:[#allocation153_spill] sm:$0xff] }
 0x5f3   : > { %16390 = vmatprep.mubr.msk.f32.mxu0 %vm4939_vm7, %v22474_v12  ;;  %v22478_v12 = vld [vmem:[#allocation152_spill] sm:$0xff] }
 0x5f6   : > { %16391 = vmatmul.mubr.msk.f32.vlgmr.msra.gmra.mrb[32].mxu0 %vm4939_vm7, %v11074_v62 }
 0x5f7   : > { %16439 = vmatpush3.msra.mxu0 %v14242_v3  ;;  %16393 = vmatprep.mubr.msk.f32.mxu0 %vm4939_vm7, %v22476_v0  ;;  %v22481_v3 = vld [vmem:[#allocation7_spill] sm:$0xff] }
 0x5f8   : > { %16488 = vmatprep.subr.mxu0 %v14275_v37  ;;  %v11080_v62 = vmul.f32 %v22481_v3, %v20668_v46 }
 0x5fa   : > { %16394 = vmatmul.mubr.msk.f32.gmra.mrb[34].mxu0 %vm4939_vm7, %v11076_v47  ;;  %v22483_v47 = vld [vmem:[#allocation8_spill] sm:$0xff] }
 0x5fb   : > { %16396 = vmatprep.mubr.msk.f32.mxu0 %vm4939_vm7, %v22478_v12  ;;  %v11082_v41 = vmul.f32 %v22483_v47, %v20677_v63  ;;  %v22484_v12 = vld [vmem:[#allocation155_spill] sm:$0xff] }
 0x5fe   : > { %16397 = vmatmul.mubr.msk.f32.gmra.mrb[36].mxu0 %vm4939_vm7, %v11078_v42  ;;  %v22485_v42 = vld [vmem:[#allocation9_spill] sm:$0xff] }
 0x5ff   : > { %16399 = vmatprep.mubr.msk.f32.mxu0 %vm4939_vm7, %v22480_v30  ;;  %v11084_v45 = vmul.f32 %v22485_v42, %v20686_v23  ;;  %v22486_v30 = vld [vmem:[#allocation157_spill] sm:$0xff] }
 0x602   : > { %16400 = vmatmul.mubr.msk.f32.gmra.mrb[38].mxu0 %vm4939_vm7, %v11080_v62  ;;  %v22487_v62 = vld [vmem:[#allocation10_spill] sm:$0xff] }
 0x603   : > { %16402 = vmatprep.mubr.msk.f32.mxu0 %vm4939_vm7, %v22482_v56  ;;  %v11086_v3 = vmul.f32 %v22487_v62, %v20695_v50  ;;  %v22488_v56 = vld [vmem:[#allocation159_spill] sm:$0xff]  ;;  %v22494_v62 = vld [vmem:[#allocation21_spill] sm:$0xff] }
 0x606   : > { %16403 = vmatmul.mubr.msk.f32.gmra.mrb[40].mxu0 %vm4939_vm7, %v11082_v41  ;;  %v22489_v41 = vld [vmem:[#allocation12_spill] sm:$0xff] }
 0x607   : > { %16405 = vmatprep.mubr.msk.f32.mxu0 %vm4939_vm7, %v22484_v12  ;;  %v11088_v47 = vmul.f32 %v22489_v41, %v20704_v1  ;;  %v22490_v12 = vld [vmem:[#allocation161_spill] sm:$0xff]  ;;  %v22497_v41 = vld [vmem:[#allocation28_spill] sm:$0xff] }
 0x60a   : > { %16406 = vmatmul.mubr.msk.f32.gmra.mrb[42].mxu0 %vm4939_vm7, %v11084_v45  ;;  %v22491_v45 = vld [vmem:[#allocation16_spill] sm:$0xff] }
 0x60b   : > { %16408 = vmatprep.mubr.msk.f32.mxu0 %vm4939_vm7, %v22486_v30  ;;  %v11090_v42 = vmul.f32 %v22491_v45, %v20713_v11  ;;  %v22492_v30 = vld [vmem:[#allocation163_spill] sm:$0xff]  ;;  %v22500_v45 = vld [vmem:[#allocation33_spill] sm:$0xff] }
 0x60e   : > { %16409 = vmatmul.mubr.msk.f32.gmra.mrb[44].mxu0 %vm4939_vm7, %v11086_v3  ;;  %v22493_v3 = vld [vmem:[#allocation162_spill] sm:$0xff] }
 0x60f   : > { %16411 = vmatprep.mubr.msk.f32.mxu0 %vm4939_vm7, %v22488_v56  ;;  %v11092_v50 = vmul.f32 %v22494_v62, %v22493_v3  ;;  %v22495_v56 = vld [vmem:[#allocation165_spill] sm:$0xff]  ;;  %v22503_v62 = vld [vmem:[#allocation39_spill] sm:$0xff] }
 0x612   : > { %16412 = vmatmul.mubr.msk.f32.gmra.mrb[46].mxu0 %vm4939_vm7, %v11088_v47  ;;  %v22496_v47 = vld [vmem:[#allocation164_spill] sm:$0xff] }
 0x613   : > { %16414 = vmatprep.mubr.msk.f32.mxu0 %vm4939_vm7, %v22490_v12  ;;  %v11094_v1 = vmul.f32 %v22497_v41, %v22496_v47  ;;  %v22498_v12 = vld [vmem:[#allocation167_spill] sm:$0xff] }
 0x616   : > { %16415 = vmatmul.mubr.msk.f32.gmra.mrb[48].mxu0 %vm4939_vm7, %v11090_v42  ;;  %v22499_v42 = vld [vmem:[#allocation166_spill] sm:$0xff] }
 0x617   : > { %16417 = vmatprep.mubr.msk.f32.mxu0 %vm4939_vm7, %v22492_v30  ;;  %v11096_v11 = vmul.f32 %v22500_v45, %v22499_v42  ;;  %v22501_v30 = vld [vmem:[#allocation169_spill] sm:$0xff] }
 0x61a   : > { %16418 = vmatmul.mubr.msk.f32.gmra.mrb[50].mxu0 %vm4939_vm7, %v11092_v50  ;;  %v22502_v50 = vld [vmem:[#allocation168_spill] sm:$0xff] }
 0x61b   : > { %16420 = vmatprep.mubr.msk.f32.mxu0 %vm4939_vm7, %v22495_v56  ;;  %v11098_v3 = vmul.f32 %v22503_v62, %v22502_v50  ;;  %v21016_v62 = vld [vmem:[#allocation3 + $0x102] sm:$0xff] }
 0x61e   : > { %16421 = vmatmul.mubr.msk.f32.gmra.mrb[52].mxu0 %vm4939_vm7, %v11094_v1  ;;  %v22504_v1 = vld [vmem:[#allocation45_spill] sm:$0xff] }
 0x61f   : > { %16423 = vmatprep.mubr.msk.f32.mxu0 %vm4939_vm7, %v22498_v12  ;;  %v11100_v41 = vmul.f32 %v22504_v1, %v20758_v21 }
 0x622   : > { %16424 = vmatmul.mubr.msk.f32.gmra.mrb[54].mxu0 %vm4939_vm7, %v11096_v11  ;;  %v22505_v11 = vld [vmem:[#allocation51_spill] sm:$0xff] }
 0x623   : > { %16426 = vmatprep.mubr.msk.f32.mxu0 %vm4939_vm7, %v22501_v30  ;;  %v11102_v45 = vmul.f32 %v22505_v11, %v20767_v18  ;;  %v21013_v30 = vld [vmem:[#allocation3 + $0x10a] sm:$0xff]  ;;  %v11494_v11 = vmul.f32 %v22126_v26, %v20510_v38  ;;  %v11498_v26 = vmul.f32 %v22128_v9, %v20528_v34  ;;  %v11504_v9 = vmul.f32 %v22131_v25, %v20555_v39  ;;  %v11891_v39 = vld [vmem:[#allocation3 + $0x81] sm:$0xff] }
 0x624   : > { %v11510_v25 = vmul.f32 %v22187_v43, %v20582_v24  ;;  %v11516_v43 = vmul.f32 %v22196_v53, %v20609_v59  ;;  %v11490_v53 = vld [vmem:[#allocation3 + $0x110] sm:$0xff]  ;;  %v11894_v24 = vld [vmem:[#allocation3 + $0x99] sm:$0xff] }
 0x625   : > { %v11885_v38 = vld [vmem:[#allocation3 + $0x51] sm:$0xff]  ;;  %v11888_v34 = vld [vmem:[#allocation3 + $0x69] sm:$0xff] }
 0x626   : > { %16427 = vmatmul.mubr.msk.f32.gmra.mrb[56].mxu0 %vm4939_vm7, %v11098_v3  ;;  %v11104_v3 = vmul.f32 %v22438_v35, %v21013_v30  ;;  %v11897_v59 = vld [vmem:[#allocation3 + $0xb1] sm:$0xff] }
 0x627   : > { %16429 = vmatprep.mubr.msk.f32.mxu0 %vm4939_vm7, %v20761_v40 }
 0x62a   : > { %16430 = vmatmul.mubr.msk.f32.gmra.mrb[58].mxu0 %vm4939_vm7, %v11100_v41  ;;  %v11492_v41 = vmul.f32 %v22125_v14, %v20499_v57  ;;  %v11496_v14 = vmul.f32 %v22127_v17, %v20519_v8  ;;  %v11500_v57 = vmul.f32 %v22129_v5, %v20537_v54  ;;  %v11502_v17 = vmul.f32 %v22130_v49, %v20546_v27  ;;  %v11887_v8 = vld [vmem:[#allocation3 + $0x61] sm:$0xff]  ;;  %v11889_v54 = vld [vmem:[#allocation3 + $0x71] sm:$0xff]  ;;  %v11890_v27 = vld [vmem:[#allocation3 + $0x79] sm:$0xff] }
 0x62b   : > { %16432 = vmatprep.mubr.msk.f32.mxu0 %vm4939_vm7, %v20770_v36  ;;  %v11506_v5 = vmul.f32 %v22132_v29, %v20564_v55  ;;  %v11508_v49 = vmul.f32 %v18184_v19, %v20573_v13  ;;  %v11512_v29 = vmul.f32 %v22190_v7, %v20591_v60  ;;  %v11514_v19 = vmul.f32 %v22193_v16, %v20600_v58  ;;  %v22506_v16 = vld [vmem:[#allocation55_spill] sm:$0xff]  ;;  %v11892_v55 = vld [vmem:[#allocation3 + $0x89] sm:$0xff]  ;;  %v11893_v13 = vld [vmem:[#allocation3 + $0x91] sm:$0xff] }
 0x62c   : > { %v11518_v7 = vmul.f32 %v22199_v31, %v20618_v32  ;;  %v11491_v31 = vld [vmem:[#allocation3 + $0x118] sm:$0xff]  ;;  %v11895_v60 = vld [vmem:[#allocation3 + $0xa1] sm:$0xff]  ;;  %v11896_v58 = vld [vmem:[#allocation3 + $0xa9] sm:$0xff] }
 0x62d   : > { %v11898_v32 = vld [vmem:[#allocation3 + $0xb9] sm:$0xff] }
 0x62e   : > { %16433 = vmatmul.mubr.msk.f32.gmra.mrb[60].mxu0 %vm4939_vm7, %v11102_v45  ;;  %v14308_v45 = vld [vmem:[%s21580_s4 + $0x40] sm:$0xff] }
 0x62f   : > { %16435 = vmatprep.mubr.msk.f32.mxu0 %vm4939_vm7, %v21016_v62 }
 0x632   : > { %16436 = vmatmul.mubr.msk.f32.gmra.mrb[62].mxu0 %vm4939_vm7, %v11104_v3  ;;  %v11901_v3 = vld [vmem:[#allocation3 + $0xd1] sm:$0xff] }
 0x633   : > { %16440 = vmatprep.mubr.msk.f32.mxu0 %vm4939_vm7, %v11492_v41  ;;  %v11902_v41 = vld [vmem:[#allocation3 + $0xd9] sm:$0xff] }
 0x636   : > { %16441 = vmatmul.mubr.msk.f32.vlgmr.msra.gmra.mrb[32].mxu0 %vm4939_vm7, %v20513_v52  ;;  %v11886_v52 = vld [vmem:[#allocation3 + $0x59] sm:$0xff] }
 0x637   : > { %16489 = vmatpush3.msra.mxu0 %v14275_v37  ;;  %16443 = vmatprep.mubr.msk.f32.mxu0 %vm4939_vm7, %v11494_v11  ;;  %v11899_v37 = vld [vmem:[#allocation3 + $0xc1] sm:$0xff]  ;;  %v11900_v11 = vld [vmem:[#allocation3 + $0xc9] sm:$0xff] }
 0x638   : > { %16538 = vmatprep.subr.mxu0 %v14308_v45 }
 0x63a   : > { %16444 = vmatmul.mubr.msk.f32.gmra.mrb[34].mxu0 %vm4939_vm7, %v20522_v22  ;;  %v11884_v22 = vld [vmem:[#allocation3 + $0x49] sm:$0xff] }
 0x63b   : > { %16446 = vmatprep.mubr.msk.f32.mxu0 %vm4939_vm7, %v11496_v14  ;;  %v11904_v14 = vld [vmem:[#allocation3 + $0xe9] sm:$0xff] }
 0x63e   : > { %16447 = vmatmul.mubr.msk.f32.gmra.mrb[36].mxu0 %vm4939_vm7, %v20531_v2  ;;  %v11883_v2 = vld [vmem:[#allocation3 + $0x41] sm:$0xff] }
 0x63f   : > { %16449 = vmatprep.mubr.msk.f32.mxu0 %vm4939_vm7, %v11498_v26  ;;  %v11905_v26 = vld [vmem:[#allocation3 + $0xf1] sm:$0xff] }
 0x642   : > { %16450 = vmatmul.mubr.msk.f32.gmra.mrb[38].mxu0 %vm4939_vm7, %v20540_v44 }
 0x643   : > { %16452 = vmatprep.mubr.msk.f32.mxu0 %vm4939_vm7, %v11500_v57  ;;  %v11906_v57 = vld [vmem:[#allocation3 + $0xf9] sm:$0xff] }
 0x646   : > { %16453 = vmatmul.mubr.msk.f32.gmra.mrb[40].mxu0 %vm4939_vm7, %v20549_v61  ;;  %v22508_v61 = vld [vmem:[#allocation148_spill] sm:$0xff] }
 0x647   : > { %16455 = vmatprep.mubr.msk.f32.mxu0 %vm4939_vm7, %v11502_v17  ;;  %v22511_v17 = vld [vmem:[#allocation115_spill] sm:$0xff] }
 0x64a   : > { %16456 = vmatmul.mubr.msk.f32.gmra.mrb[42].mxu0 %vm4939_vm7, %v20558_v28 }
 0x64b   : > { %16458 = vmatprep.mubr.msk.f32.mxu0 %vm4939_vm7, %v11504_v9  ;;  %v11909_v9 = vld [vmem:[#allocation3 + $0x111] sm:$0xff] }
 0x64e   : > { %16459 = vmatmul.mubr.msk.f32.gmra.mrb[44].mxu0 %vm4939_vm7, %v20567_v6  ;;  %v11882_v6 = vld [vmem:[#allocation3 + $0x39] sm:$0xff] }
 0x64f   : > { %16461 = vmatprep.mubr.msk.f32.mxu0 %vm4939_vm7, %v11506_v5  ;;  %v22512_v5 = vld [vmem:[#allocation116_spill] sm:$0xff] }
 0x652   : > { %16462 = vmatmul.mubr.msk.f32.gmra.mrb[46].mxu0 %vm4939_vm7, %v20576_v33  ;;  %v22509_v33 = vld [vmem:[#allocation64_spill] sm:$0xff] }
 0x653   : > { %16464 = vmatprep.mubr.msk.f32.mxu0 %vm4939_vm7, %v11508_v49  ;;  %v11522_v44 = vmul.f32 %v22509_v33, %v11490_v53  ;;  %v11910_v49 = vld [vmem:[#allocation3 + $0x119] sm:$0xff] }
 0x654   : > { %v22520_v53 = vld [vmem:[#allocation7_spill] sm:$0xff] }
 0x655   : > { %v12305_v33 = vmul.f32 %v22520_v53, %v20677_v63  ;;  %v22527_v63 = vld [vmem:[#allocation158_spill] sm:$0xff] }
 0x656   : > { %16465 = vmatmul.mubr.msk.f32.gmra.mrb[48].mxu0 %vm4939_vm7, %v20585_v48  ;;  %v11881_v48 = vld [vmem:[#allocation3 + $0x31] sm:$0xff] }
 0x657   : > { %16467 = vmatprep.mubr.msk.f32.mxu0 %vm4939_vm7, %v11510_v25  ;;  %v22513_v25 = vld [vmem:[#allocation150_spill] sm:$0xff] }
 0x65a   : > { %16468 = vmatmul.mubr.msk.f32.gmra.mrb[50].mxu0 %vm4939_vm7, %v20594_v4  ;;  %v11880_v4 = vld [vmem:[#allocation3 + $0x29] sm:$0xff] }
 0x65b   : > { %16470 = vmatprep.mubr.msk.f32.mxu0 %vm4939_vm7, %v11512_v29  ;;  %v22514_v29 = vld [vmem:[#allocation4_spill] sm:$0xff] }
 0x65e   : > { %16471 = vmatmul.mubr.msk.f32.gmra.mrb[52].mxu0 %vm4939_vm7, %v20603_v51  ;;  %v22507_v51 = vld [vmem:[#allocation63_spill] sm:$0xff] }
 0x65f   : > { %16473 = vmatprep.mubr.msk.f32.mxu0 %vm4939_vm7, %v11514_v19  ;;  %v11520_v28 = vmul.f32 %v22507_v51, %v22506_v16  ;;  %v12299_v19 = vmul.f32 %v22514_v29, %v22513_v25  ;;  %v22517_v51 = vld [vmem:[#allocation153_spill] sm:$0xff] }
 0x662   : > { %16474 = vmatmul.mubr.msk.f32.gmra.mrb[54].mxu0 %vm4939_vm7, %v20612_v20  ;;  %v22510_v20 = vld [vmem:[#allocation170_spill] sm:$0xff] }
 0x663   : > { %16476 = vmatprep.mubr.msk.f32.mxu0 %vm4939_vm7, %v11516_v43  ;;  %v22515_v43 = vld [vmem:[#allocation152_spill] sm:$0xff] }
 0x666   : > { %16477 = vmatmul.mubr.msk.f32.gmra.mrb[56].mxu0 %vm4939_vm7, %v20621_v10  ;;  %v11879_v10 = vld [vmem:[#allocation3 + $0x21] sm:$0xff] }
 0x667   : > { %16479 = vmatprep.mubr.msk.f32.mxu0 %vm4939_vm7, %v11518_v7  ;;  %v22516_v7 = vld [vmem:[#allocation5_spill] sm:$0xff] }
 0x668   : > { %v12301_v16 = vmul.f32 %v22516_v7, %v20659_v15  ;;  %v22522_v15 = vld [vmem:[#allocation8_spill] sm:$0xff] }
 0x66a   : > { %16480 = vmatmul.mubr.msk.f32.gmra.mrb[58].mxu0 %vm4939_vm7, %v22508_v61 }
 0x66b   : > { %16482 = vmatprep.mubr.msk.f32.mxu0 %vm4939_vm7, %v11520_v28  ;;  %v22518_v28 = vld [vmem:[#allocation6_spill] sm:$0xff] }
 0x66c   : > { %v12303_v61 = vmul.f32 %v22518_v28, %v20668_v46  ;;  %v22524_v46 = vld [vmem:[#allocation156_spill] sm:$0xff] }
 0x66e   : > { %16483 = vmatmul.mubr.msk.f32.gmra.mrb[60].mxu0 %vm4939_vm7, %v22510_v20  ;;  %v12307_v20 = vmul.f32 %v22522_v15, %v20686_v23  ;;  %v22530_v23 = vld [vmem:[#allocation160_spill] sm:$0xff] }
 0x66f   : > { %16485 = vmatprep.mubr.msk.f32.mxu0 %vm4939_vm7, %v11522_v44  ;;  %v22521_v44 = vld [vmem:[#allocation155_spill] sm:$0xff] }
 0x672   : > { %16486 = vmatmul.mubr.msk.f32.gmra.mrb[62].mxu0 %vm4939_vm7, %v11491_v31  ;;  %v22523_v31 = vld [vmem:[#allocation157_spill] sm:$0xff] }
 0x673   : > { %16490 = vmatprep.mubr.msk.f32.mxu0 %vm4939_vm7, %v11879_v10  ;;  %v22525_v10 = vld [vmem:[#allocation9_spill] sm:$0xff] }
 0x676   : > { %16491 = vmatmul.mubr.msk.f32.vlgmr.msra.gmra.mrb[32].mxu0 %vm4939_vm7, %v11880_v4  ;;  %v12309_v4 = vmul.f32 %v22525_v10, %v22524_v46 }
 0x677   : > { %16539 = vmatpush3.msra.mxu0 %v14308_v45  ;;  %16493 = vmatprep.mubr.msk.f32.mxu0 %vm4939_vm7, %v11881_v48  ;;  %v11903_v45 = vld [vmem:[#allocation3 + $0xe1] sm:$0xff] }
 0x678   : > { %v22526_v48 = vld [vmem:[#allocation159_spill] sm:$0xff] }
 0x67a   : > { %16494 = vmatmul.mubr.msk.f32.gmra.mrb[34].mxu0 %vm4939_vm7, %v11882_v6  ;;  %v22528_v6 = vld [vmem:[#allocation10_spill] sm:$0xff] }
 0x67b   : > { %16496 = vmatprep.mubr.msk.f32.mxu0 %vm4939_vm7, %v11883_v2  ;;  %v12311_v2 = vmul.f32 %v22528_v6, %v22527_v63 }
 0x67e   : > { %16497 = vmatmul.mubr.msk.f32.gmra.mrb[36].mxu0 %vm4939_vm7, %v11884_v22  ;;  %v22529_v22 = vld [vmem:[#allocation161_spill] sm:$0xff] }
 0x67f   : > { %16499 = vmatprep.mubr.msk.f32.mxu0 %vm4939_vm7, %v11885_v38  ;;  %v22531_v38 = vld [vmem:[#allocation12_spill] sm:$0xff] }
 0x682   : > { %16500 = vmatmul.mubr.msk.f32.gmra.mrb[38].mxu0 %vm4939_vm7, %v11886_v52  ;;  %v12313_v52 = vmul.f32 %v22531_v38, %v22530_v23  ;;  %v21261_v23 = vpop.permute.xlu1 %12982 }
 0x683   : > { %16502 = vmatprep.mubr.msk.f32.mxu0 %vm4939_vm7, %v11887_v8  ;;  %v22532_v8 = vld [vmem:[#allocation163_spill] sm:$0xff] }
 0x686   : > { %16503 = vmatmul.mubr.msk.f32.gmra.mrb[40].mxu0 %vm4939_vm7, %v11888_v34  ;;  %v22533_v34 = vld [vmem:[#allocation162_spill] sm:$0xff] }
 0x687   : > { %16505 = vmatprep.mubr.msk.f32.mxu0 %vm4939_vm7, %v11889_v54  ;;  %v22534_v54 = vld [vmem:[#allocation16_spill] sm:$0xff] }
 0x68a   : > { %16506 = vmatmul.mubr.msk.f32.gmra.mrb[42].mxu0 %vm4939_vm7, %v11890_v27  ;;  %v12315_v27 = vmul.f32 %v22534_v54, %v22533_v34 }
 0x68b   : > { %16508 = vmatprep.mubr.msk.f32.mxu0 %vm4939_vm7, %v11891_v39  ;;  %v22535_v39 = vld [vmem:[#allocation21_spill] sm:$0xff] }
 0x68e   : > { %16509 = vmatmul.mubr.msk.f32.gmra.mrb[44].mxu0 %vm4939_vm7, %v11892_v55  ;;  %v12317_v55 = vmul.f32 %v22535_v39, %v22496_v47 }
 0x68f   : > { %16511 = vmatprep.mubr.msk.f32.mxu0 %vm4939_vm7, %v11893_v13  ;;  %v22536_v13 = vld [vmem:[#allocation28_spill] sm:$0xff] }
 0x692   : > { %16512 = vmatmul.mubr.msk.f32.gmra.mrb[46].mxu0 %vm4939_vm7, %v11894_v24  ;;  %v12319_v24 = vmul.f32 %v22536_v13, %v22499_v42  ;;  %v12297_v42 = vld [vmem:[#allocation3 + $0x11a] sm:$0xff]  ;;  %v21271_v13 = vpop.permute.xlu1 %12986 }
 0x693   : > { %16514 = vmatprep.mubr.msk.f32.mxu0 %vm4939_vm7, %v11895_v60  ;;  %v22537_v60 = vld [vmem:[#allocation169_spill] sm:$0xff] }
 0x696   : > { %16515 = vmatmul.mubr.msk.f32.gmra.mrb[48].mxu0 %vm4939_vm7, %v11896_v58  ;;  %v22538_v58 = vld [vmem:[#allocation33_spill] sm:$0xff] }
 0x697   : > { %16517 = vmatprep.mubr.msk.f32.mxu0 %vm4939_vm7, %v11897_v59  ;;  %v12321_v59 = vmul.f32 %v22538_v58, %v22502_v50  ;;  %v22540_v50 = vld [vmem:[#allocation51_spill] sm:$0xff] }
 0x69a   : > { %16518 = vmatmul.mubr.msk.f32.gmra.mrb[50].mxu0 %vm4939_vm7, %v11898_v32  ;;  %v12296_v32 = vld [vmem:[#allocation3 + $0x112] sm:$0xff] }
 0x69b   : > { %16520 = vmatprep.mubr.msk.f32.mxu0 %vm4939_vm7, %v11899_v37 }
 0x69e   : > { %16521 = vmatmul.mubr.msk.f32.gmra.mrb[52].mxu0 %vm4939_vm7, %v11900_v11 }
 0x69f   : > { %16523 = vmatprep.mubr.msk.f32.mxu0 %vm4939_vm7, %v11901_v3 }
 0x6a2   : > { %16524 = vmatmul.mubr.msk.f32.gmra.mrb[54].mxu0 %vm4939_vm7, %v11902_v41 }
 0x6a3   : > { %16526 = vmatprep.mubr.msk.f32.mxu0 %vm4939_vm7, %v11903_v45 }
 0x6a6   : > { %16527 = vmatmul.mubr.msk.f32.gmra.mrb[56].mxu0 %vm4939_vm7, %v11904_v14 }
 0x6a7   : > { %16529 = vmatprep.mubr.msk.f32.mxu0 %vm4939_vm7, %v11905_v26 }
 0x6aa   : > { %16530 = vmatmul.mubr.msk.f32.gmra.mrb[58].mxu0 %vm4939_vm7, %v11906_v57 }
 0x6ab   : > { %16532 = vmatprep.mubr.msk.f32.mxu0 %vm4939_vm7, %v22511_v17 }
 0x6ae   : > { %16533 = vmatmul.mubr.msk.f32.gmra.mrb[60].mxu0 %vm4939_vm7, %v22512_v5 }
 0x6af   : > { %16535 = vmatprep.mubr.msk.f32.mxu0 %vm4939_vm7, %v11909_v9 }
 0x6b2   : > { %16536 = vmatmul.mubr.msk.f32.gmra.mrb[62].mxu0 %vm4939_vm7, %v11910_v49 }
 0x6b3   : > { %16540 = vmatprep.mubr.msk.f32.mxu0 %vm4939_vm7, %v22476_v0  ;;  %v22519_v0 = vld [vmem:[#allocation154_spill] sm:$0xff] }
 0x6b6   : > { %16541 = vmatmul.mubr.msk.f32.vlgmr.msra.gmra.mrb[32].mxu0 %vm4939_vm7, %v12299_v19 }
 0x6b7   : > { %16543 = vmatprep.mubr.msk.f32.mxu0 %vm4939_vm7, %v22515_v43 }
 0x6ba   : > { %16544 = vmatmul.mubr.msk.f32.gmra.mrb[34].mxu0 %vm4939_vm7, %v12301_v16 }
 0x6bb   : > { %16546 = vmatprep.mubr.msk.f32.mxu0 %vm4939_vm7, %v22517_v51 }
 0x6be   : > { %16547 = vmatmul.mubr.msk.f32.gmra.mrb[36].mxu0 %vm4939_vm7, %v12303_v61 }
 0x6bf   : > { %16549 = vmatprep.mubr.msk.f32.mxu0 %vm4939_vm7, %v22519_v0 }
 0x6c2   : > { %16550 = vmatmul.mubr.msk.f32.gmra.mrb[38].mxu0 %vm4939_vm7, %v12305_v33 }
 0x6c3   : > { %16552 = vmatprep.mubr.msk.f32.mxu0 %vm4939_vm7, %v22521_v44 }
 0x6c6   : > { %16553 = vmatmul.mubr.msk.f32.gmra.mrb[40].mxu0 %vm4939_vm7, %v12307_v20 }
 0x6c7   : > { %16555 = vmatprep.mubr.msk.f32.mxu0 %vm4939_vm7, %v22523_v31 }
 0x6ca   : > { %16556 = vmatmul.mubr.msk.f32.gmra.mrb[42].mxu0 %vm4939_vm7, %v12309_v4 }
 0x6cb   : > { %16558 = vmatprep.mubr.msk.f32.mxu0 %vm4939_vm7, %v22526_v48 }
 0x6ce   : > { %16559 = vmatmul.mubr.msk.f32.gmra.mrb[44].mxu0 %vm4939_vm7, %v12311_v2 }
 0x6cf   : > { %16561 = vmatprep.mubr.msk.f32.mxu0 %vm4939_vm7, %v22529_v22 }
 0x6d2   : > { %16562 = vmatmul.mubr.msk.f32.gmra.mrb[46].mxu0 %vm4939_vm7, %v12313_v52 }
 0x6d3   : > { %16564 = vmatprep.mubr.msk.f32.mxu0 %vm4939_vm7, %v22532_v8  ;;  %v21264_v8 = vpop.permute.xlu0 %12980 }
 0x6d6   : > { %16565 = vmatmul.mubr.msk.f32.gmra.mrb[48].mxu0 %vm4939_vm7, %v12315_v27 }
 0x6d7   : > { %16567 = vmatprep.mubr.msk.f32.mxu0 %vm4939_vm7, %v22495_v56  ;;  %v22539_v56 = vld [vmem:[#allocation39_spill] sm:$0xff] }
 0x6d8   : > { %v12323_v47 = vmul.f32 %v22539_v56, %v20758_v21  ;;  %v12329_v21 = vmul.f32 %v22438_v35, %v12297_v42 }
 0x6da   : > { %16568 = vmatmul.mubr.msk.f32.gmra.mrb[50].mxu0 %vm4939_vm7, %v12317_v55 }
 0x6db   : > { %16570 = vmatprep.mubr.msk.f32.mxu0 %vm4939_vm7, %v22498_v12  ;;  %v12325_v12 = vmul.f32 %v22504_v1, %v20767_v18  ;;  %v21219_v18 = vld [vmem:[%s21583_s7] ss:$0 sm:$0xff] }
 0x6de   : > { %16571 = vmatmul.mubr.msk.f32.gmra.mrb[52].mxu0 %vm4939_vm7, %v12319_v24  ;;  %v21274_v24 = vpop.permute.xlu0 %12984 }
 0x6df   : > { %16573 = vmatprep.mubr.msk.f32.mxu0 %vm4939_vm7, %v22537_v60 }
 0x6e2   : > { %16574 = vmatmul.mubr.msk.f32.gmra.mrb[54].mxu0 %vm4939_vm7, %v12321_v59 }
 0x6e3   : > { %16576 = vmatprep.mubr.msk.f32.mxu0 %vm4939_vm7, %v20761_v40  ;;  %v12327_v40 = vmul.f32 %v22540_v50, %v21013_v30 }
 0x6e6   : > { %16577 = vmatmul.mubr.msk.f32.gmra.mrb[56].mxu0 %vm4939_vm7, %v12323_v47 }
 0x6e7   : > { %16579 = vmatprep.mubr.msk.f32.mxu0 %vm4939_vm7, %v20770_v36 }
 0x6ea   : > { %16580 = vmatmul.mubr.msk.f32.gmra.mrb[58].mxu0 %vm4939_vm7, %v12325_v12  ;;  %v21281_v12 = vpop.permute.xlu1 %12990 }
 0x6eb   : > { %16582 = vmatprep.mubr.msk.f32.mxu0 %vm4939_vm7, %v21016_v62 }
 0x6ee   : > { %16583 = vmatmul.mubr.msk.f32.gmra.mrb[60].mxu0 %vm4939_vm7, %v12327_v40  ;;  %v21284_v40 = vpop.permute.xlu0 %12988 }
 0x6ef   : > { %16585 = vmatprep.mubr.msk.f32.mxu0 %vm4939_vm7, %v12296_v32 }
 0x6f2   : > { %16586 = vmatmul.mubr.msk.f32.gmra.mrb[62].mxu0 %vm4939_vm7, %v12329_v21 }
 0x789   : > { %v16542_v36 = vpop.f32.mrb[32].mxu0 }
 0x78a   : > { %v12693_v62 = vadd.f32 %v16542_v36, %v21219_v18  ;;  %v12494_v1 = vpop.f32.mrb[33].mxu0 }
 0x78b   : > { %v12692_v30 = vadd.f32 %v21219_v18, %v12494_v1 }
 0x78c   : > { %12758 = vrot.lane.b32.xlu1 %v12693_v62, %s17574_s26 }
 0x78d   : > { %12756 = vrot.lane.b32.xlu0 %v12692_v30, %s17574_s26  ;;  %v16545_v35 = vpop.f32.mrb[34].mxu0  ;;  %v21291_v30 = vpop.permute.xlu1 %12994 }
 0x78e   : > { %v12695_v37 = vadd.f32 %v16545_v35, %v21219_v18  ;;  %v12504_v11 = vpop.f32.mrb[35].mxu0  ;;  %v21294_v35 = vpop.permute.xlu0 %12992 }
 0x78f   : > { %v12694_v3 = vadd.f32 %v21219_v18, %v12504_v11 }
 0x790   : > { %12762 = vrot.lane.b32.xlu1 %v12695_v37, %s17574_s26 }
 0x791   : > { %12760 = vrot.lane.b32.xlu0 %v12694_v3, %s17574_s26  ;;  %v16548_v41 = vpop.f32.mrb[36].mxu0 }
 0x792   : > { %v12697_v45 = vadd.f32 %v16548_v41, %v21219_v18  ;;  %v12514_v14 = vpop.f32.mrb[37].mxu0 }
 0x793   : > { %v12696_v26 = vadd.f32 %v21219_v18, %v12514_v14  ;;  %v21303_v14 = vpop.permute.xlu0 %12996 }
 0x794   : > { %12766 = vrot.lane.b32.xlu1 %v12697_v45, %s17574_s26  ;;  %v21301_v45 = vpop.permute.xlu1 %12998 }
 0x795   : > { %12764 = vrot.lane.b32.xlu0 %v12696_v26, %s17574_s26  ;;  %v16551_v57 = vpop.f32.mrb[38].mxu0  ;;  %v22541_v26 = vld [vmem:[#allocation112_spill] sm:$0xff] }
 0x796   : > { %v12699_v17 = vadd.f32 %v16551_v57, %v21219_v18  ;;  %v12524_v9 = vpop.f32.mrb[39].mxu0  ;;  %v22542_v57 = vld [vmem:[#allocation111_spill] sm:$0xff] }
 0x797   : > { %v12698_v5 = vadd.f32 %v21219_v18, %v12524_v9  ;;  %v22543_v9 = vld [vmem:[#allocation128_spill] sm:$0xff] }
 0x798   : > { %12770 = vrot.lane.b32.xlu1 %v12699_v17, %s17574_s26  ;;  %v21309_v17 = vpop.permute.xlu1 %13002 }
 0x799   : > { %12768 = vrot.lane.b32.xlu0 %v12698_v5, %s17574_s26  ;;  %v16554_v49 = vpop.f32.mrb[40].mxu0  ;;  %v22544_v5 = vld [vmem:[#allocation125_spill] sm:$0xff] }
 0x79a   : > { %v12701_v25 = vadd.f32 %v16554_v49, %v21219_v18  ;;  %v12534_v29 = vpop.f32.mrb[41].mxu0  ;;  %v22545_v49 = vld [vmem:[#allocation114_spill] sm:$0xff] }
 0x79b   : > { %v12700_v19 = vadd.f32 %v21219_v18, %v12534_v29 }
 0x79c   : > { %12774 = vrot.lane.b32.xlu1 %v12701_v25, %s17574_s26  ;;  %v22546_v25 = vld [vmem:[#allocation113_spill] sm:$0xff]  ;;  %v21321_v29 = vpop.permute.xlu1 %13006 }
 0x79d   : > { %12772 = vrot.lane.b32.xlu0 %v12700_v19, %s17574_s26  ;;  %v16557_v43 = vpop.f32.mrb[42].mxu0 }
 0x79e   : > { %v12703_v7 = vadd.f32 %v16557_v43, %v21219_v18  ;;  %v12544_v16 = vpop.f32.mrb[43].mxu0 }
 0x79f   : > { %v12702_v51 = vadd.f32 %v21219_v18, %v12544_v16 }
 0x7a0   : > { %12778 = vrot.lane.b32.xlu1 %v12703_v7, %s17574_s26  ;;  %v21325_v43 = vpop.permute.xlu1 %13010 }
 0x7a1   : > { %12776 = vrot.lane.b32.xlu0 %v12702_v51, %s17574_s26  ;;  %v16560_v28 = vpop.f32.mrb[44].mxu0 }
 0x7a2   : > { %v12705_v61 = vadd.f32 %v16560_v28, %v21219_v18  ;;  %v12554_v0 = vpop.f32.mrb[45].mxu0 }
 0x7a3   : > { %v12704_v53 = vadd.f32 %v21219_v18, %v12554_v0 }
 0x7a4   : > { %12782 = vrot.lane.b32.xlu1 %v12705_v61, %s17574_s26  ;;  %v21329_v16 = vpop.permute.xlu1 %13014 }
 0x7a5   : > { %12780 = vrot.lane.b32.xlu0 %v12704_v53, %s17574_s26  ;;  %v16563_v33 = vpop.f32.mrb[46].mxu0 }
 0x7a6   : > { %v12707_v44 = vadd.f32 %v16563_v33, %v21219_v18  ;;  %v12564_v15 = vpop.f32.mrb[47].mxu0 }
 0x7a7   : > { %v12706_v20 = vadd.f32 %v21219_v18, %v12564_v15 }
 0x7a8   : > { %12786 = vrot.lane.b32.xlu1 %v12707_v44, %s17574_s26  ;;  %v21333_v28 = vpop.permute.xlu1 %13018 }
 0x7a9   : > { %12784 = vrot.lane.b32.xlu0 %v12706_v20, %s17574_s26  ;;  %v16566_v31 = vpop.f32.mrb[48].mxu0 }
 0x7aa   : > { %v12709_v46 = vadd.f32 %v16566_v31, %v21219_v18  ;;  %v12574_v10 = vpop.f32.mrb[49].mxu0 }
 0x7ab   : > { %v12708_v4 = vadd.f32 %v21219_v18, %v12574_v10 }
 0x7ac   : > { %12790 = vrot.lane.b32.xlu1 %v12709_v46, %s17574_s26  ;;  %v21337_v0 = vpop.permute.xlu1 %13022  ;;  %v22547_v46 = vld [vmem:[#allocation58_spill] sm:$0xff] }
 0x7ad   : > { %12788 = vrot.lane.b32.xlu0 %v12708_v4, %s17574_s26  ;;  %v16569_v48 = vpop.f32.mrb[50].mxu0 }
 0x7ae   : > { %v12711_v63 = vadd.f32 %v16569_v48, %v21219_v18  ;;  %v12584_v6 = vpop.f32.mrb[51].mxu0  ;;  %v22548_v48 = vld [vmem:[#allocation11_spill] sm:$0xff] }
 0x7af   : > { %v12710_v2 = vadd.f32 %v21219_v18, %v12584_v6 }
 0x7b0   : > { %12794 = vrot.lane.b32.xlu1 %v12711_v63, %s17574_s26  ;;  %v21341_v33 = vpop.permute.xlu1 %13026 }
 0x7b1   : > { %12792 = vrot.lane.b32.xlu0 %v12710_v2, %s17574_s26  ;;  %v16572_v22 = vpop.f32.mrb[52].mxu0  ;;  %v22549_v2 = vld [vmem:[#allocation14_spill] sm:$0xff] }
 0x7b2   : > { %v12713_v38 = vadd.f32 %v16572_v22, %v21219_v18  ;;  %v12594_v52 = vpop.f32.mrb[53].mxu0 }
 0x7b3   : > { %v12712_v34 = vadd.f32 %v21219_v18, %v12594_v52  ;;  %v22550_v52 = vld [vmem:[#allocation59_spill] sm:$0xff] }
 0x7b4   : > { %12798 = vrot.lane.b32.xlu1 %v12713_v38, %s17574_s26  ;;  %v21345_v15 = vpop.permute.xlu1 %13030 }
 0x7b5   : > { %12796 = vrot.lane.b32.xlu0 %v12712_v34, %s17574_s26  ;;  %v16575_v54 = vpop.f32.mrb[54].mxu0 }
 0x7b6   : > { %v12715_v27 = vadd.f32 %v16575_v54, %v21219_v18  ;;  %v12604_v39 = vpop.f32.mrb[55].mxu0 }
 0x7b7   : > { %v12714_v55 = vadd.f32 %v21219_v18, %v12604_v39 }
 0x7b8   : > { %12802 = vrot.lane.b32.xlu1 %v12715_v27, %s17574_s26  ;;  %v22551_v27 = vld [vmem:[#allocation17_spill] sm:$0xff] }
 0x7b9   : > { %12800 = vrot.lane.b32.xlu0 %v12714_v55, %s17574_s26  ;;  %v16578_v60 = vpop.f32.mrb[56].mxu0 }
 0x7ba   : > { %v12717_v58 = vadd.f32 %v16578_v60, %v21219_v18  ;;  %v12614_v59 = vpop.f32.mrb[57].mxu0  ;;  %v22552_v60 = vld [vmem:[#allocation24_spill] sm:$0xff] }
 0x7bb   : > { %v12716_v56 = vadd.f32 %v21219_v18, %v12614_v59 }
 0x7bc   : > { %12806 = vrot.lane.b32.xlu1 %v12717_v58, %s17574_s26 }
 0x7bd   : > { %12804 = vrot.lane.b32.xlu0 %v12716_v56, %s17574_s26  ;;  %v16581_v47 = vpop.f32.mrb[58].mxu0 }
 0x7be   : > { %v12719_v42 = vadd.f32 %v16581_v47, %v21219_v18  ;;  %v12624_v50 = vpop.f32.mrb[59].mxu0  ;;  %v22553_v47 = vld [vmem:[#allocation60_spill] sm:$0xff] }
 0x7bf   : > { %v12718_v32 = vadd.f32 %v21219_v18, %v12624_v50 }
 0x7c0   : > { %12810 = vrot.lane.b32.xlu1 %v12719_v42, %s17574_s26 }
 0x7c1   : > { %12808 = vrot.lane.b32.xlu0 %v12718_v32, %s17574_s26  ;;  %v16584_v21 = vpop.f32.mrb[60].mxu0 }
 0x7c2   : > { %v12721_v36 = vadd.f32 %v16584_v21, %v21219_v18  ;;  %v12634_v62 = vpop.f32.mrb[61].mxu0  ;;  %v22554_v21 = vld [vmem:[#allocation30_spill] sm:$0xff] }
 0x7c3   : > { %v12720_v1 = vadd.f32 %v21219_v18, %v12634_v62 }
 0x7c4   : > { %12814 = vrot.lane.b32.xlu1 %v12721_v36, %s17574_s26 }
 0x7c5   : > { %12812 = vrot.lane.b32.xlu0 %v12720_v1, %s17574_s26  ;;  %v16587_v37 = vpop.f32.mrb[62].mxu0 }
 0x7c6   : > { %v12723_v11 = vadd.f32 %v16587_v37, %v21219_v18  ;;  %v12644_v3 = vpop.f32.mrb[63].mxu0 }
 0x7c7   : > { %v12722_v41 = vadd.f32 %v21219_v18, %v12644_v3  ;;  %v21313_v18 = vpop.permute.xlu0 %13000  ;;  %v22555_v3 = vld [vmem:[#allocation35_spill] sm:$0xff] }
 0x7c8   : > { %12818 = vrot.lane.b32.xlu1 %v12723_v11, %s17574_s26 }
 0x7c9   : > { %12816 = vrot.lane.b32.xlu0 %v12722_v41, %s17574_s26 }
 0x7cb   : > { %v21323_v19 = vpop.permute.xlu0 %13004 }
 0x7cc   : > { %13034 = vrot.lane.b32.xlu1 %v22541_v26, %s17574_s26 }
 0x7cd   : > { %13032 = vrot.lane.b32.xlu0 %v22542_v57, %s17574_s26 }
 0x7cf   : > { %v21327_v7 = vpop.permute.xlu0 %13008 }
 0x7d0   : > { %13038 = vrot.lane.b32.xlu1 %v22543_v9, %s17574_s26 }
 0x7d1   : > { %13036 = vrot.lane.b32.xlu0 %v22544_v5, %s17574_s26 }
 0x7d3   : > { %v21331_v51 = vpop.permute.xlu0 %13012 }
 0x7d4   : > { %13042 = vrot.lane.b32.xlu1 %v22545_v49, %s17574_s26 }
 0x7d5   : > { %13040 = vrot.lane.b32.xlu0 %v22546_v25, %s17574_s26 }
 0x7d7   : > { %v21335_v61 = vpop.permute.xlu0 %13016 }
 0x7db   : > { %v21339_v53 = vpop.permute.xlu0 %13020 }
 0x7df   : > { %v21343_v44 = vpop.permute.xlu0 %13024 }
 0x7e3   : > { %v21347_v20 = vpop.permute.xlu0 %13028 }
 0x7fe   : > { %v12759_v31 = vpop.permute.xlu1 %12758 }
 0x7ff   : > { %v12853_v10 = vadd.f32 %v12759_v31, %v22547_v46  ;;  %v12757_v4 = vpop.permute.xlu0 %12756 }
 0x800   : > { %v12852_v63 = vadd.f32 %v12757_v4, %v22548_v48 }
 0x801   : > { %17498 = vtanh.f32 %v12853_v10  ;;  %v22556_v10 = vld [vmem:[#allocation61_spill] sm:$0xff] }
 0x802   : > { %17500 = vtanh.f32 %v12852_v63  ;;  %v12763_v6 = vpop.permute.xlu1 %12762 }
 0x803   : > { %v12855_v22 = vadd.f32 %v12763_v6, %v22549_v2  ;;  %v12761_v38 = vpop.permute.xlu0 %12760  ;;  %v22557_v6 = vld [vmem:[#allocation42_spill] sm:$0xff] }
 0x804   : > { %v12854_v34 = vadd.f32 %v12761_v38, %v22550_v52  ;;  %v22558_v52 = vld [vmem:[#allocation48_spill] sm:$0xff] }
 0x805   : > { %17502 = vtanh.f32 %v12855_v22 }
 0x806   : > { %17504 = vtanh.f32 %v12854_v34  ;;  %v12767_v54 = vpop.permute.xlu1 %12766 }
 0x807   : > { %v12857_v39 = vadd.f32 %v12767_v54, %v22551_v27  ;;  %v12765_v55 = vpop.permute.xlu0 %12764 }
 0x808   : > { %v12856_v58 = vadd.f32 %v12765_v55, %v22552_v60 }
 0x809   : > { %17506 = vtanh.f32 %v12857_v39  ;;  %v22559_v39 = vld [vmem:[#allocation62_spill] sm:$0xff] }
 0x80a   : > { %17508 = vtanh.f32 %v12856_v58  ;;  %v12771_v59 = vpop.permute.xlu1 %12770 }
 0x80b   : > { %v17499_v56 = vpop.eup %17498  ;;  %v12859_v42 = vadd.f32 %v12771_v59, %v22553_v47  ;;  %v12769_v50 = vpop.permute.xlu0 %12768  ;;  %v22560_v59 = vld [vmem:[#allocation96_spill] sm:$0xff] }
 0x80c   : > { %v17501_v32 = vpop.eup %17500  ;;  %v12858_v36 = vadd.f32 %v12769_v50, %v22554_v21  ;;  %v13077_v62 = vmul.f32 %v17499_v56, %v21261_v23  ;;  %v22561_v50 = vld [vmem:[#allocation97_spill] sm:$0xff] }
 0x80d   : > { %17510 = vtanh.f32 %v12859_v42  ;;  %v13076_v1 = vmul.f32 %v17501_v32, %v21264_v8 }
 0x80e   : > { %17512 = vtanh.f32 %v12858_v36  ;;  %v12775_v37 = vpop.permute.xlu1 %12774  ;;  %13142 = vrot.lane.b32.xlu1 %v13077_v62, %s17575_s21  ;;  %v22562_v62 = vld [vmem:[#allocation99_spill] sm:$0xff] }
 0x80f   : > { %v17503_v11 = vpop.eup %17502  ;;  %v12861_v41 = vadd.f32 %v12775_v37, %v22555_v3  ;;  %13140 = vrot.lane.b32.xlu0 %v13076_v1, %s17575_s21  ;;  %v12773_v31 = vpop.permute.xlu0 %12772  ;;  %v22563_v3 = vld [vmem:[#allocation50_spill] sm:$0xff] }
 0x810   : > { %v17505_v46 = vpop.eup %17504  ;;  %v12860_v4 = vadd.f32 %v12773_v31, %v22556_v10  ;;  %v13079_v48 = vmul.f32 %v17503_v11, %v21271_v13  ;;  %v22564_v10 = vld [vmem:[#allocation54_spill] sm:$0xff] }
 0x811   : > { %17514 = vtanh.f32 %v12861_v41  ;;  %v13078_v23 = vmul.f32 %v17505_v46, %v21274_v24 }
 0x812   : > { %17516 = vtanh.f32 %v12860_v4  ;;  %v12779_v8 = vpop.permute.xlu1 %12778  ;;  %13146 = vrot.lane.b32.xlu1 %v13079_v48, %s17575_s21 }
 0x813   : > { %v17507_v63 = vpop.eup %17506  ;;  %v12863_v2 = vadd.f32 %v12779_v8, %v22557_v6  ;;  %13144 = vrot.lane.b32.xlu0 %v13078_v23, %s17575_s21  ;;  %v12777_v22 = vpop.permute.xlu0 %12776  ;;  %v22565_v8 = vld [vmem:[#allocation69_spill] sm:$0xff] }
 0x814   : > { %v17509_v38 = vpop.eup %17508  ;;  %v12862_v34 = vadd.f32 %v12777_v22, %v22558_v52  ;;  %v13081_v54 = vmul.f32 %v17507_v63, %v21281_v12  ;;  %v22566_v22 = vld [vmem:[#allocation70_spill] sm:$0xff] }
 0x815   : > { %17518 = vtanh.f32 %v12863_v2  ;;  %v13080_v13 = vmul.f32 %v17509_v38, %v21284_v40 }
 0x816   : > { %17520 = vtanh.f32 %v12862_v34  ;;  %v12783_v24 = vpop.permute.xlu1 %12782  ;;  %13150 = vrot.lane.b32.xlu1 %v13081_v54, %s17575_s21  ;;  %v22567_v54 = vld [vmem:[#allocation73_spill] sm:$0xff] }
 0x817   : > { %v17511_v27 = vpop.eup %17510  ;;  %v12865_v55 = vadd.f32 %v12783_v24, %v22559_v39  ;;  %13148 = vrot.lane.b32.xlu0 %v13080_v13, %s17575_s21  ;;  %v12781_v60 = vpop.permute.xlu0 %12780  ;;  %v22568_v39 = vld [vmem:[#allocation75_spill] sm:$0xff] }
 0x818   : > { %v17513_v58 = vpop.eup %17512  ;;  %v12864_v56 = vadd.f32 %v12781_v60, %v22560_v59  ;;  %v13083_v47 = vmul.f32 %v17511_v27, %v21291_v30  ;;  %v22569_v59 = vld [vmem:[#allocation78_spill] sm:$0xff] }
 0x819   : > { %17522 = vtanh.f32 %v12865_v55  ;;  %v13082_v12 = vmul.f32 %v17513_v58, %v21294_v35 }
 0x81a   : > { %17524 = vtanh.f32 %v12864_v56  ;;  %v12787_v40 = vpop.permute.xlu1 %12786  ;;  %13154 = vrot.lane.b32.xlu1 %v13083_v47, %s17575_s21 }
 0x81b   : > { %v17515_v42 = vpop.eup %17514  ;;  %v12867_v32 = vadd.f32 %v12787_v40, %v22561_v50  ;;  %13152 = vrot.lane.b32.xlu0 %v13082_v12, %s17575_s21  ;;  %v12785_v21 = vpop.permute.xlu0 %12784  ;;  %v22570_v40 = vld [vmem:[#allocation80_spill] sm:$0xff] }
 0x81c   : > { %v17517_v36 = vpop.eup %17516  ;;  %v12866_v1 = vadd.f32 %v12785_v21, %v22562_v62  ;;  %v13085_v37 = vmul.f32 %v17515_v42, %v21301_v45  ;;  %v22571_v21 = vld [vmem:[#allocation81_spill] sm:$0xff] }
 0x81d   : > { %17526 = vtanh.f32 %v12867_v32  ;;  %v13084_v30 = vmul.f32 %v17517_v36, %v21303_v14 }
 0x81e   : > { %17528 = vtanh.f32 %v12866_v1  ;;  %v12791_v35 = vpop.permute.xlu1 %12790  ;;  %13158 = vrot.lane.b32.xlu1 %v13085_v37, %s17575_s21  ;;  %v22572_v37 = vld [vmem:[#allocation84_spill] sm:$0xff] }
 0x81f   : > { %v17519_v11 = vpop.eup %17518  ;;  %v12869_v41 = vadd.f32 %v12791_v35, %v22563_v3  ;;  %13156 = vrot.lane.b32.xlu0 %v13084_v30, %s17575_s21  ;;  %v12789_v31 = vpop.permute.xlu0 %12788  ;;  %v22573_v3 = vld [vmem:[#allocation85_spill] sm:$0xff] }
 0x820   : > { %v17521_v46 = vpop.eup %17520  ;;  %v12868_v4 = vadd.f32 %v12789_v31, %v22564_v10  ;;  %v13087_v48 = vmul.f32 %v17519_v11, %v21309_v17  ;;  %v22574_v10 = vld [vmem:[#allocation88_spill] sm:$0xff] }
 0x821   : > { %17530 = vtanh.f32 %v12869_v41  ;;  %v13086_v45 = vmul.f32 %v17521_v46, %v21313_v18 }
 0x822   : > { %17532 = vtanh.f32 %v12868_v4  ;;  %v12795_v14 = vpop.permute.xlu1 %12794  ;;  %13162 = vrot.lane.b32.xlu1 %v13087_v48, %s17575_s21 }
 0x823   : > { %v17523_v23 = vpop.eup %17522  ;;  %v12871_v63 = vadd.f32 %v12795_v14, %v22565_v8  ;;  %13160 = vrot.lane.b32.xlu0 %v13086_v45, %s17575_s21  ;;  %v12793_v6 = vpop.permute.xlu0 %12792  ;;  %v22575_v14 = vld [vmem:[#allocation90_spill] sm:$0xff] }
 0x824   : > { %v17525_v2 = vpop.eup %17524  ;;  %v12870_v38 = vadd.f32 %v12793_v6, %v22566_v22  ;;  %v13089_v52 = vmul.f32 %v17523_v23, %v21321_v29  ;;  %v22576_v6 = vld [vmem:[#allocation92_spill] sm:$0xff] }
 0x825   : > { %17534 = vtanh.f32 %v12871_v63  ;;  %v13088_v17 = vmul.f32 %v17525_v2, %v21323_v19 }
 0x826   : > { %17536 = vtanh.f32 %v12870_v38  ;;  %v12799_v18 = vpop.permute.xlu1 %12798  ;;  %13166 = vrot.lane.b32.xlu1 %v13089_v52, %s17575_s21  ;;  %v22577_v52 = vld [vmem:[#allocation141_spill] sm:$0xff] }
 0x827   : > { %v17527_v34 = vpop.eup %17526  ;;  %v12873_v13 = vadd.f32 %v12799_v18, %v22567_v54  ;;  %13164 = vrot.lane.b32.xlu0 %v13088_v17, %s17575_s21  ;;  %v12797_v24 = vpop.permute.xlu0 %12796  ;;  %v22578_v54 = vld [vmem:[#allocation95_spill] sm:$0xff] }
 0x828   : > { %v17529_v27 = vpop.eup %17528  ;;  %v12872_v55 = vadd.f32 %v12797_v24, %v22568_v39  ;;  %v13091_v60 = vmul.f32 %v17527_v34, %v21325_v43 }
 0x829   : > { %17538 = vtanh.f32 %v12873_v13  ;;  %v13090_v29 = vmul.f32 %v17529_v27, %v21327_v7 }
 0x82a   : > { %17540 = vtanh.f32 %v12872_v55  ;;  %v12803_v19 = vpop.permute.xlu1 %12802  ;;  %13170 = vrot.lane.b32.xlu1 %v13091_v60, %s17575_s21 }
 0x82b   : > { %v17531_v58 = vpop.eup %17530  ;;  %v12875_v56 = vadd.f32 %v12803_v19, %v22569_v59  ;;  %13168 = vrot.lane.b32.xlu0 %v13090_v29, %s17575_s21  ;;  %v12801_v47 = vpop.permute.xlu0 %12800 }
 0x82c   : > { %v17533_v12 = vpop.eup %17532  ;;  %v12874_v42 = vadd.f32 %v12801_v47, %v22570_v40  ;;  %v13093_v50 = vmul.f32 %v17531_v58, %v21329_v16 }
 0x82d   : > { %17542 = vtanh.f32 %v12875_v56  ;;  %v13092_v43 = vmul.f32 %v17533_v12, %v21331_v51 }
 0x82e   : > { %17544 = vtanh.f32 %v12874_v42  ;;  %v12807_v7 = vpop.permute.xlu1 %12806  ;;  %13174 = vrot.lane.b32.xlu1 %v13093_v50, %s17575_s21 }
 0x82f   : > { %v17535_v32 = vpop.eup %17534  ;;  %v12877_v36 = vadd.f32 %v12807_v7, %v22571_v21  ;;  %13172 = vrot.lane.b32.xlu0 %v13092_v43, %s17575_s21  ;;  %v12805_v62 = vpop.permute.xlu0 %12804  ;;  %v22579_v7 = vld [vmem:[#allocation56_spill] sm:$0xff] }
 0x830   : > { %v17537_v1 = vpop.eup %17536  ;;  %v12876_v30 = vadd.f32 %v12805_v62, %v22572_v37  ;;  %v13095_v35 = vmul.f32 %v17535_v32, %v21333_v28  ;;  %v12917_v32 = vsub.f32 1.0, %v22579_v7  ;;  %v22580_v21 = vld [vmem:[#allocation100_spill] sm:$0xff]  ;;  %v22581_v62 = vld [vmem:[#allocation66_spill] sm:$0xff]  ;;  %v22582_v37 = vld [vmem:[#allocation71_spill] sm:$0xff] }
 0x831   : > { %17546 = vtanh.f32 %v12877_v36  ;;  %v13094_v16 = vmul.f32 %v17537_v1, %v21335_v61  ;;  %v12916_v36 = vsub.f32 1.0, %v22580_v21 }
 0x832   : > { %17548 = vtanh.f32 %v12876_v30  ;;  %v12811_v51 = vpop.permute.xlu1 %12810  ;;  %13178 = vrot.lane.b32.xlu1 %v13095_v35, %s17575_s21  ;;  %v12949_v1 = vmul.f32 %v12917_v32, %v22581_v62  ;;  %v12919_v30 = vsub.f32 1.0, %v22582_v37  ;;  %v22600_v32 = vld [vmem:[#allocation86_spill] sm:$0xff]  ;;  %v22601_v37 = vld [vmem:[#allocation36_spill] sm:$0xff] }
 0x833   : > { %v17539_v11 = vpop.eup %17538  ;;  %v12879_v41 = vadd.f32 %v12811_v51, %v22573_v3  ;;  %13176 = vrot.lane.b32.xlu0 %v13094_v16, %s17575_s21  ;;  %v12809_v31 = vpop.permute.xlu0 %12808  ;;  %v22583_v16 = vld [vmem:[#allocation65_spill] sm:$0xff]  ;;  %v12926_v21 = vsub.f32 1.0, %v22600_v32  ;;  %v22619_v32 = vld [vmem:[#allocation15_spill] sm:$0xff] }
 0x834   : > { %v17541_v46 = vpop.eup %17540  ;;  %v12878_v4 = vadd.f32 %v12809_v31, %v22574_v10  ;;  %v13097_v48 = vmul.f32 %v17539_v11, %v21337_v0  ;;  %v12948_v51 = vmul.f32 %v12916_v36, %v22583_v16  ;;  %v22584_v11 = vld [vmem:[#allocation57_spill] sm:$0xff]  ;;  %v22585_v10 = vld [vmem:[#allocation67_spill] sm:$0xff] }
 0x835   : > { %17550 = vtanh.f32 %v12879_v41  ;;  %v13096_v28 = vmul.f32 %v17541_v46, %v21339_v53  ;;  %v12918_v3 = vsub.f32 1.0, %v22584_v11  ;;  %v22603_v11 = vld [vmem:[#allocation34_spill] sm:$0xff] }
 0x836   : > { %17552 = vtanh.f32 %v12878_v4  ;;  %v12815_v61 = vpop.permute.xlu1 %12814  ;;  %13182 = vrot.lane.b32.xlu1 %v13097_v48, %s17575_s21  ;;  %v12951_v4 = vmul.f32 %v12919_v30, %v22585_v10  ;;  %v22586_v48 = vld [vmem:[#allocation74_spill] sm:$0xff] }
 0x837   : > { %v17543_v45 = vpop.eup %17542  ;;  %v12881_v23 = vadd.f32 %v12815_v61, %v22575_v14  ;;  %13180 = vrot.lane.b32.xlu0 %v13096_v28, %s17575_s21  ;;  %v12813_v8 = vpop.permute.xlu0 %12812  ;;  %v12921_v28 = vsub.f32 1.0, %v22586_v48  ;;  %v22605_v48 = vld [vmem:[#allocation41_spill] sm:$0xff] }
 0x838   : > { %v17545_v63 = vpop.eup %17544  ;;  %v12880_v2 = vadd.f32 %v12813_v8, %v22576_v6  ;;  %v13099_v22 = vmul.f32 %v17543_v45, %v21341_v33  ;;  %v22587_v45 = vld [vmem:[#allocation13_spill] sm:$0xff] }
 0x839   : > { %17554 = vtanh.f32 %v12881_v23  ;;  %v13098_v0 = vmul.f32 %v17545_v63, %v21343_v44  ;;  %v12950_v14 = vmul.f32 %v12918_v3, %v22587_v45  ;;  %v22588_v23 = vld [vmem:[#allocation72_spill] sm:$0xff]  ;;  %v12958_v3 = vmul.f32 %v12926_v21, %v22603_v11 }
 0x83a   : > { %17556 = vtanh.f32 %v12880_v2  ;;  %13186 = vrot.lane.b32.xlu1 %v13099_v22, %s17575_s21  ;;  %v12819_v53 = vpop.permute.xlu1 %12818  ;;  %v12920_v8 = vsub.f32 1.0, %v22588_v23  ;;  %v22589_v22 = vld [vmem:[#allocation20_spill] sm:$0xff] }
 0x83b   : > { %v17547_v38 = vpop.eup %17546  ;;  %v12883_v17 = vadd.f32 %v12819_v53, %v22577_v52  ;;  %13184 = vrot.lane.b32.xlu0 %v13098_v0, %s17575_s21  ;;  %v12817_v18 = vpop.permute.xlu0 %12816  ;;  %v12953_v0 = vmul.f32 %v12921_v28, %v22589_v22  ;;  %v22590_v53 = vld [vmem:[#allocation76_spill] sm:$0xff] }
 0x83c   : > { %v17549_v34 = vpop.eup %17548  ;;  %v12882_v13 = vadd.f32 %v12817_v18, %v22578_v54  ;;  %v13101_v24 = vmul.f32 %v17547_v38, %v21345_v15  ;;  %v12923_v38 = vsub.f32 1.0, %v22590_v53  ;;  %v22607_v23 = vld [vmem:[#allocation40_spill] sm:$0xff]  ;;  %v22609_v53 = vld [vmem:[#allocation47_spill] sm:$0xff] }
 0x83d   : > { %17558 = vtanh.f32 %v12883_v17  ;;  %v13100_v33 = vmul.f32 %v17549_v34, %v21347_v20  ;;  %v22591_v17 = vld [vmem:[#allocation18_spill] sm:$0xff]  ;;  %v22592_v34 = vld [vmem:[#allocation77_spill] sm:$0xff] }
 0x83e   : > { %17560 = vtanh.f32 %v12882_v13  ;;  %13190 = vrot.lane.b32.xlu1 %v13101_v24, %s17575_s21  ;;  %v13035_v44 = vpop.permute.xlu1 %13034  ;;  %v12952_v18 = vmul.f32 %v12920_v8, %v22591_v17  ;;  %v12922_v54 = vsub.f32 1.0, %v22592_v34  ;;  %v22611_v34 = vld [vmem:[#allocation46_spill] sm:$0xff] }
 0x83f   : > { %v17551_v27 = vpop.eup %17550  ;;  %13188 = vrot.lane.b32.xlu0 %v13100_v33, %s17575_s21  ;;  %v13033_v39 = vpop.permute.xlu0 %13032 }
 0x840   : > { %v17553_v55 = vpop.eup %17552  ;;  %v13103_v60 = vmul.f32 %v17551_v27, %v13035_v44  ;;  %v22593_v44 = vld [vmem:[#allocation25_spill] sm:$0xff] }
 0x841   : > { %v13102_v29 = vmul.f32 %v17553_v55, %v13033_v39  ;;  %v12955_v27 = vmul.f32 %v12923_v38, %v22593_v44  ;;  %v22594_v39 = vld [vmem:[#allocation79_spill] sm:$0xff] }
 0x842   : > { %13194 = vrot.lane.b32.xlu1 %v13103_v60, %s17575_s21  ;;  %v13039_v19 = vpop.permute.xlu1 %13038  ;;  %v12925_v55 = vsub.f32 1.0, %v22594_v39  ;;  %v22613_v39 = vld [vmem:[#allocation53_spill] sm:$0xff] }
 0x843   : > { %v17555_v58 = vpop.eup %17554  ;;  %13192 = vrot.lane.b32.xlu0 %v13102_v29, %s17575_s21  ;;  %v13037_v15 = vpop.permute.xlu0 %13036  ;;  %v22595_v29 = vld [vmem:[#allocation23_spill] sm:$0xff] }
 0x844   : > { %v17557_v59 = vpop.eup %17556  ;;  %v13105_v20 = vmul.f32 %v17555_v58, %v13039_v19  ;;  %v12954_v19 = vmul.f32 %v12922_v54, %v22595_v29  ;;  %v22596_v58 = vld [vmem:[#allocation82_spill] sm:$0xff] }
 0x845   : > { %v13104_v56 = vmul.f32 %v17557_v59, %v13037_v15  ;;  %v12924_v15 = vsub.f32 1.0, %v22596_v58  ;;  %v22615_v58 = vld [vmem:[#allocation52_spill] sm:$0xff] }
 0x846   : > { %13198 = vrot.lane.b32.xlu1 %v13105_v20, %s17575_s21  ;;  %v13043_v47 = vpop.permute.xlu1 %13042 }
 0x847   : > { %v17559_v12 = vpop.eup %17558  ;;  %13196 = vrot.lane.b32.xlu0 %v13104_v56, %s17575_s21  ;;  %v13041_v40 = vpop.permute.xlu0 %13040 }
 0x848   : > { %v17561_v42 = vpop.eup %17560  ;;  %v13107_v50 = vmul.f32 %v17559_v12, %v13043_v47  ;;  %v22597_v47 = vld [vmem:[#allocation31_spill] sm:$0xff] }
 0x849   : > { %v13106_v43 = vmul.f32 %v17561_v42, %v13041_v40  ;;  %v12957_v12 = vmul.f32 %v12925_v55, %v22597_v47  ;;  %v22598_v40 = vld [vmem:[#allocation83_spill] sm:$0xff] }
 0x84a   : > { %13202 = vrot.lane.b32.xlu1 %v13107_v50, %s17575_s21  ;;  %v12927_v42 = vsub.f32 1.0, %v22598_v40  ;;  %v22617_v40 = vld [vmem:[#allocation19_spill] sm:$0xff] }
 0x84b   : > { %13200 = vrot.lane.b32.xlu0 %v13106_v43, %s17575_s21  ;;  %v22599_v43 = vld [vmem:[#allocation29_spill] sm:$0xff] }
 0x84c   : > { %v12956_v7 = vmul.f32 %v12924_v15, %v22599_v43  ;;  %v12959_v30 = vmul.f32 %v12927_v42, %v22601_v37 }
 0x880   : > { %v13143_v35 = vpop.permute.xlu1 %13142 }
 0x881   : > { %v13237_v41 = vadd.f32 %v13143_v35, %v12949_v1  ;;  %v13141_v31 = vpop.permute.xlu0 %13140  ;;  %v22602_v35 = vld [vmem:[#allocation87_spill] sm:$0xff] }
 0x882   : > { %v13236_v46 = vadd.f32 %v13141_v31, %v12948_v51  ;;  %v12929_v16 = vsub.f32 1.0, %v22602_v35  ;;  %v22621_v35 = vld [vmem:[#allocation26_spill] sm:$0xff] }
 0x883   : > { %13269 = vst.msk [vmem:[%s21447_s24 + $0x8] sm:$0xff] %vm4939_vm7, %v13237_v41  ;;  %v22604_v41 = vld [vmem:[#allocation89_spill] sm:$0xff] }
 0x884   : > { %13268 = vst.msk [vmem:[%s21447_s24] sm:$0xff] %vm4939_vm7, %v13236_v46  ;;  %v13147_v61 = vpop.permute.xlu1 %13146  ;;  %v12928_v31 = vsub.f32 1.0, %v22604_v41  ;;  %v12961_v28 = vmul.f32 %v12929_v16, %v22605_v48  ;;  %v22623_v41 = vld [vmem:[#allocation22_spill] sm:$0xff] }
 0x885   : > { %v13239_v63 = vadd.f32 %v13147_v61, %v12951_v4  ;;  %v13145_v6 = vpop.permute.xlu0 %13144  ;;  %v22606_v61 = vld [vmem:[#allocation93_spill] sm:$0xff] }
 0x886   : > { %v13238_v2 = vadd.f32 %v13145_v6, %v12950_v14  ;;  %v12931_v45 = vsub.f32 1.0, %v22606_v61  ;;  %v12960_v8 = vmul.f32 %v12928_v31, %v22607_v23  ;;  %v22625_v61 = vld [vmem:[#allocation32_spill] sm:$0xff] }
 0x887   : > { %13271 = vst.msk [vmem:[%s21447_s24 + $0x18] sm:$0xff] %vm4939_vm7, %v13239_v63  ;;  %v22608_v63 = vld [vmem:[#allocation94_spill] sm:$0xff] }
 0x888   : > { %13270 = vst.msk [vmem:[%s21447_s24 + $0x10] sm:$0xff] %vm4939_vm7, %v13238_v2  ;;  %v13151_v52 = vpop.permute.xlu1 %13150  ;;  %v12930_v6 = vsub.f32 1.0, %v22608_v63  ;;  %v12963_v38 = vmul.f32 %v12931_v45, %v22609_v53  ;;  %v22627_v63 = vld [vmem:[#allocation27_spill] sm:$0xff] }
 0x889   : > { %v13241_v13 = vadd.f32 %v13151_v52, %v12953_v0  ;;  %v13149_v24 = vpop.permute.xlu0 %13148  ;;  %v22610_v52 = vld [vmem:[#allocation101_spill] sm:$0xff] }
 0x88a   : > { %v13240_v33 = vadd.f32 %v13149_v24, %v12952_v18  ;;  %v12933_v17 = vsub.f32 1.0, %v22610_v52  ;;  %v12962_v54 = vmul.f32 %v12930_v6, %v22611_v34  ;;  %v22629_v52 = vld [vmem:[#allocation68_spill] sm:$0xff] }
 0x88b   : > { %13273 = vst.msk [vmem:[%s21447_s24 + $0x28] sm:$0xff] %vm4939_vm7, %v13241_v13  ;;  %v22612_v13 = vld [vmem:[#allocation102_spill] sm:$0xff] }
 0x88c   : > { %13272 = vst.msk [vmem:[%s21447_s24 + $0x20] sm:$0xff] %vm4939_vm7, %v13240_v33  ;;  %v13155_v60 = vpop.permute.xlu1 %13154  ;;  %v12932_v24 = vsub.f32 1.0, %v22612_v13  ;;  %v12965_v55 = vmul.f32 %v12933_v17, %v22613_v39  ;;  %v22631_v39 = vld [vmem:[#allocation43_spill] sm:$0xff] }
 0x88d   : > { %v13243_v59 = vadd.f32 %v13155_v60, %v12955_v27  ;;  %v13153_v20 = vpop.permute.xlu0 %13152  ;;  %v22614_v60 = vld [vmem:[#allocation104_spill] sm:$0xff] }
 0x88e   : > { %v13242_v56 = vadd.f32 %v13153_v20, %v12954_v19  ;;  %v12935_v29 = vsub.f32 1.0, %v22614_v60  ;;  %v12964_v15 = vmul.f32 %v12932_v24, %v22615_v58  ;;  %v12942_v24 = vsub.f32 1.0, %v22542_v57 }
 0x88f   : > { %13275 = vst.msk [vmem:[%s21447_s24 + $0x38] sm:$0xff] %vm4939_vm7, %v13243_v59  ;;  %v22616_v59 = vld [vmem:[#allocation103_spill] sm:$0xff]  ;;  %v12945_v60 = vsub.f32 1.0, %v22543_v9  ;;  %v12944_v58 = vsub.f32 1.0, %v22544_v5 }
 0x890   : > { %13274 = vst.msk [vmem:[%s21447_s24 + $0x30] sm:$0xff] %vm4939_vm7, %v13242_v56  ;;  %v13159_v50 = vpop.permute.xlu1 %13158  ;;  %v12934_v20 = vsub.f32 1.0, %v22616_v59  ;;  %v12967_v42 = vmul.f32 %v12935_v29, %v22617_v40  ;;  %v22632_v29 = vld [vmem:[#allocation38_spill] sm:$0xff] }
 0x891   : > { %v13245_v36 = vadd.f32 %v13159_v50, %v12957_v12  ;;  %v13157_v62 = vpop.permute.xlu0 %13156  ;;  %v22618_v50 = vld [vmem:[#allocation106_spill] sm:$0xff] }
 0x892   : > { %v13244_v1 = vadd.f32 %v13157_v62, %v12956_v7  ;;  %v12937_v43 = vsub.f32 1.0, %v22618_v50  ;;  %v12966_v21 = vmul.f32 %v12934_v20, %v22619_v32  ;;  %v22633_v20 = vld [vmem:[#allocation49_spill] sm:$0xff] }
 0x893   : > { %13277 = vst.msk [vmem:[%s21447_s24 + $0x48] sm:$0xff] %vm4939_vm7, %v13245_v36  ;;  %v22620_v36 = vld [vmem:[#allocation105_spill] sm:$0xff] }
 0x894   : > { %13276 = vst.msk [vmem:[%s21447_s24 + $0x40] sm:$0xff] %vm4939_vm7, %v13244_v1  ;;  %v13163_v51 = vpop.permute.xlu1 %13162  ;;  %v12936_v62 = vsub.f32 1.0, %v22620_v36  ;;  %v12969_v16 = vmul.f32 %v12937_v43, %v22621_v35 }
 0x895   : > { %v13247_v46 = vadd.f32 %v13163_v51, %v12959_v30  ;;  %v13161_v10 = vpop.permute.xlu0 %13160  ;;  %v22622_v51 = vld [vmem:[#allocation108_spill] sm:$0xff] }
 0x896   : > { %v13246_v4 = vadd.f32 %v13161_v10, %v12958_v3  ;;  %v12939_v11 = vsub.f32 1.0, %v22622_v51  ;;  %v12968_v31 = vmul.f32 %v12936_v62, %v22623_v41 }
 0x897   : > { %13279 = vst.msk [vmem:[%s21447_s24 + $0x58] sm:$0xff] %vm4939_vm7, %v13247_v46  ;;  %v22624_v46 = vld [vmem:[#allocation107_spill] sm:$0xff] }
 0x898   : > { %13278 = vst.msk [vmem:[%s21447_s24 + $0x50] sm:$0xff] %vm4939_vm7, %v13246_v4  ;;  %v13167_v14 = vpop.permute.xlu1 %13166  ;;  %v12938_v10 = vsub.f32 1.0, %v22624_v46  ;;  %v12971_v45 = vmul.f32 %v12939_v11, %v22625_v61 }
 0x899   : > { %v13249_v2 = vadd.f32 %v13167_v14, %v12961_v28  ;;  %v13165_v22 = vpop.permute.xlu0 %13164  ;;  %v22626_v14 = vld [vmem:[#allocation110_spill] sm:$0xff] }
 0x89a   : > { %v13248_v0 = vadd.f32 %v13165_v22, %v12960_v8  ;;  %v12941_v23 = vsub.f32 1.0, %v22626_v14  ;;  %v12970_v6 = vmul.f32 %v12938_v10, %v22627_v63 }
 0x89b   : > { %13281 = vst.msk [vmem:[%s21447_s24 + $0x68] sm:$0xff] %vm4939_vm7, %v13249_v2  ;;  %v22628_v2 = vld [vmem:[#allocation109_spill] sm:$0xff] }
 0x89c   : > { %13280 = vst.msk [vmem:[%s21447_s24 + $0x60] sm:$0xff] %vm4939_vm7, %v13248_v0  ;;  %v13171_v18 = vpop.permute.xlu1 %13170  ;;  %v12940_v22 = vsub.f32 1.0, %v22628_v2  ;;  %v12973_v17 = vmul.f32 %v12941_v23, %v22629_v52 }
 0x89d   : > { %v13251_v33 = vadd.f32 %v13171_v18, %v12963_v38  ;;  %v13169_v44 = vpop.permute.xlu0 %13168  ;;  %v12943_v18 = vsub.f32 1.0, %v22541_v26 }
 0x89e   : > { %v13250_v27 = vadd.f32 %v13169_v44, %v12962_v54  ;;  %v22630_v54 = vld [vmem:[#allocation37_spill] sm:$0xff] }
 0x89f   : > { %13283 = vst.msk [vmem:[%s21447_s24 + $0x78] sm:$0xff] %vm4939_vm7, %v13251_v33  ;;  %v12972_v13 = vmul.f32 %v12940_v22, %v22630_v54 }
 0x8a0   : > { %13282 = vst.msk [vmem:[%s21447_s24 + $0x70] sm:$0xff] %vm4939_vm7, %v13250_v27  ;;  %v13175_v19 = vpop.permute.xlu1 %13174 }
 0x8a1   : > { %v13253_v56 = vadd.f32 %v13175_v19, %v12965_v55  ;;  %v13173_v47 = vpop.permute.xlu0 %13172  ;;  %v12975_v55 = vmul.f32 %v12943_v18, %v22631_v39  ;;  %v12974_v19 = vmul.f32 %v12942_v24, %v22632_v29 }
 0x8a2   : > { %v13252_v12 = vadd.f32 %v13173_v47, %v12964_v15  ;;  %v12947_v47 = vsub.f32 1.0, %v22545_v49  ;;  %v22636_v49 = vld [vmem:[#allocation91_spill] sm:$0xff] }
 0x8a3   : > { %13285 = vst.msk [vmem:[%s21447_s24 + $0x88] sm:$0xff] %vm4939_vm7, %v13253_v56  ;;  %v12977_v56 = vmul.f32 %v12945_v60, %v22633_v20 }
 0x8a4   : > { %13284 = vst.msk [vmem:[%s21447_s24 + $0x80] sm:$0xff] %vm4939_vm7, %v13252_v12  ;;  %v13179_v7 = vpop.permute.xlu1 %13178  ;;  %v22634_v12 = vld [vmem:[#allocation44_spill] sm:$0xff] }
 0x8a5   : > { %v13255_v1 = vadd.f32 %v13179_v7, %v12967_v42  ;;  %v13177_v37 = vpop.permute.xlu0 %13176  ;;  %v12976_v40 = vmul.f32 %v12944_v58, %v22634_v12  ;;  %v12946_v42 = vsub.f32 1.0, %v22546_v25  ;;  %v22635_v7 = vld [vmem:[#allocation98_spill] sm:$0xff] }
 0x8a6   : > { %v13254_v30 = vadd.f32 %v13177_v37, %v12966_v21  ;;  %v12979_v32 = vmul.f32 %v12947_v47, %v22635_v7 }
 0x8a7   : > { %13287 = vst.msk [vmem:[%s21447_s24 + $0x98] sm:$0xff] %vm4939_vm7, %v13255_v1  ;;  %v12978_v36 = vmul.f32 %v12946_v42, %v22636_v49 }
 0x8a8   : > { %13286 = vst.msk [vmem:[%s21447_s24 + $0x90] sm:$0xff] %vm4939_vm7, %v13254_v30  ;;  %v13183_v3 = vpop.permute.xlu1 %13182 }
 0x8a9   : > { %v13257_v4 = vadd.f32 %v13183_v3, %v12969_v16  ;;  %v13181_v48 = vpop.permute.xlu0 %13180 }
 0x8aa   : > { %v13256_v28 = vadd.f32 %v13181_v48, %v12968_v31 }
 0x8ab   : > { %13289 = vst.msk [vmem:[%s21447_s24 + $0xa8] sm:$0xff] %vm4939_vm7, %v13257_v4 }
 0x8ac   : > { %13288 = vst.msk [vmem:[%s21447_s24 + $0xa0] sm:$0xff] %vm4939_vm7, %v13256_v28  ;;  %v13187_v8 = vpop.permute.xlu1 %13186 }
 0x8ad   : > { %v13259_v0 = vadd.f32 %v13187_v8, %v12971_v45  ;;  %v13185_v53 = vpop.permute.xlu0 %13184 }
 0x8ae   : > { %v13258_v38 = vadd.f32 %v13185_v53, %v12970_v6 }
 0x8af   : > { %13291 = vst.msk [vmem:[%s21447_s24 + $0xb8] sm:$0xff] %vm4939_vm7, %v13259_v0 }
 0x8b0   : > { %13290 = vst.msk [vmem:[%s21447_s24 + $0xb0] sm:$0xff] %vm4939_vm7, %v13258_v38  ;;  %v13191_v34 = vpop.permute.xlu1 %13190 }
 0x8b1   : > { %v13261_v33 = vadd.f32 %v13191_v34, %v12973_v17  ;;  %v13189_v44 = vpop.permute.xlu0 %13188 }
 0x8b2   : > { %v13260_v27 = vadd.f32 %v13189_v44, %v12972_v13 }
 0x8b3   : > { %13293 = vst.msk [vmem:[%s21447_s24 + $0xc8] sm:$0xff] %vm4939_vm7, %v13261_v33 }
 0x8b4   : > { %13292 = vst.msk [vmem:[%s21447_s24 + $0xc0] sm:$0xff] %vm4939_vm7, %v13260_v27  ;;  %v13195_v26 = vpop.permute.xlu1 %13194 }
 0x8b5   : > { %v13263_v57 = vadd.f32 %v13195_v26, %v12975_v55  ;;  %v13193_v15 = vpop.permute.xlu0 %13192 }
 0x8b6   : > { %v13262_v59 = vadd.f32 %v13193_v15, %v12974_v19 }
 0x8b7   : > { %13295 = vst.msk [vmem:[%s21447_s24 + $0xd8] sm:$0xff] %vm4939_vm7, %v13263_v57 }
 0x8b8   : > { %13294 = vst.msk [vmem:[%s21447_s24 + $0xd0] sm:$0xff] %vm4939_vm7, %v13262_v59  ;;  %v13199_v9 = vpop.permute.xlu1 %13198 }
 0x8b9   : > { %v13265_v5 = vadd.f32 %v13199_v9, %v12977_v56  ;;  %v13197_v50 = vpop.permute.xlu0 %13196 }
 0x8ba   : > { %v13264_v43 = vadd.f32 %v13197_v50, %v12976_v40 }
 0x8bb   : > { %13297 = vst.msk [vmem:[%s21447_s24 + $0xe8] sm:$0xff] %vm4939_vm7, %v13265_v5 }
 0x8bc   : > { %13296 = vst.msk [vmem:[%s21447_s24 + $0xe0] sm:$0xff] %vm4939_vm7, %v13264_v43  ;;  %v13203_v21 = vpop.permute.xlu1 %13202 }
 0x8bd   : > { %v13267_v62 = vadd.f32 %v13203_v21, %v12979_v32  ;;  %v13201_v1 = vpop.permute.xlu0 %13200 }
 0x8be   : > { %v13266_v37 = vadd.f32 %v13201_v1, %v12978_v36 }
 0x8bf   : > { %13299 = vst.msk [vmem:[%s21447_s24 + $0xf8] sm:$0xff] %vm4939_vm7, %v13267_v62 }
 0x8c0   : > { %13298 = vst.msk [vmem:[%s21447_s24 + $0xf0] sm:$0xff] %vm4939_vm7, %v13266_v37 }
 0x8c1 PF: > { %s18_s27 = sadd.s32 1, %s17570_s27  }
 0x8c2   : > { %p15_p4 = scmp.ge.s32.totalorder %s18_s27, 4  }
 0x8c4   :  { %17 = sbr.rel (!%p15_p4) target bundleno = 1 (0x1), region = 109 }

</bundles_post_ra>
